<compile_context>
chip_gen: v7x
topology: tpu7x:2x2x1
jax: 0.10.0
libtpu: 0.0.40
codegen_flags: <defaults>
</compile_context>

<pallas_src>
import functools

import jax
import jax.numpy as jnp
from jax import lax
from jax.experimental import pallas as pl
from jax.experimental.pallas import tpu as pltpu

_NEG = -1e30      # "minus infinity" for the masked running max
_T_SUB = 128      # in-block time sub-chunk (keeps the (b, D, t) projection small)


# ----------------------------------------------------------------------------
# Fused kernel: block-diagonal pointwise projection over ALL groups + masked
# global max-pool over time, accumulated across time blocks.
#   x_ref     : (b_blk, C_total, t_blk)   NCT-native activations (time in lanes)
#   w_ref     : (D_total, C_total)        block-diagonal encoder weight, pre-transposed
#   valid_ref : (G, t_blk)                f32 flags: 1.0 = time step selected by group g
#   b_ref     : (1, D_total)              concatenated encoder bias (added once at the end)
#   out_ref   : (b_blk, D_total)          running max (output-resident accumulator)
# ----------------------------------------------------------------------------
def _fused_encode_pool_kernel(x_ref, w_ref, valid_ref, b_ref, out_ref, *,
                              d_model, t_sub):
    t = pl.program_id(1)

    @pl.when(t == 0)
    def _init():
        out_ref[...] = jnp.full(out_ref.shape, _NEG, dtype=out_ref.dtype)

    bb = x_ref.shape[0]
    tb = x_ref.shape[2]
    d_total = out_ref.shape[1]

    # Hoisted once per grid step: broadcast the (D, C) weight across the batch block so the
    # projection is a single standard batched matmul (b, M=D, K=C) @ (b, K=C, N=t).
    wT = w_ref[...]
    wTb = jnp.broadcast_to(wT[None], (bb,) + wT.shape)

    red = jnp.full((bb, d_total), _NEG, jnp.float32)
    n_sub = tb // t_sub
    for s in range(n_sub):                       # static unroll; n_sub is small (<= 4-8)
        lo, hi = s * t_sub, (s + 1) * t_sub
        xc = x_ref[:, :, lo:hi]                  # (bb, C, ts)   lane slice, 128-aligned
        vc = valid_ref[:, lo:hi]                 # (G, ts)       f32 selection flags

        # MXU: (bb, D, C) @ (bb, C, ts) -> (bb, D, ts), f32 accumulate.
        proj = jnp.einsum('bdc,bct->bdt', wTb, xc,
                          preferred_element_type=jnp.float32)

        # Expand compact per-group flags to (D, ts) by sublane broadcast (cheap, per-lane).
        segs = []
        for g, dg in enumerate(d_model):
            segs.append(jnp.broadcast_to(vc[g:g + 1, :], (dg, t_sub)))
        vfull = jnp.concatenate(segs, axis=0) if len(segs) > 1 else segs[0]

        masked = jnp.where(vfull[None, :, :] > 0.5, proj, _NEG)
        red = jnp.maximum(red, jnp.max(masked, axis=-1))     # lane reduce over time

    out_ref[...] = jnp.maximum(out_ref[...], red)

    @pl.when(t == pl.num_programs(1) - 1)
    def _finalize():
        out_ref[...] = out_ref[...] + b_ref[...]   # bias is time-invariant -> add once


def fused_encode_pool(x_nct, wT_bd, bias, valid, d_model, *,
                      b_blk=32, t_blk=512, vmem_budget=24 * 2**20):
    """max over selected time steps of (W_blockdiag @ x) + b, all groups fused.

    x_nct  : (B, C_total, T)  NCT layout (as in the PyTorch module) -- NOT transposed.
    wT_bd  : (D_total, C_total) block-diagonal encoder weight, pre-transposed.
    bias   : (D_total,)
    valid  : (G, T) f32 flags, 1.0 where the time step is in group g's index set.
    """
    B, C, T = x_nct.shape
    D = wT_bd.shape[0]
    G = len(d_model)

    # ---- tile selection: lane-dense time blocks, per-generation-safe VMEM budget ----
    if T <= 128:
        t_blk = T                                  # block == full dim (allowed)
    else:
        t_blk = max(128, min((t_blk // 128) * 128, pl.cdiv(T, 128) * 128))
    b_blk = B if B <= b_blk else max(8, (b_blk // 8) * 8)

    itm = jnp.dtype(x_nct.dtype).itemsize

    def _est(bb, tb):
        ts = min(_T_SUB, tb)
        return (2 * bb * C * tb * itm        # x block, double-buffered
                + 2 * G * tb * 4             # valid block
                + 2 * D * C * itm + 2 * D * 4
                + 2 * bb * D * 4             # output accumulator block
                + 3 * bb * D * ts * 4)       # proj / masked / flag intermediates

    while _est(b_blk, t_blk) > vmem_budget and t_blk > 128:
        t_blk = max(128, t_blk - 128)
    while _est(b_blk, t_blk) > vmem_budget and b_blk > 8:
        b_blk = max(8, b_blk // 2)

    nb = pl.cdiv(B, b_blk)
    nt = pl.cdiv(T, t_blk)
    Tp = nt * t_blk
    if valid.shape[1] != Tp:
        # Only the tiny mask is padded; padded (and OOB-read garbage) steps are invalid.
        valid = jnp.pad(valid, ((0, 0), (0, Tp - valid.shape[1])))

    t_sub = min(_T_SUB, t_blk)
    kernel = functools.partial(_fused_encode_pool_kernel,
                               d_model=tuple(int(d) for d in d_model), t_sub=t_sub)

    return pl.pallas_call(
        kernel,
        out_shape=jax.ShapeDtypeStruct((B, D), jnp.float32),
        grid=(nb, nt),                               # (batch blocks, time blocks)
        in_specs=[
            pl.BlockSpec((b_blk, C, t_blk), lambda bi, ti: (bi, 0, ti)),
            pl.BlockSpec((D, C),            lambda bi, ti: (0, 0)),
            pl.BlockSpec((G, t_blk),        lambda bi, ti: (0, ti)),
            pl.BlockSpec((1, D),            lambda bi, ti: (0, 0)),
        ],
        out_specs=pl.BlockSpec((b_blk, D), lambda bi, ti: (bi, 0)),
        compiler_params=pltpu.CompilerParams(
            dimension_semantics=("parallel", "arbitrary"),   # batch -> megacore on v7x
            vmem_limit_bytes=32 * 1024 * 1024,               # safe on v5e/v6e/v7x
        ),
    )(x_nct, wT_bd, valid, bias.reshape(1, D))


# ----------------------------------------------------------------------------
# H3MAE wrapper (parameter setup + tiny glue in plain JAX, hot path in Pallas)
# ----------------------------------------------------------------------------
class H3MAEPallas:
    def __init__(self, ic_per_layer, d_model, num_targets, key,
                 fine_tune=False, compute_dtype=jnp.float32, b_blk=32, t_blk=512):
        self.layer_num = len(ic_per_layer)
        self.ic_per_layer = ic_per_layer
        self.d_model = d_model
        self.fine_tune = fine_tune
        self.compute_dtype = compute_dtype
        self.b_blk = b_blk
        self.t_blk = t_blk
        self.final_dim = sum(d_model)
        c_total = sum(ic_per_layer)

        keys = jax.random.split(key, self.layer_num + 1)
        self.enc_w, self.enc_b = [], []
        for i in range(self.layer_num):
            c, d = ic_per_layer[i], d_model[i]
            w = jax.random.normal(keys[i], (c, d), jnp.float32) / jnp.sqrt(jnp.float32(c))
            self.enc_w.append(w)
            self.enc_b.append(jnp.full((d,), 0.1, jnp.float32))

        # Fused block-diagonal encoder weight, stored PRE-TRANSPOSED (D_total, C_total)
        # for the NCT-native kernel, plus the concatenated bias.
        w_bd = jnp.zeros((c_total, self.final_dim), jnp.float32)
        c_off = d_off = 0
        for i in range(self.layer_num):
            c, d = ic_per_layer[i], d_model[i]
            w_bd = w_bd.at[c_off:c_off + c, d_off:d_off + d].set(self.enc_w[i])
            c_off += c
            d_off += d
        self.wT_bd = jnp.transpose(w_bd)             # (D_total, C_total)
        self.b_all = jnp.concatenate(self.enc_b)

        # predict_head: xavier_normal_ weight, bias = 0.1 (matches _init_weights)
        fan = self.final_dim + num_targets
        self.head_w = jax.random.normal(
            keys[-1], (self.final_dim, num_targets), jnp.float32
        ) * jnp.sqrt(2.0 / fan)
        self.head_b = jnp.full((num_targets,), 0.1, jnp.float32)

    def _build_valid(self, indexes, T):
        """Compact (num_groups, T) f32 table: 1.0 where t is in the group's index set.

        Precondition: every group has a non-empty index set (as in the reference gather)."""
        rows, start = [], 0
        for i in range(self.layer_num):
            idx = jnp.asarray(indexes[start], jnp.int32)
            rows.append(jnp.zeros((T,), jnp.float32).at[idx].set(1.0))
            start += self.ic_per_layer[i]
        return jnp.stack(rows, axis=0)

    def __call__(self, x, indexes):
        # x: [B, sum(ic_per_layer), T_full]  (NCT, like PyTorch) -- consumed NCT-native.
        T = x.shape[2]
        valid = self._build_valid(indexes, T)
        rep = fused_encode_pool(
            x.astype(self.compute_dtype),
            self.wT_bd.astype(self.compute_dtype),
            self.b_all, valid, self.d_model,
            b_blk=self.b_blk, t_blk=self.t_blk,
        )
        if self.fine_tune:
            # Tiny head matmul: left to XLA (a dedicated pallas_call costs more than it).
            return jnp.dot(rep, self.head_w, precision=lax.Precision.HIGHEST) + self.head_b
        return rep

    # pure-JAX reference (literal gather-based path, matches the PyTorch semantics)
    def reference(self, x, indexes):
        start, feats = 0, []
        for i in range(self.layer_num):
            end = start + self.ic_per_layer[i]
            idx = indexes[start]
            x_layer = x[:, start:end, :][:, :, idx]              # [B, C_i, T_i]
            x_btc = jnp.transpose(x_layer, (0, 2, 1))            # [B, T_i, C_i]
            proj = jnp.einsum("btc,cd->btd", x_btc, self.enc_w[i],
                              precision=lax.Precision.HIGHEST) + self.enc_b[i]
            feats.append(jnp.max(proj, axis=1))
            start = end
        all_rep = jnp.concatenate(feats, axis=1)
        if self.fine_tune:
            return jnp.dot(all_rep, self.head_w,
                           precision=lax.Precision.HIGHEST) + self.head_b
        return all_rep


if __name__ == "__main__":
    key = jax.random.PRNGKey(0)
    k_x, k_params = jax.random.split(key)

    # small synthetic config: 2 multi-rate groups, 2 channels each, d_model=[64,64]
    # (sum=128, lane-dense output), 5 targets. B=24 / T=384 with b_blk=16 / t_blk=256
    # exercises multiple batch blocks (megacore axis), multiple time blocks and the
    # ragged batch/time tail handling (no padding of x).
    B, T_full = 24, 384
    ic_per_layer = [2, 2]
    d_model = [64, 64]
    num_targets = 5
    total_c = sum(ic_per_layer)

    x = jax.random.normal(k_x, (B, total_c, T_full), jnp.float32)
    # per-channel time indexes (group 0 full rate, group 1 half rate)
    indexes = [
        jnp.arange(T_full, dtype=jnp.int32),            # channel 0
        jnp.arange(T_full, dtype=jnp.int32),            # channel 1
        jnp.arange(0, T_full, 2, dtype=jnp.int32),      # channel 2
        jnp.arange(0, T_full, 2, dtype=jnp.int32),      # channel 3
    ]

    model = H3MAEPallas(ic_per_layer, d_model, num_targets, k_params,
                        fine_tune=False, b_blk=16, t_blk=256)

    # 1) representation path (fine_tune=False)
    rep = jax.block_until_ready(model(x, indexes))
    rep_ref = model.reference(x, indexes)
    assert rep.shape == (B, sum(d_model))
    assert jnp.allclose(rep, rep_ref, atol=5e-2, rtol=5e-2), \
        float(jnp.max(jnp.abs(rep - rep_ref)))

    # 2) fine_tune path: Linear predict head -> [B, num_targets]
    model.fine_tune = True
    logits = jax.block_until_ready(model(x, indexes))
    logits_ref = model.reference(x, indexes)
    assert logits.shape == (B, num_targets)
    assert jnp.allclose(logits, logits_ref, atol=1e-1, rtol=1e-1)
    model.fine_tune = False

    # 3) bf16 activation/weight storage (halves HBM x traffic on v5e/v6e/v7x), f32 accumulate
    model.compute_dtype = jnp.bfloat16
    rep_bf16 = jax.block_until_ready(model(x, indexes))
    assert rep_bf16.shape == (B, sum(d_model))
    assert jnp.allclose(rep_bf16, rep_ref, atol=2.5e-1, rtol=2.5e-1)

    print("KERNEL_OK")
</pallas_src>

<mosaic_0001>
module attributes {stable_mosaic.version = 11 : i64} {
  func.func @_fused_encode_pool_kernel(%arg0: i32, %arg1: i32, %arg2: memref<16x4x256xf32, #tpu.memory_space<vmem>>, %arg3: memref<128x4xf32, #tpu.memory_space<vmem>>, %arg4: memref<2x256xf32, #tpu.memory_space<vmem>>, %arg5: memref<1x128xf32, #tpu.memory_space<vmem>>, %arg6: memref<16x128xf32, #tpu.memory_space<vmem>>) attributes {dimension_semantics = [#tpu.dimension_semantics<parallel>, #tpu.dimension_semantics<arbitrary>], iteration_bounds = array<i64: 2, 2>, scalar_prefetch = 0 : i64, scratch_operands = 0 : i64, tpu.core_type = #tpu.core_type<tc>, window_params = [{transform_indices = @transform_0, window_bounds = array<i64: 16, 4, 256>}, {pipeline_mode = #tpu.pipeline_mode<synchronous>, transform_indices = @transform_1, window_bounds = array<i64: 128, 4>}, {transform_indices = @transform_2, window_bounds = array<i64: 2, 256>}, {pipeline_mode = #tpu.pipeline_mode<synchronous>, transform_indices = @transform_3, window_bounds = array<i64: 1, 128>}, {transform_indices = @transform_4, window_bounds = array<i64: 16, 128>}]} {
    %c0_i32 = arith.constant 0 : i32
    %0 = arith.cmpi eq, %arg1, %c0_i32 : i32
    %1 = arith.extui %0 : i1 to i32
    %c0_i32_0 = arith.constant 0 : i32
    %2 = arith.cmpi ne, %1, %c0_i32_0 : i32
    scf.if %2 {
      %cst_24 = arith.constant -1.000000e+30 : f32
      %52 = vector.broadcast %cst_24 : f32 to vector<16x128xf32>
      %c0_25 = arith.constant 0 : index
      %c0_26 = arith.constant 0 : index
      %53 = vector.load %arg6[%c0_25, %c0_26] : memref<16x128xf32, #tpu.memory_space<vmem>>, vector<16x128xf32>
      tpu.vector_store %arg6[%c0_25, %c0_26], %52 {strides = array<i32>} : memref<16x128xf32, #tpu.memory_space<vmem>>, vector<16x128xf32>,
    } else {
    }
    %c0 = arith.constant 0 : index
    %c0_1 = arith.constant 0 : index
    %3 = vector.load %arg3[%c0, %c0_1] : memref<128x4xf32, #tpu.memory_space<vmem>>, vector<128x4xf32>
    %4 = vector.shape_cast %3 : vector<128x4xf32> to vector<1x128x4xf32>
    %5 = vector.shape_cast %4 : vector<1x128x4xf32> to vector<1x128x4xf32>
    %6 = vector.broadcast %5 : vector<1x128x4xf32> to vector<16x128x4xf32>
    %cst = arith.constant -1.000000e+30 : f32
    %7 = vector.broadcast %cst : f32 to vector<16x128xf32>
    %c0_2 = arith.constant 0 : index
    %c0_3 = arith.constant 0 : index
    %c0_4 = arith.constant 0 : index
    %8 = vector.load %arg2[%c0_2, %c0_3, %c0_4] : memref<16x4x256xf32, #tpu.memory_space<vmem>>, vector<16x4x128xf32>
    %c0_5 = arith.constant 0 : index
    %c0_6 = arith.constant 0 : index
    %9 = vector.load %arg4[%c0_5, %c0_6] : memref<2x256xf32, #tpu.memory_space<vmem>>, vector<2x128xf32>
    "tpu.trace_start"() <{level = 10 : i32, message = "bdc,bct->bdt"}> : () -> ()
    %cst_7 = arith.constant dense<0.000000e+00> : vector<16x128x128xf32>
    %10 = tpu.matmul %6, %8, %cst_7 {dimension_numbers = #tpu.dot_dimension_numbers<[2], [1], [1], [2], [0, 0, 0, 1, 1, 2], [0], [0]>} : vector<16x128x4xf32>, vector<16x4x128xf32>, vector<16x128x128xf32> -> vector<16x128x128xf32>
    "tpu.trace_stop"() : () -> ()
    %11 = vector.extract_strided_slice %9 {offsets = [0, 0], sizes = [1, 128], strides = [1, 1]} : vector<2x128xf32> to vector<1x128xf32>
    %12 = vector.shape_cast %11 : vector<1x128xf32> to vector<1x128xf32>
    %13 = vector.broadcast %12 : vector<1x128xf32> to vector<64x128xf32>
    %14 = vector.extract_strided_slice %9 {offsets = [1, 0], sizes = [1, 128], strides = [1, 1]} : vector<2x128xf32> to vector<1x128xf32>
    %15 = vector.shape_cast %14 : vector<1x128xf32> to vector<1x128xf32>
    %16 = vector.broadcast %15 : vector<1x128xf32> to vector<64x128xf32>
    %17 = tpu.concatenate %13, %16 in 0 : vector<64x128xf32>, vector<64x128xf32> -> vector<128x128xf32>
    %18 = vector.shape_cast %17 : vector<128x128xf32> to vector<1x128x128xf32>
    %cst_8 = arith.constant 5.000000e-01 : f32
    %19 = vector.broadcast %cst_8 : f32 to vector<1x128x128xf32>
    %20 = arith.cmpf ogt, %18, %19 : vector<1x128x128xf32>
    %cst_9 = arith.constant -1.000000e+30 : f32
    %21 = vector.shape_cast %20 : vector<1x128x128xi1> to vector<1x128x128xi1>
    %22 = vector.broadcast %21 : vector<1x128x128xi1> to vector<16x128x128xi1>
    %23 = vector.broadcast %cst_9 : f32 to vector<16x128x128xf32>
    %24 = arith.select %22, %10, %23 : vector<16x128x128xi1>, vector<16x128x128xf32>
    %cst_10 = arith.constant dense<0xFF800000> : vector<16x128xf32>
    %25 = vector.multi_reduction <maximumf>, %24, %cst_10 [2] : vector<16x128x128xf32> to vector<16x128xf32>
    %26 = arith.maximumf %7, %25 : vector<16x128xf32>
    %c0_11 = arith.constant 0 : index
    %c0_12 = arith.constant 0 : index
    %c128 = arith.constant 128 : index
    %27 = vector.load %arg2[%c0_11, %c0_12, %c128] : memref<16x4x256xf32, #tpu.memory_space<vmem>>, vector<16x4x128xf32>
    %c0_13 = arith.constant 0 : index
    %c128_14 = arith.constant 128 : index
    %28 = vector.load %arg4[%c0_13, %c128_14] : memref<2x256xf32, #tpu.memory_space<vmem>>, vector<2x128xf32>
    "tpu.trace_start"() <{level = 10 : i32, message = "bdc,bct->bdt"}> : () -> ()
    %cst_15 = arith.constant dense<0.000000e+00> : vector<16x128x128xf32>
    %29 = tpu.matmul %6, %27, %cst_15 {dimension_numbers = #tpu.dot_dimension_numbers<[2], [1], [1], [2], [0, 0, 0, 1, 1, 2], [0], [0]>} : vector<16x128x4xf32>, vector<16x4x128xf32>, vector<16x128x128xf32> -> vector<16x128x128xf32>
    "tpu.trace_stop"() : () -> ()
    %30 = vector.extract_strided_slice %28 {offsets = [0, 0], sizes = [1, 128], strides = [1, 1]} : vector<2x128xf32> to vector<1x128xf32>
    %31 = vector.shape_cast %30 : vector<1x128xf32> to vector<1x128xf32>
    %32 = vector.broadcast %31 : vector<1x128xf32> to vector<64x128xf32>
    %33 = vector.extract_strided_slice %28 {offsets = [1, 0], sizes = [1, 128], strides = [1, 1]} : vector<2x128xf32> to vector<1x128xf32>
    %34 = vector.shape_cast %33 : vector<1x128xf32> to vector<1x128xf32>
    %35 = vector.broadcast %34 : vector<1x128xf32> to vector<64x128xf32>
    %36 = tpu.concatenate %32, %35 in 0 : vector<64x128xf32>, vector<64x128xf32> -> vector<128x128xf32>
    %37 = vector.shape_cast %36 : vector<128x128xf32> to vector<1x128x128xf32>
    %cst_16 = arith.constant 5.000000e-01 : f32
    %38 = vector.broadcast %cst_16 : f32 to vector<1x128x128xf32>
    %39 = arith.cmpf ogt, %37, %38 : vector<1x128x128xf32>
    %cst_17 = arith.constant -1.000000e+30 : f32
    %40 = vector.shape_cast %39 : vector<1x128x128xi1> to vector<1x128x128xi1>
    %41 = vector.broadcast %40 : vector<1x128x128xi1> to vector<16x128x128xi1>
    %42 = vector.broadcast %cst_17 : f32 to vector<16x128x128xf32>
    %43 = arith.select %41, %29, %42 : vector<16x128x128xi1>, vector<16x128x128xf32>
    %cst_18 = arith.constant dense<0xFF800000> : vector<16x128xf32>
    %44 = vector.multi_reduction <maximumf>, %43, %cst_18 [2] : vector<16x128x128xf32> to vector<16x128xf32>
    %45 = arith.maximumf %26, %44 : vector<16x128xf32>
    %c0_19 = arith.constant 0 : index
    %c0_20 = arith.constant 0 : index
    %46 = vector.load %arg6[%c0_19, %c0_20] : memref<16x128xf32, #tpu.memory_space<vmem>>, vector<16x128xf32>
    %47 = arith.maximumf %46, %45 : vector<16x128xf32>
    %c0_21 = arith.constant 0 : index
    %c0_22 = arith.constant 0 : index
    %48 = vector.load %arg6[%c0_21, %c0_22] : memref<16x128xf32, #tpu.memory_space<vmem>>, vector<16x128xf32>
    tpu.vector_store %arg6[%c0_21, %c0_22], %47 {strides = array<i32>} : memref<16x128xf32, #tpu.memory_space<vmem>>, vector<16x128xf32>,
    %c1_i32 = arith.constant 1 : i32
    %49 = arith.cmpi eq, %arg1, %c1_i32 : i32
    %50 = arith.extui %49 : i1 to i32
    %c0_i32_23 = arith.constant 0 : i32
    %51 = arith.cmpi ne, %50, %c0_i32_23 : i32
    scf.if %51 {
      %c0_24 = arith.constant 0 : index
      %c0_25 = arith.constant 0 : index
      %52 = vector.load %arg6[%c0_24, %c0_25] : memref<16x128xf32, #tpu.memory_space<vmem>>, vector<16x128xf32>
      %c0_26 = arith.constant 0 : index
      %c0_27 = arith.constant 0 : index
      %53 = vector.load %arg5[%c0_26, %c0_27] : memref<1x128xf32, #tpu.memory_space<vmem>>, vector<1x128xf32>
      %54 = vector.broadcast %53 : vector<1x128xf32> to vector<16x128xf32>
      %55 = arith.addf %52, %54 : vector<16x128xf32>
      %c0_28 = arith.constant 0 : index
      %c0_29 = arith.constant 0 : index
      %56 = vector.load %arg6[%c0_28, %c0_29] : memref<16x128xf32, #tpu.memory_space<vmem>>, vector<16x128xf32>
      tpu.vector_store %arg6[%c0_28, %c0_29], %55 {strides = array<i32>} : memref<16x128xf32, #tpu.memory_space<vmem>>, vector<16x128xf32>,
    } else {
    }
    return
  }
  func.func @transform_0(%arg0: i32, %arg1: i32) -> (i32, i32, i32) {
    %c0_i32 = arith.constant 0 : i32
    %c0_i32_0 = arith.constant 0 : i32
    return %arg0, %c0_i32, %arg1 : i32, i32, i32
  }
  func.func @transform_1(%arg0: i32, %arg1: i32) -> (i32, i32) {
    %c0_i32 = arith.constant 0 : i32
    %c0_i32_0 = arith.constant 0 : i32
    %c0_i32_1 = arith.constant 0 : i32
    return %c0_i32, %c0_i32_0 : i32, i32
  }
  func.func @transform_2(%arg0: i32, %arg1: i32) -> (i32, i32) {
    %c0_i32 = arith.constant 0 : i32
    %c0_i32_0 = arith.constant 0 : i32
    return %c0_i32, %arg1 : i32, i32
  }
  func.func @transform_3(%arg0: i32, %arg1: i32) -> (i32, i32) {
    %c0_i32 = arith.constant 0 : i32
    %c0_i32_0 = arith.constant 0 : i32
    %c0_i32_1 = arith.constant 0 : i32
    return %c0_i32, %c0_i32_0 : i32, i32
  }
  func.func @transform_4(%arg0: i32, %arg1: i32) -> (i32, i32) {
    %c0_i32 = arith.constant 0 : i32
    %c0_i32_0 = arith.constant 0 : i32
    return %arg0, %c0_i32 : i32, i32
  }
}

</mosaic_0001>

<bundles_post_ra>
// kernel: tpu_custom_call.1
= control target key start
LH: loop header
LB: loop body
LE: loop exit
PB: predicated region body
PF: predicated region fallthrough
CT: control target
= control target key end

     0   :  { %9 = vsyncpa [#allocation3], 0  ;;  %s16821_s0 = inlined_call_operand.hbm [shape: f32[24,4,384], index: 0, kind: input, shape index: {}]   ;;  %s16822_s1 = inlined_call_operand.vmem [shape: f32[128,4], index: 1, kind: input, shape index: {}]   ;;  %s16823_s2 = inlined_call_operand.vmem [shape: f32[2,512], index: 2, kind: input, shape index: {}]   ;;  %s16824_s3 = inlined_call_operand.vmem [shape: f32[1,128], index: 3, kind: input, shape index: {}]   ;;  %s16825_s4 = inlined_call_operand.hbm [shape: f32[24,128], index: 4, kind: output, shape index: {}]  }
   0x1   :  { %11 = vsyncpa [#allocation3 + $0x1], 0 }
   0x2   :  { %12 = vsyncpa [#allocation4], 0 }
   0x3   :  { %14 = vsyncpa [#allocation4 + $0x1], 0  ;;  %s11199_s15 = smov 0   ;;  %s11201_s16 = smov 0  }
   0x4   :  { %s11203_s17 = smov 0   ;;  %s11205_s18 = smov 0  }
   0x5   :  { %s11207_s19 = smov 0   ;;  %s11209_s20 = smov 0  }
   0x6   :  { %s11211_s21 = smov 0   ;;  %s11213_s22 = smov 0  }
   0x7   :  { %s11215_s23 = smov 0   ;;  %s11217_s24 = smov 0  }
   0x8   :  { %s11219_s25 = smov 0  }
   0x9 LB: > { %16850 = sst [smem:[#allocation8_spill]] %s11133_s17  ;;  %s8916_s26 = sadd.s32 4294967295, %s11165_s25   ;;  %s11165_s25 = sphi %s11219_s25, %s20_s25   ;;  %s11161_s24 = sphi %s11217_s24, %s17846_s24   ;;  %s11157_s23 = sphi %s11215_s23, %s17851_s23   ;;  %s11153_s22 = sphi %s11213_s22, %s17844_s22   ;;  %s11149_s21 = sphi %s11211_s21, %s17843_s21   ;;  %s11145_s20 = sphi %s11209_s20, %s17842_s20   ;;  %s11141_s19 = sphi %s11207_s19, %s17850_s19   ;;  %s11137_s18 = sphi %s11205_s18, %s17849_s18   ;;  %s11133_s17 = sphi %s11203_s17, %s17840_s17   ;;  %s11129_s16 = sphi %s11201_s16, %s17848_s16   ;;  %s11125_s15 = sphi %s11199_s15, %s17847_s15  }
   0xa   : > { %16851 = sst [smem:[#allocation9_spill]] %s11145_s20  ;;  %s8917_s27 = sadd.s32 4294967294, %s11165_s25  }
   0xb   : > { %16852 = sst [smem:[#allocation10_spill]] %s11157_s23  ;;  %s29_s28 = sadd.s32 1, %s11157_s23 }
   0xc   : > { %16853 = sst [smem:[#allocation11_spill]] %s11161_s24  ;;  %s32_s29 = sadd.s32 1, %s11161_s24 }
   0xd   : > { %p30_p0 = scmp.ge.s32.totalorder %s29_s28, 2  ;;  %s41_s30 = sadd.s32 1, %s11145_s20 }
   0xe   : > { %p48_p1 = scmp.ne.s32.totalorder %s11145_s20, %s11141_s19  ;;  %p49_p2 = scmp.eq.s32.totalorder %s11165_s25, 0 }
   0xf   : > { %s17853_s28 = smov (%p30_p0, %s29_s28), 0  ;;  %s17855_s29 = smov (!%p30_p0, %s32_s29), %s11161_s24 }
  0x10   : > { %16854 = sst [smem:[#allocation12_spill]] %s17853_s28  ;;  %s37_s5 = ssub.s32 %s11157_s23, %s17853_s28 }
  0x11   : > { %p11265_p3 = por %p49_p2, %p48_p1  ;;  %p34_p4 = scmp.ge.s32.totalorder %s17855_s29, 2 }
  0x12   : > { %p54_p5 = scmp.ne.s32.totalorder %s11141_s19, %s11137_s18  ;;  %p55_p6 = scmp.eq.s32.totalorder %s8916_s26, 0 }
  0x13   : > { %s135_s7 = sadd.s32 1, %s11133_s17  ;;  %s17857_s29 = smov (%p34_p4, %s17855_s29), 0 }
  0x14   : > { %16856 = sst [smem:[#allocation13_spill]] %s17857_s29  ;;  %p11273_p7 = por %p55_p6, %p54_p5 }
  0x15   : > { %p145_p8 = scmp.ne.s32.totalorder %s11133_s17, %s11129_s16  ;;  %s36_s9 = ssub.s32 %s11161_s24, %s17857_s29 }
  0x16   : > { %p146_p9 = scmp.eq.s32.totalorder %s8916_s26, 3  ;;  %s38_s10 = sor.u32 %s37_s5, %s36_s9 }
  0x17   : > { %p133_p10 = scmp.eq.s32.totalorder %s36_s9, 0  ;;  %p39_p11 = scmp.eq.s32.totalorder %s38_s10, 0 }
  0x18   : > { %p11281_p12 = por %p146_p9, %p145_p8  ;;  %p151_p13 = scmp.ne.s32.totalorder %s11129_s16, %s11125_s15 }
  0x19   : > { %s11286_s12 = scalar_select %p133_p10, %s11133_s17, %s135_s7  }
  0x1a   : > { %s11289_s13 = scalar_select %p39_p11, %s11145_s20, %s41_s30  }
  0x1b   : > { %16859 = sst [smem:[#allocation14_spill]] %s11286_s12  ;;  %p152_p0 = scmp.eq.s32.totalorder %s8917_s27, 3 }
  0x1c   : > { %16860 = sst [smem:[#allocation15_spill]] %s11289_s13  ;;  %p8919_p2 = scmp.ge.s32.totalorder %s11165_s25, 4 }
  0x1d   : > { %p11293_p1 = por %p152_p0, %p151_p13 }
  0x1e   : > { %174 = sbr.rel (%p8919_p2) target bundleno = 76 (0x4c), region = 24 }
  0x1f   : > { %s16861_s14 = scalar_select %p11293_p1, 1, 0 }
  0x25   : > { %177 = sbr.rel (!%p11265_p3) target bundleno = 76 (0x4c), region = 28  ;;  %s178_s18 = sand.u32 (%p11265_p3), 1, %s11145_s20  }
  0x26   : > { %s8921_s26 = sshll.u32 (%p11265_p3), %s11161_s24, 4  ;;  %s8920_s5 = sshll.u32 (%p11265_p3), %s178_s18, 7 }
  0x27   : > { %s8922_s30 = sshll.u32 (%p11265_p3), %s11157_s23, 1  ;;  %s185_s7 = ssub.s32 (%p11265_p3), 24, %s8921_s26 }
  0x28   : > { %s189_s9 = ssub.s32 (%p11265_p3), 3, %s8922_s30  ;;  %p186_p4 = scmp.lt.s32.totalorder (%p11265_p3), %s185_s7, 16 }
  0x29   : > { %p190_p5 = scmp.lt.s32.totalorder (%p11265_p3), %s189_s9, 2  ;;  %s11309_s29 = scalar_lea.sflag (%p11265_p3), [#allocation3], %s178_s18 }
  0x2a   : > { %s182_s28 = scalar_lea.vmem (%p11265_p3), [#allocation2], %s8920_s5 }
  0x2c   : > { %s17859_s7 = smov (!%p186_p4, %s185_s7), 16  ;;  %s17861_s9 = smov (!%p190_p5, %s189_s9), 2 }
  0x2d   : > { %s8923_s27 = sshll.u32 %s17859_s7, 6 }
  0x2e   : > { %s11306_s10 = smul.u32 %s8923_s27, %s17861_s9 }
  0x30   : > { %s194_s6 = ssub.s32 2048, %s11306_s10 }
  0x31   : > { %195 = vsyncadd %s11309_s29, %s194_s6  ;;  %p8924_p3 = scmp.ne.s32.totalorder %s11306_s10, 0  ;;  %s10866_s26 = smul.u32 48, %s11161_s24 }
  0x32   : > { %s8927_s23 = sshll.u32 %s17861_s9, 2  ;;  %s203_s13 = sshll.u32 %s182_s28, 4  ;;  %s11317_s13 = int_to_ptr.vmem [resolvable:$true] %s203_s13 }
  0x33   : > { %s198_s20 = sadd.s32 %s10866_s26, %s8922_s30  ;;  %s202_s27 = smul.u32 %s8927_s23, %s17859_s7 }
  0x34   : > { %s8926_s12 = sshll.u32 %s198_s20, 6  ;;  %s11019_s30 = scalar_lea.hbm %s16821_s0, 4608 }
  0x35   : > { %s11322_s5 = scalar_lea.hbm %s16821_s0, %s8926_s12  ;;  %s11324_s6 = sshll.u32 %s202_s27, 4 }
  0x36   : > { %s11015_s24 = scalar_lea.hbm %s11322_s5, %s11324_s6  ;;  %p11020_p10 = scmp.lt.u32.totalorder %s11322_s5, %s16821_s0 }
  0x37   : > { %p11016_p6 = scmp.ne.s32.totalorder %s11322_s5, %s11015_s24  ;;  %p11021_p11 = scmp.lt.u32.totalorder %s11019_s30, %s11015_s24 }
  0x38   : > { %p11023_p0 = scmp.lt.u32.totalorder %s11015_s24, %s11322_s5 }
  0x39   : > { %p11017_p8 = pnand %p11016_p6, %p8924_p3  ;;  %p11022_p13 = por %p11021_p11, %p11020_p10 }
  0x3b   : > { %p11018_p9 = pneg %p11017_p8  ;;  %p11024_p2 = por %p11023_p0, %p11022_p13 }
  0x3d   : > { %p11025_p4 = pnand %p11024_p2, %p11018_p9 }
  0x3f   : > { %11028 = shalt.err (!%p11025_p4)
}
  0x40   : > { %s11029_s12 = scalar_lea.vmem %s11317_s13, %s11324_s6  ;;  %s11167_s26 = smov [#allocation2]  }
  0x41   : > { %p11030_p5 = scmp.ne.s32.totalorder %s11317_s13, %s11029_s12  ;;  %s11033_s27 = sshll.u32 %s11167_s26, 4  ;;  %s11034_s27 = int_to_ptr.vmem [resolvable:$false] %s11033_s27 }
  0x42   : > { %s11035_s18 = scalar_lea.vmem %s11034_s27, 4096  ;;  %p11036_p1 = scmp.lt.s32.totalorder %s11317_s13, %s11034_s27 }
  0x43   : > { %p11031_p6 = pnand %p11030_p5, %p8924_p3  ;;  %p11037_p10 = scmp.lt.s32.totalorder %s11035_s18, %s11029_s12 }
  0x45   : > { %p11032_p8 = pneg %p11031_p6  ;;  %p11038_p11 = por %p11037_p10, %p11036_p1 }
  0x47   : > { %p11039_p13 = pnand %p11038_p11, %p11032_p8 }
  0x49   : > { %11042 = shalt.err (!%p11039_p13)
}
  0x4a   : > { %s11168_s24 = smov 192   ;;  %s11169_s20 = smov 128  }
  0x4b   : > { %209 = dma.hbm_to_vmem [thread:$0]  (%p8924_p3), %s11322_s5, %s11324_s6, %s11317_s13, %s11309_s29, %s11168_s24, %s11169_s20, %s8927_s23  }
  0x4c PF: > { %p8928_p9 = scmp.ge.s32.totalorder %s11165_s25, 1  ;;  %p220_p0 = scmp.lt.s32.totalorder %s11165_s25, 5 }
  0x4e   : > { %p221_p1 = pnand %p8928_p9, %p220_p0 }
  0x50   : > { %224 = sbr.rel (%p221_p1) target bundleno = 1536 (0x600), region = 36 }
  0x57   : > { %s226_s28 = sand.u32 1, %s11141_s19  }
  0x58   : > { %s8929_s30 = sshll.u32 %s226_s28, 7  ;;  %s227_s7 = scalar_lea.sflag [#allocation3], %s226_s28 }
  0x59   : > { %s11356_s17 = scalar_lea.vmem [#allocation2], %s8929_s30 }
  0x5a   : > { %11116 = dma.done.wait (%p11273_p7), %s227_s7, 2048  }
  0x5b   : > { %11118 = vsyncadd (%p11273_p7), %s227_s7, 4294965248  ;;  %s257_s23 = sand.u32 1, %s11129_s16   ;;  %s8931_s29 = sshll.u32 %s11149_s21, 1 }
  0x5c   : > { %s8930_s13 = sshll.u32 %s257_s23, 4  ;;  %p271_p3 = scmp.lt.s32.totalorder %s8931_s29, 3 }
  0x5d   : > { %s11371_s12 = scalar_lea.vmem [#allocation5], %s8930_s13  ;;  %p8933_p2 = scmp.ne.s32.totalorder %s11149_s21, 0 }
  0x5e   : > { %s17863_s29 = smov (!%p271_p3, %s8931_s29), 3  ;;  %v11170_v0 = vmov (!%p8933_p2), -1e+30  }
  0x5f   : > { %s8932_s9 = sshll.u32 %s17863_s29, 1  ;;  %284 = sbr.rel (%p8933_p2) target bundleno = 102 (0x66), region = 44  ;;  %285 = vst [vmem:[%s11371_s12] sm:$0xff] (!%p8933_p2), %v11170_v0  ;;  %286 = vst [vmem:[%s11371_s12 + $0x8] sm:$0xff] (!%p8933_p2), %v11170_v0 }
  0x60   : > { %s11369_s6 = scalar_lea.vmem %s16823_s2, %s8932_s9 }
  0x66 PF: > { %v303_v1 = vld [vmem:[%s11356_s17] sm:$0xf]  ;;  %vm369_vm0 = vcmask 1043456   ;;  %v304_v2 = vld [vmem:[%s11356_s17 + $0x8] sm:$0xf]  ;;  %vm320_vm1 = vcmask 31744   ;;  %v16832_v29 = vlaneseq }
  0x67   : > { %v11381_v3 = vld [vmem:[%s16822_s1] sm:$0xff]  ;;  %10034 = vmatprep.subr.msk.mxu0 %vm369_vm0, %v303_v1  ;;  %10060 = vmatprep.subr.msk.mxu1 %vm369_vm0, %v304_v2  ;;  %v11388_v4 = vld [vmem:[%s16822_s1 + $0x8] sm:$0xff]  ;;  %v11396_v5 = vld [vmem:[%s16822_s1 + $0x10] sm:$0xff]  ;;  %vm7468_vm6 = vcmask 130112   ;;  %vm7475_vm7 = vcmask 195712   ;;  %vm7482_vm8 = vcmask 261312  }
  0x68   : > { %10035 = vmatpush3.msk.msra.mxu0 %vm369_vm0, %v303_v1  ;;  %10036 = vmatprep.mubr.msk.f32.mxu0 %vm320_vm1, %v11381_v3  ;;  %v305_v6 = vld [vmem:[%s11356_s17 + $0x10] sm:$0xf]  ;;  %v306_v7 = vld [vmem:[%s11356_s17 + $0x18] sm:$0xf]  ;;  %v11419_v9 = vld [vmem:[%s16822_s1 + $0x20] sm:$0xff]  ;;  %v11881_v30 = vshrl.u32 %v16832_v29, 7 }
  0x69   : > { %10061 = vmatpush3.msk.msra.mxu1 %vm369_vm0, %v304_v2  ;;  %10062 = vmatprep.mubr.msk.f32.mxu1 %vm320_vm1, %v11381_v3  ;;  %v11412_v8 = vld [vmem:[%s16822_s1 + $0x18] sm:$0xff]  ;;  %v307_v10 = vld [vmem:[%s11356_s17 + $0x20] sm:$0xf]  ;;  %v308_v11 = vld [vmem:[%s11356_s17 + $0x28] sm:$0xf]  ;;  %vm7489_vm9 = vcmask 326912  }
  0x6a   : > { %10037 = vmatmul.mubr.msk.f32.vlgmr.msra.gmra.mrb[0].mxu0 %vm320_vm1, %v11388_v4  ;;  %10063 = vmatmul.mubr.msk.f32.vlgmr.msra.gmra.mrb[0].mxu1 %vm320_vm1, %v11388_v4  ;;  %v11436_v12 = vld [vmem:[%s16822_s1 + $0x28] sm:$0xff]  ;;  %v11443_v13 = vld [vmem:[%s16822_s1 + $0x30] sm:$0xff]  ;;  %v11456_v14 = vld [vmem:[%s16822_s1 + $0x38] sm:$0xff]  ;;  %16862 = vst [vmem:[#allocation16_spill] sm:$0xff] %v11881_v30  ;;  %v16834_v31 = vsub.s32 0, %v11881_v30  ;;  %vm7496_vm10 = vcmask 392512  }
  0x6b   : > { %10039 = vmatprep.mubr.msk.f32.mxu0 %vm320_vm1, %v11396_v5  ;;  %10065 = vmatprep.mubr.msk.f32.mxu1 %vm320_vm1, %v11396_v5  ;;  %v11463_v15 = vld [vmem:[%s16822_s1 + $0x40] sm:$0xff]  ;;  %v11474_v16 = vld [vmem:[%s16822_s1 + $0x48] sm:$0xff]  ;;  %v11481_v17 = vld [vmem:[%s16822_s1 + $0x50] sm:$0xff]  ;;  %vm7503_vm11 = vcmask 458112   ;;  %vm7510_vm12 = vcmask 523712   ;;  %vm7517_vm13 = vcmask 589312  }
  0x6c   : > { %10086 = vmatprep.subr.msk.mxu0 %vm369_vm0, %v305_v6  ;;  %10112 = vmatprep.subr.msk.mxu1 %vm369_vm0, %v306_v7  ;;  %v11492_v18 = vld [vmem:[%s16822_s1 + $0x58] sm:$0xff]  ;;  %v11499_v19 = vld [vmem:[%s16822_s1 + $0x60] sm:$0xff]  ;;  %v11510_v20 = vld [vmem:[%s16822_s1 + $0x68] sm:$0xff]  ;;  %vm16842_vm14 = vcmask 654912   ;;  %vm7531_vm15 = vcmask 720512   ;;  %p9478_p7 = scmp.ne.s32.totalorder %s11149_s21, 1 }
  0x6d   : > { %10087 = vmatpush3.msk.msra.mxu0 %vm369_vm0, %v305_v6  ;;  %10113 = vmatpush3.msk.msra.mxu1 %vm369_vm0, %v306_v7  ;;  %v11517_v21 = vld [vmem:[%s16822_s1 + $0x70] sm:$0xff]  ;;  %v11528_v22 = vld [vmem:[%s16822_s1 + $0x78] sm:$0xff]  ;;  %v311_v25 = vld [vmem:[%s11356_s17 + $0x40] sm:$0xf]  ;;  %v16833_v7 = vsub.s32 1, %v11881_v30 }
  0x6e   : > { %10040 = vmatmul.mubr.msk.f32.gmra.mrb[2].mxu0 %vm320_vm1, %v11412_v8  ;;  %10066 = vmatmul.mubr.msk.f32.gmra.mrb[2].mxu1 %vm320_vm1, %v11412_v8  ;;  %v309_v23 = vld [vmem:[%s11356_s17 + $0x30] sm:$0xf]  ;;  %v310_v24 = vld [vmem:[%s11356_s17 + $0x38] sm:$0xf]  ;;  %v312_v26 = vld [vmem:[%s11356_s17 + $0x48] sm:$0xf] }
  0x6f   : > { %10042 = vmatprep.mubr.msk.f32.mxu0 %vm320_vm1, %v11419_v9  ;;  %10068 = vmatprep.mubr.msk.f32.mxu1 %vm320_vm1, %v11419_v9  ;;  %v313_v27 = vld [vmem:[%s11356_s17 + $0x50] sm:$0xf]  ;;  %v314_v28 = vld [vmem:[%s11356_s17 + $0x58] sm:$0xf]  ;;  %v11885_v32 = vld [vmem:[%s11369_s6] sm:$0x3] }
  0x70   : > { %10138 = vmatprep.subr.msk.mxu0 %vm369_vm0, %v307_v10  ;;  %10164 = vmatprep.subr.msk.mxu1 %vm369_vm0, %v308_v11  ;;  %v11890_v33 = vrot.slane %v11885_v32, %v16834_v31  ;;  %v315_v52 = vld [vmem:[%s11356_s17 + $0x60] sm:$0xf]  ;;  %v316_v59 = vld [vmem:[%s11356_s17 + $0x68] sm:$0xf] }
  0x72   : > { %10043 = vmatmul.mubr.msk.f32.gmra.mrb[4].mxu0 %vm320_vm1, %v11436_v12  ;;  %10069 = vmatmul.mubr.msk.f32.gmra.mrb[4].mxu1 %vm320_vm1, %v11436_v12  ;;  %vm2746_vm2 = vcmp.gt.f32.partialorder %v11890_v33, 0.5 }
  0x73   : > { %10045 = vmatprep.mubr.msk.f32.mxu0 %vm320_vm1, %v11443_v13  ;;  %10071 = vmatprep.mubr.msk.f32.mxu1 %vm320_vm1, %v11443_v13 }
  0x76   : > { %10046 = vmatmul.mubr.msk.f32.gmra.mrb[6].mxu0 %vm320_vm1, %v11456_v14  ;;  %10072 = vmatmul.mubr.msk.f32.gmra.mrb[6].mxu1 %vm320_vm1, %v11456_v14 }
  0x77   : > { %10048 = vmatprep.mubr.msk.f32.mxu0 %vm320_vm1, %v11463_v15  ;;  %10074 = vmatprep.mubr.msk.f32.mxu1 %vm320_vm1, %v11463_v15 }
  0x7a   : > { %10049 = vmatmul.mubr.msk.f32.gmra.mrb[8].mxu0 %vm320_vm1, %v11474_v16  ;;  %10075 = vmatmul.mubr.msk.f32.gmra.mrb[8].mxu1 %vm320_vm1, %v11474_v16 }
  0x7b   : > { %10051 = vmatprep.mubr.msk.f32.mxu0 %vm320_vm1, %v11481_v17  ;;  %10077 = vmatprep.mubr.msk.f32.mxu1 %vm320_vm1, %v11481_v17 }
  0x7e   : > { %10052 = vmatmul.mubr.msk.f32.gmra.mrb[10].mxu0 %vm320_vm1, %v11492_v18  ;;  %10078 = vmatmul.mubr.msk.f32.gmra.mrb[10].mxu1 %vm320_vm1, %v11492_v18 }
  0x7f   : > { %10054 = vmatprep.mubr.msk.f32.mxu0 %vm320_vm1, %v11499_v19  ;;  %10080 = vmatprep.mubr.msk.f32.mxu1 %vm320_vm1, %v11499_v19 }
  0x82   : > { %10055 = vmatmul.mubr.msk.f32.gmra.mrb[12].mxu0 %vm320_vm1, %v11510_v20  ;;  %10081 = vmatmul.mubr.msk.f32.gmra.mrb[12].mxu1 %vm320_vm1, %v11510_v20 }
  0x83   : > { %10057 = vmatprep.mubr.msk.f32.mxu0 %vm320_vm1, %v11517_v21  ;;  %10083 = vmatprep.mubr.msk.f32.mxu1 %vm320_vm1, %v11517_v21 }
  0x86   : > { %10058 = vmatmul.mubr.msk.f32.gmra.mrb[14].mxu0 %vm320_vm1, %v11528_v22  ;;  %10084 = vmatmul.mubr.msk.f32.gmra.mrb[14].mxu1 %vm320_vm1, %v11528_v22 }
  0x87   : > { %10088 = vmatprep.mubr.msk.f32.mxu0 %vm320_vm1, %v11381_v3  ;;  %10114 = vmatprep.mubr.msk.f32.mxu1 %vm320_vm1, %v11381_v3 }
  0x8a   : > { %10089 = vmatmul.mubr.msk.f32.vlgmr.msra.gmra.mrb[16].mxu0 %vm320_vm1, %v11388_v4  ;;  %10115 = vmatmul.mubr.msk.f32.vlgmr.msra.gmra.mrb[16].mxu1 %vm320_vm1, %v11388_v4 }
  0x8b   : > { %10091 = vmatprep.mubr.msk.f32.mxu0 %vm320_vm1, %v11396_v5  ;;  %10117 = vmatprep.mubr.msk.f32.mxu1 %vm320_vm1, %v11396_v5 }
  0x8c   : > { %10139 = vmatpush3.msk.msra.mxu0 %vm369_vm0, %v307_v10  ;;  %10165 = vmatpush3.msk.msra.mxu1 %vm369_vm0, %v308_v11 }
  0x8d   : > { %10190 = vmatprep.subr.msk.mxu0 %vm369_vm0, %v309_v23  ;;  %10216 = vmatprep.subr.msk.mxu1 %vm369_vm0, %v310_v24 }
  0x8e   : > { %10092 = vmatmul.mubr.msk.f32.gmra.mrb[18].mxu0 %vm320_vm1, %v11412_v8  ;;  %10118 = vmatmul.mubr.msk.f32.gmra.mrb[18].mxu1 %vm320_vm1, %v11412_v8 }
  0x8f   : > { %10094 = vmatprep.mubr.msk.f32.mxu0 %vm320_vm1, %v11419_v9  ;;  %10120 = vmatprep.mubr.msk.f32.mxu1 %vm320_vm1, %v11419_v9 }
  0x92   : > { %10095 = vmatmul.mubr.msk.f32.gmra.mrb[20].mxu0 %vm320_vm1, %v11436_v12  ;;  %10121 = vmatmul.mubr.msk.f32.gmra.mrb[20].mxu1 %vm320_vm1, %v11436_v12 }
  0x93   : > { %10097 = vmatprep.mubr.msk.f32.mxu0 %vm320_vm1, %v11443_v13  ;;  %10123 = vmatprep.mubr.msk.f32.mxu1 %vm320_vm1, %v11443_v13 }
  0x96   : > { %10098 = vmatmul.mubr.msk.f32.gmra.mrb[22].mxu0 %vm320_vm1, %v11456_v14  ;;  %10124 = vmatmul.mubr.msk.f32.gmra.mrb[22].mxu1 %vm320_vm1, %v11456_v14 }
  0x97   : > { %10100 = vmatprep.mubr.msk.f32.mxu0 %vm320_vm1, %v11463_v15  ;;  %10126 = vmatprep.mubr.msk.f32.mxu1 %vm320_vm1, %v11463_v15 }
  0x9a   : > { %10101 = vmatmul.mubr.msk.f32.gmra.mrb[24].mxu0 %vm320_vm1, %v11474_v16  ;;  %10127 = vmatmul.mubr.msk.f32.gmra.mrb[24].mxu1 %vm320_vm1, %v11474_v16 }
  0x9b   : > { %10103 = vmatprep.mubr.msk.f32.mxu0 %vm320_vm1, %v11481_v17  ;;  %10129 = vmatprep.mubr.msk.f32.mxu1 %vm320_vm1, %v11481_v17 }
  0x9e   : > { %10104 = vmatmul.mubr.msk.f32.gmra.mrb[26].mxu0 %vm320_vm1, %v11492_v18  ;;  %10130 = vmatmul.mubr.msk.f32.gmra.mrb[26].mxu1 %vm320_vm1, %v11492_v18 }
  0x9f   : > { %10106 = vmatprep.mubr.msk.f32.mxu0 %vm320_vm1, %v11499_v19  ;;  %10132 = vmatprep.mubr.msk.f32.mxu1 %vm320_vm1, %v11499_v19 }
  0xa2   : > { %10107 = vmatmul.mubr.msk.f32.gmra.mrb[28].mxu0 %vm320_vm1, %v11510_v20  ;;  %10133 = vmatmul.mubr.msk.f32.gmra.mrb[28].mxu1 %vm320_vm1, %v11510_v20 }
  0xa3   : > { %10109 = vmatprep.mubr.msk.f32.mxu0 %vm320_vm1, %v11517_v21  ;;  %10135 = vmatprep.mubr.msk.f32.mxu1 %vm320_vm1, %v11517_v21 }
  0xa6   : > { %10110 = vmatmul.mubr.msk.f32.gmra.mrb[30].mxu0 %vm320_vm1, %v11528_v22  ;;  %10136 = vmatmul.mubr.msk.f32.gmra.mrb[30].mxu1 %vm320_vm1, %v11528_v22 }
  0xa7   : > { %10140 = vmatprep.mubr.msk.f32.mxu0 %vm320_vm1, %v11381_v3  ;;  %10166 = vmatprep.mubr.msk.f32.mxu1 %vm320_vm1, %v11381_v3 }
  0xaa   : > { %10141 = vmatmul.mubr.msk.f32.vlgmr.msra.gmra.mrb[32].mxu0 %vm320_vm1, %v11388_v4  ;;  %10167 = vmatmul.mubr.msk.f32.vlgmr.msra.gmra.mrb[32].mxu1 %vm320_vm1, %v11388_v4 }
  0xab   : > { %10143 = vmatprep.mubr.msk.f32.mxu0 %vm320_vm1, %v11396_v5  ;;  %10169 = vmatprep.mubr.msk.f32.mxu1 %vm320_vm1, %v11396_v5 }
  0xac   : > { %10191 = vmatpush3.msk.msra.mxu0 %vm369_vm0, %v309_v23  ;;  %10217 = vmatpush3.msk.msra.mxu1 %vm369_vm0, %v310_v24 }
  0xad   : > { %10242 = vmatprep.subr.msk.mxu0 %vm369_vm0, %v311_v25  ;;  %10268 = vmatprep.subr.msk.mxu1 %vm369_vm0, %v312_v26 }
  0xae   : > { %10144 = vmatmul.mubr.msk.f32.gmra.mrb[34].mxu0 %vm320_vm1, %v11412_v8  ;;  %10170 = vmatmul.mubr.msk.f32.gmra.mrb[34].mxu1 %vm320_vm1, %v11412_v8 }
  0xaf   : > { %10146 = vmatprep.mubr.msk.f32.mxu0 %vm320_vm1, %v11419_v9  ;;  %10172 = vmatprep.mubr.msk.f32.mxu1 %vm320_vm1, %v11419_v9 }
  0xb2   : > { %10147 = vmatmul.mubr.msk.f32.gmra.mrb[36].mxu0 %vm320_vm1, %v11436_v12  ;;  %10173 = vmatmul.mubr.msk.f32.gmra.mrb[36].mxu1 %vm320_vm1, %v11436_v12 }
  0xb3   : > { %10149 = vmatprep.mubr.msk.f32.mxu0 %vm320_vm1, %v11443_v13  ;;  %10175 = vmatprep.mubr.msk.f32.mxu1 %vm320_vm1, %v11443_v13 }
  0xb6   : > { %10150 = vmatmul.mubr.msk.f32.gmra.mrb[38].mxu0 %vm320_vm1, %v11456_v14  ;;  %10176 = vmatmul.mubr.msk.f32.gmra.mrb[38].mxu1 %vm320_vm1, %v11456_v14 }
  0xb7   : > { %10152 = vmatprep.mubr.msk.f32.mxu0 %vm320_vm1, %v11463_v15  ;;  %10178 = vmatprep.mubr.msk.f32.mxu1 %vm320_vm1, %v11463_v15 }
  0xba   : > { %10153 = vmatmul.mubr.msk.f32.gmra.mrb[40].mxu0 %vm320_vm1, %v11474_v16  ;;  %10179 = vmatmul.mubr.msk.f32.gmra.mrb[40].mxu1 %vm320_vm1, %v11474_v16 }
  0xbb   : > { %10155 = vmatprep.mubr.msk.f32.mxu0 %vm320_vm1, %v11481_v17  ;;  %10181 = vmatprep.mubr.msk.f32.mxu1 %vm320_vm1, %v11481_v17 }
  0xbe   : > { %10156 = vmatmul.mubr.msk.f32.gmra.mrb[42].mxu0 %vm320_vm1, %v11492_v18  ;;  %10182 = vmatmul.mubr.msk.f32.gmra.mrb[42].mxu1 %vm320_vm1, %v11492_v18 }
  0xbf   : > { %10158 = vmatprep.mubr.msk.f32.mxu0 %vm320_vm1, %v11499_v19  ;;  %10184 = vmatprep.mubr.msk.f32.mxu1 %vm320_vm1, %v11499_v19 }
  0xc2   : > { %10159 = vmatmul.mubr.msk.f32.gmra.mrb[44].mxu0 %vm320_vm1, %v11510_v20  ;;  %10185 = vmatmul.mubr.msk.f32.gmra.mrb[44].mxu1 %vm320_vm1, %v11510_v20 }
  0xc3   : > { %10161 = vmatprep.mubr.msk.f32.mxu0 %vm320_vm1, %v11517_v21  ;;  %10187 = vmatprep.mubr.msk.f32.mxu1 %vm320_vm1, %v11517_v21 }
  0xc6   : > { %10162 = vmatmul.mubr.msk.f32.gmra.mrb[46].mxu0 %vm320_vm1, %v11528_v22  ;;  %10188 = vmatmul.mubr.msk.f32.gmra.mrb[46].mxu1 %vm320_vm1, %v11528_v22 }
  0xc7   : > { %10192 = vmatprep.mubr.msk.f32.mxu0 %vm320_vm1, %v11381_v3  ;;  %10218 = vmatprep.mubr.msk.f32.mxu1 %vm320_vm1, %v11381_v3 }
  0xca   : > { %10193 = vmatmul.mubr.msk.f32.vlgmr.msra.gmra.mrb[48].mxu0 %vm320_vm1, %v11388_v4  ;;  %10219 = vmatmul.mubr.msk.f32.vlgmr.msra.gmra.mrb[48].mxu1 %vm320_vm1, %v11388_v4 }
  0xcb   : > { %10195 = vmatprep.mubr.msk.f32.mxu0 %vm320_vm1, %v11396_v5  ;;  %10221 = vmatprep.mubr.msk.f32.mxu1 %vm320_vm1, %v11396_v5 }
  0xcc   : > { %10243 = vmatpush3.msk.msra.mxu0 %vm369_vm0, %v311_v25  ;;  %10269 = vmatpush3.msk.msra.mxu1 %vm369_vm0, %v312_v26 }
  0xcd   : > { %10294 = vmatprep.subr.msk.mxu0 %vm369_vm0, %v313_v27  ;;  %10320 = vmatprep.subr.msk.mxu1 %vm369_vm0, %v314_v28 }
  0xce   : > { %10196 = vmatmul.mubr.msk.f32.gmra.mrb[50].mxu0 %vm320_vm1, %v11412_v8  ;;  %10222 = vmatmul.mubr.msk.f32.gmra.mrb[50].mxu1 %vm320_vm1, %v11412_v8 }
  0xcf   : > { %10198 = vmatprep.mubr.msk.f32.mxu0 %vm320_vm1, %v11419_v9  ;;  %10224 = vmatprep.mubr.msk.f32.mxu1 %vm320_vm1, %v11419_v9 }
  0xd2   : > { %10199 = vmatmul.mubr.msk.f32.gmra.mrb[52].mxu0 %vm320_vm1, %v11436_v12  ;;  %10225 = vmatmul.mubr.msk.f32.gmra.mrb[52].mxu1 %vm320_vm1, %v11436_v12 }
  0xd3   : > { %10201 = vmatprep.mubr.msk.f32.mxu0 %vm320_vm1, %v11443_v13  ;;  %10227 = vmatprep.mubr.msk.f32.mxu1 %vm320_vm1, %v11443_v13 }
  0xd6   : > { %10202 = vmatmul.mubr.msk.f32.gmra.mrb[54].mxu0 %vm320_vm1, %v11456_v14  ;;  %10228 = vmatmul.mubr.msk.f32.gmra.mrb[54].mxu1 %vm320_vm1, %v11456_v14 }
  0xd7   : > { %10204 = vmatprep.mubr.msk.f32.mxu0 %vm320_vm1, %v11463_v15  ;;  %10230 = vmatprep.mubr.msk.f32.mxu1 %vm320_vm1, %v11463_v15 }
  0xda   : > { %10205 = vmatmul.mubr.msk.f32.gmra.mrb[56].mxu0 %vm320_vm1, %v11474_v16  ;;  %10231 = vmatmul.mubr.msk.f32.gmra.mrb[56].mxu1 %vm320_vm1, %v11474_v16 }
  0xdb   : > { %10207 = vmatprep.mubr.msk.f32.mxu0 %vm320_vm1, %v11481_v17  ;;  %10233 = vmatprep.mubr.msk.f32.mxu1 %vm320_vm1, %v11481_v17 }
  0xde   : > { %10208 = vmatmul.mubr.msk.f32.gmra.mrb[58].mxu0 %vm320_vm1, %v11492_v18  ;;  %10234 = vmatmul.mubr.msk.f32.gmra.mrb[58].mxu1 %vm320_vm1, %v11492_v18 }
  0xdf   : > { %10210 = vmatprep.mubr.msk.f32.mxu0 %vm320_vm1, %v11499_v19  ;;  %10236 = vmatprep.mubr.msk.f32.mxu1 %vm320_vm1, %v11499_v19 }
  0xe2   : > { %10211 = vmatmul.mubr.msk.f32.gmra.mrb[60].mxu0 %vm320_vm1, %v11510_v20  ;;  %10237 = vmatmul.mubr.msk.f32.gmra.mrb[60].mxu1 %vm320_vm1, %v11510_v20 }
  0xe3   : > { %10213 = vmatprep.mubr.msk.f32.mxu0 %vm320_vm1, %v11517_v21  ;;  %10239 = vmatprep.mubr.msk.f32.mxu1 %vm320_vm1, %v11517_v21 }
  0xe6   : > { %10214 = vmatmul.mubr.msk.f32.gmra.mrb[62].mxu0 %vm320_vm1, %v11528_v22  ;;  %10240 = vmatmul.mubr.msk.f32.gmra.mrb[62].mxu1 %vm320_vm1, %v11528_v22 }
  0xe7   : > { %10244 = vmatprep.mubr.msk.f32.mxu0 %vm320_vm1, %v11381_v3  ;;  %10270 = vmatprep.mubr.msk.f32.mxu1 %vm320_vm1, %v11381_v3 }
  0xea   : > { %10245 = vmatmul.mubr.msk.f32.vlgmr.msra.gmra.mrb[64].mxu0 %vm320_vm1, %v11388_v4  ;;  %10271 = vmatmul.mubr.msk.f32.vlgmr.msra.gmra.mrb[64].mxu1 %vm320_vm1, %v11388_v4 }
  0xeb   : > { %10247 = vmatprep.mubr.msk.f32.mxu0 %vm320_vm1, %v11396_v5  ;;  %10273 = vmatprep.mubr.msk.f32.mxu1 %vm320_vm1, %v11396_v5 }
  0xec   : > { %10295 = vmatpush3.msk.msra.mxu0 %vm369_vm0, %v313_v27  ;;  %10321 = vmatpush3.msk.msra.mxu1 %vm369_vm0, %v314_v28  ;;  %v11955_v27 = vrot.slane %v11885_v32, %v16833_v7 }
  0xed   : > { %10346 = vmatprep.subr.msk.mxu0 %vm369_vm0, %v315_v52  ;;  %10372 = vmatprep.subr.msk.mxu1 %vm369_vm0, %v316_v59 }
  0xee   : > { %10248 = vmatmul.mubr.msk.f32.gmra.mrb[66].mxu0 %vm320_vm1, %v11412_v8  ;;  %10274 = vmatmul.mubr.msk.f32.gmra.mrb[66].mxu1 %vm320_vm1, %v11412_v8  ;;  %vm2747_vm3 = vcmp.gt.f32.partialorder %v11955_v27, 0.5 }
  0xef   : > { %10250 = vmatprep.mubr.msk.f32.mxu0 %vm320_vm1, %v11419_v9  ;;  %10276 = vmatprep.mubr.msk.f32.mxu1 %vm320_vm1, %v11419_v9 }
  0xf2   : > { %10251 = vmatmul.mubr.msk.f32.gmra.mrb[68].mxu0 %vm320_vm1, %v11436_v12  ;;  %10277 = vmatmul.mubr.msk.f32.gmra.mrb[68].mxu1 %vm320_vm1, %v11436_v12 }
  0xf3   : > { %10253 = vmatprep.mubr.msk.f32.mxu0 %vm320_vm1, %v11443_v13  ;;  %10279 = vmatprep.mubr.msk.f32.mxu1 %vm320_vm1, %v11443_v13 }
  0xf6   : > { %10254 = vmatmul.mubr.msk.f32.gmra.mrb[70].mxu0 %vm320_vm1, %v11456_v14  ;;  %10280 = vmatmul.mubr.msk.f32.gmra.mrb[70].mxu1 %vm320_vm1, %v11456_v14 }
  0xf7   : > { %10256 = vmatprep.mubr.msk.f32.mxu0 %vm320_vm1, %v11463_v15  ;;  %10282 = vmatprep.mubr.msk.f32.mxu1 %vm320_vm1, %v11463_v15 }
  0xfa   : > { %10257 = vmatmul.mubr.msk.f32.gmra.mrb[72].mxu0 %vm320_vm1, %v11474_v16  ;;  %10283 = vmatmul.mubr.msk.f32.gmra.mrb[72].mxu1 %vm320_vm1, %v11474_v16 }
  0xfb   : > { %10259 = vmatprep.mubr.msk.f32.mxu0 %vm320_vm1, %v11481_v17  ;;  %10285 = vmatprep.mubr.msk.f32.mxu1 %vm320_vm1, %v11481_v17 }
  0xfe   : > { %10260 = vmatmul.mubr.msk.f32.gmra.mrb[74].mxu0 %vm320_vm1, %v11492_v18  ;;  %10286 = vmatmul.mubr.msk.f32.gmra.mrb[74].mxu1 %vm320_vm1, %v11492_v18 }
  0xff   : > { %10262 = vmatprep.mubr.msk.f32.mxu0 %vm320_vm1, %v11499_v19  ;;  %10288 = vmatprep.mubr.msk.f32.mxu1 %vm320_vm1, %v11499_v19 }
 0x102   : > { %10263 = vmatmul.mubr.msk.f32.gmra.mrb[76].mxu0 %vm320_vm1, %v11510_v20  ;;  %10289 = vmatmul.mubr.msk.f32.gmra.mrb[76].mxu1 %vm320_vm1, %v11510_v20 }
 0x103   : > { %10265 = vmatprep.mubr.msk.f32.mxu0 %vm320_vm1, %v11517_v21  ;;  %10291 = vmatprep.mubr.msk.f32.mxu1 %vm320_vm1, %v11517_v21 }
 0x106   : > { %10266 = vmatmul.mubr.msk.f32.gmra.mrb[78].mxu0 %vm320_vm1, %v11528_v22  ;;  %10292 = vmatmul.mubr.msk.f32.gmra.mrb[78].mxu1 %vm320_vm1, %v11528_v22 }
 0x107   : > { %10296 = vmatprep.mubr.msk.f32.mxu0 %vm320_vm1, %v11381_v3  ;;  %10322 = vmatprep.mubr.msk.f32.mxu1 %vm320_vm1, %v11381_v3 }
 0x10a   : > { %10297 = vmatmul.mubr.msk.f32.vlgmr.msra.gmra.mrb[80].mxu0 %vm320_vm1, %v11388_v4  ;;  %10323 = vmatmul.mubr.msk.f32.vlgmr.msra.gmra.mrb[80].mxu1 %vm320_vm1, %v11388_v4 }
 0x10b   : > { %10299 = vmatprep.mubr.msk.f32.mxu0 %vm320_vm1, %v11396_v5  ;;  %10325 = vmatprep.mubr.msk.f32.mxu1 %vm320_vm1, %v11396_v5 }
 0x10c   : > { %10347 = vmatpush3.msk.msra.mxu0 %vm369_vm0, %v315_v52  ;;  %10373 = vmatpush3.msk.msra.mxu1 %vm369_vm0, %v316_v59 }
 0x10e   : > { %10300 = vmatmul.mubr.msk.f32.gmra.mrb[82].mxu0 %vm320_vm1, %v11412_v8  ;;  %10326 = vmatmul.mubr.msk.f32.gmra.mrb[82].mxu1 %vm320_vm1, %v11412_v8 }
 0x10f   : > { %10302 = vmatprep.mubr.msk.f32.mxu0 %vm320_vm1, %v11419_v9  ;;  %10328 = vmatprep.mubr.msk.f32.mxu1 %vm320_vm1, %v11419_v9 }
 0x112   : > { %10303 = vmatmul.mubr.msk.f32.gmra.mrb[84].mxu0 %vm320_vm1, %v11436_v12  ;;  %10329 = vmatmul.mubr.msk.f32.gmra.mrb[84].mxu1 %vm320_vm1, %v11436_v12 }
 0x113   : > { %10305 = vmatprep.mubr.msk.f32.mxu0 %vm320_vm1, %v11443_v13  ;;  %10331 = vmatprep.mubr.msk.f32.mxu1 %vm320_vm1, %v11443_v13 }
 0x116   : > { %10306 = vmatmul.mubr.msk.f32.gmra.mrb[86].mxu0 %vm320_vm1, %v11456_v14  ;;  %10332 = vmatmul.mubr.msk.f32.gmra.mrb[86].mxu1 %vm320_vm1, %v11456_v14 }
 0x117   : > { %10308 = vmatprep.mubr.msk.f32.mxu0 %vm320_vm1, %v11463_v15  ;;  %10334 = vmatprep.mubr.msk.f32.mxu1 %vm320_vm1, %v11463_v15 }
 0x11a   : > { %10309 = vmatmul.mubr.msk.f32.gmra.mrb[88].mxu0 %vm320_vm1, %v11474_v16  ;;  %10335 = vmatmul.mubr.msk.f32.gmra.mrb[88].mxu1 %vm320_vm1, %v11474_v16 }
 0x11b   : > { %10311 = vmatprep.mubr.msk.f32.mxu0 %vm320_vm1, %v11481_v17  ;;  %10337 = vmatprep.mubr.msk.f32.mxu1 %vm320_vm1, %v11481_v17 }
 0x11e   : > { %10312 = vmatmul.mubr.msk.f32.gmra.mrb[90].mxu0 %vm320_vm1, %v11492_v18  ;;  %10338 = vmatmul.mubr.msk.f32.gmra.mrb[90].mxu1 %vm320_vm1, %v11492_v18 }
 0x11f   : > { %10314 = vmatprep.mubr.msk.f32.mxu0 %vm320_vm1, %v11499_v19  ;;  %10340 = vmatprep.mubr.msk.f32.mxu1 %vm320_vm1, %v11499_v19 }
 0x122   : > { %10315 = vmatmul.mubr.msk.f32.gmra.mrb[92].mxu0 %vm320_vm1, %v11510_v20  ;;  %10341 = vmatmul.mubr.msk.f32.gmra.mrb[92].mxu1 %vm320_vm1, %v11510_v20 }
 0x123   : > { %10317 = vmatprep.mubr.msk.f32.mxu0 %vm320_vm1, %v11517_v21  ;;  %10343 = vmatprep.mubr.msk.f32.mxu1 %vm320_vm1, %v11517_v21 }
 0x126   : > { %10318 = vmatmul.mubr.msk.f32.gmra.mrb[94].mxu0 %vm320_vm1, %v11528_v22  ;;  %10344 = vmatmul.mubr.msk.f32.gmra.mrb[94].mxu1 %vm320_vm1, %v11528_v22 }
 0x127   : > { %10348 = vmatprep.mubr.msk.f32.mxu0 %vm320_vm1, %v11381_v3  ;;  %10374 = vmatprep.mubr.msk.f32.mxu1 %vm320_vm1, %v11381_v3 }
 0x12a   : > { %10349 = vmatmul.mubr.msk.f32.vlgmr.msra.gmra.mrb[96].mxu0 %vm320_vm1, %v11388_v4  ;;  %10375 = vmatmul.mubr.msk.f32.vlgmr.msra.gmra.mrb[96].mxu1 %vm320_vm1, %v11388_v4 }
 0x12b   : > { %10351 = vmatprep.mubr.msk.f32.mxu0 %vm320_vm1, %v11396_v5  ;;  %10377 = vmatprep.mubr.msk.f32.mxu1 %vm320_vm1, %v11396_v5 }
 0x12e   : > { %10352 = vmatmul.mubr.msk.f32.gmra.mrb[98].mxu0 %vm320_vm1, %v11412_v8  ;;  %10378 = vmatmul.mubr.msk.f32.gmra.mrb[98].mxu1 %vm320_vm1, %v11412_v8 }
 0x12f   : > { %10354 = vmatprep.mubr.msk.f32.mxu0 %vm320_vm1, %v11419_v9  ;;  %10380 = vmatprep.mubr.msk.f32.mxu1 %vm320_vm1, %v11419_v9 }
 0x132   : > { %10355 = vmatmul.mubr.msk.f32.gmra.mrb[100].mxu0 %vm320_vm1, %v11436_v12  ;;  %10381 = vmatmul.mubr.msk.f32.gmra.mrb[100].mxu1 %vm320_vm1, %v11436_v12 }
 0x133   : > { %10357 = vmatprep.mubr.msk.f32.mxu0 %vm320_vm1, %v11443_v13  ;;  %10383 = vmatprep.mubr.msk.f32.mxu1 %vm320_vm1, %v11443_v13 }
 0x136   : > { %10358 = vmatmul.mubr.msk.f32.gmra.mrb[102].mxu0 %vm320_vm1, %v11456_v14  ;;  %10384 = vmatmul.mubr.msk.f32.gmra.mrb[102].mxu1 %vm320_vm1, %v11456_v14 }
 0x137   : > { %10360 = vmatprep.mubr.msk.f32.mxu0 %vm320_vm1, %v11463_v15  ;;  %10386 = vmatprep.mubr.msk.f32.mxu1 %vm320_vm1, %v11463_v15 }
 0x13a   : > { %10361 = vmatmul.mubr.msk.f32.gmra.mrb[104].mxu0 %vm320_vm1, %v11474_v16  ;;  %10387 = vmatmul.mubr.msk.f32.gmra.mrb[104].mxu1 %vm320_vm1, %v11474_v16 }
 0x13b   : > { %10363 = vmatprep.mubr.msk.f32.mxu0 %vm320_vm1, %v11481_v17  ;;  %10389 = vmatprep.mubr.msk.f32.mxu1 %vm320_vm1, %v11481_v17 }
 0x13d   : > { %v10038_v34 = vpop.f32.mrb[0].mxu0  ;;  %v10064_v35 = vpop.f32.mrb[0].mxu1 }
 0x13e   : > { %v439_v36 = vpop.f32.mrb[1].mxu0  ;;  %v587_v37 = vpop.f32.mrb[1].mxu1  ;;  %v2769_v38 = vsel %vm2746_vm2, %v10064_v35, -1e+30  ;;  %v2753_v39 = vsel %vm2746_vm2, %v10038_v34, -1e+30  ;;  %10364 = vmatmul.mubr.msk.f32.gmra.mrb[106].mxu0 %vm320_vm1, %v11492_v18  ;;  %10390 = vmatmul.mubr.msk.f32.gmra.mrb[106].mxu1 %vm320_vm1, %v11492_v18 }
 0x13f   : > { %3042 = vmax.xlane.f32.xlu1 %v2769_v38  ;;  %3010 = vmax.xlane.f32.xlu0 %v2753_v39  ;;  %v2752_v43 = vsel %vm2746_vm2, %v439_v36, -1e+30  ;;  %v2768_v49 = vsel %vm2746_vm2, %v587_v37, -1e+30 }
 0x140   : > { %10366 = vmatprep.mubr.msk.f32.mxu0 %vm320_vm1, %v11499_v19  ;;  %10392 = vmatprep.mubr.msk.f32.mxu1 %vm320_vm1, %v11499_v19 }
 0x141   : > { %v10041_v40 = vpop.f32.mrb[2].mxu0  ;;  %v10067_v41 = vpop.f32.mrb[2].mxu1 }
 0x142   : > { %v449_v42 = vpop.f32.mrb[3].mxu0  ;;  %v2755_v44 = vsel %vm2746_vm2, %v10041_v40, -1e+30  ;;  %v597_v45 = vpop.f32.mrb[3].mxu1  ;;  %v2771_v46 = vsel %vm2746_vm2, %v10067_v41, -1e+30  ;;  %10367 = vmatmul.mubr.msk.f32.gmra.mrb[108].mxu0 %vm320_vm1, %v11510_v20  ;;  %10393 = vmatmul.mubr.msk.f32.gmra.mrb[108].mxu1 %vm320_vm1, %v11510_v20 }
 0x143   : > { %3008 = vmax.xlane.f32.xlu0 %v2752_v43  ;;  %3014 = vmax.xlane.f32.xlu1 %v2755_v44  ;;  %v2770_v55 = vsel %vm2746_vm2, %v597_v45, -1e+30  ;;  %v2754_v56 = vsel %vm2746_vm2, %v449_v42, -1e+30 }
 0x144   : > { %10369 = vmatprep.mubr.msk.f32.mxu0 %vm320_vm1, %v11517_v21  ;;  %10395 = vmatprep.mubr.msk.f32.mxu1 %vm320_vm1, %v11517_v21 }
 0x145   : > { %v10044_v47 = vpop.f32.mrb[4].mxu0  ;;  %v10070_v48 = vpop.f32.mrb[4].mxu1 }
 0x146   : > { %v459_v50 = vpop.f32.mrb[5].mxu0  ;;  %v607_v51 = vpop.f32.mrb[5].mxu1  ;;  %v2757_v60 = vsel %vm2746_vm2, %v10044_v47, -1e+30  ;;  %v2773_v2 = vsel %vm2746_vm2, %v10070_v48, -1e+30  ;;  %10370 = vmatmul.mubr.msk.f32.gmra.mrb[110].mxu0 %vm320_vm1, %v11528_v22  ;;  %10396 = vmatmul.mubr.msk.f32.gmra.mrb[110].mxu1 %vm320_vm1, %v11528_v22 }
 0x147   : > { %3040 = vmax.xlane.f32.xlu0 %v2768_v49  ;;  %3046 = vmax.xlane.f32.xlu1 %v2771_v46  ;;  %v2756_v61 = vsel %vm2746_vm2, %v459_v50, -1e+30  ;;  %v2772_v6 = vsel %vm2746_vm2, %v607_v51, -1e+30 }
 0x148   : > { %10400 = vmatprep.mubr.msk.f32.mxu0 %vm320_vm1, %v11381_v3  ;;  %10426 = vmatprep.mubr.msk.f32.mxu1 %vm320_vm1, %v11381_v3 }
 0x149   : > { %v10047_v53 = vpop.f32.mrb[6].mxu0  ;;  %v10073_v54 = vpop.f32.mrb[6].mxu1 }
 0x14a   : > { %v469_v57 = vpop.f32.mrb[7].mxu0  ;;  %v617_v58 = vpop.f32.mrb[7].mxu1  ;;  %v2759_v25 = vsel %vm2746_vm2, %v10047_v53, -1e+30  ;;  %v2775_v32 = vsel %vm2746_vm2, %v10073_v54, -1e+30 }
 0x14b   : > { %3044 = vmax.xlane.f32.xlu0 %v2770_v55  ;;  %3012 = vmax.xlane.f32.xlu1 %v2754_v56  ;;  %v2758_v26 = vsel %vm2746_vm2, %v469_v57, -1e+30  ;;  %v2774_v37 = vsel %vm2746_vm2, %v617_v58, -1e+30 }
 0x14d   : > { %v10050_v62 = vpop.f32.mrb[8].mxu0  ;;  %v10076_v63 = vpop.f32.mrb[8].mxu1 }
 0x14e   : > { %v479_v0 = vpop.f32.mrb[9].mxu0  ;;  %v627_v1 = vpop.f32.mrb[9].mxu1  ;;  %v2761_v42 = vsel %vm2747_vm3, %v10050_v62, -1e+30  ;;  %v2777_v48 = vsel %vm2747_vm3, %v10076_v63, -1e+30 }
 0x14f   : > { %3018 = vmax.xlane.f32.xlu1 %v2757_v60  ;;  %3016 = vmax.xlane.f32.xlu0 %v2756_v61  ;;  %v2760_v43 = vsel %vm2747_vm3, %v479_v0, -1e+30  ;;  %v2776_v49 = vsel %vm2747_vm3, %v627_v1, -1e+30 }
 0x151   : > { %v10053_v10 = vpop.f32.mrb[10].mxu0  ;;  %v11936_v11 = vpop.f32.mrb[10].mxu1 }
 0x152   : > { %v489_v23 = vpop.f32.mrb[11].mxu0  ;;  %v11938_v24 = vpop.f32.mrb[11].mxu1  ;;  %v2763_v54 = vsel %vm2747_vm3, %v10053_v10, -1e+30  ;;  %v2779_v60 = vsel %vm2747_vm3, %v11936_v11, -1e+30 }
 0x153   : > { %3050 = vmax.xlane.f32.xlu1 %v2773_v2  ;;  %3048 = vmax.xlane.f32.xlu0 %v2772_v6  ;;  %v2762_v55 = vsel %vm2747_vm3, %v489_v23, -1e+30  ;;  %v2778_v61 = vsel %vm2747_vm3, %v11938_v24, -1e+30 }
 0x155   : > { %v11957_v28 = vpop.f32.mrb[12].mxu0  ;;  %v11959_v34 = vpop.f32.mrb[12].mxu1 }
 0x156   : > { %v11961_v35 = vpop.f32.mrb[13].mxu0  ;;  %v11963_v36 = vpop.f32.mrb[13].mxu1  ;;  %v2765_v2 = vsel %vm2747_vm3, %v11957_v28, -1e+30 }
 0x157   : > { %3022 = vmax.xlane.f32.xlu1 %v2759_v25  ;;  %3020 = vmax.xlane.f32.xlu0 %v2758_v26  ;;  %v2764_v6 = vsel %vm2747_vm3, %v11961_v35, -1e+30  ;;  %v2781_v25 = vsel %vm2747_vm3, %v11959_v34, -1e+30  ;;  %v2780_v26 = vsel %vm2747_vm3, %v11963_v36, -1e+30 }
 0x159   : > { %v11978_v38 = vpop.f32.mrb[14].mxu0  ;;  %v11980_v39 = vpop.f32.mrb[14].mxu1 }
 0x15a   : > { %v11982_v40 = vpop.f32.mrb[15].mxu0  ;;  %v11984_v41 = vpop.f32.mrb[15].mxu1 }
 0x15b   : > { %3054 = vmax.xlane.f32.xlu1 %v2775_v32  ;;  %3052 = vmax.xlane.f32.xlu0 %v2774_v37  ;;  %v2767_v37 = vsel %vm2747_vm3, %v11978_v38, -1e+30  ;;  %v2766_v34 = vsel %vm2747_vm3, %v11982_v40, -1e+30  ;;  %v2782_v38 = vsel %vm2747_vm3, %v11984_v41, -1e+30 }
 0x15d   : > { %v11998_v44 = vpop.f32.mrb[16].mxu0  ;;  %v12000_v45 = vpop.f32.mrb[16].mxu1 }
 0x15e   : > { %v12002_v46 = vpop.f32.mrb[17].mxu0  ;;  %v12004_v47 = vpop.f32.mrb[17].mxu1 }
 0x15f   : > { %3026 = vmax.xlane.f32.xlu1 %v2761_v42  ;;  %3024 = vmax.xlane.f32.xlu0 %v2760_v43 }
 0x161   : > { %v12018_v50 = vpop.f32.mrb[18].mxu0  ;;  %v12020_v51 = vpop.f32.mrb[18].mxu1 }
 0x162   : > { %v12022_v52 = vpop.f32.mrb[19].mxu0  ;;  %v12024_v53 = vpop.f32.mrb[19].mxu1 }
 0x163   : > { %3058 = vmax.xlane.f32.xlu1 %v2777_v48  ;;  %3056 = vmax.xlane.f32.xlu0 %v2776_v49  ;;  %v2783_v49 = vsel %vm2747_vm3, %v11980_v39, -1e+30  ;;  %v2784_v39 = vsel %vm2746_vm2, %v12002_v46, -1e+30 }
 0x165   : > { %v12038_v56 = vpop.f32.mrb[20].mxu0  ;;  %v12040_v57 = vpop.f32.mrb[20].mxu1 }
 0x166   : > { %v12042_v58 = vpop.f32.mrb[21].mxu0  ;;  %v12044_v59 = vpop.f32.mrb[21].mxu1 }
 0x167   : > { %3030 = vmax.xlane.f32.xlu1 %v2763_v54  ;;  %3028 = vmax.xlane.f32.xlu0 %v2762_v55 }
 0x169   : > { %v12060_v62 = vpop.f32.mrb[22].mxu0  ;;  %v12062_v63 = vpop.f32.mrb[22].mxu1 }
 0x16a   : > { %v12064_v0 = vpop.f32.mrb[23].mxu0  ;;  %v12066_v1 = vpop.f32.mrb[23].mxu1 }
 0x16b   : > { %3062 = vmax.xlane.f32.xlu1 %v2779_v60  ;;  %3060 = vmax.xlane.f32.xlu0 %v2778_v61  ;;  %v2785_v61 = vsel %vm2746_vm2, %v11998_v44, -1e+30  ;;  %v2800_v44 = vsel %vm2746_vm2, %v12004_v47, -1e+30 }
 0x16d   : > { %v12078_v10 = vpop.f32.mrb[24].mxu0  ;;  %v12080_v11 = vpop.f32.mrb[24].mxu1 }
 0x16e   : > { %v12082_v23 = vpop.f32.mrb[25].mxu0  ;;  %v12084_v24 = vpop.f32.mrb[25].mxu1 }
 0x16f   : > { %3034 = vmax.xlane.f32.xlu1 %v2765_v2  ;;  %3032 = vmax.xlane.f32.xlu0 %v2764_v6 }
 0x171   : > { %v12092_v28 = vpop.f32.mrb[26].mxu0  ;;  %v12094_v3 = vpop.f32.mrb[26].mxu1 }
 0x172   : > { %v12096_v35 = vpop.f32.mrb[27].mxu0  ;;  %v12098_v32 = vpop.f32.mrb[27].mxu1 }
 0x173   : > { %3066 = vmax.xlane.f32.xlu1 %v2781_v25  ;;  %3064 = vmax.xlane.f32.xlu0 %v2780_v26  ;;  %v2801_v26 = vsel %vm2746_vm2, %v12000_v45, -1e+30  ;;  %v2786_v45 = vsel %vm2746_vm2, %v12022_v52, -1e+30 }
 0x175   : > { %v12106_v42 = vpop.f32.mrb[28].mxu0  ;;  %v12108_v36 = vpop.f32.mrb[28].mxu1 }
 0x176   : > { %v12110_v43 = vpop.f32.mrb[29].mxu0  ;;  %v12112_v48 = vpop.f32.mrb[29].mxu1 }
 0x177   : > { %3038 = vmax.xlane.f32.xlu1 %v2767_v37  ;;  %3036 = vmax.xlane.f32.xlu0 %v2766_v34 }
 0x179   : > { %v12120_v54 = vpop.f32.mrb[30].mxu0  ;;  %v12122_v40 = vpop.f32.mrb[30].mxu1 }
 0x17a   : > { %v12124_v55 = vpop.f32.mrb[31].mxu0  ;;  %v12126_v60 = vpop.f32.mrb[31].mxu1 }
 0x17b   : > { %3070 = vmax.xlane.f32.xlu1 %v2783_v49  ;;  %3068 = vmax.xlane.f32.xlu0 %v2782_v38  ;;  %v2787_v38 = vsel %vm2746_vm2, %v12018_v50, -1e+30  ;;  %v2802_v50 = vsel %vm2746_vm2, %v12024_v53, -1e+30  ;;  %v2788_v53 = vsel %vm2746_vm2, %v12042_v58, -1e+30 }
 0x17d   : > { %v12134_v2 = vpop.f32.mrb[32].mxu0  ;;  %v12136_v41 = vpop.f32.mrb[32].mxu1 }
 0x17e   : > { %v12138_v6 = vpop.f32.mrb[33].mxu0  ;;  %v12140_v25 = vpop.f32.mrb[33].mxu1 }
 0x17f   : > { %3074 = vmax.xlane.f32.xlu1 %v2785_v61  ;;  %3072 = vmax.xlane.f32.xlu0 %v2784_v39 }
 0x181   : > { %v12148_v46 = vpop.f32.mrb[34].mxu0  ;;  %v12150_v37 = vpop.f32.mrb[34].mxu1 }
 0x182   : > { %v12152_v34 = vpop.f32.mrb[35].mxu0  ;;  %v12154_v49 = vpop.f32.mrb[35].mxu1 }
 0x183   : > { %3106 = vmax.xlane.f32.xlu1 %v2801_v26  ;;  %3104 = vmax.xlane.f32.xlu0 %v2800_v44  ;;  %v317_v26 = vld [vmem:[%s11356_s17 + $0x70] sm:$0xf]  ;;  %v2803_v44 = vsel %vm2746_vm2, %v12020_v51, -1e+30  ;;  %v2789_v51 = vsel %vm2746_vm2, %v12038_v56, -1e+30 }
 0x184   : > { %10398 = vmatprep.subr.msk.mxu0 %vm369_vm0, %v317_v26  ;;  %v2805_v56 = vsel %vm2746_vm2, %v12040_v57, -1e+30  ;;  %v2791_v57 = vsel %vm2746_vm2, %v12060_v62, -1e+30  ;;  %v2807_v62 = vsel %vm2746_vm2, %v12062_v63, -1e+30 }
 0x185   : > { %v12162_v61 = vpop.f32.mrb[36].mxu0  ;;  %v12164_v47 = vpop.f32.mrb[36].mxu1  ;;  %10399 = vmatpush3.msk.msra.mxu0 %vm369_vm0, %v317_v26  ;;  %v2793_v63 = vsel %vm2747_vm3, %v12078_v10, -1e+30  ;;  %v2809_v10 = vsel %vm2747_vm3, %v12080_v11, -1e+30 }
 0x186   : > { %v12166_v39 = vpop.f32.mrb[37].mxu0  ;;  %v12168_v29 = vpop.f32.mrb[37].mxu1  ;;  %10401 = vmatmul.mubr.msk.f32.vlgmr.msra.gmra.mrb[112].mxu0 %vm320_vm1, %v11388_v4  ;;  %v2795_v11 = vsel %vm2747_vm3, %v12092_v28, -1e+30  ;;  %v318_v28 = vld [vmem:[%s11356_s17 + $0x78] sm:$0xf] }
 0x187   : > { %3078 = vmax.xlane.f32.xlu1 %v2787_v38  ;;  %3076 = vmax.xlane.f32.xlu0 %v2786_v45 }
 0x188   : > { %10403 = vmatprep.mubr.msk.f32.mxu0 %vm320_vm1, %v11396_v5  ;;  %v2804_v5 = vsel %vm2746_vm2, %v12044_v59, -1e+30  ;;  %10424 = vmatprep.subr.msk.mxu1 %vm369_vm0, %v318_v28 }
 0x189   : > { %v12178_v52 = vpop.f32.mrb[38].mxu0  ;;  %v12180_v7 = vpop.f32.mrb[38].mxu1  ;;  %10425 = vmatpush3.msk.msra.mxu1 %vm369_vm0, %v318_v28  ;;  %v2796_v28 = vsel %vm2747_vm3, %v12110_v43, -1e+30  ;;  %v2813_v43 = vsel %vm2747_vm3, %v12108_v36, -1e+30 }
 0x18a   : > { %v12183_v31 = vpop.f32.mrb[39].mxu0  ;;  %v12185_v38 = vpop.f32.mrb[39].mxu1  ;;  %10404 = vmatmul.mubr.msk.f32.gmra.mrb[114].mxu0 %vm320_vm1, %v11412_v8  ;;  %v12398_v36 = vld [vmem:[%s16822_s1 + $0x28] sm:$0xff] }
 0x18b   : > { %3110 = vmax.xlane.f32.xlu1 %v2803_v44  ;;  %3108 = vmax.xlane.f32.xlu0 %v2802_v50 }
 0x18c   : > { %10406 = vmatprep.mubr.msk.f32.mxu0 %vm320_vm1, %v11419_v9  ;;  %v2790_v9 = vsel %vm2746_vm2, %v12064_v0, -1e+30 }
 0x18d   : > { %v12197_v45 = vpop.f32.mrb[40].mxu0  ;;  %v12199_v26 = vpop.f32.mrb[40].mxu1 }
 0x18e   : > { %v12201_v30 = vpop.f32.mrb[41].mxu0  ;;  %v12203_v4 = vpop.f32.mrb[41].mxu1  ;;  %10407 = vmatmul.mubr.msk.f32.gmra.mrb[116].mxu0 %vm320_vm1, %v11436_v12 }
 0x18f   : > { %3082 = vmax.xlane.f32.xlu1 %v2789_v51  ;;  %3080 = vmax.xlane.f32.xlu0 %v2788_v53 }
 0x190   : > { %10409 = vmatprep.mubr.msk.f32.mxu0 %vm320_vm1, %v11443_v13  ;;  %v2806_v13 = vsel %vm2746_vm2, %v12066_v1, -1e+30 }
 0x191   : > { %v12215_v58 = vpop.f32.mrb[42].mxu0  ;;  %v12217_v44 = vpop.f32.mrb[42].mxu1 }
 0x192   : > { %v12219_v50 = vpop.f32.mrb[43].mxu0  ;;  %v12221_v8 = vpop.f32.mrb[43].mxu1  ;;  %10410 = vmatmul.mubr.msk.f32.gmra.mrb[118].mxu0 %vm320_vm1, %v11456_v14 }
 0x193   : > { %3114 = vmax.xlane.f32.xlu1 %v2805_v56  ;;  %3112 = vmax.xlane.f32.xlu0 %v2804_v5 }
 0x194   : > { %10412 = vmatprep.mubr.msk.f32.mxu0 %vm320_vm1, %v11463_v15  ;;  %v2792_v15 = vsel %vm2747_vm3, %v12082_v23, -1e+30 }
 0x195   : > { %v12233_v59 = vpop.f32.mrb[44].mxu0  ;;  %v12235_v51 = vpop.f32.mrb[44].mxu1 }
 0x196   : > { %v12237_v53 = vpop.f32.mrb[45].mxu0  ;;  %v12239_v12 = vpop.f32.mrb[45].mxu1  ;;  %10413 = vmatmul.mubr.msk.f32.gmra.mrb[120].mxu0 %vm320_vm1, %v11474_v16 }
 0x197   : > { %3086 = vmax.xlane.f32.xlu1 %v2791_v57  ;;  %3084 = vmax.xlane.f32.xlu0 %v2790_v9 }
 0x198   : > { %10415 = vmatprep.mubr.msk.f32.mxu0 %vm320_vm1, %v11481_v17  ;;  %v2808_v17 = vsel %vm2747_vm3, %v12084_v24, -1e+30 }
 0x199   : > { %v12251_v0 = vpop.f32.mrb[46].mxu0  ;;  %v12253_v56 = vpop.f32.mrb[46].mxu1 }
 0x19a   : > { %v12255_v5 = vpop.f32.mrb[47].mxu0  ;;  %v12257_v14 = vpop.f32.mrb[47].mxu1  ;;  %10416 = vmatmul.mubr.msk.f32.gmra.mrb[122].mxu0 %vm320_vm1, %v11492_v18 }
 0x19b   : > { %3118 = vmax.xlane.f32.xlu1 %v2807_v62  ;;  %3116 = vmax.xlane.f32.xlu0 %v2806_v13 }
 0x19c   : > { %10418 = vmatprep.mubr.msk.f32.mxu0 %vm320_vm1, %v11499_v19  ;;  %v2794_v19 = vsel %vm2747_vm3, %v12096_v35, -1e+30  ;;  %v2811_v35 = vsel %vm2747_vm3, %v12094_v3, -1e+30 }
 0x19d   : > { %v12269_v1 = vpop.f32.mrb[48].mxu0  ;;  %v12271_v57 = vpop.f32.mrb[48].mxu1 }
 0x19e   : > { %v12273_v9 = vpop.f32.mrb[49].mxu0  ;;  %v12275_v16 = vpop.f32.mrb[49].mxu1  ;;  %10419 = vmatmul.mubr.msk.f32.gmra.mrb[124].mxu0 %vm320_vm1, %v11510_v20 }
 0x19f   : > { %3090 = vmax.xlane.f32.xlu1 %v2793_v63  ;;  %3088 = vmax.xlane.f32.xlu0 %v2792_v15 }
 0x1a0   : > { %10421 = vmatprep.mubr.msk.f32.mxu0 %vm320_vm1, %v11517_v21  ;;  %v2810_v21 = vsel %vm2747_vm3, %v12098_v32, -1e+30  ;;  %v12342_v32 = vld [vmem:[%s16822_s1 + $0x8] sm:$0xff] }
 0x1a1   : > { %v12287_v23 = vpop.f32.mrb[50].mxu0  ;;  %v12289_v62 = vpop.f32.mrb[50].mxu1  ;;  %10427 = vmatmul.mubr.msk.f32.vlgmr.msra.gmra.mrb[112].mxu1 %vm320_vm1, %v12342_v32 }
 0x1a2   : > { %v12291_v13 = vpop.f32.mrb[51].mxu0  ;;  %v12293_v18 = vpop.f32.mrb[51].mxu1  ;;  %10422 = vmatmul.mubr.msk.f32.gmra.mrb[126].mxu0 %vm320_vm1, %v11528_v22 }
 0x1a3   : > { %3122 = vmax.xlane.f32.xlu1 %v2809_v10  ;;  %3120 = vmax.xlane.f32.xlu0 %v2808_v17  ;;  %v12326_v10 = vld [vmem:[%s16822_s1] sm:$0xff] }
 0x1a4   : > { %10452 = vmatprep.mubr.msk.f32.mxu0 %vm320_vm1, %v12326_v10 }
 0x1a5   : > { %v12305_v24 = vpop.f32.mrb[52].mxu0  ;;  %v12307_v63 = vpop.f32.mrb[52].mxu1 }
 0x1a6   : > { %v12309_v15 = vpop.f32.mrb[53].mxu0  ;;  %v12311_v20 = vpop.f32.mrb[53].mxu1 }
 0x1a7   : > { %3094 = vmax.xlane.f32.xlu1 %v2795_v11  ;;  %3092 = vmax.xlane.f32.xlu0 %v2794_v19  ;;  %v2797_v19 = vsel %vm2747_vm3, %v12106_v42, -1e+30  ;;  %v12370_v42 = vld [vmem:[%s16822_s1 + $0x18] sm:$0xff] }
 0x1a9   : > { %v12330_v22 = vpop.f32.mrb[54].mxu0  ;;  %v12332_v17 = vpop.f32.mrb[54].mxu1 }
 0x1aa   : > { %16863 = vst [vmem:[#allocation17_spill] sm:$0xff] %v12332_v17  ;;  %v12335_v3 = vpop.f32.mrb[55].mxu0  ;;  %v12337_v11 = vpop.f32.mrb[55].mxu1 }
 0x1ab   : > { %16864 = vst [vmem:[#allocation18_spill] sm:$0xff] %v12335_v3  ;;  %16865 = vst [vmem:[#allocation19_spill] sm:$0xff] %v12337_v11  ;;  %3126 = vmax.xlane.f32.xlu1 %v2811_v35  ;;  %3124 = vmax.xlane.f32.xlu0 %v2810_v21  ;;  %v12355_v11 = vld [vmem:[%s16822_s1 + $0x10] sm:$0xff] }
 0x1ac   : > { %10429 = vmatprep.mubr.msk.f32.mxu1 %vm320_vm1, %v12355_v11 }
 0x1ad   : > { %v12359_v17 = vpop.f32.mrb[56].mxu0  ;;  %v12361_v35 = vpop.f32.mrb[56].mxu1  ;;  %10430 = vmatmul.mubr.msk.f32.gmra.mrb[114].mxu1 %vm320_vm1, %v12370_v42 }
 0x1ae   : > { %16866 = vst [vmem:[#allocation20_spill] sm:$0xff] %v12359_v17  ;;  %16867 = vst [vmem:[#allocation21_spill] sm:$0xff] %v12361_v35  ;;  %v12363_v21 = vpop.f32.mrb[57].mxu0  ;;  %v12365_v3 = vpop.f32.mrb[57].mxu1  ;;  %v2812_v35 = vsel %vm2747_vm3, %v12112_v48, -1e+30 }
 0x1af   : > { %16868 = vst [vmem:[#allocation22_spill] sm:$0xff] %v12363_v21  ;;  %16869 = vst [vmem:[#allocation23_spill] sm:$0xff] %v12365_v3  ;;  %3098 = vmax.xlane.f32.xlu1 %v2797_v19  ;;  %3096 = vmax.xlane.f32.xlu0 %v2796_v28  ;;  %v12383_v3 = vld [vmem:[%s16822_s1 + $0x20] sm:$0xff]  ;;  %v2799_v48 = vsel %vm2747_vm3, %v12120_v54, -1e+30  ;;  %v12426_v54 = vld [vmem:[%s16822_s1 + $0x38] sm:$0xff] }
 0x1b0   : > { %10432 = vmatprep.mubr.msk.f32.mxu1 %vm320_vm1, %v12383_v3 }
 0x1b1   : > { %v12387_v21 = vpop.f32.mrb[58].mxu0  ;;  %v12389_v19 = vpop.f32.mrb[58].mxu1  ;;  %10433 = vmatmul.mubr.msk.f32.gmra.mrb[116].mxu1 %vm320_vm1, %v12398_v36 }
 0x1b2   : > { %16870 = vst [vmem:[#allocation24_spill] sm:$0xff] %v12387_v21  ;;  %16871 = vst [vmem:[#allocation25_spill] sm:$0xff] %v12389_v19  ;;  %v12391_v28 = vpop.f32.mrb[59].mxu0  ;;  %v12393_v17 = vpop.f32.mrb[59].mxu1  ;;  %v2798_v19 = vsel %vm2747_vm3, %v12124_v55, -1e+30 }
 0x1b3   : > { %16872 = vst [vmem:[#allocation26_spill] sm:$0xff] %v12391_v28  ;;  %16873 = vst [vmem:[#allocation27_spill] sm:$0xff] %v12393_v17  ;;  %3130 = vmax.xlane.f32.xlu1 %v2813_v43  ;;  %3128 = vmax.xlane.f32.xlu0 %v2812_v35  ;;  %v12411_v17 = vld [vmem:[%s16822_s1 + $0x30] sm:$0xff]  ;;  %v2815_v55 = vsel %vm2747_vm3, %v12122_v40, -1e+30  ;;  %v12454_v40 = vld [vmem:[%s16822_s1 + $0x48] sm:$0xff] }
 0x1b4   : > { %10435 = vmatprep.mubr.msk.f32.mxu1 %vm320_vm1, %v12411_v17 }
 0x1b5   : > { %v12415_v28 = vpop.f32.mrb[60].mxu0  ;;  %v12417_v43 = vpop.f32.mrb[60].mxu1  ;;  %10436 = vmatmul.mubr.msk.f32.gmra.mrb[118].mxu1 %vm320_vm1, %v12426_v54 }
 0x1b6   : > { %16874 = vst [vmem:[#allocation28_spill] sm:$0xff] %v12415_v28  ;;  %16875 = vst [vmem:[#allocation29_spill] sm:$0xff] %v12417_v43  ;;  %v12419_v35 = vpop.f32.mrb[61].mxu0  ;;  %v12421_v21 = vpop.f32.mrb[61].mxu1  ;;  %v2814_v43 = vsel %vm2747_vm3, %v12126_v60, -1e+30 }
 0x1b7   : > { %16876 = vst [vmem:[#allocation30_spill] sm:$0xff] %v12419_v35  ;;  %16877 = vst [vmem:[#allocation31_spill] sm:$0xff] %v12421_v21  ;;  %3102 = vmax.xlane.f32.xlu1 %v2799_v48  ;;  %3100 = vmax.xlane.f32.xlu0 %v2798_v19  ;;  %v12439_v21 = vld [vmem:[%s16822_s1 + $0x40] sm:$0xff]  ;;  %v2817_v60 = vsel %vm2746_vm2, %v12134_v2, -1e+30  ;;  %v12480_v2 = vld [vmem:[%s16822_s1 + $0x58] sm:$0xff] }
 0x1b8   : > { %10438 = vmatprep.mubr.msk.f32.mxu1 %vm320_vm1, %v12439_v21 }
 0x1b9   : > { %v12443_v35 = vpop.f32.mrb[62].mxu0  ;;  %v12445_v48 = vpop.f32.mrb[62].mxu1  ;;  %10439 = vmatmul.mubr.msk.f32.gmra.mrb[120].mxu1 %vm320_vm1, %v12454_v40 }
 0x1ba   : > { %16878 = vst [vmem:[#allocation32_spill] sm:$0xff] %v12443_v35  ;;  %16879 = vst [vmem:[#allocation33_spill] sm:$0xff] %v12445_v48  ;;  %v12447_v19 = vpop.f32.mrb[63].mxu0  ;;  %v12449_v28 = vpop.f32.mrb[63].mxu1  ;;  %v2816_v48 = vsel %vm2746_vm2, %v12138_v6, -1e+30 }
 0x1bb   : > { %16880 = vst [vmem:[#allocation34_spill] sm:$0xff] %v12447_v19  ;;  %16881 = vst [vmem:[#allocation35_spill] sm:$0xff] %v12449_v28  ;;  %3134 = vmax.xlane.f32.xlu1 %v2815_v55  ;;  %3132 = vmax.xlane.f32.xlu0 %v2814_v43  ;;  %v12467_v28 = vld [vmem:[%s16822_s1 + $0x50] sm:$0xff] }
 0x1bc   : > { %10441 = vmatprep.mubr.msk.f32.mxu1 %vm320_vm1, %v12467_v28  ;;  %v12519_v35 = vld [vmem:[%s16822_s1 + $0x70] sm:$0xff] }
 0x1bd   : > { %v12471_v19 = vpop.f32.mrb[64].mxu0  ;;  %v12473_v55 = vpop.f32.mrb[64].mxu1  ;;  %10442 = vmatmul.mubr.msk.f32.gmra.mrb[122].mxu1 %vm320_vm1, %v12480_v2 }
 0x1be   : > { %16882 = vst [vmem:[#allocation36_spill] sm:$0xff] %v12471_v19  ;;  %16883 = vst [vmem:[#allocation37_spill] sm:$0xff] %v12473_v55  ;;  %v12475_v43 = vpop.f32.mrb[65].mxu0  ;;  %v12484_v6 = vpop.f32.mrb[65].mxu1  ;;  %v2833_v19 = vsel %vm2746_vm2, %v12136_v41, -1e+30 }
 0x1bf   : > { %16884 = vst [vmem:[#allocation38_spill] sm:$0xff] %v12475_v43  ;;  %3138 = vmax.xlane.f32.xlu1 %v2817_v60  ;;  %3136 = vmax.xlane.f32.xlu0 %v2816_v48  ;;  %16885 = vst [vmem:[#allocation39_spill] sm:$0xff] %v12484_v6  ;;  %v2832_v55 = vsel %vm2746_vm2, %v12140_v25, -1e+30  ;;  %v12495_v43 = vld [vmem:[%s16822_s1 + $0x60] sm:$0xff]  ;;  %v12502_v48 = vld [vmem:[%s16822_s1 + $0x68] sm:$0xff] }
 0x1c0   : > { %10444 = vmatprep.mubr.msk.f32.mxu1 %vm320_vm1, %v12495_v43  ;;  %v2819_v25 = vsel %vm2746_vm2, %v12148_v46, -1e+30  ;;  %v2818_v60 = vsel %vm2746_vm2, %v12152_v34, -1e+30  ;;  %v12528_v46 = vld [vmem:[%s16822_s1 + $0x78] sm:$0xff] }
 0x1c1   : > { %10445 = vmatmul.mubr.msk.f32.gmra.mrb[124].mxu1 %vm320_vm1, %v12502_v48  ;;  %v12506_v41 = vpop.f32.mrb[66].mxu0 }
 0x1c2   : > { %v12514_v6 = vpop.f32.mrb[67].mxu0  ;;  %10447 = vmatprep.mubr.msk.f32.mxu1 %vm320_vm1, %v12519_v35 }
 0x1c3   : > { %3170 = vmax.xlane.f32.xlu1 %v2833_v19  ;;  %3168 = vmax.xlane.f32.xlu0 %v2832_v55  ;;  %16886 = vst [vmem:[#allocation40_spill] sm:$0xff] %v12514_v6  ;;  %v12523_v19 = vpop.f32.mrb[66].mxu1  ;;  %v3776_v55 = vld [vmem:[%s11356_s17 + $0x4] sm:$0xf]  ;;  %v2835_v6 = vsel %vm2746_vm2, %v12150_v37, -1e+30 }
 0x1c4   : > { %16887 = vst [vmem:[#allocation41_spill] sm:$0xff] %v12523_v19  ;;  %v12532_v34 = vpop.f32.mrb[67].mxu1  ;;  %v2834_v19 = vsel %vm2746_vm2, %v12154_v49, -1e+30  ;;  %10450 = vmatprep.subr.msk.mxu0 %vm369_vm0, %v3776_v55  ;;  %v2821_v49 = vsel %vm2746_vm2, %v12162_v61, -1e+30 }
 0x1c5   : > { %10448 = vmatmul.mubr.msk.f32.gmra.mrb[126].mxu1 %vm320_vm1, %v12528_v46  ;;  %16888 = vst [vmem:[#allocation42_spill] sm:$0xff] %v12532_v34  ;;  %10451 = vmatpush3.msk.msra.mxu0 %vm369_vm0, %v3776_v55  ;;  %v2820_v34 = vsel %vm2746_vm2, %v12166_v39, -1e+30  ;;  %v2837_v39 = vsel %vm2746_vm2, %v12164_v47, -1e+30 }
 0x1c6   : > { %10478 = vmatprep.mubr.msk.f32.mxu1 %vm320_vm1, %v12326_v10  ;;  %10453 = vmatmul.mubr.msk.f32.vlgmr.msra.gmra.mrb[128].mxu0 %vm320_vm1, %v12342_v32  ;;  %v2823_v47 = vsel %vm2746_vm2, %v12178_v52, -1e+30 }
 0x1c7   : > { %3142 = vmax.xlane.f32.xlu1 %v2819_v25  ;;  %3140 = vmax.xlane.f32.xlu0 %v2818_v60  ;;  %v12547_v25 = vpop.f32.mrb[68].mxu0 }
 0x1c8   : > { %10455 = vmatprep.mubr.msk.f32.mxu0 %vm320_vm1, %v12355_v11  ;;  %v12561_v55 = vpop.f32.mrb[69].mxu0 }
 0x1ca   : > { %10456 = vmatmul.mubr.msk.f32.gmra.mrb[130].mxu0 %vm320_vm1, %v12370_v42 }
 0x1cb   : > { %3174 = vmax.xlane.f32.xlu1 %v2835_v6  ;;  %3172 = vmax.xlane.f32.xlu0 %v2834_v19  ;;  %v12563_v6 = vpop.f32.mrb[68].mxu1 }
 0x1cc   : > { %v12549_v60 = vpop.xlane.xlu1 %3042  ;;  %v12551_v37 = vpop.xlane.xlu0 %3010  ;;  %10458 = vmatprep.mubr.msk.f32.mxu0 %vm320_vm1, %v12383_v3 }
 0x1cd   : > { %16889 = vst [vmem:[#allocation43_spill] sm:$0xff] %v12549_v60  ;;  %16890 = vst [vmem:[#allocation44_spill] sm:$0xff] %v12551_v37  ;;  %v12567_v19 = vpop.f32.mrb[69].mxu1  ;;  %v2836_v37 = vsel %vm2746_vm2, %v12168_v29, -1e+30 }
 0x1ce   : > { %10459 = vmatmul.mubr.msk.f32.gmra.mrb[132].mxu0 %vm320_vm1, %v12398_v36  ;;  %v2822_v29 = vsel %vm2746_vm2, %v12183_v31, -1e+30  ;;  %v2839_v31 = vsel %vm2746_vm2, %v12180_v7, -1e+30  ;;  %v2825_v7 = vsel %vm2747_vm3, %v12197_v45, -1e+30 }
 0x1cf   : > { %3146 = vmax.xlane.f32.xlu1 %v2821_v49  ;;  %3144 = vmax.xlane.f32.xlu0 %v2820_v34  ;;  %v12583_v34 = vpop.f32.mrb[70].mxu0 }
 0x1d0   : > { %v12569_v60 = vpop.xlane.xlu0 %3008  ;;  %v12571_v61 = vpop.xlane.xlu1 %3014  ;;  %10461 = vmatprep.mubr.msk.f32.mxu0 %vm320_vm1, %v12411_v17 }
 0x1d1   : > { %16891 = vst [vmem:[#allocation45_spill] sm:$0xff] %v12569_v60  ;;  %16892 = vst [vmem:[#allocation46_spill] sm:$0xff] %v12571_v61  ;;  %v12597_v60 = vpop.f32.mrb[71].mxu0 }
 0x1d2   : > { %10462 = vmatmul.mubr.msk.f32.gmra.mrb[134].mxu0 %vm320_vm1, %v12426_v54 }
 0x1d3   : > { %3178 = vmax.xlane.f32.xlu1 %v2837_v39  ;;  %3176 = vmax.xlane.f32.xlu0 %v2836_v37  ;;  %v12599_v37 = vpop.f32.mrb[70].mxu1 }
 0x1d4   : > { %v12585_v49 = vpop.xlane.xlu0 %3040  ;;  %v12587_v61 = vpop.xlane.xlu1 %3046  ;;  %10464 = vmatprep.mubr.msk.f32.mxu0 %vm320_vm1, %v12439_v21 }
 0x1d5   : > { %16893 = vst [vmem:[#allocation47_spill] sm:$0xff] %v12585_v49  ;;  %16894 = vst [vmem:[#allocation48_spill] sm:$0xff] %v12587_v61  ;;  %v12603_v39 = vpop.f32.mrb[71].mxu1  ;;  %v2838_v49 = vsel %vm2746_vm2, %v12185_v38, -1e+30 }
 0x1d6   : > { %10465 = vmatmul.mubr.msk.f32.gmra.mrb[136].mxu0 %vm320_vm1, %v12454_v40  ;;  %v2824_v38 = vsel %vm2747_vm3, %v12201_v30, -1e+30  ;;  %v2841_v30 = vsel %vm2747_vm3, %v12199_v26, -1e+30  ;;  %v2827_v26 = vsel %vm2747_vm3, %v12215_v58, -1e+30 }
 0x1d7   : > { %3150 = vmax.xlane.f32.xlu1 %v2823_v47  ;;  %3148 = vmax.xlane.f32.xlu0 %v2822_v29  ;;  %v12619_v47 = vpop.f32.mrb[72].mxu0 }
 0x1d8   : > { %v12605_v61 = vpop.xlane.xlu0 %3044  ;;  %v12607_v52 = vpop.xlane.xlu1 %3012  ;;  %10467 = vmatprep.mubr.msk.f32.mxu0 %vm320_vm1, %v12467_v28 }
 0x1d9   : > { %16895 = vst [vmem:[#allocation49_spill] sm:$0xff] %v12605_v61  ;;  %16896 = vst [vmem:[#allocation50_spill] sm:$0xff] %v12607_v52  ;;  %v12633_v52 = vpop.f32.mrb[73].mxu0 }
 0x1da   : > { %10468 = vmatmul.mubr.msk.f32.gmra.mrb[138].mxu0 %vm320_vm1, %v12480_v2 }
 0x1db   : > { %3182 = vmax.xlane.f32.xlu1 %v2839_v31  ;;  %3180 = vmax.xlane.f32.xlu0 %v2838_v49  ;;  %v12635_v49 = vpop.f32.mrb[72].mxu1 }
 0x1dc   : > { %v12621_v29 = vpop.xlane.xlu1 %3018  ;;  %v12623_v61 = vpop.xlane.xlu0 %3016  ;;  %10470 = vmatprep.mubr.msk.f32.mxu0 %vm320_vm1, %v12495_v43 }
 0x1dd   : > { %16897 = vst [vmem:[#allocation51_spill] sm:$0xff] %v12621_v29  ;;  %16898 = vst [vmem:[#allocation52_spill] sm:$0xff] %v12623_v61  ;;  %v12639_v31 = vpop.f32.mrb[73].mxu1  ;;  %v2840_v29 = vsel %vm2747_vm3, %v12203_v4, -1e+30 }
 0x1de   : > { %10471 = vmatmul.mubr.msk.f32.gmra.mrb[140].mxu0 %vm320_vm1, %v12502_v48  ;;  %v2826_v4 = vsel %vm2747_vm3, %v12219_v50, -1e+30  ;;  %v2843_v50 = vsel %vm2747_vm3, %v12217_v44, -1e+30 }
 0x1df   : > { %3154 = vmax.xlane.f32.xlu1 %v2825_v7  ;;  %3152 = vmax.xlane.f32.xlu0 %v2824_v38  ;;  %v12655_v7 = vpop.f32.mrb[74].mxu0 }
 0x1e0   : > { %v12641_v61 = vpop.xlane.xlu1 %3050  ;;  %v12643_v45 = vpop.xlane.xlu0 %3048  ;;  %10473 = vmatprep.mubr.msk.f32.mxu0 %vm320_vm1, %v12519_v35 }
 0x1e1   : > { %16899 = vst [vmem:[#allocation53_spill] sm:$0xff] %v12641_v61  ;;  %16900 = vst [vmem:[#allocation54_spill] sm:$0xff] %v12643_v45  ;;  %v12669_v61 = vpop.f32.mrb[75].mxu0 }
 0x1e2   : > { %10474 = vmatmul.mubr.msk.f32.gmra.mrb[142].mxu0 %vm320_vm1, %v12528_v46 }
 0x1e3   : > { %3186 = vmax.xlane.f32.xlu1 %v2841_v30  ;;  %3184 = vmax.xlane.f32.xlu0 %v2840_v29  ;;  %v12671_v29 = vpop.f32.mrb[74].mxu1 }
 0x1e4   : > { %v12657_v38 = vpop.xlane.xlu1 %3022  ;;  %v12659_v45 = vpop.xlane.xlu0 %3020  ;;  %16903 = vst [vmem:[#allocation57_spill] sm:$0xff] %v12671_v29  ;;  %v2842_v29 = vsel %vm2747_vm3, %v12221_v8, -1e+30  ;;  %10504 = vmatprep.mubr.msk.f32.mxu0 %vm320_vm1, %v12326_v10  ;;  %v2829_v8 = vsel %vm2747_vm3, %v12233_v59, -1e+30 }
 0x1e5   : > { %16901 = vst [vmem:[#allocation55_spill] sm:$0xff] %v12657_v38  ;;  %16902 = vst [vmem:[#allocation56_spill] sm:$0xff] %v12659_v45  ;;  %v12675_v30 = vpop.f32.mrb[75].mxu1  ;;  %v3777_v45 = vld [vmem:[%s11356_s17 + $0xc] sm:$0xf] }
 0x1e6   : > { %10476 = vmatprep.subr.msk.mxu1 %vm369_vm0, %v3777_v45 }
 0x1e7   : > { %3158 = vmax.xlane.f32.xlu1 %v2827_v26  ;;  %3156 = vmax.xlane.f32.xlu0 %v2826_v4  ;;  %v12694_v26 = vpop.f32.mrb[76].mxu0 }
 0x1e8   : > { %v12678_v58 = vpop.xlane.xlu1 %3054  ;;  %v12680_v38 = vpop.xlane.xlu0 %3052  ;;  %10477 = vmatpush3.msk.msra.mxu1 %vm369_vm0, %v3777_v45 }
 0x1e9   : > { %16904 = vst [vmem:[#allocation58_spill] sm:$0xff] %v12678_v58  ;;  %16905 = vst [vmem:[#allocation59_spill] sm:$0xff] %v12680_v38  ;;  %10479 = vmatmul.mubr.msk.f32.vlgmr.msra.gmra.mrb[128].mxu1 %vm320_vm1, %v12342_v32  ;;  %v2828_v38 = vsel %vm2747_vm3, %v12237_v53, -1e+30  ;;  %v12708_v45 = vpop.f32.mrb[77].mxu0 }
 0x1ea   : > { %10481 = vmatprep.mubr.msk.f32.mxu1 %vm320_vm1, %v12355_v11  ;;  %v2845_v53 = vsel %vm2747_vm3, %v12235_v51, -1e+30  ;;  %v2831_v51 = vsel %vm2747_vm3, %v12251_v0, -1e+30 }
 0x1eb   : > { %3190 = vmax.xlane.f32.xlu1 %v2843_v50  ;;  %3188 = vmax.xlane.f32.xlu0 %v2842_v29  ;;  %v12710_v29 = vpop.f32.mrb[76].mxu1 }
 0x1ec   : > { %v12696_v4 = vpop.xlane.xlu1 %3026  ;;  %v12698_v44 = vpop.xlane.xlu0 %3024 }
 0x1ed   : > { %16906 = vst [vmem:[#allocation60_spill] sm:$0xff] %v12696_v4  ;;  %16907 = vst [vmem:[#allocation61_spill] sm:$0xff] %v12698_v44  ;;  %10482 = vmatmul.mubr.msk.f32.gmra.mrb[130].mxu1 %vm320_vm1, %v12370_v42  ;;  %v12714_v50 = vpop.f32.mrb[77].mxu1  ;;  %v2844_v44 = vsel %vm2747_vm3, %v12239_v12, -1e+30 }
 0x1ee   : > { %10484 = vmatprep.mubr.msk.f32.mxu1 %vm320_vm1, %v12383_v3  ;;  %v2830_v12 = vsel %vm2747_vm3, %v12255_v5, -1e+30  ;;  %v2847_v5 = vsel %vm2747_vm3, %v12253_v56, -1e+30  ;;  %v2849_v56 = vsel %vm2746_vm2, %v12269_v1, -1e+30 }
 0x1ef   : > { %3162 = vmax.xlane.f32.xlu1 %v2829_v8  ;;  %3160 = vmax.xlane.f32.xlu0 %v2828_v38  ;;  %v12730_v38 = vpop.f32.mrb[78].mxu0  ;;  %v2865_v1 = vsel %vm2746_vm2, %v12271_v57, -1e+30  ;;  %v2851_v57 = vsel %vm2746_vm2, %v12287_v23, -1e+30 }
 0x1f0   : > { %v12716_v58 = vpop.xlane.xlu1 %3058  ;;  %v12718_v59 = vpop.xlane.xlu0 %3056 }
 0x1f1   : > { %16908 = vst [vmem:[#allocation62_spill] sm:$0xff] %v12716_v58  ;;  %16909 = vst [vmem:[#allocation63_spill] sm:$0xff] %v12718_v59  ;;  %10485 = vmatmul.mubr.msk.f32.gmra.mrb[132].mxu1 %vm320_vm1, %v12398_v36  ;;  %v12744_v58 = vpop.f32.mrb[79].mxu0 }
 0x1f2   : > { %10487 = vmatprep.mubr.msk.f32.mxu1 %vm320_vm1, %v12411_v17 }
 0x1f3   : > { %3194 = vmax.xlane.f32.xlu1 %v2845_v53  ;;  %3192 = vmax.xlane.f32.xlu0 %v2844_v44  ;;  %v12746_v44 = vpop.f32.mrb[78].mxu1 }
 0x1f4   : > { %v12732_v8 = vpop.xlane.xlu1 %3030  ;;  %v12734_v59 = vpop.xlane.xlu0 %3028 }
 0x1f5   : > { %16910 = vst [vmem:[#allocation64_spill] sm:$0xff] %v12732_v8  ;;  %16911 = vst [vmem:[#allocation65_spill] sm:$0xff] %v12734_v59  ;;  %10488 = vmatmul.mubr.msk.f32.gmra.mrb[134].mxu1 %vm320_vm1, %v12426_v54  ;;  %v12750_v53 = vpop.f32.mrb[79].mxu1  ;;  %v2846_v8 = vsel %vm2747_vm3, %v12257_v14, -1e+30 }
 0x1f6   : > { %10490 = vmatprep.mubr.msk.f32.mxu1 %vm320_vm1, %v12439_v21  ;;  %v2848_v14 = vsel %vm2746_vm2, %v12273_v9, -1e+30  ;;  %v2864_v9 = vsel %vm2746_vm2, %v12275_v16, -1e+30 }
 0x1f7   : > { %3166 = vmax.xlane.f32.xlu1 %v2831_v51  ;;  %3164 = vmax.xlane.f32.xlu0 %v2830_v12  ;;  %v12766_v51 = vpop.f32.mrb[80].mxu0 }
 0x1f8   : > { %v12752_v59 = vpop.xlane.xlu1 %3062  ;;  %v12754_v0 = vpop.xlane.xlu0 %3060 }
 0x1f9   : > { %16912 = vst [vmem:[#allocation66_spill] sm:$0xff] %v12752_v59  ;;  %16913 = vst [vmem:[#allocation67_spill] sm:$0xff] %v12754_v0  ;;  %10491 = vmatmul.mubr.msk.f32.gmra.mrb[136].mxu1 %vm320_vm1, %v12454_v40  ;;  %v12780_v59 = vpop.f32.mrb[81].mxu0 }
 0x1fa   : > { %10493 = vmatprep.mubr.msk.f32.mxu1 %vm320_vm1, %v12467_v28 }
 0x1fb   : > { %3198 = vmax.xlane.f32.xlu1 %v2847_v5  ;;  %3196 = vmax.xlane.f32.xlu0 %v2846_v8  ;;  %v12782_v8 = vpop.f32.mrb[80].mxu1 }
 0x1fc   : > { %v12768_v12 = vpop.xlane.xlu1 %3034  ;;  %v12770_v0 = vpop.xlane.xlu0 %3032 }
 0x1fd   : > { %16914 = vst [vmem:[#allocation68_spill] sm:$0xff] %v12768_v12  ;;  %16915 = vst [vmem:[#allocation69_spill] sm:$0xff] %v12770_v0  ;;  %10494 = vmatmul.mubr.msk.f32.gmra.mrb[138].mxu1 %vm320_vm1, %v12480_v2  ;;  %v12786_v5 = vpop.f32.mrb[81].mxu1 }
 0x1fe   : > { %10496 = vmatprep.mubr.msk.f32.mxu1 %vm320_vm1, %v12495_v43 }
 0x1ff   : > { %3202 = vmax.xlane.f32.xlu1 %v2849_v56  ;;  %3200 = vmax.xlane.f32.xlu0 %v2848_v14  ;;  %v12802_v56 = vpop.f32.mrb[82].mxu0 }
 0x200   : > { %v12794_v0 = vpop.xlane.xlu1 %3066  ;;  %v12796_v12 = vpop.xlane.xlu0 %3064 }
 0x201   : > { %16916 = vst [vmem:[#allocation70_spill] sm:$0xff] %v12794_v0  ;;  %16917 = vst [vmem:[#allocation71_spill] sm:$0xff] %v12796_v12  ;;  %10497 = vmatmul.mubr.msk.f32.gmra.mrb[140].mxu1 %vm320_vm1, %v12502_v48  ;;  %v2850_v12 = vsel %vm2746_vm2, %v12291_v13, -1e+30  ;;  %v12816_v0 = vpop.f32.mrb[83].mxu0 }
 0x202   : > { %10499 = vmatprep.mubr.msk.f32.mxu1 %vm320_vm1, %v12519_v35  ;;  %v2866_v13 = vsel %vm2746_vm2, %v12293_v18, -1e+30  ;;  %v2853_v18 = vsel %vm2746_vm2, %v12305_v24, -1e+30 }
 0x203   : > { %3234 = vmax.xlane.f32.xlu1 %v2865_v1  ;;  %3232 = vmax.xlane.f32.xlu0 %v2864_v9  ;;  %v12818_v1 = vpop.f32.mrb[82].mxu1  ;;  %v3778_v9 = vld [vmem:[%s11356_s17 + $0x14] sm:$0xf] }
 0x204   : > { %v12807_v16 = vpop.xlane.xlu1 %3038  ;;  %v12809_v14 = vpop.xlane.xlu0 %3036  ;;  %10502 = vmatprep.subr.msk.mxu0 %vm369_vm0, %v3778_v9 }
 0x205   : > { %16918 = vst [vmem:[#allocation72_spill] sm:$0xff] %v12807_v16  ;;  %16919 = vst [vmem:[#allocation73_spill] sm:$0xff] %v12809_v14  ;;  %10500 = vmatmul.mubr.msk.f32.gmra.mrb[142].mxu1 %vm320_vm1, %v12528_v46  ;;  %v12822_v23 = vpop.f32.mrb[83].mxu1  ;;  %v2867_v14 = vsel %vm2746_vm2, %v12289_v62, -1e+30  ;;  %10503 = vmatpush3.msk.msra.mxu0 %vm369_vm0, %v3778_v9  ;;  %v12841_v62 = vpop.f32.mrb[84].mxu0 }
 0x206   : > { %10530 = vmatprep.mubr.msk.f32.mxu1 %vm320_vm1, %v12326_v10  ;;  %10505 = vmatmul.mubr.msk.f32.vlgmr.msra.gmra.mrb[144].mxu0 %vm320_vm1, %v12342_v32  ;;  %v12855_v9 = vpop.f32.mrb[85].mxu0 }
 0x207   : > { %3206 = vmax.xlane.f32.xlu1 %v2851_v57  ;;  %3204 = vmax.xlane.f32.xlu0 %v2850_v12 }
 0x208   : > { %v12831_v16 = vpop.xlane.xlu1 %3070  ;;  %v12833_v4 = vpop.xlane.xlu0 %3068  ;;  %10507 = vmatprep.mubr.msk.f32.mxu0 %vm320_vm1, %v12355_v11 }
 0x209   : > { %16920 = vst [vmem:[#allocation74_spill] sm:$0xff] %v12831_v16  ;;  %16921 = vst [vmem:[#allocation75_spill] sm:$0xff] %v12833_v4  ;;  %v2852_v4 = vsel %vm2746_vm2, %v12309_v15, -1e+30  ;;  %v2868_v15 = vsel %vm2746_vm2, %v12311_v20, -1e+30 }
 0x20a   : > { %10508 = vmatmul.mubr.msk.f32.gmra.mrb[146].mxu0 %vm320_vm1, %v12370_v42 }
 0x20b   : > { %3238 = vmax.xlane.f32.xlu1 %v2867_v14  ;;  %3236 = vmax.xlane.f32.xlu0 %v2866_v13  ;;  %v12857_v14 = vpop.f32.mrb[84].mxu1  ;;  %v2869_v13 = vsel %vm2746_vm2, %v12307_v63, -1e+30  ;;  %v2855_v63 = vsel %vm2746_vm2, %v12330_v22, -1e+30 }
 0x20c   : > { %v12846_v12 = vpop.xlane.xlu1 %3074  ;;  %v12848_v57 = vpop.xlane.xlu0 %3072  ;;  %10510 = vmatprep.mubr.msk.f32.mxu0 %vm320_vm1, %v12383_v3 }
 0x20d   : > { %16922 = vst [vmem:[#allocation76_spill] sm:$0xff] %v12846_v12  ;;  %16923 = vst [vmem:[#allocation77_spill] sm:$0xff] %v12848_v57  ;;  %v12861_v24 = vpop.f32.mrb[85].mxu1 }
 0x20e   : > { %16924 = vst [vmem:[#allocation78_spill] sm:$0xff] %v12861_v24  ;;  %10511 = vmatmul.mubr.msk.f32.gmra.mrb[148].mxu0 %vm320_vm1, %v12398_v36 }
 0x20f   : > { %3210 = vmax.xlane.f32.xlu1 %v2853_v18  ;;  %3208 = vmax.xlane.f32.xlu0 %v2852_v4  ;;  %v12877_v4 = vpop.f32.mrb[86].mxu0 }
 0x210   : > { %v12869_v57 = vpop.xlane.xlu1 %3106  ;;  %v12871_v12 = vpop.xlane.xlu0 %3104  ;;  %16927 = vst [vmem:[#allocation81_spill] sm:$0xff] %v12877_v4  ;;  %10513 = vmatprep.mubr.msk.f32.mxu0 %vm320_vm1, %v12411_v17 }
 0x211   : > { %16925 = vst [vmem:[#allocation79_spill] sm:$0xff] %v12869_v57  ;;  %16926 = vst [vmem:[#allocation80_spill] sm:$0xff] %v12871_v12  ;;  %v16930_v57 = vld [vmem:[#allocation18_spill] sm:$0xff]  ;;  %v12891_v16 = vpop.f32.mrb[87].mxu0 }
 0x212   : > { %v2854_v12 = vsel %vm2746_vm2, %v16930_v57, -1e+30  ;;  %16931 = vst [vmem:[#allocation18_spill] sm:$0xff] %v12891_v16  ;;  %10514 = vmatmul.mubr.msk.f32.gmra.mrb[150].mxu0 %vm320_vm1, %v12426_v54 }
 0x213   : > { %3242 = vmax.xlane.f32.xlu1 %v2869_v13  ;;  %3240 = vmax.xlane.f32.xlu0 %v2868_v15  ;;  %v12893_v13 = vpop.f32.mrb[86].mxu1  ;;  %v16934_v15 = vld [vmem:[#allocation17_spill] sm:$0xff] }
 0x214   : > { %v12882_v18 = vpop.xlane.xlu1 %3078  ;;  %v12884_v20 = vpop.xlane.xlu0 %3076  ;;  %16932 = vst [vmem:[#allocation84_spill] sm:$0xff] %v12893_v13  ;;  %10516 = vmatprep.mubr.msk.f32.mxu0 %vm320_vm1, %v12439_v21 }
 0x215   : > { %16928 = vst [vmem:[#allocation82_spill] sm:$0xff] %v12882_v18  ;;  %16929 = vst [vmem:[#allocation83_spill] sm:$0xff] %v12884_v20  ;;  %v12897_v22 = vpop.f32.mrb[87].mxu1  ;;  %v2871_v20 = vsel %vm2746_vm2, %v16934_v15, -1e+30  ;;  %v16935_v18 = vld [vmem:[#allocation19_spill] sm:$0xff] }
 0x216   : > { %16933 = vst [vmem:[#allocation85_spill] sm:$0xff] %v12897_v22  ;;  %v2870_v57 = vsel %vm2746_vm2, %v16935_v18, -1e+30  ;;  %10517 = vmatmul.mubr.msk.f32.gmra.mrb[152].mxu0 %vm320_vm1, %v12454_v40 }
 0x217   : > { %3214 = vmax.xlane.f32.xlu1 %v2855_v63  ;;  %3212 = vmax.xlane.f32.xlu0 %v2854_v12  ;;  %v12913_v12 = vpop.f32.mrb[88].mxu0  ;;  %v16939_v63 = vld [vmem:[#allocation20_spill] sm:$0xff] }
 0x218   : > { %v12905_v4 = vpop.xlane.xlu1 %3110  ;;  %v12907_v16 = vpop.xlane.xlu0 %3108  ;;  %16938 = vst [vmem:[#allocation86_spill] sm:$0xff] %v12913_v12  ;;  %v2857_v15 = vsel %vm2747_vm3, %v16939_v63, -1e+30  ;;  %10519 = vmatprep.mubr.msk.f32.mxu0 %vm320_vm1, %v12467_v28  ;;  %v16946_v63 = vld [vmem:[#allocation21_spill] sm:$0xff] }
 0x219   : > { %16936 = vst [vmem:[#allocation17_spill] sm:$0xff] %v12905_v4  ;;  %16937 = vst [vmem:[#allocation19_spill] sm:$0xff] %v12907_v16  ;;  %v16942_v4 = vld [vmem:[#allocation22_spill] sm:$0xff]  ;;  %v12927_v13 = vpop.f32.mrb[89].mxu0 }
 0x21a   : > { %v2856_v16 = vsel %vm2747_vm3, %v16942_v4, -1e+30  ;;  %16943 = vst [vmem:[#allocation22_spill] sm:$0xff] %v12927_v13  ;;  %10520 = vmatmul.mubr.msk.f32.gmra.mrb[154].mxu0 %vm320_vm1, %v12480_v2 }
 0x21b   : > { %3246 = vmax.xlane.f32.xlu1 %v2871_v20  ;;  %3244 = vmax.xlane.f32.xlu0 %v2870_v57  ;;  %v12929_v20 = vpop.f32.mrb[88].mxu1 }
 0x21c   : > { %v12918_v22 = vpop.xlane.xlu1 %3082  ;;  %v12920_v18 = vpop.xlane.xlu0 %3080  ;;  %16944 = vst [vmem:[#allocation88_spill] sm:$0xff] %v12929_v20  ;;  %10522 = vmatprep.mubr.msk.f32.mxu0 %vm320_vm1, %v12495_v43 }
 0x21d   : > { %16940 = vst [vmem:[#allocation20_spill] sm:$0xff] %v12918_v22  ;;  %16941 = vst [vmem:[#allocation87_spill] sm:$0xff] %v12920_v18  ;;  %v12933_v57 = vpop.f32.mrb[89].mxu1  ;;  %v2873_v18 = vsel %vm2747_vm3, %v16946_v63, -1e+30  ;;  %v16947_v22 = vld [vmem:[#allocation23_spill] sm:$0xff] }
 0x21e   : > { %16945 = vst [vmem:[#allocation89_spill] sm:$0xff] %v12933_v57  ;;  %v2872_v4 = vsel %vm2747_vm3, %v16947_v22, -1e+30  ;;  %10523 = vmatmul.mubr.msk.f32.gmra.mrb[156].mxu0 %vm320_vm1, %v12502_v48 }
 0x21f   : > { %3218 = vmax.xlane.f32.xlu1 %v2857_v15  ;;  %3216 = vmax.xlane.f32.xlu0 %v2856_v16  ;;  %v12949_v16 = vpop.f32.mrb[90].mxu0  ;;  %v16951_v15 = vld [vmem:[#allocation24_spill] sm:$0xff] }
 0x220   : > { %v12941_v12 = vpop.xlane.xlu1 %3114  ;;  %v12943_v13 = vpop.xlane.xlu0 %3112  ;;  %16950 = vst [vmem:[#allocation90_spill] sm:$0xff] %v12949_v16  ;;  %v2859_v63 = vsel %vm2747_vm3, %v16951_v15, -1e+30  ;;  %10525 = vmatprep.mubr.msk.f32.mxu0 %vm320_vm1, %v12519_v35  ;;  %v3779_v15 = vld [vmem:[%s11356_s17 + $0x1c] sm:$0xf] }
 0x221   : > { %16948 = vst [vmem:[#allocation21_spill] sm:$0xff] %v12941_v12  ;;  %16949 = vst [vmem:[#allocation23_spill] sm:$0xff] %v12943_v13  ;;  %v16954_v13 = vld [vmem:[#allocation26_spill] sm:$0xff]  ;;  %v12963_v20 = vpop.f32.mrb[91].mxu0  ;;  %10528 = vmatprep.subr.msk.mxu1 %vm369_vm0, %v3779_v15 }
 0x222   : > { %v2858_v57 = vsel %vm2747_vm3, %v16954_v13, -1e+30  ;;  %16955 = vst [vmem:[#allocation26_spill] sm:$0xff] %v12963_v20  ;;  %10526 = vmatmul.mubr.msk.f32.gmra.mrb[158].mxu0 %vm320_vm1, %v12528_v46  ;;  %v16958_v13 = vld [vmem:[#allocation27_spill] sm:$0xff]  ;;  %10529 = vmatpush3.msk.msra.mxu1 %vm369_vm0, %v3779_v15 }
 0x223   : > { %3250 = vmax.xlane.f32.xlu1 %v2873_v18  ;;  %3248 = vmax.xlane.f32.xlu0 %v2872_v4  ;;  %v12965_v18 = vpop.f32.mrb[90].mxu1  ;;  %v2874_v16 = vsel %vm2747_vm3, %v16958_v13, -1e+30 }
 0x224   : > { %v12954_v22 = vpop.xlane.xlu1 %3086  ;;  %v12956_v12 = vpop.xlane.xlu0 %3084  ;;  %10556 = vmatprep.mubr.msk.f32.mxu0 %vm320_vm1, %v12326_v10  ;;  %10531 = vmatmul.mubr.msk.f32.vlgmr.msra.gmra.mrb[144].mxu1 %vm320_vm1, %v12342_v32 }
 0x225   : > { %16952 = vst [vmem:[#allocation24_spill] sm:$0xff] %v12954_v22  ;;  %16953 = vst [vmem:[#allocation91_spill] sm:$0xff] %v12956_v12  ;;  %v12969_v4 = vpop.f32.mrb[91].mxu1  ;;  %v16957_v12 = vld [vmem:[#allocation25_spill] sm:$0xff]  ;;  %10533 = vmatprep.mubr.msk.f32.mxu1 %vm320_vm1, %v12355_v11 }
 0x226   : > { %16956 = vst [vmem:[#allocation92_spill] sm:$0xff] %v12969_v4  ;;  %v2875_v22 = vsel %vm2747_vm3, %v16957_v12, -1e+30  ;;  %v12988_v12 = vpop.f32.mrb[92].mxu0 }
 0x227   : > { %3222 = vmax.xlane.f32.xlu1 %v2859_v63  ;;  %3220 = vmax.xlane.f32.xlu0 %v2858_v57  ;;  %16961 = vst [vmem:[#allocation93_spill] sm:$0xff] %v12988_v12  ;;  %v16962_v57 = vld [vmem:[#allocation28_spill] sm:$0xff]  ;;  %v13002_v15 = vpop.f32.mrb[93].mxu0 }
 0x228   : > { %v12978_v24 = vpop.xlane.xlu1 %3118  ;;  %v12980_v20 = vpop.xlane.xlu0 %3116  ;;  %v2861_v63 = vsel %vm2747_vm3, %v16962_v57, -1e+30  ;;  %10534 = vmatmul.mubr.msk.f32.gmra.mrb[146].mxu1 %vm320_vm1, %v12370_v42  ;;  %v16969_v57 = vld [vmem:[#allocation29_spill] sm:$0xff] }
 0x229   : > { %16959 = vst [vmem:[#allocation25_spill] sm:$0xff] %v12978_v24  ;;  %16960 = vst [vmem:[#allocation27_spill] sm:$0xff] %v12980_v20  ;;  %v16965_v24 = vld [vmem:[#allocation30_spill] sm:$0xff]  ;;  %10536 = vmatprep.mubr.msk.f32.mxu1 %vm320_vm1, %v12383_v3 }
 0x22a   : > { %v2860_v4 = vsel %vm2747_vm3, %v16965_v24, -1e+30  ;;  %16966 = vst [vmem:[#allocation30_spill] sm:$0xff] %v13002_v15 }
 0x22b   : > { %3254 = vmax.xlane.f32.xlu1 %v2875_v22  ;;  %3252 = vmax.xlane.f32.xlu0 %v2874_v16  ;;  %v13004_v16 = vpop.f32.mrb[92].mxu1 }
 0x22c   : > { %v12993_v13 = vpop.xlane.xlu1 %3090  ;;  %v12995_v20 = vpop.xlane.xlu0 %3088  ;;  %16967 = vst [vmem:[#allocation95_spill] sm:$0xff] %v13004_v16  ;;  %10537 = vmatmul.mubr.msk.f32.gmra.mrb[148].mxu1 %vm320_vm1, %v12398_v36 }
 0x22d   : > { %16963 = vst [vmem:[#allocation28_spill] sm:$0xff] %v12993_v13  ;;  %16964 = vst [vmem:[#allocation94_spill] sm:$0xff] %v12995_v20  ;;  %v13008_v22 = vpop.f32.mrb[93].mxu1  ;;  %v2877_v20 = vsel %vm2747_vm3, %v16969_v57, -1e+30  ;;  %v16970_v13 = vld [vmem:[#allocation31_spill] sm:$0xff]  ;;  %10539 = vmatprep.mubr.msk.f32.mxu1 %vm320_vm1, %v12411_v17 }
 0x22e   : > { %16968 = vst [vmem:[#allocation96_spill] sm:$0xff] %v13008_v22  ;;  %v2876_v24 = vsel %vm2747_vm3, %v16970_v13, -1e+30 }
 0x22f   : > { %3226 = vmax.xlane.f32.xlu1 %v2861_v63  ;;  %3224 = vmax.xlane.f32.xlu0 %v2860_v4  ;;  %v13024_v4 = vpop.f32.mrb[94].mxu0  ;;  %v16974_v63 = vld [vmem:[#allocation32_spill] sm:$0xff] }
 0x230   : > { %v13016_v12 = vpop.xlane.xlu1 %3122  ;;  %v13018_v15 = vpop.xlane.xlu0 %3120  ;;  %16973 = vst [vmem:[#allocation97_spill] sm:$0xff] %v13024_v4  ;;  %v2863_v57 = vsel %vm2747_vm3, %v16974_v63, -1e+30  ;;  %10540 = vmatmul.mubr.msk.f32.gmra.mrb[150].mxu1 %vm320_vm1, %v12426_v54  ;;  %v16981_v63 = vld [vmem:[#allocation33_spill] sm:$0xff] }
 0x231   : > { %16971 = vst [vmem:[#allocation29_spill] sm:$0xff] %v13016_v12  ;;  %16972 = vst [vmem:[#allocation31_spill] sm:$0xff] %v13018_v15  ;;  %v16977_v12 = vld [vmem:[#allocation34_spill] sm:$0xff]  ;;  %v13038_v16 = vpop.f32.mrb[95].mxu0  ;;  %10542 = vmatprep.mubr.msk.f32.mxu1 %vm320_vm1, %v12439_v21 }
 0x232   : > { %v2862_v15 = vsel %vm2747_vm3, %v16977_v12, -1e+30  ;;  %16978 = vst [vmem:[#allocation34_spill] sm:$0xff] %v13038_v16 }
 0x233   : > { %3258 = vmax.xlane.f32.xlu1 %v2877_v20  ;;  %3256 = vmax.xlane.f32.xlu0 %v2876_v24  ;;  %v13040_v20 = vpop.f32.mrb[94].mxu1 }
 0x234   : > { %v13029_v22 = vpop.xlane.xlu1 %3094  ;;  %v13031_v13 = vpop.xlane.xlu0 %3092  ;;  %16979 = vst [vmem:[#allocation99_spill] sm:$0xff] %v13040_v20  ;;  %10543 = vmatmul.mubr.msk.f32.gmra.mrb[152].mxu1 %vm320_vm1, %v12454_v40 }
 0x235   : > { %16975 = vst [vmem:[#allocation32_spill] sm:$0xff] %v13029_v22  ;;  %16976 = vst [vmem:[#allocation98_spill] sm:$0xff] %v13031_v13  ;;  %v13044_v24 = vpop.f32.mrb[95].mxu1  ;;  %v2879_v13 = vsel %vm2747_vm3, %v16981_v63, -1e+30  ;;  %v16982_v22 = vld [vmem:[#allocation35_spill] sm:$0xff]  ;;  %10545 = vmatprep.mubr.msk.f32.mxu1 %vm320_vm1, %v12467_v28 }
 0x236   : > { %16980 = vst [vmem:[#allocation100_spill] sm:$0xff] %v13044_v24  ;;  %v2878_v12 = vsel %vm2747_vm3, %v16982_v22, -1e+30 }
 0x237   : > { %3230 = vmax.xlane.f32.xlu1 %v2863_v57  ;;  %3228 = vmax.xlane.f32.xlu0 %v2862_v15  ;;  %v13060_v15 = vpop.f32.mrb[96].mxu0  ;;  %v16986_v57 = vld [vmem:[#allocation36_spill] sm:$0xff] }
 0x238   : > { %v13052_v4 = vpop.xlane.xlu1 %3126  ;;  %v13054_v16 = vpop.xlane.xlu0 %3124  ;;  %16985 = vst [vmem:[#allocation101_spill] sm:$0xff] %v13060_v15  ;;  %v2881_v63 = vsel %vm2746_vm2, %v16986_v57, -1e+30  ;;  %10546 = vmatmul.mubr.msk.f32.gmra.mrb[154].mxu1 %vm320_vm1, %v12480_v2  ;;  %v16993_v57 = vld [vmem:[#allocation37_spill] sm:$0xff] }
 0x239   : > { %16983 = vst [vmem:[#allocation33_spill] sm:$0xff] %v13052_v4  ;;  %16984 = vst [vmem:[#allocation35_spill] sm:$0xff] %v13054_v16  ;;  %v16989_v4 = vld [vmem:[#allocation38_spill] sm:$0xff]  ;;  %v13074_v20 = vpop.f32.mrb[97].mxu0  ;;  %10548 = vmatprep.mubr.msk.f32.mxu1 %vm320_vm1, %v12495_v43 }
 0x23a   : > { %v2880_v16 = vsel %vm2746_vm2, %v16989_v4, -1e+30  ;;  %16990 = vst [vmem:[#allocation38_spill] sm:$0xff] %v13074_v20 }
 0x23b   : > { %3262 = vmax.xlane.f32.xlu1 %v2879_v13  ;;  %3260 = vmax.xlane.f32.xlu0 %v2878_v12  ;;  %v13076_v13 = vpop.f32.mrb[96].mxu1 }
 0x23c   : > { %v13065_v24 = vpop.xlane.xlu1 %3098  ;;  %v13067_v22 = vpop.xlane.xlu0 %3096  ;;  %16991 = vst [vmem:[#allocation103_spill] sm:$0xff] %v13076_v13  ;;  %10549 = vmatmul.mubr.msk.f32.gmra.mrb[156].mxu1 %vm320_vm1, %v12502_v48 }
 0x23d   : > { %16987 = vst [vmem:[#allocation36_spill] sm:$0xff] %v13065_v24  ;;  %16988 = vst [vmem:[#allocation102_spill] sm:$0xff] %v13067_v22  ;;  %v13080_v12 = vpop.f32.mrb[97].mxu1  ;;  %v2897_v22 = vsel %vm2746_vm2, %v16993_v57, -1e+30  ;;  %v16994_v24 = vld [vmem:[#allocation39_spill] sm:$0xff]  ;;  %10551 = vmatprep.mubr.msk.f32.mxu1 %vm320_vm1, %v12519_v35 }
 0x23e   : > { %16992 = vst [vmem:[#allocation104_spill] sm:$0xff] %v13080_v12  ;;  %v2896_v4 = vsel %vm2746_vm2, %v16994_v24, -1e+30 }
 0x23f   : > { %3266 = vmax.xlane.f32.xlu1 %v2881_v63  ;;  %3264 = vmax.xlane.f32.xlu0 %v2880_v16  ;;  %v13096_v16 = vpop.f32.mrb[98].mxu0  ;;  %v2883_v63 = vsel %vm2746_vm2, %v12506_v41, -1e+30 }
 0x240   : > { %v13088_v15 = vpop.xlane.xlu1 %3130  ;;  %v13090_v20 = vpop.xlane.xlu0 %3128  ;;  %16997 = vst [vmem:[#allocation105_spill] sm:$0xff] %v13096_v16  ;;  %10552 = vmatmul.mubr.msk.f32.gmra.mrb[158].mxu1 %vm320_vm1, %v12528_v46 }
 0x241   : > { %16995 = vst [vmem:[#allocation37_spill] sm:$0xff] %v13088_v15  ;;  %16996 = vst [vmem:[#allocation39_spill] sm:$0xff] %v13090_v20  ;;  %v17000_v20 = vld [vmem:[#allocation40_spill] sm:$0xff]  ;;  %v13110_v12 = vpop.f32.mrb[99].mxu0  ;;  %10582 = vmatprep.mubr.msk.f32.mxu1 %vm320_vm1, %v12326_v10 }
 0x242   : > { %v2882_v15 = vsel %vm2746_vm2, %v17000_v20, -1e+30  ;;  %17001 = vst [vmem:[#allocation40_spill] sm:$0xff] %v13110_v12  ;;  %v17003_v20 = vld [vmem:[#allocation42_spill] sm:$0xff] }
 0x243   : > { %3298 = vmax.xlane.f32.xlu1 %v2897_v22  ;;  %3296 = vmax.xlane.f32.xlu0 %v2896_v4  ;;  %v13112_v22 = vpop.f32.mrb[98].mxu1  ;;  %v3780_v4 = vld [vmem:[%s11356_s17 + $0x24] sm:$0xf]  ;;  %v2898_v16 = vsel %vm2746_vm2, %v17003_v20, -1e+30 }
 0x244   : > { %v13101_v24 = vpop.xlane.xlu1 %3102  ;;  %v13103_v57 = vpop.xlane.xlu0 %3100  ;;  %10554 = vmatprep.subr.msk.mxu0 %vm369_vm0, %v3780_v4 }
 0x245   : > { %16998 = vst [vmem:[#allocation106_spill] sm:$0xff] %v13101_v24  ;;  %16999 = vst [vmem:[#allocation107_spill] sm:$0xff] %v13103_v57  ;;  %v13116_v41 = vpop.f32.mrb[99].mxu1  ;;  %v17002_v57 = vld [vmem:[#allocation41_spill] sm:$0xff]  ;;  %10555 = vmatpush3.msk.msra.mxu0 %vm369_vm0, %v3780_v4 }
 0x246   : > { %v2899_v24 = vsel %vm2746_vm2, %v17002_v57, -1e+30  ;;  %10557 = vmatmul.mubr.msk.f32.vlgmr.msra.gmra.mrb[160].mxu0 %vm320_vm1, %v12342_v32 }
 0x247   : > { %3270 = vmax.xlane.f32.xlu1 %v2883_v63  ;;  %3268 = vmax.xlane.f32.xlu0 %v2882_v15  ;;  %v13135_v15 = vpop.f32.mrb[100].mxu0  ;;  %v2885_v63 = vsel %vm2746_vm2, %v12547_v25, -1e+30 }
 0x248   : > { %v13125_v13 = vpop.xlane.xlu1 %3134  ;;  %v13127_v12 = vpop.xlane.xlu0 %3132  ;;  %10559 = vmatprep.mubr.msk.f32.mxu0 %vm320_vm1, %v12355_v11 }
 0x249   : > { %17004 = vst [vmem:[#allocation41_spill] sm:$0xff] %v13125_v13  ;;  %17005 = vst [vmem:[#allocation42_spill] sm:$0xff] %v13127_v12  ;;  %v2884_v12 = vsel %vm2746_vm2, %v12561_v55, -1e+30  ;;  %v13149_v4 = vpop.f32.mrb[101].mxu0 }
 0x24a   : > { %10560 = vmatmul.mubr.msk.f32.gmra.mrb[162].mxu0 %vm320_vm1, %v12370_v42  ;;  %v2900_v55 = vsel %vm2746_vm2, %v12567_v19, -1e+30 }
 0x24b   : > { %3302 = vmax.xlane.f32.xlu1 %v2899_v24  ;;  %3300 = vmax.xlane.f32.xlu0 %v2898_v16  ;;  %v13151_v16 = vpop.f32.mrb[100].mxu1  ;;  %v2901_v24 = vsel %vm2746_vm2, %v12563_v6, -1e+30  ;;  %v2887_v6 = vsel %vm2746_vm2, %v12583_v34, -1e+30 }
 0x24c   : > { %v13140_v57 = vpop.xlane.xlu1 %3138  ;;  %v13142_v20 = vpop.xlane.xlu0 %3136  ;;  %10562 = vmatprep.mubr.msk.f32.mxu0 %vm320_vm1, %v12383_v3 }
 0x24d   : > { %17006 = vst [vmem:[#allocation108_spill] sm:$0xff] %v13140_v57  ;;  %17007 = vst [vmem:[#allocation109_spill] sm:$0xff] %v13142_v20  ;;  %v13155_v25 = vpop.f32.mrb[101].mxu1 }
 0x24e   : > { %10563 = vmatmul.mubr.msk.f32.gmra.mrb[164].mxu0 %vm320_vm1, %v12398_v36 }
 0x24f   : > { %3274 = vmax.xlane.f32.xlu1 %v2885_v63  ;;  %3272 = vmax.xlane.f32.xlu0 %v2884_v12  ;;  %v13171_v12 = vpop.f32.mrb[102].mxu0 }
 0x250   : > { %v13163_v20 = vpop.xlane.xlu1 %3170  ;;  %v13165_v57 = vpop.xlane.xlu0 %3168  ;;  %10565 = vmatprep.mubr.msk.f32.mxu0 %vm320_vm1, %v12411_v17 }
 0x251   : > { %17008 = vst [vmem:[#allocation110_spill] sm:$0xff] %v13163_v20  ;;  %17009 = vst [vmem:[#allocation111_spill] sm:$0xff] %v13165_v57  ;;  %v2886_v57 = vsel %vm2746_vm2, %v12597_v60, -1e+30  ;;  %v13185_v20 = vpop.f32.mrb[103].mxu0 }
 0x252   : > { %10566 = vmatmul.mubr.msk.f32.gmra.mrb[166].mxu0 %vm320_vm1, %v12426_v54  ;;  %v2902_v60 = vsel %vm2746_vm2, %v12603_v39, -1e+30 }
 0x253   : > { %3306 = vmax.xlane.f32.xlu1 %v2901_v24  ;;  %3304 = vmax.xlane.f32.xlu0 %v2900_v55  ;;  %v13187_v24 = vpop.f32.mrb[102].mxu1  ;;  %v2903_v55 = vsel %vm2746_vm2, %v12599_v37, -1e+30  ;;  %v2889_v37 = vsel %vm2747_vm3, %v12619_v47, -1e+30 }
 0x254   : > { %v13176_v63 = vpop.xlane.xlu1 %3142  ;;  %v13178_v19 = vpop.xlane.xlu0 %3140  ;;  %10568 = vmatprep.mubr.msk.f32.mxu0 %vm320_vm1, %v12439_v21 }
 0x255   : > { %17010 = vst [vmem:[#allocation112_spill] sm:$0xff] %v13176_v63  ;;  %17011 = vst [vmem:[#allocation113_spill] sm:$0xff] %v13178_v19  ;;  %v13191_v34 = vpop.f32.mrb[103].mxu1 }
 0x256   : > { %10569 = vmatmul.mubr.msk.f32.gmra.mrb[168].mxu0 %vm320_vm1, %v12454_v40 }
 0x257   : > { %3278 = vmax.xlane.f32.xlu1 %v2887_v6  ;;  %3276 = vmax.xlane.f32.xlu0 %v2886_v57  ;;  %v13207_v57 = vpop.f32.mrb[104].mxu0 }
 0x258   : > { %v13199_v19 = vpop.xlane.xlu1 %3174  ;;  %v13201_v63 = vpop.xlane.xlu0 %3172  ;;  %10571 = vmatprep.mubr.msk.f32.mxu0 %vm320_vm1, %v12467_v28 }
 0x259   : > { %17012 = vst [vmem:[#allocation114_spill] sm:$0xff] %v13199_v19  ;;  %17013 = vst [vmem:[#allocation115_spill] sm:$0xff] %v13201_v63  ;;  %v2888_v63 = vsel %vm2747_vm3, %v12633_v52, -1e+30  ;;  %v13221_v19 = vpop.f32.mrb[105].mxu0 }
 0x25a   : > { %10572 = vmatmul.mubr.msk.f32.gmra.mrb[170].mxu0 %vm320_vm1, %v12480_v2  ;;  %v2904_v52 = vsel %vm2747_vm3, %v12639_v31, -1e+30 }
 0x25b   : > { %3310 = vmax.xlane.f32.xlu1 %v2903_v55  ;;  %3308 = vmax.xlane.f32.xlu0 %v2902_v60  ;;  %v13223_v55 = vpop.f32.mrb[104].mxu1  ;;  %v2905_v60 = vsel %vm2747_vm3, %v12635_v49, -1e+30  ;;  %v2891_v49 = vsel %vm2747_vm3, %v12655_v7, -1e+30 }
 0x25c   : > { %v13212_v6 = vpop.xlane.xlu1 %3146  ;;  %v13214_v39 = vpop.xlane.xlu0 %3144  ;;  %10574 = vmatprep.mubr.msk.f32.mxu0 %vm320_vm1, %v12495_v43 }
 0x25d   : > { %17014 = vst [vmem:[#allocation116_spill] sm:$0xff] %v13212_v6  ;;  %17015 = vst [vmem:[#allocation117_spill] sm:$0xff] %v13214_v39  ;;  %v13227_v47 = vpop.f32.mrb[105].mxu1 }
 0x25e   : > { %10575 = vmatmul.mubr.msk.f32.gmra.mrb[172].mxu0 %vm320_vm1, %v12502_v48 }
 0x25f   : > { %3282 = vmax.xlane.f32.xlu1 %v2889_v37  ;;  %3280 = vmax.xlane.f32.xlu0 %v2888_v63  ;;  %v13243_v63 = vpop.f32.mrb[106].mxu0 }
 0x260   : > { %v13235_v39 = vpop.xlane.xlu1 %3178  ;;  %v13237_v6 = vpop.xlane.xlu0 %3176  ;;  %10577 = vmatprep.mubr.msk.f32.mxu0 %vm320_vm1, %v12519_v35 }
 0x261   : > { %17016 = vst [vmem:[#allocation118_spill] sm:$0xff] %v13235_v39  ;;  %17017 = vst [vmem:[#allocation119_spill] sm:$0xff] %v13237_v6  ;;  %v2890_v6 = vsel %vm2747_vm3, %v12669_v61, -1e+30  ;;  %v13257_v39 = vpop.f32.mrb[107].mxu0 }
 0x262   : > { %17020 = vst [vmem:[#allocation122_spill] sm:$0xff] %v13257_v39  ;;  %10578 = vmatmul.mubr.msk.f32.gmra.mrb[174].mxu0 %vm320_vm1, %v12528_v46  ;;  %v2906_v61 = vsel %vm2747_vm3, %v12675_v30, -1e+30  ;;  %v2893_v30 = vsel %vm2747_vm3, %v12694_v26, -1e+30 }
 0x263   : > { %3314 = vmax.xlane.f32.xlu1 %v2905_v60  ;;  %3312 = vmax.xlane.f32.xlu0 %v2904_v52  ;;  %v13259_v60 = vpop.f32.mrb[106].mxu1  ;;  %v3781_v52 = vld [vmem:[%s11356_s17 + $0x2c] sm:$0xf]  ;;  %v2909_v26 = vsel %vm2747_vm3, %v12710_v29, -1e+30 }
 0x264   : > { %v13248_v31 = vpop.xlane.xlu1 %3150  ;;  %v13250_v37 = vpop.xlane.xlu0 %3148  ;;  %10580 = vmatprep.subr.msk.mxu1 %vm369_vm0, %v3781_v52  ;;  %10608 = vmatprep.mubr.msk.f32.mxu0 %vm320_vm1, %v12326_v10  ;;  %v2892_v10 = vsel %vm2747_vm3, %v12708_v45, -1e+30  ;;  %v2908_v45 = vsel %vm2747_vm3, %v12714_v50, -1e+30  ;;  %v2895_v50 = vsel %vm2747_vm3, %v12730_v38, -1e+30 }
 0x265   : > { %17018 = vst [vmem:[#allocation120_spill] sm:$0xff] %v13248_v31  ;;  %17019 = vst [vmem:[#allocation121_spill] sm:$0xff] %v13250_v37  ;;  %v13263_v7 = vpop.f32.mrb[107].mxu1  ;;  %v17021_v37 = vld [vmem:[#allocation57_spill] sm:$0xff]  ;;  %10581 = vmatpush3.msk.msra.mxu1 %vm369_vm0, %v3781_v52  ;;  %v2911_v38 = vsel %vm2747_vm3, %v12746_v44, -1e+30 }
 0x266   : > { %v2907_v31 = vsel %vm2747_vm3, %v17021_v37, -1e+30  ;;  %10583 = vmatmul.mubr.msk.f32.vlgmr.msra.gmra.mrb[160].mxu1 %vm320_vm1, %v12342_v32  ;;  %v2913_v44 = vsel %vm2746_vm2, %v12766_v51, -1e+30  ;;  %v2929_v51 = vsel %vm2746_vm2, %v12782_v8, -1e+30 }
 0x267   : > { %3286 = vmax.xlane.f32.xlu1 %v2891_v49  ;;  %3284 = vmax.xlane.f32.xlu0 %v2890_v6  ;;  %v13282_v6 = vpop.f32.mrb[108].mxu0 }
 0x268   : > { %v13272_v13 = vpop.xlane.xlu1 %3182  ;;  %v13274_v39 = vpop.xlane.xlu0 %3180  ;;  %10585 = vmatprep.mubr.msk.f32.mxu1 %vm320_vm1, %v12355_v11 }
 0x269   : > { %17022 = vst [vmem:[#allocation57_spill] sm:$0xff] %v13272_v13  ;;  %17023 = vst [vmem:[#allocation123_spill] sm:$0xff] %v13274_v39  ;;  %v13296_v32 = vpop.f32.mrb[109].mxu0  ;;  %v13510_v13 = vld [vmem:[%s16822_s1 + $0x30] sm:$0xff] }
 0x26a   : > { %10586 = vmatmul.mubr.msk.f32.gmra.mrb[162].mxu1 %vm320_vm1, %v12370_v42 }
 0x26b   : > { %3318 = vmax.xlane.f32.xlu1 %v2907_v31  ;;  %3316 = vmax.xlane.f32.xlu0 %v2906_v61  ;;  %v13300_v31 = vpop.f32.mrb[110].mxu0  ;;  %v13316_v61 = vpop.f32.mrb[108].mxu1 }
 0x26c   : > { %v13287_v49 = vpop.xlane.xlu1 %3154  ;;  %v13289_v37 = vpop.xlane.xlu0 %3152  ;;  %10588 = vmatprep.mubr.msk.f32.mxu1 %vm320_vm1, %v12383_v3  ;;  %v2894_v3 = vsel %vm2747_vm3, %v12744_v58, -1e+30  ;;  %v2910_v58 = vsel %vm2747_vm3, %v12750_v53, -1e+30 }
 0x26d   : > { %17024 = vst [vmem:[#allocation124_spill] sm:$0xff] %v13287_v49  ;;  %17025 = vst [vmem:[#allocation125_spill] sm:$0xff] %v13289_v37  ;;  %v13314_v42 = vpop.f32.mrb[111].mxu0  ;;  %v13320_v29 = vpop.f32.mrb[109].mxu1  ;;  %v17063_v37 = vld [vmem:[#allocation22_spill] sm:$0xff] }
 0x26e   : > { %10589 = vmatmul.mubr.msk.f32.gmra.mrb[164].mxu1 %vm320_vm1, %v12398_v36  ;;  %v13334_v36 = vpop.f32.mrb[110].mxu1  ;;  %v2920_v49 = vsel %vm2747_vm3, %v17063_v37, -1e+30 }
 0x26f   : > { %3290 = vmax.xlane.f32.xlu1 %v2893_v30  ;;  %3288 = vmax.xlane.f32.xlu0 %v2892_v10 }
 0x270   : > { %v13308_v52 = vpop.xlane.xlu1 %3186  ;;  %v13310_v11 = vpop.xlane.xlu0 %3184  ;;  %10591 = vmatprep.mubr.msk.f32.mxu1 %vm320_vm1, %v12411_v17 }
 0x271   : > { %17026 = vst [vmem:[#allocation126_spill] sm:$0xff] %v13308_v52  ;;  %17027 = vst [vmem:[#allocation127_spill] sm:$0xff] %v13310_v11  ;;  %v17050_v52 = vld [vmem:[#allocation18_spill] sm:$0xff] }
 0x272   : > { %10592 = vmatmul.mubr.msk.f32.gmra.mrb[166].mxu1 %vm320_vm1, %v12426_v54  ;;  %v13354_v54 = vpop.f32.mrb[112].mxu0  ;;  %v2918_v39 = vsel %vm2746_vm2, %v17050_v52, -1e+30 }
 0x273   : > { %3322 = vmax.xlane.f32.xlu1 %v2909_v26  ;;  %3320 = vmax.xlane.f32.xlu0 %v2908_v45  ;;  %v13338_v26 = vpop.f32.mrb[111].mxu1 }
 0x274   : > { %v13325_v30 = vpop.xlane.xlu1 %3158  ;;  %v13327_v10 = vpop.xlane.xlu0 %3156  ;;  %10594 = vmatprep.mubr.msk.f32.mxu1 %vm320_vm1, %v12439_v21 }
 0x275   : > { %17028 = vst [vmem:[#allocation128_spill] sm:$0xff] %v13325_v30  ;;  %17029 = vst [vmem:[#allocation129_spill] sm:$0xff] %v13327_v10  ;;  %v13368_v21 = vpop.f32.mrb[113].mxu0 }
 0x276   : > { %10595 = vmatmul.mubr.msk.f32.gmra.mrb[168].mxu1 %vm320_vm1, %v12454_v40  ;;  %v13372_v40 = vpop.f32.mrb[114].mxu0 }
 0x277   : > { %3294 = vmax.xlane.f32.xlu1 %v2895_v50  ;;  %3292 = vmax.xlane.f32.xlu0 %v2894_v3  ;;  %v2912_v3 = vsel %vm2746_vm2, %v12780_v59, -1e+30  ;;  %v2928_v59 = vsel %vm2746_vm2, %v12786_v5, -1e+30  ;;  %v2915_v5 = vsel %vm2746_vm2, %v12802_v56, -1e+30 }
 0x278   : > { %v13346_v45 = vpop.xlane.xlu1 %3190  ;;  %v13348_v17 = vpop.xlane.xlu0 %3188  ;;  %10597 = vmatprep.mubr.msk.f32.mxu1 %vm320_vm1, %v12467_v28  ;;  %v3782_v56 = vld [vmem:[%s11356_s17 + $0x34] sm:$0xf] }
 0x279   : > { %17030 = vst [vmem:[#allocation130_spill] sm:$0xff] %v13346_v45  ;;  %17031 = vst [vmem:[#allocation131_spill] sm:$0xff] %v13348_v17  ;;  %10606 = vmatprep.subr.msk.mxu0 %vm369_vm0, %v3782_v56  ;;  %v13482_v45 = vld [vmem:[%s16822_s1 + $0x20] sm:$0xff] }
 0x27a   : > { %10598 = vmatmul.mubr.msk.f32.gmra.mrb[170].mxu1 %vm320_vm1, %v12480_v2  ;;  %v13386_v2 = vpop.f32.mrb[115].mxu0  ;;  %10607 = vmatpush3.msk.msra.mxu0 %vm369_vm0, %v3782_v56  ;;  %v2916_v56 = vsel %vm2746_vm2, %v12855_v9, -1e+30 }
 0x27b   : > { %3326 = vmax.xlane.f32.xlu1 %v2911_v38  ;;  %3324 = vmax.xlane.f32.xlu0 %v2910_v58  ;;  %v13390_v8 = vpop.f32.mrb[116].mxu0 }
 0x27c   : > { %v13359_v50 = vpop.xlane.xlu1 %3162  ;;  %v13361_v53 = vpop.xlane.xlu0 %3160  ;;  %10600 = vmatprep.mubr.msk.f32.mxu1 %vm320_vm1, %v12495_v43  ;;  %v2914_v43 = vsel %vm2746_vm2, %v12816_v0, -1e+30  ;;  %v2930_v0 = vsel %vm2746_vm2, %v12822_v23, -1e+30 }
 0x27d   : > { %17032 = vst [vmem:[#allocation132_spill] sm:$0xff] %v13359_v50  ;;  %17033 = vst [vmem:[#allocation133_spill] sm:$0xff] %v13361_v53  ;;  %v13538_v50 = vld [vmem:[%s16822_s1 + $0x40] sm:$0xff] }
 0x27e   : > { %10601 = vmatmul.mubr.msk.f32.gmra.mrb[172].mxu1 %vm320_vm1, %v12502_v48  ;;  %v13404_v48 = vpop.f32.mrb[117].mxu0 }
 0x27f   : > { %3330 = vmax.xlane.f32.xlu1 %v2913_v44  ;;  %3328 = vmax.xlane.f32.xlu0 %v2912_v3  ;;  %v13408_v3 = vpop.f32.mrb[118].mxu0 }
 0x280   : > { %v13380_v38 = vpop.xlane.xlu1 %3194  ;;  %v13382_v28 = vpop.xlane.xlu0 %3192  ;;  %10603 = vmatprep.mubr.msk.f32.mxu1 %vm320_vm1, %v12519_v35 }
 0x281   : > { %17034 = vst [vmem:[#allocation134_spill] sm:$0xff] %v13380_v38  ;;  %17035 = vst [vmem:[#allocation135_spill] sm:$0xff] %v13382_v28  ;;  %v13454_v28 = vld [vmem:[%s16822_s1 + $0x10] sm:$0xff] }
 0x282   : > { %10604 = vmatmul.mubr.msk.f32.gmra.mrb[174].mxu1 %vm320_vm1, %v12528_v46  ;;  %v13425_v46 = vld [vmem:[%s16822_s1] sm:$0xff] }
 0x283   : > { %3362 = vmax.xlane.f32.xlu1 %v2929_v51  ;;  %3360 = vmax.xlane.f32.xlu0 %v2928_v59  ;;  %v2931_v51 = vsel %vm2746_vm2, %v12818_v1, -1e+30  ;;  %v13435_v1 = vld [vmem:[%s16822_s1 + $0x8] sm:$0xff] }
 0x284   : > { %v13395_v58 = vpop.xlane.xlu1 %3166  ;;  %v13397_v44 = vpop.xlane.xlu0 %3164  ;;  %10634 = vmatprep.mubr.msk.f32.mxu1 %vm320_vm1, %v13425_v46  ;;  %10609 = vmatmul.mubr.msk.f32.vlgmr.msra.gmra.mrb[176].mxu0 %vm320_vm1, %v13435_v1 }
 0x285   : > { %17036 = vst [vmem:[#allocation136_spill] sm:$0xff] %v13395_v58  ;;  %17037 = vst [vmem:[#allocation137_spill] sm:$0xff] %v13397_v44  ;;  %10611 = vmatprep.mubr.msk.f32.mxu0 %vm320_vm1, %v13454_v28 }
 0x287   : > { %3334 = vmax.xlane.f32.xlu1 %v2915_v5  ;;  %3332 = vmax.xlane.f32.xlu0 %v2914_v43  ;;  %v13429_v5 = vpop.f32.mrb[119].mxu0  ;;  %v2917_v43 = vsel %vm2746_vm2, %v12841_v62, -1e+30  ;;  %v13463_v62 = vld [vmem:[%s16822_s1 + $0x18] sm:$0xff] }
 0x288   : > { %v13417_v59 = vpop.xlane.xlu1 %3198  ;;  %v13419_v35 = vpop.xlane.xlu0 %3196  ;;  %10612 = vmatmul.mubr.msk.f32.gmra.mrb[178].mxu0 %vm320_vm1, %v13463_v62 }
 0x289   : > { %17038 = vst [vmem:[#allocation138_spill] sm:$0xff] %v13417_v59  ;;  %17039 = vst [vmem:[#allocation139_spill] sm:$0xff] %v13419_v35  ;;  %v13439_v23 = vpop.f32.mrb[120].mxu0  ;;  %10614 = vmatprep.mubr.msk.f32.mxu0 %vm320_vm1, %v13482_v45 }
 0x28b   : > { %3366 = vmax.xlane.f32.xlu1 %v2931_v51  ;;  %3364 = vmax.xlane.f32.xlu0 %v2930_v0  ;;  %v13458_v51 = vpop.f32.mrb[121].mxu0  ;;  %v2933_v0 = vsel %vm2746_vm2, %v12857_v14, -1e+30  ;;  %v13491_v14 = vld [vmem:[%s16822_s1 + $0x28] sm:$0xff] }
 0x28c   : > { %v13444_v35 = vpop.xlane.xlu1 %3202  ;;  %v13446_v59 = vpop.xlane.xlu0 %3200  ;;  %10615 = vmatmul.mubr.msk.f32.gmra.mrb[180].mxu0 %vm320_vm1, %v13491_v14 }
 0x28d   : > { %17040 = vst [vmem:[#allocation140_spill] sm:$0xff] %v13444_v35  ;;  %17041 = vst [vmem:[#allocation141_spill] sm:$0xff] %v13446_v59  ;;  %v13467_v9 = vpop.f32.mrb[122].mxu0  ;;  %v17042_v59 = vld [vmem:[#allocation78_spill] sm:$0xff]  ;;  %10617 = vmatprep.mubr.msk.f32.mxu0 %vm320_vm1, %v13510_v13 }
 0x28e   : > { %v2932_v35 = vsel %vm2746_vm2, %v17042_v59, -1e+30 }
 0x28f   : > { %3338 = vmax.xlane.f32.xlu1 %v2917_v43  ;;  %3336 = vmax.xlane.f32.xlu0 %v2916_v56  ;;  %v13486_v43 = vpop.f32.mrb[123].mxu0  ;;  %v17047_v56 = vld [vmem:[#allocation81_spill] sm:$0xff] }
 0x290   : > { %v13475_v38 = vpop.xlane.xlu1 %3234  ;;  %v13477_v17 = vpop.xlane.xlu0 %3232  ;;  %17045 = vst [vmem:[#allocation143_spill] sm:$0xff] %v13486_v43 }
 0x291   : > { %17043 = vst [vmem:[#allocation78_spill] sm:$0xff] %v13475_v38  ;;  %17044 = vst [vmem:[#allocation142_spill] sm:$0xff] %v13477_v17  ;;  %v13495_v59 = vpop.f32.mrb[124].mxu0  ;;  %v2919_v17 = vsel %vm2746_vm2, %v17047_v56, -1e+30  ;;  %v17053_v56 = vld [vmem:[#allocation84_spill] sm:$0xff] }
 0x292   : > { %17046 = vst [vmem:[#allocation144_spill] sm:$0xff] %v13495_v59  ;;  %v13624_v59 = vld [vmem:[%s16822_s1 + $0x70] sm:$0xff] }
 0x293   : > { %3370 = vmax.xlane.f32.xlu1 %v2933_v0  ;;  %3368 = vmax.xlane.f32.xlu0 %v2932_v35  ;;  %v13514_v35 = vpop.f32.mrb[125].mxu0  ;;  %v13519_v0 = vld [vmem:[%s16822_s1 + $0x38] sm:$0xff] }
 0x294   : > { %v13500_v38 = vpop.xlane.xlu1 %3206  ;;  %v13502_v11 = vpop.xlane.xlu0 %3204  ;;  %17051 = vst [vmem:[#allocation18_spill] sm:$0xff] %v13514_v35  ;;  %10618 = vmatmul.mubr.msk.f32.gmra.mrb[182].mxu0 %vm320_vm1, %v13519_v0 }
 0x295   : > { %17048 = vst [vmem:[#allocation81_spill] sm:$0xff] %v13500_v38  ;;  %17049 = vst [vmem:[#allocation145_spill] sm:$0xff] %v13502_v11  ;;  %v13523_v52 = vpop.f32.mrb[126].mxu0  ;;  %v2935_v11 = vsel %vm2746_vm2, %v17053_v56, -1e+30  ;;  %v17054_v38 = vld [vmem:[#allocation85_spill] sm:$0xff]  ;;  %10620 = vmatprep.mubr.msk.f32.mxu0 %vm320_vm1, %v13538_v50 }
 0x296   : > { %17052 = vst [vmem:[#allocation146_spill] sm:$0xff] %v13523_v52  ;;  %v2934_v44 = vsel %vm2746_vm2, %v17054_v38, -1e+30  ;;  %v13549_v38 = vld [vmem:[%s16822_s1 + $0x48] sm:$0xff]  ;;  %v13596_v52 = vld [vmem:[%s16822_s1 + $0x60] sm:$0xff] }
 0x297   : > { %3342 = vmax.xlane.f32.xlu1 %v2919_v17  ;;  %3340 = vmax.xlane.f32.xlu0 %v2918_v39  ;;  %v13542_v39 = vpop.f32.mrb[127].mxu0  ;;  %v13544_v17 = vpop.f32.mrb[112].mxu1 }
 0x298   : > { %v13531_v58 = vpop.xlane.xlu1 %3238  ;;  %v13533_v53 = vpop.xlane.xlu0 %3236  ;;  %17057 = vst [vmem:[#allocation147_spill] sm:$0xff] %v13542_v39  ;;  %17058 = vst [vmem:[#allocation148_spill] sm:$0xff] %v13544_v17  ;;  %10621 = vmatmul.mubr.msk.f32.gmra.mrb[184].mxu0 %vm320_vm1, %v13549_v38  ;;  %v13568_v17 = vld [vmem:[%s16822_s1 + $0x50] sm:$0xff] }
 0x299   : > { %17055 = vst [vmem:[#allocation84_spill] sm:$0xff] %v13531_v58  ;;  %17056 = vst [vmem:[#allocation85_spill] sm:$0xff] %v13533_v53  ;;  %v13553_v56 = vpop.f32.mrb[113].mxu1  ;;  %v17060_v53 = vld [vmem:[#allocation86_spill] sm:$0xff]  ;;  %10623 = vmatprep.mubr.msk.f32.mxu0 %vm320_vm1, %v13568_v17 }
 0x29a   : > { %17059 = vst [vmem:[#allocation149_spill] sm:$0xff] %v13553_v56  ;;  %v2921_v58 = vsel %vm2747_vm3, %v17060_v53, -1e+30  ;;  %v13577_v53 = vld [vmem:[%s16822_s1 + $0x58] sm:$0xff] }
 0x29b   : > { %3374 = vmax.xlane.f32.xlu1 %v2935_v11  ;;  %3372 = vmax.xlane.f32.xlu0 %v2934_v44  ;;  %v13572_v11 = vpop.f32.mrb[114].mxu1  ;;  %v17066_v44 = vld [vmem:[#allocation88_spill] sm:$0xff] }
 0x29c   : > { %v13558_v10 = vpop.xlane.xlu1 %3210  ;;  %v13560_v30 = vpop.xlane.xlu0 %3208  ;;  %17064 = vst [vmem:[#allocation22_spill] sm:$0xff] %v13572_v11  ;;  %10624 = vmatmul.mubr.msk.f32.gmra.mrb[186].mxu0 %vm320_vm1, %v13577_v53 }
 0x29d   : > { %17061 = vst [vmem:[#allocation86_spill] sm:$0xff] %v13558_v10  ;;  %17062 = vst [vmem:[#allocation150_spill] sm:$0xff] %v13560_v30  ;;  %v13581_v37 = vpop.f32.mrb[115].mxu1  ;;  %v2937_v30 = vsel %vm2747_vm3, %v17066_v44, -1e+30  ;;  %v17067_v10 = vld [vmem:[#allocation89_spill] sm:$0xff]  ;;  %10626 = vmatprep.mubr.msk.f32.mxu0 %vm320_vm1, %v13596_v52 }
 0x29e   : > { %17065 = vst [vmem:[#allocation151_spill] sm:$0xff] %v13581_v37  ;;  %v2936_v11 = vsel %vm2747_vm3, %v17067_v10, -1e+30  ;;  %v17072_v44 = vld [vmem:[#allocation90_spill] sm:$0xff] }
 0x29f   : > { %3346 = vmax.xlane.f32.xlu1 %v2921_v58  ;;  %3344 = vmax.xlane.f32.xlu0 %v2920_v49  ;;  %v13600_v49 = vpop.f32.mrb[116].mxu1  ;;  %v13605_v58 = vld [vmem:[%s16822_s1 + $0x68] sm:$0xff]  ;;  %v17075_v37 = vld [vmem:[#allocation26_spill] sm:$0xff] }
 0x2a0   : > { %v13589_v56 = vpop.xlane.xlu1 %3242  ;;  %v13591_v39 = vpop.xlane.xlu0 %3240  ;;  %17070 = vst [vmem:[#allocation152_spill] sm:$0xff] %v13600_v49  ;;  %10627 = vmatmul.mubr.msk.f32.gmra.mrb[188].mxu0 %vm320_vm1, %v13605_v58  ;;  %v2922_v35 = vsel %vm2747_vm3, %v17075_v37, -1e+30 }
 0x2a1   : > { %17068 = vst [vmem:[#allocation88_spill] sm:$0xff] %v13589_v56  ;;  %17069 = vst [vmem:[#allocation89_spill] sm:$0xff] %v13591_v39  ;;  %v13609_v10 = vpop.f32.mrb[117].mxu1  ;;  %v2923_v39 = vsel %vm2747_vm3, %v17072_v44, -1e+30  ;;  %10629 = vmatprep.mubr.msk.f32.mxu0 %vm320_vm1, %v13624_v59 }
 0x2a2   : > { %17071 = vst [vmem:[#allocation153_spill] sm:$0xff] %v13609_v10  ;;  %v3783_v44 = vld [vmem:[%s11356_s17 + $0x3c] sm:$0xf] }
 0x2a3   : > { %3378 = vmax.xlane.f32.xlu1 %v2937_v30  ;;  %3376 = vmax.xlane.f32.xlu0 %v2936_v11  ;;  %v13628_v30 = vpop.f32.mrb[118].mxu1  ;;  %v13633_v11 = vld [vmem:[%s16822_s1 + $0x78] sm:$0xff] }
 0x2a4   : > { %v13614_v56 = vpop.xlane.xlu1 %3214  ;;  %v13616_v49 = vpop.xlane.xlu0 %3212  ;;  %17076 = vst [vmem:[#allocation26_spill] sm:$0xff] %v13628_v30  ;;  %10630 = vmatmul.mubr.msk.f32.gmra.mrb[190].mxu0 %vm320_vm1, %v13633_v11  ;;  %10632 = vmatprep.subr.msk.mxu1 %vm369_vm0, %v3783_v44 }
 0x2a5   : > { %17073 = vst [vmem:[#allocation90_spill] sm:$0xff] %v13614_v56  ;;  %17074 = vst [vmem:[#allocation154_spill] sm:$0xff] %v13616_v49  ;;  %v13637_v37 = vpop.f32.mrb[119].mxu1  ;;  %v2939_v49 = vsel %vm2747_vm3, %v12965_v18, -1e+30  ;;  %v17078_v56 = vld [vmem:[#allocation92_spill] sm:$0xff]  ;;  %10660 = vmatprep.mubr.msk.f32.mxu0 %vm320_vm1, %v13425_v46  ;;  %10633 = vmatpush3.msk.msra.mxu1 %vm369_vm0, %v3783_v44 }
 0x2a6   : > { %17077 = vst [vmem:[#allocation155_spill] sm:$0xff] %v13637_v37  ;;  %v2938_v30 = vsel %vm2747_vm3, %v17078_v56, -1e+30  ;;  %10635 = vmatmul.mubr.msk.f32.vlgmr.msra.gmra.mrb[176].mxu1 %vm320_vm1, %v13435_v1  ;;  %v17086_v37 = vld [vmem:[#allocation30_spill] sm:$0xff] }
 0x2a7   : > { %3350 = vmax.xlane.f32.xlu1 %v2923_v39  ;;  %3348 = vmax.xlane.f32.xlu0 %v2922_v35  ;;  %v13654_v35 = vpop.f32.mrb[120].mxu1  ;;  %v17083_v39 = vld [vmem:[#allocation93_spill] sm:$0xff]  ;;  %v2924_v44 = vsel %vm2747_vm3, %v17086_v37, -1e+30 }
 0x2a8   : > { %v13646_v10 = vpop.xlane.xlu1 %3246  ;;  %v13648_v43 = vpop.xlane.xlu0 %3244  ;;  %17081 = vst [vmem:[#allocation157_spill] sm:$0xff] %v13654_v35  ;;  %v2925_v56 = vsel %vm2747_vm3, %v17083_v39, -1e+30  ;;  %10637 = vmatprep.mubr.msk.f32.mxu1 %vm320_vm1, %v13454_v28 }
 0x2a9   : > { %17079 = vst [vmem:[#allocation92_spill] sm:$0xff] %v13646_v10  ;;  %17080 = vst [vmem:[#allocation156_spill] sm:$0xff] %v13648_v43  ;;  %v13658_v18 = vpop.f32.mrb[121].mxu1 }
 0x2aa   : > { %17082 = vst [vmem:[#allocation158_spill] sm:$0xff] %v13658_v18  ;;  %v13672_v35 = vpop.f32.mrb[122].mxu1  ;;  %10638 = vmatmul.mubr.msk.f32.gmra.mrb[178].mxu1 %vm320_vm1, %v13463_v62 }
 0x2ab   : > { %3382 = vmax.xlane.f32.xlu1 %v2939_v49  ;;  %3380 = vmax.xlane.f32.xlu0 %v2938_v30  ;;  %17087 = vst [vmem:[#allocation30_spill] sm:$0xff] %v13672_v35  ;;  %v13676_v49 = vpop.f32.mrb[123].mxu1  ;;  %v17089_v30 = vld [vmem:[#allocation95_spill] sm:$0xff] }
 0x2ac   : > { %v13663_v43 = vpop.xlane.xlu1 %3218  ;;  %v13665_v10 = vpop.xlane.xlu0 %3216  ;;  %17088 = vst [vmem:[#allocation160_spill] sm:$0xff] %v13676_v49  ;;  %v2941_v39 = vsel %vm2747_vm3, %v17089_v30, -1e+30  ;;  %10640 = vmatprep.mubr.msk.f32.mxu1 %vm320_vm1, %v13482_v45 }
 0x2ad   : > { %17084 = vst [vmem:[#allocation93_spill] sm:$0xff] %v13663_v43  ;;  %17085 = vst [vmem:[#allocation159_spill] sm:$0xff] %v13665_v10  ;;  %v17090_v10 = vld [vmem:[#allocation96_spill] sm:$0xff]  ;;  %v13690_v35 = vpop.f32.mrb[124].mxu1 }
 0x2ae   : > { %v2940_v37 = vsel %vm2747_vm3, %v17090_v10, -1e+30  ;;  %17093 = vst [vmem:[#allocation161_spill] sm:$0xff] %v13690_v35  ;;  %10641 = vmatmul.mubr.msk.f32.gmra.mrb[180].mxu1 %vm320_vm1, %v13491_v14 }
 0x2af   : > { %3354 = vmax.xlane.f32.xlu1 %v2925_v56  ;;  %3352 = vmax.xlane.f32.xlu0 %v2924_v44  ;;  %v13694_v56 = vpop.f32.mrb[125].mxu1  ;;  %v17095_v44 = vld [vmem:[#allocation97_spill] sm:$0xff] }
 0x2b0   : > { %v13684_v43 = vpop.xlane.xlu1 %3250  ;;  %v13686_v18 = vpop.xlane.xlu0 %3248  ;;  %17094 = vst [vmem:[#allocation162_spill] sm:$0xff] %v13694_v56  ;;  %v2927_v10 = vsel %vm2747_vm3, %v17095_v44, -1e+30  ;;  %10643 = vmatprep.mubr.msk.f32.mxu1 %vm320_vm1, %v13510_v13 }
 0x2b1   : > { %17091 = vst [vmem:[#allocation95_spill] sm:$0xff] %v13684_v43  ;;  %17092 = vst [vmem:[#allocation96_spill] sm:$0xff] %v13686_v18  ;;  %v17098_v18 = vld [vmem:[#allocation34_spill] sm:$0xff]  ;;  %v13708_v35 = vpop.f32.mrb[126].mxu1 }
 0x2b2   : > { %v2926_v49 = vsel %vm2747_vm3, %v17098_v18, -1e+30  ;;  %17099 = vst [vmem:[#allocation34_spill] sm:$0xff] %v13708_v35  ;;  %10644 = vmatmul.mubr.msk.f32.gmra.mrb[182].mxu1 %vm320_vm1, %v13519_v0 }
 0x2b3   : > { %3386 = vmax.xlane.f32.xlu1 %v2941_v39  ;;  %3384 = vmax.xlane.f32.xlu0 %v2940_v37  ;;  %v13712_v39 = vpop.f32.mrb[127].mxu1  ;;  %v17101_v37 = vld [vmem:[#allocation99_spill] sm:$0xff] }
 0x2b4   : > { %v13699_v30 = vpop.xlane.xlu1 %3222  ;;  %v13701_v43 = vpop.xlane.xlu0 %3220  ;;  %17100 = vst [vmem:[#allocation164_spill] sm:$0xff] %v13712_v39  ;;  %v2943_v44 = vsel %vm2747_vm3, %v17101_v37, -1e+30  ;;  %10646 = vmatprep.mubr.msk.f32.mxu1 %vm320_vm1, %v13538_v50 }
 0x2b5   : > { %17096 = vst [vmem:[#allocation97_spill] sm:$0xff] %v13699_v30  ;;  %17097 = vst [vmem:[#allocation163_spill] sm:$0xff] %v13701_v43  ;;  %v17102_v43 = vld [vmem:[#allocation100_spill] sm:$0xff] }
 0x2b6   : > { %v2942_v18 = vsel %vm2747_vm3, %v17102_v43, -1e+30  ;;  %10647 = vmatmul.mubr.msk.f32.gmra.mrb[184].mxu1 %vm320_vm1, %v13549_v38 }
 0x2b7   : > { %3358 = vmax.xlane.f32.xlu1 %v2927_v10  ;;  %3356 = vmax.xlane.f32.xlu0 %v2926_v49  ;;  %v13728_v49 = vpop.f32.mrb[128].mxu0  ;;  %v17106_v10 = vld [vmem:[#allocation101_spill] sm:$0xff] }
 0x2b8   : > { %v13720_v30 = vpop.xlane.xlu1 %3254  ;;  %v13722_v56 = vpop.xlane.xlu0 %3252  ;;  %17105 = vst [vmem:[#allocation165_spill] sm:$0xff] %v13728_v49  ;;  %v2945_v37 = vsel %vm2746_vm2, %v17106_v10, -1e+30  ;;  %10649 = vmatprep.mubr.msk.f32.mxu1 %vm320_vm1, %v13568_v17 }
 0x2b9   : > { %17103 = vst [vmem:[#allocation99_spill] sm:$0xff] %v13720_v30  ;;  %17104 = vst [vmem:[#allocation100_spill] sm:$0xff] %v13722_v56  ;;  %v17109_v30 = vld [vmem:[#allocation38_spill] sm:$0xff]  ;;  %v13742_v35 = vpop.f32.mrb[129].mxu0 }
 0x2ba   : > { %v2944_v56 = vsel %vm2746_vm2, %v17109_v30, -1e+30  ;;  %17110 = vst [vmem:[#allocation38_spill] sm:$0xff] %v13742_v35  ;;  %10650 = vmatmul.mubr.msk.f32.gmra.mrb[186].mxu1 %vm320_vm1, %v13577_v53 }
 0x2bb   : > { %3390 = vmax.xlane.f32.xlu1 %v2943_v44  ;;  %3388 = vmax.xlane.f32.xlu0 %v2942_v18  ;;  %v13746_v44 = vpop.f32.mrb[130].mxu0  ;;  %v17112_v18 = vld [vmem:[#allocation103_spill] sm:$0xff] }
 0x2bc   : > { %v13733_v39 = vpop.xlane.xlu1 %3226  ;;  %v13735_v43 = vpop.xlane.xlu0 %3224  ;;  %17111 = vst [vmem:[#allocation167_spill] sm:$0xff] %v13746_v44  ;;  %v2961_v10 = vsel %vm2746_vm2, %v17112_v18, -1e+30  ;;  %10652 = vmatprep.mubr.msk.f32.mxu1 %vm320_vm1, %v13596_v52  ;;  %v17117_v18 = vld [vmem:[#allocation105_spill] sm:$0xff]  ;;  %v17120_v44 = vld [vmem:[#allocation40_spill] sm:$0xff] }
 0x2bd   : > { %17107 = vst [vmem:[#allocation101_spill] sm:$0xff] %v13733_v39  ;;  %17108 = vst [vmem:[#allocation166_spill] sm:$0xff] %v13735_v43  ;;  %v17113_v43 = vld [vmem:[#allocation104_spill] sm:$0xff]  ;;  %v2946_v35 = vsel %vm2746_vm2, %v17120_v44, -1e+30 }
 0x2be   : > { %v2960_v30 = vsel %vm2746_vm2, %v17113_v43, -1e+30  ;;  %10653 = vmatmul.mubr.msk.f32.gmra.mrb[188].mxu1 %vm320_vm1, %v13605_v58  ;;  %v2947_v43 = vsel %vm2746_vm2, %v17117_v18, -1e+30  ;;  %v2963_v18 = vsel %vm2746_vm2, %v13112_v22, -1e+30 }
 0x2bf   : > { %3394 = vmax.xlane.f32.xlu1 %v2945_v37  ;;  %3392 = vmax.xlane.f32.xlu0 %v2944_v56  ;;  %v13760_v37 = vpop.f32.mrb[131].mxu0  ;;  %v2962_v44 = vsel %vm2746_vm2, %v13116_v41, -1e+30  ;;  %v2949_v41 = vsel %vm2746_vm2, %v13135_v15, -1e+30 }
 0x2c0   : > { %v13754_v39 = vpop.xlane.xlu1 %3258  ;;  %v13756_v49 = vpop.xlane.xlu0 %3256  ;;  %17116 = vst [vmem:[#allocation168_spill] sm:$0xff] %v13760_v37  ;;  %10655 = vmatprep.mubr.msk.f32.mxu1 %vm320_vm1, %v13624_v59  ;;  %v2965_v15 = vsel %vm2746_vm2, %v13151_v16, -1e+30  ;;  %v2951_v16 = vsel %vm2746_vm2, %v13171_v12, -1e+30 }
 0x2c1   : > { %17114 = vst [vmem:[#allocation103_spill] sm:$0xff] %v13754_v39  ;;  %17115 = vst [vmem:[#allocation104_spill] sm:$0xff] %v13756_v49  ;;  %v13764_v56 = vpop.f32.mrb[132].mxu0  ;;  %v2967_v12 = vsel %vm2746_vm2, %v13187_v24, -1e+30 }
 0x2c2   : > { %v13778_v37 = vpop.f32.mrb[133].mxu0  ;;  %10656 = vmatmul.mubr.msk.f32.gmra.mrb[190].mxu1 %vm320_vm1, %v13633_v11 }
 0x2c3   : > { %3426 = vmax.xlane.f32.xlu1 %v2961_v10  ;;  %3424 = vmax.xlane.f32.xlu0 %v2960_v30  ;;  %v13782_v10 = vpop.f32.mrb[134].mxu0  ;;  %v3784_v30 = vld [vmem:[%s11356_s17 + $0x44] sm:$0xf] }
 0x2c4   : > { %v13769_v39 = vpop.xlane.xlu1 %3230  ;;  %v13771_v49 = vpop.xlane.xlu0 %3228  ;;  %10658 = vmatprep.subr.msk.mxu0 %vm369_vm0, %v3784_v30  ;;  %10686 = vmatprep.mubr.msk.f32.mxu1 %vm320_vm1, %v13425_v46 }
 0x2c5   : > { %17118 = vst [vmem:[#allocation105_spill] sm:$0xff] %v13769_v39  ;;  %17119 = vst [vmem:[#allocation169_spill] sm:$0xff] %v13771_v49  ;;  %10659 = vmatpush3.msk.msra.mxu0 %vm369_vm0, %v3784_v30 }
 0x2c6   : > { %10661 = vmatmul.mubr.msk.f32.vlgmr.msra.gmra.mrb[192].mxu0 %vm320_vm1, %v13435_v1 }
 0x2c7   : > { %3398 = vmax.xlane.f32.xlu1 %v2947_v43  ;;  %3396 = vmax.xlane.f32.xlu0 %v2946_v35  ;;  %v13798_v35 = vpop.f32.mrb[135].mxu0 }
 0x2c8   : > { %v13791_v49 = vpop.xlane.xlu1 %3262  ;;  %v13793_v39 = vpop.xlane.xlu0 %3260  ;;  %10663 = vmatprep.mubr.msk.f32.mxu0 %vm320_vm1, %v13454_v28 }
 0x2c9   : > { %17121 = vst [vmem:[#allocation40_spill] sm:$0xff] %v13791_v49  ;;  %17122 = vst [vmem:[#allocation170_spill] sm:$0xff] %v13793_v39  ;;  %v13803_v22 = vpop.f32.mrb[136].mxu0  ;;  %v2948_v49 = vsel %vm2746_vm2, %v13149_v4, -1e+30 }
 0x2ca   : > { %v13817_v30 = vpop.f32.mrb[137].mxu0  ;;  %10664 = vmatmul.mubr.msk.f32.gmra.mrb[194].mxu0 %vm320_vm1, %v13463_v62  ;;  %v2964_v4 = vsel %vm2746_vm2, %v13155_v25, -1e+30 }
 0x2cb   : > { %3430 = vmax.xlane.f32.xlu1 %v2963_v18  ;;  %3428 = vmax.xlane.f32.xlu0 %v2962_v44  ;;  %v13821_v18 = vpop.f32.mrb[138].mxu0 }
 0x2cc   : > { %v13808_v43 = vpop.xlane.xlu1 %3266  ;;  %v13810_v39 = vpop.xlane.xlu0 %3264  ;;  %10666 = vmatprep.mubr.msk.f32.mxu0 %vm320_vm1, %v13482_v45 }
 0x2cd   : > { %17123 = vst [vmem:[#allocation171_spill] sm:$0xff] %v13808_v43  ;;  %17124 = vst [vmem:[#allocation172_spill] sm:$0xff] %v13810_v39  ;;  %v13835_v43 = vpop.f32.mrb[139].mxu0 }
 0x2ce   : > { %10667 = vmatmul.mubr.msk.f32.gmra.mrb[196].mxu0 %vm320_vm1, %v13491_v14 }
 0x2cf   : > { %3402 = vmax.xlane.f32.xlu1 %v2949_v41  ;;  %3400 = vmax.xlane.f32.xlu0 %v2948_v49  ;;  %v13839_v49 = vpop.f32.mrb[140].mxu0 }
 0x2d0   : > { %v13829_v44 = vpop.xlane.xlu1 %3298  ;;  %v13831_v39 = vpop.xlane.xlu0 %3296  ;;  %10669 = vmatprep.mubr.msk.f32.mxu0 %vm320_vm1, %v13510_v13 }
 0x2d1   : > { %17125 = vst [vmem:[#allocation173_spill] sm:$0xff] %v13829_v44  ;;  %17126 = vst [vmem:[#allocation174_spill] sm:$0xff] %v13831_v39  ;;  %v2950_v39 = vsel %vm2746_vm2, %v13185_v20, -1e+30  ;;  %v13853_v44 = vpop.f32.mrb[141].mxu0 }
 0x2d2   : > { %10670 = vmatmul.mubr.msk.f32.gmra.mrb[198].mxu0 %vm320_vm1, %v13519_v0  ;;  %v2966_v20 = vsel %vm2746_vm2, %v13191_v34, -1e+30  ;;  %v2953_v34 = vsel %vm2747_vm3, %v13207_v57, -1e+30  ;;  %v2969_v57 = vsel %vm2747_vm3, %v13223_v55, -1e+30 }
 0x2d3   : > { %3434 = vmax.xlane.f32.xlu1 %v2965_v15  ;;  %3432 = vmax.xlane.f32.xlu0 %v2964_v4  ;;  %v13857_v15 = vpop.f32.mrb[142].mxu0 }
 0x2d4   : > { %v13844_v25 = vpop.xlane.xlu1 %3270  ;;  %v13846_v41 = vpop.xlane.xlu0 %3268  ;;  %10672 = vmatprep.mubr.msk.f32.mxu0 %vm320_vm1, %v13538_v50 }
 0x2d5   : > { %17127 = vst [vmem:[#allocation175_spill] sm:$0xff] %v13844_v25  ;;  %17128 = vst [vmem:[#allocation176_spill] sm:$0xff] %v13846_v41  ;;  %v13871_v25 = vpop.f32.mrb[143].mxu0 }
 0x2d6   : > { %10673 = vmatmul.mubr.msk.f32.gmra.mrb[200].mxu0 %vm320_vm1, %v13549_v38 }
 0x2d7   : > { %3406 = vmax.xlane.f32.xlu1 %v2951_v16  ;;  %3404 = vmax.xlane.f32.xlu0 %v2950_v39  ;;  %v13873_v39 = vpop.f32.mrb[128].mxu1 }
 0x2d8   : > { %v13865_v4 = vpop.xlane.xlu1 %3302  ;;  %v13867_v41 = vpop.xlane.xlu0 %3300  ;;  %17131 = vst [vmem:[#allocation179_spill] sm:$0xff] %v13873_v39  ;;  %10675 = vmatprep.mubr.msk.f32.mxu0 %vm320_vm1, %v13568_v17 }
 0x2d9   : > { %17129 = vst [vmem:[#allocation177_spill] sm:$0xff] %v13865_v4  ;;  %17130 = vst [vmem:[#allocation178_spill] sm:$0xff] %v13867_v41  ;;  %v13877_v24 = vpop.f32.mrb[129].mxu1  ;;  %v2952_v4 = vsel %vm2747_vm3, %v13221_v19, -1e+30 }
 0x2da   : > { %v13891_v39 = vpop.f32.mrb[130].mxu1  ;;  %10676 = vmatmul.mubr.msk.f32.gmra.mrb[202].mxu0 %vm320_vm1, %v13577_v53  ;;  %v2968_v19 = vsel %vm2747_vm3, %v13227_v47, -1e+30  ;;  %v2955_v47 = vsel %vm2747_vm3, %v13243_v63, -1e+30 }
 0x2db   : > { %3438 = vmax.xlane.f32.xlu1 %v2967_v12  ;;  %3436 = vmax.xlane.f32.xlu0 %v2966_v20  ;;  %v13895_v12 = vpop.f32.mrb[131].mxu1  ;;  %v3785_v63 = vld [vmem:[%s11356_s17 + $0x4c] sm:$0xf] }
 0x2dc   : > { %v13882_v16 = vpop.xlane.xlu1 %3274  ;;  %v13884_v41 = vpop.xlane.xlu0 %3272  ;;  %10678 = vmatprep.mubr.msk.f32.mxu0 %vm320_vm1, %v13596_v52  ;;  %10684 = vmatprep.subr.msk.mxu1 %vm369_vm0, %v3785_v63 }
 0x2dd   : > { %17132 = vst [vmem:[#allocation180_spill] sm:$0xff] %v13882_v16  ;;  %17133 = vst [vmem:[#allocation181_spill] sm:$0xff] %v13884_v41  ;;  %10685 = vmatpush3.msk.msra.mxu1 %vm369_vm0, %v3785_v63  ;;  %v2956_v63 = vsel %vm2747_vm3, %v13296_v32, -1e+30  ;;  %v2958_v32 = vsel %vm2747_vm3, %v13314_v42, -1e+30 }
 0x2de   : > { %10679 = vmatmul.mubr.msk.f32.gmra.mrb[204].mxu0 %vm320_vm1, %v13605_v58  ;;  %10687 = vmatmul.mubr.msk.f32.vlgmr.msra.gmra.mrb[192].mxu1 %vm320_vm1, %v13435_v1  ;;  %v2972_v42 = vsel %vm2747_vm3, %v13320_v29, -1e+30  ;;  %v2974_v29 = vsel %vm2747_vm3, %v13338_v26, -1e+30 }
 0x2df   : > { %3410 = vmax.xlane.f32.xlu1 %v2953_v34  ;;  %3408 = vmax.xlane.f32.xlu0 %v2952_v4  ;;  %v13909_v34 = vpop.f32.mrb[132].mxu1 }
 0x2e0   : > { %v13903_v20 = vpop.xlane.xlu1 %3306  ;;  %v13905_v41 = vpop.xlane.xlu0 %3304  ;;  %17136 = vst [vmem:[#allocation184_spill] sm:$0xff] %v13909_v34  ;;  %10681 = vmatprep.mubr.msk.f32.mxu0 %vm320_vm1, %v13624_v59  ;;  %10689 = vmatprep.mubr.msk.f32.mxu1 %vm320_vm1, %v13454_v28 }
 0x2e1   : > { %17134 = vst [vmem:[#allocation182_spill] sm:$0xff] %v13903_v20  ;;  %17135 = vst [vmem:[#allocation183_spill] sm:$0xff] %v13905_v41  ;;  %v13913_v55 = vpop.f32.mrb[133].mxu1  ;;  %v17139_v20 = vld [vmem:[#allocation122_spill] sm:$0xff] }
 0x2e2   : > { %v2954_v16 = vsel %vm2747_vm3, %v17139_v20, -1e+30  ;;  %v13927_v34 = vpop.f32.mrb[134].mxu1  ;;  %10682 = vmatmul.mubr.msk.f32.gmra.mrb[206].mxu0 %vm320_vm1, %v13633_v11  ;;  %v2970_v20 = vsel %vm2747_vm3, %v13263_v7, -1e+30  ;;  %10690 = vmatmul.mubr.msk.f32.gmra.mrb[194].mxu1 %vm320_vm1, %v13463_v62 }
 0x2e3   : > { %3442 = vmax.xlane.f32.xlu1 %v2969_v57  ;;  %3440 = vmax.xlane.f32.xlu0 %v2968_v19  ;;  %v13931_v57 = vpop.f32.mrb[135].mxu1  ;;  %v2971_v19 = vsel %vm2747_vm3, %v13259_v60, -1e+30  ;;  %v2957_v7 = vsel %vm2747_vm3, %v13282_v6, -1e+30 }
 0x2e4   : > { %v13918_v4 = vpop.xlane.xlu1 %3278  ;;  %v13920_v41 = vpop.xlane.xlu0 %3276  ;;  %10712 = vmatprep.mubr.msk.f32.mxu0 %vm320_vm1, %v13425_v46  ;;  %v2959_v6 = vsel %vm2747_vm3, %v13300_v31, -1e+30  ;;  %10692 = vmatprep.mubr.msk.f32.mxu1 %vm320_vm1, %v13482_v45  ;;  %v2973_v31 = vsel %vm2747_vm3, %v13316_v61, -1e+30  ;;  %v2975_v61 = vsel %vm2747_vm3, %v13334_v36, -1e+30 }
 0x2e5   : > { %17137 = vst [vmem:[#allocation185_spill] sm:$0xff] %v13918_v4  ;;  %17138 = vst [vmem:[#allocation186_spill] sm:$0xff] %v13920_v41  ;;  %v2977_v36 = vsel %vm2746_vm2, %v13354_v54, -1e+30  ;;  %v2979_v54 = vsel %vm2746_vm2, %v13372_v40, -1e+30 }
 0x2e6   : > { %10693 = vmatmul.mubr.msk.f32.gmra.mrb[196].mxu1 %vm320_vm1, %v13491_v14 }
 0x2e7   : > { %3414 = vmax.xlane.f32.xlu1 %v2955_v47  ;;  %3412 = vmax.xlane.f32.xlu0 %v2954_v16  ;;  %v13948_v16 = vpop.f32.mrb[136].mxu1 }
 0x2e8   : > { %v13940_v41 = vpop.xlane.xlu1 %3310  ;;  %v13942_v4 = vpop.xlane.xlu0 %3308  ;;  %10695 = vmatprep.mubr.msk.f32.mxu1 %vm320_vm1, %v13510_v13 }
 0x2e9   : > { %17140 = vst [vmem:[#allocation122_spill] sm:$0xff] %v13940_v41  ;;  %17141 = vst [vmem:[#allocation187_spill] sm:$0xff] %v13942_v4  ;;  %v13952_v60 = vpop.f32.mrb[137].mxu1 }
 0x2ea   : > { %v13966_v41 = vpop.f32.mrb[138].mxu1  ;;  %10696 = vmatmul.mubr.msk.f32.gmra.mrb[198].mxu1 %vm320_vm1, %v13519_v0 }
 0x2eb   : > { %3446 = vmax.xlane.f32.xlu1 %v2971_v19  ;;  %3444 = vmax.xlane.f32.xlu0 %v2970_v20  ;;  %v13970_v19 = vpop.f32.mrb[139].mxu1 }
 0x2ec   : > { %v13957_v47 = vpop.xlane.xlu1 %3282  ;;  %v13959_v4 = vpop.xlane.xlu0 %3280  ;;  %10698 = vmatprep.mubr.msk.f32.mxu1 %vm320_vm1, %v13538_v50 }
 0x2ed   : > { %17142 = vst [vmem:[#allocation188_spill] sm:$0xff] %v13957_v47  ;;  %17143 = vst [vmem:[#allocation189_spill] sm:$0xff] %v13959_v4  ;;  %v13984_v47 = vpop.f32.mrb[140].mxu1 }
 0x2ee   : > { %10699 = vmatmul.mubr.msk.f32.gmra.mrb[200].mxu1 %vm320_vm1, %v13549_v38 }
 0x2ef   : > { %3418 = vmax.xlane.f32.xlu1 %v2957_v7  ;;  %3416 = vmax.xlane.f32.xlu0 %v2956_v63  ;;  %v13988_v7 = vpop.f32.mrb[141].mxu1 }
 0x2f0   : > { %v13975_v20 = vpop.xlane.xlu1 %3314  ;;  %v13977_v4 = vpop.xlane.xlu0 %3312  ;;  %10701 = vmatprep.mubr.msk.f32.mxu1 %vm320_vm1, %v13568_v17 }
 0x2f1   : > { %17144 = vst [vmem:[#allocation190_spill] sm:$0xff] %v13975_v20  ;;  %17145 = vst [vmem:[#allocation191_spill] sm:$0xff] %v13977_v4  ;;  %v14002_v20 = vpop.f32.mrb[142].mxu1 }
 0x2f2   : > { %10702 = vmatmul.mubr.msk.f32.gmra.mrb[202].mxu1 %vm320_vm1, %v13577_v53 }
 0x2f3   : > { %3422 = vmax.xlane.f32.xlu1 %v2959_v6  ;;  %3420 = vmax.xlane.f32.xlu0 %v2958_v32  ;;  %v14006_v6 = vpop.f32.mrb[143].mxu1 }
 0x2f4   : > { %v13996_v63 = vpop.xlane.xlu1 %3286  ;;  %v13998_v4 = vpop.xlane.xlu0 %3284  ;;  %10704 = vmatprep.mubr.msk.f32.mxu1 %vm320_vm1, %v13596_v52 }
 0x2f5   : > { %17146 = vst [vmem:[#allocation192_spill] sm:$0xff] %v13996_v63  ;;  %17147 = vst [vmem:[#allocation193_spill] sm:$0xff] %v13998_v4 }
 0x2f6   : > { %10705 = vmatmul.mubr.msk.f32.gmra.mrb[204].mxu1 %vm320_vm1, %v13605_v58 }
 0x2f7   : > { %3450 = vmax.xlane.f32.xlu1 %v2973_v31  ;;  %3448 = vmax.xlane.f32.xlu0 %v2972_v42  ;;  %v14022_v31 = vpop.f32.mrb[144].mxu0 }
 0x2f8   : > { %v14014_v32 = vpop.xlane.xlu1 %3318  ;;  %v14016_v4 = vpop.xlane.xlu0 %3316  ;;  %10707 = vmatprep.mubr.msk.f32.mxu1 %vm320_vm1, %v13624_v59 }
 0x2f9   : > { %17148 = vst [vmem:[#allocation194_spill] sm:$0xff] %v14014_v32  ;;  %17149 = vst [vmem:[#allocation195_spill] sm:$0xff] %v14016_v4  ;;  %v2976_v4 = vsel %vm2746_vm2, %v13368_v21, -1e+30  ;;  %v14036_v32 = vpop.f32.mrb[145].mxu0 }
 0x2fa   : > { %v2978_v21 = vsel %vm2746_vm2, %v13386_v2, -1e+30  ;;  %10708 = vmatmul.mubr.msk.f32.gmra.mrb[206].mxu1 %vm320_vm1, %v13633_v11 }
 0x2fb   : > { %3454 = vmax.xlane.f32.xlu1 %v2975_v61  ;;  %3452 = vmax.xlane.f32.xlu0 %v2974_v29  ;;  %v14040_v61 = vpop.f32.mrb[146].mxu0 }
 0x2fc   : > { %v14027_v42 = vpop.xlane.xlu1 %3290  ;;  %v14029_v26 = vpop.xlane.xlu0 %3288  ;;  %10738 = vmatprep.mubr.msk.f32.mxu1 %vm320_vm1, %v13425_v46 }
 0x2fd   : > { %17150 = vst [vmem:[#allocation196_spill] sm:$0xff] %v14027_v42  ;;  %17151 = vst [vmem:[#allocation197_spill] sm:$0xff] %v14029_v26 }
 0x2ff   : > { %3458 = vmax.xlane.f32.xlu1 %v2977_v36  ;;  %3456 = vmax.xlane.f32.xlu0 %v2976_v4  ;;  %v14054_v36 = vpop.f32.mrb[147].mxu0  ;;  %v2981_v4 = vsel %vm2746_vm2, %v13390_v8, -1e+30  ;;  %v3786_v8 = vld [vmem:[%s11356_s17 + $0x54] sm:$0xf] }
 0x300   : > { %v14045_v29 = vpop.xlane.xlu1 %3322  ;;  %v14047_v26 = vpop.xlane.xlu0 %3320  ;;  %10710 = vmatprep.subr.msk.mxu0 %vm369_vm0, %v3786_v8 }
 0x301   : > { %17152 = vst [vmem:[#allocation198_spill] sm:$0xff] %v14045_v29  ;;  %17153 = vst [vmem:[#allocation199_spill] sm:$0xff] %v14047_v26  ;;  %v14058_v40 = vpop.f32.mrb[148].mxu0  ;;  %v2980_v29 = vsel %vm2746_vm2, %v13404_v48, -1e+30  ;;  %10711 = vmatpush3.msk.msra.mxu0 %vm369_vm0, %v3786_v8 }
 0x302   : > { %v14072_v42 = vpop.f32.mrb[149].mxu0  ;;  %10713 = vmatmul.mubr.msk.f32.vlgmr.msra.gmra.mrb[208].mxu0 %vm320_vm1, %v13435_v1 }
 0x303   : > { %3462 = vmax.xlane.f32.xlu1 %v2979_v54  ;;  %3460 = vmax.xlane.f32.xlu0 %v2978_v21  ;;  %v14076_v54 = vpop.f32.mrb[150].mxu0  ;;  %v2983_v21 = vsel %vm2746_vm2, %v13408_v3, -1e+30 }
 0x304   : > { %v14063_v26 = vpop.xlane.xlu1 %3294  ;;  %v14065_v2 = vpop.xlane.xlu0 %3292  ;;  %10715 = vmatprep.mubr.msk.f32.mxu0 %vm320_vm1, %v13454_v28 }
 0x305   : > { %17154 = vst [vmem:[#allocation200_spill] sm:$0xff] %v14063_v26  ;;  %17155 = vst [vmem:[#allocation201_spill] sm:$0xff] %v14065_v2  ;;  %v2982_v26 = vsel %vm2746_vm2, %v13429_v5, -1e+30  ;;  %v2985_v5 = vsel %vm2747_vm3, %v13439_v23, -1e+30 }
 0x306   : > { %10716 = vmatmul.mubr.msk.f32.gmra.mrb[210].mxu0 %vm320_vm1, %v13463_v62  ;;  %v2987_v23 = vsel %vm2747_vm3, %v13467_v9, -1e+30  ;;  %v17168_v9 = vld [vmem:[#allocation144_spill] sm:$0xff] }
 0x307   : > { %3466 = vmax.xlane.f32.xlu1 %v2981_v4  ;;  %3464 = vmax.xlane.f32.xlu0 %v2980_v29  ;;  %v14092_v29 = vpop.f32.mrb[151].mxu0 }
 0x308   : > { %v14082_v2 = vpop.xlane.xlu1 %3326  ;;  %v14084_v48 = vpop.xlane.xlu0 %3324  ;;  %10718 = vmatprep.mubr.msk.f32.mxu0 %vm320_vm1, %v13482_v45 }
 0x309   : > { %17156 = vst [vmem:[#allocation202_spill] sm:$0xff] %v14082_v2  ;;  %17157 = vst [vmem:[#allocation203_spill] sm:$0xff] %v14084_v48  ;;  %v14097_v3 = vpop.f32.mrb[152].mxu0  ;;  %v2984_v2 = vsel %vm2747_vm3, %v13458_v51, -1e+30  ;;  %v17165_v51 = vld [vmem:[#allocation143_spill] sm:$0xff] }
 0x30a   : > { %17158 = vst [vmem:[#allocation204_spill] sm:$0xff] %v14097_v3  ;;  %v14111_v8 = vpop.f32.mrb[153].mxu0  ;;  %10719 = vmatmul.mubr.msk.f32.gmra.mrb[212].mxu0 %vm320_vm1, %v13491_v14 }
 0x30b   : > { %3470 = vmax.xlane.f32.xlu1 %v2983_v21  ;;  %3468 = vmax.xlane.f32.xlu0 %v2982_v26  ;;  %17161 = vst [vmem:[#allocation207_spill] sm:$0xff] %v14111_v8  ;;  %v14115_v26 = vpop.f32.mrb[154].mxu0 }
 0x30c   : > { %v14102_v4 = vpop.xlane.xlu1 %3330  ;;  %v14104_v48 = vpop.xlane.xlu0 %3328  ;;  %17162 = vst [vmem:[#allocation208_spill] sm:$0xff] %v14115_v26  ;;  %10721 = vmatprep.mubr.msk.f32.mxu0 %vm320_vm1, %v13510_v13 }
 0x30d   : > { %17159 = vst [vmem:[#allocation205_spill] sm:$0xff] %v14102_v4  ;;  %17160 = vst [vmem:[#allocation206_spill] sm:$0xff] %v14104_v48  ;;  %v2986_v4 = vsel %vm2747_vm3, %v17165_v51, -1e+30  ;;  %v14129_v63 = vpop.f32.mrb[155].mxu0  ;;  %v17171_v51 = vld [vmem:[#allocation18_spill] sm:$0xff] }
 0x30e   : > { %17166 = vst [vmem:[#allocation143_spill] sm:$0xff] %v14129_v63  ;;  %v2988_v26 = vsel %vm2747_vm3, %v17171_v51, -1e+30  ;;  %10722 = vmatmul.mubr.msk.f32.gmra.mrb[214].mxu0 %vm320_vm1, %v13519_v0  ;;  %v17177_v51 = vld [vmem:[#allocation147_spill] sm:$0xff] }
 0x30f   : > { %3474 = vmax.xlane.f32.xlu1 %v2985_v5  ;;  %3472 = vmax.xlane.f32.xlu0 %v2984_v2  ;;  %v14133_v2 = vpop.f32.mrb[156].mxu0  ;;  %v2989_v5 = vsel %vm2747_vm3, %v17168_v9, -1e+30 }
 0x310   : > { %v14120_v21 = vpop.xlane.xlu1 %3362  ;;  %v14122_v48 = vpop.xlane.xlu0 %3360  ;;  %17167 = vst [vmem:[#allocation211_spill] sm:$0xff] %v14133_v2  ;;  %v2990_v2 = vsel %vm2747_vm3, %v17177_v51, -1e+30  ;;  %10724 = vmatprep.mubr.msk.f32.mxu0 %vm320_vm1, %v13538_v50 }
 0x311   : > { %17163 = vst [vmem:[#allocation209_spill] sm:$0xff] %v14120_v21  ;;  %17164 = vst [vmem:[#allocation210_spill] sm:$0xff] %v14122_v48  ;;  %v14147_v63 = vpop.f32.mrb[157].mxu0 }
 0x312   : > { %17172 = vst [vmem:[#allocation18_spill] sm:$0xff] %v14147_v63  ;;  %10725 = vmatmul.mubr.msk.f32.gmra.mrb[216].mxu0 %vm320_vm1, %v13549_v38 }
 0x313   : > { %3478 = vmax.xlane.f32.xlu1 %v2987_v23  ;;  %3476 = vmax.xlane.f32.xlu0 %v2986_v4  ;;  %v14151_v4 = vpop.f32.mrb[158].mxu0  ;;  %v17174_v23 = vld [vmem:[#allocation146_spill] sm:$0xff] }
 0x314   : > { %v14138_v48 = vpop.xlane.xlu1 %3334  ;;  %v14140_v21 = vpop.xlane.xlu0 %3332  ;;  %17173 = vst [vmem:[#allocation213_spill] sm:$0xff] %v14151_v4  ;;  %v2991_v9 = vsel %vm2747_vm3, %v17174_v23, -1e+30  ;;  %v17181_v23 = vld [vmem:[#allocation148_spill] sm:$0xff]  ;;  %10727 = vmatprep.mubr.msk.f32.mxu0 %vm320_vm1, %v13568_v17 }
 0x315   : > { %17169 = vst [vmem:[#allocation144_spill] sm:$0xff] %v14138_v48  ;;  %17170 = vst [vmem:[#allocation212_spill] sm:$0xff] %v14140_v21  ;;  %v14165_v63 = vpop.f32.mrb[159].mxu0 }
 0x316   : > { %17178 = vst [vmem:[#allocation147_spill] sm:$0xff] %v14165_v63  ;;  %10728 = vmatmul.mubr.msk.f32.gmra.mrb[218].mxu0 %vm320_vm1, %v13577_v53 }
 0x317   : > { %3482 = vmax.xlane.f32.xlu1 %v2989_v5  ;;  %3480 = vmax.xlane.f32.xlu0 %v2988_v26  ;;  %v14167_v26 = vpop.f32.mrb[144].mxu1 }
 0x318   : > { %v14156_v21 = vpop.xlane.xlu1 %3366  ;;  %v14158_v48 = vpop.xlane.xlu0 %3364  ;;  %17179 = vst [vmem:[#allocation215_spill] sm:$0xff] %v14167_v26  ;;  %10730 = vmatprep.mubr.msk.f32.mxu0 %vm320_vm1, %v13596_v52 }
 0x319   : > { %17175 = vst [vmem:[#allocation146_spill] sm:$0xff] %v14156_v21  ;;  %17176 = vst [vmem:[#allocation214_spill] sm:$0xff] %v14158_v48  ;;  %v14171_v5 = vpop.f32.mrb[145].mxu1  ;;  %v2993_v48 = vsel %vm2746_vm2, %v17181_v23, -1e+30  ;;  %v17182_v21 = vld [vmem:[#allocation149_spill] sm:$0xff] }
 0x31a   : > { %17180 = vst [vmem:[#allocation216_spill] sm:$0xff] %v14171_v5  ;;  %v2992_v51 = vsel %vm2746_vm2, %v17182_v21, -1e+30  ;;  %v14185_v26 = vpop.f32.mrb[146].mxu1  ;;  %v17188_v23 = vld [vmem:[#allocation151_spill] sm:$0xff]  ;;  %10731 = vmatmul.mubr.msk.f32.gmra.mrb[220].mxu0 %vm320_vm1, %v13605_v58 }
 0x31b   : > { %3486 = vmax.xlane.f32.xlu1 %v2991_v9  ;;  %3484 = vmax.xlane.f32.xlu0 %v2990_v2  ;;  %17185 = vst [vmem:[#allocation217_spill] sm:$0xff] %v14185_v26  ;;  %v14189_v2 = vpop.f32.mrb[147].mxu1  ;;  %v17187_v9 = vld [vmem:[#allocation22_spill] sm:$0xff] }
 0x31c   : > { %v14179_v4 = vpop.xlane.xlu1 %3338  ;;  %v14181_v63 = vpop.xlane.xlu0 %3336  ;;  %17186 = vst [vmem:[#allocation218_spill] sm:$0xff] %v14189_v2  ;;  %v2995_v21 = vsel %vm2746_vm2, %v17187_v9, -1e+30  ;;  %v17193_v9 = vld [vmem:[#allocation152_spill] sm:$0xff]  ;;  %10733 = vmatprep.mubr.msk.f32.mxu0 %vm320_vm1, %v13624_v59 }
 0x31d   : > { %17183 = vst [vmem:[#allocation148_spill] sm:$0xff] %v14179_v4  ;;  %17184 = vst [vmem:[#allocation149_spill] sm:$0xff] %v14181_v63  ;;  %v2994_v63 = vsel %vm2746_vm2, %v17188_v23, -1e+30  ;;  %v2997_v23 = vsel %vm2746_vm2, %v17193_v9, -1e+30 }
 0x31e   : > { %10734 = vmatmul.mubr.msk.f32.gmra.mrb[222].mxu0 %vm320_vm1, %v13633_v11  ;;  %v17199_v9 = vld [vmem:[#allocation26_spill] sm:$0xff] }
 0x31f   : > { %3490 = vmax.xlane.f32.xlu1 %v2993_v48  ;;  %3488 = vmax.xlane.f32.xlu0 %v2992_v51  ;;  %v14203_v48 = vpop.f32.mrb[148].mxu1 }
 0x320   : > { %v14197_v4 = vpop.xlane.xlu1 %3370  ;;  %v14199_v5 = vpop.xlane.xlu0 %3368  ;;  %17191 = vst [vmem:[#allocation219_spill] sm:$0xff] %v14203_v48  ;;  %10764 = vmatprep.mubr.msk.f32.mxu0 %vm320_vm1, %v13425_v46 }
 0x321   : > { %17189 = vst [vmem:[#allocation22_spill] sm:$0xff] %v14197_v4  ;;  %17190 = vst [vmem:[#allocation151_spill] sm:$0xff] %v14199_v5  ;;  %v14207_v51 = vpop.f32.mrb[149].mxu1  ;;  %v17194_v4 = vld [vmem:[#allocation153_spill] sm:$0xff] }
 0x322   : > { %17192 = vst [vmem:[#allocation220_spill] sm:$0xff] %v14207_v51  ;;  %v2996_v5 = vsel %vm2746_vm2, %v17194_v4, -1e+30  ;;  %v14221_v48 = vpop.f32.mrb[150].mxu1  ;;  %v2999_v4 = vsel %vm2746_vm2, %v17199_v9, -1e+30 }
 0x323   : > { %3494 = vmax.xlane.f32.xlu1 %v2995_v21  ;;  %3492 = vmax.xlane.f32.xlu0 %v2994_v63  ;;  %17197 = vst [vmem:[#allocation221_spill] sm:$0xff] %v14221_v48  ;;  %v14225_v63 = vpop.f32.mrb[151].mxu1  ;;  %v3787_v21 = vld [vmem:[%s11356_s17 + $0x5c] sm:$0xf]  ;;  %v17206_v9 = vld [vmem:[#allocation158_spill] sm:$0xff] }
 0x324   : > { %v14215_v2 = vpop.xlane.xlu1 %3342  ;;  %v14217_v26 = vpop.xlane.xlu0 %3340  ;;  %17198 = vst [vmem:[#allocation222_spill] sm:$0xff] %v14225_v63  ;;  %10736 = vmatprep.subr.msk.mxu1 %vm369_vm0, %v3787_v21 }
 0x325   : > { %17195 = vst [vmem:[#allocation152_spill] sm:$0xff] %v14215_v2  ;;  %17196 = vst [vmem:[#allocation153_spill] sm:$0xff] %v14217_v26  ;;  %v17200_v2 = vld [vmem:[#allocation155_spill] sm:$0xff]  ;;  %10737 = vmatpush3.msk.msra.mxu1 %vm369_vm0, %v3787_v21 }
 0x326   : > { %v2998_v26 = vsel %vm2746_vm2, %v17200_v2, -1e+30  ;;  %10739 = vmatmul.mubr.msk.f32.vlgmr.msra.gmra.mrb[208].mxu1 %vm320_vm1, %v13435_v1  ;;  %v17205_v2 = vld [vmem:[#allocation157_spill] sm:$0xff]  ;;  %vm7552_vm2 = vcmask 917312  }
 0x327   : > { %3498 = vmax.xlane.f32.xlu1 %v2997_v23  ;;  %3496 = vmax.xlane.f32.xlu0 %v2996_v5  ;;  %v14242_v5 = vpop.f32.mrb[152].mxu1  ;;  %v3001_v23 = vsel %vm2747_vm3, %v17205_v2, -1e+30  ;;  %v17211_v2 = vld [vmem:[#allocation30_spill] sm:$0xff] }
 0x328   : > { %v14234_v51 = vpop.xlane.xlu1 %3374  ;;  %v14236_v8 = vpop.xlane.xlu0 %3372  ;;  %17203 = vst [vmem:[#allocation223_spill] sm:$0xff] %v14242_v5  ;;  %10741 = vmatprep.mubr.msk.f32.mxu1 %vm320_vm1, %v13454_v28 }
 0x329   : > { %17201 = vst [vmem:[#allocation26_spill] sm:$0xff] %v14234_v51  ;;  %17202 = vst [vmem:[#allocation155_spill] sm:$0xff] %v14236_v8  ;;  %v14246_v33 = vpop.f32.mrb[153].mxu1  ;;  %v3000_v8 = vsel %vm2747_vm3, %v17206_v9, -1e+30 }
 0x32a   : > { %17204 = vst [vmem:[#allocation224_spill] sm:$0xff] %v14246_v33  ;;  %10742 = vmatmul.mubr.msk.f32.gmra.mrb[210].mxu1 %vm320_vm1, %v13463_v62  ;;  %v3003_v9 = vsel %vm2747_vm3, %v17211_v2, -1e+30  ;;  %v17212_v33 = vld [vmem:[#allocation160_spill] sm:$0xff]  ;;  %v17217_v2 = vld [vmem:[#allocation161_spill] sm:$0xff] }
 0x32b   : > { %3502 = vmax.xlane.f32.xlu1 %v2999_v4  ;;  %3500 = vmax.xlane.f32.xlu0 %v2998_v26  ;;  %v14260_v4 = vpop.f32.mrb[154].mxu1 }
 0x32c   : > { %v14254_v51 = vpop.xlane.xlu1 %3346  ;;  %v14256_v21 = vpop.xlane.xlu0 %3344  ;;  %17209 = vst [vmem:[#allocation225_spill] sm:$0xff] %v14260_v4  ;;  %10744 = vmatprep.mubr.msk.f32.mxu1 %vm320_vm1, %v13482_v45 }
 0x32d   : > { %17207 = vst [vmem:[#allocation157_spill] sm:$0xff] %v14254_v51  ;;  %17208 = vst [vmem:[#allocation158_spill] sm:$0xff] %v14256_v21  ;;  %v14264_v26 = vpop.f32.mrb[155].mxu1  ;;  %v3002_v21 = vsel %vm2747_vm3, %v17212_v33, -1e+30 }
 0x32e   : > { %17210 = vst [vmem:[#allocation226_spill] sm:$0xff] %v14264_v26  ;;  %v14278_v4 = vpop.f32.mrb[156].mxu1  ;;  %10745 = vmatmul.mubr.msk.f32.gmra.mrb[212].mxu1 %vm320_vm1, %v13491_v14  ;;  %v3005_v33 = vsel %vm2747_vm3, %v17217_v2, -1e+30 }
 0x32f   : > { %3506 = vmax.xlane.f32.xlu1 %v3001_v23  ;;  %3504 = vmax.xlane.f32.xlu0 %v3000_v8  ;;  %17215 = vst [vmem:[#allocation227_spill] sm:$0xff] %v14278_v4  ;;  %v3792_v8 = vld [vmem:[%s11369_s6 + $0x2] sm:$0x3]  ;;  %v14283_v23 = vpop.f32.mrb[157].mxu1 }
 0x330   : > { %v14272_v51 = vpop.xlane.xlu1 %3378  ;;  %v14274_v5 = vpop.xlane.xlu0 %3376  ;;  %17216 = vst [vmem:[#allocation228_spill] sm:$0xff] %v14283_v23  ;;  %10747 = vmatprep.mubr.msk.f32.mxu1 %vm320_vm1, %v13510_v13  ;;  %v17221_v4 = vld [vmem:[#allocation16_spill] sm:$0xff] }
 0x331   : > { %17213 = vst [vmem:[#allocation30_spill] sm:$0xff] %v14272_v51  ;;  %17214 = vst [vmem:[#allocation160_spill] sm:$0xff] %v14274_v5  ;;  %v17218_v51 = vld [vmem:[#allocation162_spill] sm:$0xff]  ;;  %v14301_v23 = vpop.f32.mrb[158].mxu1 }
 0x332   : > { %v3004_v5 = vsel %vm2747_vm3, %v17218_v51, -1e+30  ;;  %10748 = vmatmul.mubr.msk.f32.gmra.mrb[214].mxu1 %vm320_vm1, %v13519_v0  ;;  %v14305_v2 = vpop.f32.mrb[159].mxu1  ;;  %v17224_v51 = vld [vmem:[#allocation34_spill] sm:$0xff] }
 0x333   : > { %3510 = vmax.xlane.f32.xlu1 %v3003_v9  ;;  %3508 = vmax.xlane.f32.xlu0 %v3002_v21  ;;  %v17222_v9 = vsub.s32 0, %v17221_v4  ;;  %17223 = vst [vmem:[#allocation16_spill] sm:$0xff] %v14305_v2 }
 0x334   : > { %v14291_v26 = vpop.xlane.xlu1 %3350  ;;  %v14293_v63 = vpop.xlane.xlu0 %3348  ;;  %10750 = vmatprep.mubr.msk.f32.mxu1 %vm320_vm1, %v13538_v50 }
 0x335   : > { %17219 = vst [vmem:[#allocation161_spill] sm:$0xff] %v14291_v26  ;;  %17220 = vst [vmem:[#allocation162_spill] sm:$0xff] %v14293_v63  ;;  %v14299_v21 = vrot.slane %v3792_v8, %v17222_v9  ;;  %v3007_v63 = vsel %vm2747_vm3, %v17224_v51, -1e+30  ;;  %v17225_v26 = vld [vmem:[#allocation164_spill] sm:$0xff] }
 0x336   : > { %v3006_v48 = vsel %vm2747_vm3, %v17225_v26, -1e+30  ;;  %10751 = vmatmul.mubr.msk.f32.gmra.mrb[216].mxu1 %vm320_vm1, %v13549_v38  ;;  %vm7559_vm3 = vcmask 982912  }
 0x337   : > { %3514 = vmax.xlane.f32.xlu1 %v3005_v33  ;;  %3512 = vmax.xlane.f32.xlu0 %v3004_v5  ;;  %vm6169_vm4 = vcmp.gt.f32.partialorder %v14299_v21, 0.5  ;;  %v14322_v5 = vpop.f32.mrb[160].mxu0  ;;  %v17229_v33 = vld [vmem:[#allocation165_spill] sm:$0xff] }
 0x338   : > { %v14313_v3 = vpop.xlane.xlu1 %3382  ;;  %v14315_v9 = vpop.xlane.xlu0 %3380  ;;  %17228 = vst [vmem:[#allocation229_spill] sm:$0xff] %v14322_v5  ;;  %v6176_v27 = vsel %vm6169_vm4, %v17229_v33, -1e+30  ;;  %10753 = vmatprep.mubr.msk.f32.mxu1 %vm320_vm1, %v13568_v17 }
 0x339   : > { %17226 = vst [vmem:[#allocation34_spill] sm:$0xff] %v14313_v3  ;;  %17227 = vst [vmem:[#allocation164_spill] sm:$0xff] %v14315_v9  ;;  %v17232_v9 = vld [vmem:[#allocation38_spill] sm:$0xff]  ;;  %v14336_v2 = vpop.f32.mrb[161].mxu0 }
 0x33a   : > { %v6175_v3 = vsel %vm6169_vm4, %v17232_v9, -1e+30  ;;  %17233 = vst [vmem:[#allocation38_spill] sm:$0xff] %v14336_v2  ;;  %10754 = vmatmul.mubr.msk.f32.gmra.mrb[218].mxu1 %vm320_vm1, %v13577_v53  ;;  %v17237_v9 = vld [vmem:[#allocation168_spill] sm:$0xff] }
 0x33b   : > { %3518 = vmax.xlane.f32.xlu1 %v3007_v63  ;;  %3516 = vmax.xlane.f32.xlu0 %v3006_v48  ;;  %v14340_v48 = vpop.f32.mrb[162].mxu0  ;;  %v17234_v63 = vld [vmem:[#allocation167_spill] sm:$0xff]  ;;  %v6177_v5 = vsel %vm6169_vm4, %v17237_v9, -1e+30 }
 0x33c   : > { %v14327_v26 = vpop.xlane.xlu1 %3354  ;;  %v14329_v51 = vpop.xlane.xlu0 %3352  ;;  %v6178_v33 = vsel %vm6169_vm4, %v17234_v63, -1e+30  ;;  %10756 = vmatprep.mubr.msk.f32.mxu1 %vm320_vm1, %v13596_v52 }
 0x33d   : > { %17230 = vst [vmem:[#allocation165_spill] sm:$0xff] %v14327_v26  ;;  %17231 = vst [vmem:[#allocation230_spill] sm:$0xff] %v14329_v51  ;;  %v14354_v2 = vpop.f32.mrb[163].mxu0 }
 0x33e   : > { %10757 = vmatmul.mubr.msk.f32.gmra.mrb[220].mxu1 %vm320_vm1, %v13605_v58 }
 0x33f   : > { %6433 = vmax.xlane.f32.xlu1 %v6176_v27  ;;  %6431 = vmax.xlane.f32.xlu0 %v6175_v3  ;;  %v14358_v3 = vpop.f32.mrb[164].mxu0  ;;  %v6180_v27 = vsel %vm6169_vm4, %v13764_v56, -1e+30 }
 0x340   : > { %v14345_v51 = vpop.xlane.xlu1 %3386  ;;  %v14347_v26 = vpop.xlane.xlu0 %3384  ;;  %17238 = vst [vmem:[#allocation168_spill] sm:$0xff] %v14358_v3  ;;  %10759 = vmatprep.mubr.msk.f32.mxu1 %vm320_vm1, %v13624_v59 }
 0x341   : > { %17235 = vst [vmem:[#allocation167_spill] sm:$0xff] %v14345_v51  ;;  %17236 = vst [vmem:[#allocation231_spill] sm:$0xff] %v14347_v26  ;;  %v6179_v26 = vsel %vm6169_vm4, %v13778_v37, -1e+30  ;;  %v14376_v51 = vpop.f32.mrb[165].mxu0 }
 0x342   : > { %10760 = vmatmul.mubr.msk.f32.gmra.mrb[222].mxu1 %vm320_vm1, %v13633_v11  ;;  %v14380_v56 = vpop.f32.mrb[166].mxu0  ;;  %v6182_v37 = vsel %vm6169_vm4, %v13782_v10, -1e+30 }
 0x343   : > { %6437 = vmax.xlane.f32.xlu1 %v6178_v33  ;;  %6435 = vmax.xlane.f32.xlu0 %v6177_v5  ;;  %v17241_v33 = vsub.s32 1, %v17221_v4 }
 0x344   : > { %v14363_v63 = vpop.xlane.xlu1 %3358  ;;  %v14365_v9 = vpop.xlane.xlu0 %3356  ;;  %10790 = vmatprep.mubr.msk.f32.mxu1 %vm320_vm1, %v13425_v46 }
 0x345   : > { %17239 = vst [vmem:[#allocation232_spill] sm:$0xff] %v14363_v63  ;;  %17240 = vst [vmem:[#allocation233_spill] sm:$0xff] %v14365_v9  ;;  %v14374_v5 = vrot.slane %v3792_v8, %v17241_v33  ;;  %v3788_v9 = vld [vmem:[%s11356_s17 + $0x64] sm:$0xf]  ;;  %v6181_v8 = vsel %vm6169_vm4, %v13798_v35, -1e+30 }
 0x346   : > { %10762 = vmatprep.subr.msk.mxu0 %vm369_vm0, %v3788_v9 }
 0x347   : > { %6441 = vmax.xlane.f32.xlu1 %v6180_v27  ;;  %6439 = vmax.xlane.f32.xlu0 %v6179_v26  ;;  %vm6170_vm5 = vcmp.gt.f32.partialorder %v14374_v5, 0.5  ;;  %v14397_v26 = vpop.f32.mrb[167].mxu0 }
 0x348   : > { %v14386_v63 = vpop.xlane.xlu1 %3390  ;;  %v14388_v3 = vpop.xlane.xlu0 %3388  ;;  %10763 = vmatpush3.msk.msra.mxu0 %vm369_vm0, %v3788_v9  ;;  %v6184_v35 = vsel %vm6170_vm5, %v13803_v22, -1e+30  ;;  %v6183_v33 = vsel %vm6170_vm5, %v13817_v30, -1e+30  ;;  %v6186_v22 = vsel %vm6170_vm5, %v13821_v18, -1e+30 }
 0x349   : > { %17242 = vst [vmem:[#allocation234_spill] sm:$0xff] %v14386_v63  ;;  %17243 = vst [vmem:[#allocation235_spill] sm:$0xff] %v14388_v3  ;;  %10765 = vmatmul.mubr.msk.f32.vlgmr.msra.gmra.mrb[224].mxu0 %vm320_vm1, %v13435_v1  ;;  %v14402_v10 = vpop.f32.mrb[168].mxu0  ;;  %v6188_v18 = vsel %vm6170_vm5, %v13839_v49, -1e+30 }
 0x34a   : > { %10767 = vmatprep.mubr.msk.f32.mxu0 %vm320_vm1, %v13454_v28  ;;  %v14416_v1 = vpop.f32.mrb[169].mxu0  ;;  %v6185_v28 = vsel %vm6170_vm5, %v13835_v43, -1e+30  ;;  %v6190_v49 = vsel %vm6170_vm5, %v13857_v15, -1e+30  ;;  %v14476_v15 = vpop.f32.mrb[160].mxu1 }
 0x34b   : > { %6445 = vmax.xlane.f32.xlu1 %v6182_v37  ;;  %6443 = vmax.xlane.f32.xlu0 %v6181_v8  ;;  %v14420_v9 = vpop.f32.mrb[170].mxu0  ;;  %v3791_v63 = vld [vmem:[%s11356_s17 + $0x7c] sm:$0xf] }
 0x34c   : > { %v14407_v27 = vpop.xlane.xlu1 %3394  ;;  %v14409_v46 = vpop.xlane.xlu0 %3392 }
 0x34d   : > { %17244 = vst [vmem:[#allocation236_spill] sm:$0xff] %v14407_v27  ;;  %17245 = vst [vmem:[#allocation237_spill] sm:$0xff] %v14409_v46  ;;  %10768 = vmatmul.mubr.msk.f32.gmra.mrb[226].mxu0 %vm320_vm1, %v13463_v62  ;;  %v14434_v62 = vpop.f32.mrb[171].mxu0 }
 0x34e   : > { %10770 = vmatprep.mubr.msk.f32.mxu0 %vm320_vm1, %v13482_v45  ;;  %v14438_v30 = vpop.f32.mrb[172].mxu0  ;;  %v6187_v45 = vsel %vm6170_vm5, %v13853_v44, -1e+30 }
 0x34f   : > { %6449 = vmax.xlane.f32.xlu1 %v6184_v35  ;;  %6447 = vmax.xlane.f32.xlu0 %v6183_v33 }
 0x350   : > { %v14425_v37 = vpop.xlane.xlu1 %3426  ;;  %v14427_v8 = vpop.xlane.xlu0 %3424 }
 0x351   : > { %17246 = vst [vmem:[#allocation238_spill] sm:$0xff] %v14425_v37  ;;  %17247 = vst [vmem:[#allocation239_spill] sm:$0xff] %v14427_v8  ;;  %10771 = vmatmul.mubr.msk.f32.gmra.mrb[228].mxu0 %vm320_vm1, %v13491_v14  ;;  %v14452_v14 = vpop.f32.mrb[173].mxu0 }
 0x352   : > { %10773 = vmatprep.mubr.msk.f32.mxu0 %vm320_vm1, %v13510_v13  ;;  %v14456_v33 = vpop.f32.mrb[174].mxu0  ;;  %v6189_v13 = vsel %vm6170_vm5, %v13871_v25, -1e+30 }
 0x353   : > { %6453 = vmax.xlane.f32.xlu1 %v6186_v22  ;;  %6451 = vmax.xlane.f32.xlu0 %v6185_v28  ;;  %v14472_v44 = vpop.f32.mrb[175].mxu0 }
 0x354   : > { %v14443_v35 = vpop.xlane.xlu1 %3398  ;;  %v14445_v43 = vpop.xlane.xlu0 %3396 }
 0x355   : > { %17248 = vst [vmem:[#allocation240_spill] sm:$0xff] %v14443_v35  ;;  %17249 = vst [vmem:[#allocation241_spill] sm:$0xff] %v14445_v43  ;;  %10774 = vmatmul.mubr.msk.f32.gmra.mrb[230].mxu0 %vm320_vm1, %v13519_v0  ;;  %v3789_v0 = vld [vmem:[%s11356_s17 + $0x6c] sm:$0xf]  ;;  %v3790_v35 = vld [vmem:[%s11356_s17 + $0x74] sm:$0xf] }
 0x356   : > { %10776 = vmatprep.mubr.msk.f32.mxu0 %vm320_vm1, %v13538_v50  ;;  %10788 = vmatprep.subr.msk.mxu1 %vm369_vm0, %v3789_v0  ;;  %v6191_v50 = vsel %vm6169_vm4, %v13877_v24, -1e+30  ;;  %v14503_v24 = vld [vmem:[%s16822_s1 + $0x10] sm:$0xff] }
 0x357   : > { %6457 = vmax.xlane.f32.xlu1 %v6188_v18  ;;  %6455 = vmax.xlane.f32.xlu0 %v6187_v45  ;;  %v17252_v18 = vld [vmem:[#allocation179_spill] sm:$0xff] }
 0x358   : > { %v14461_v22 = vpop.xlane.xlu1 %3430  ;;  %v14463_v28 = vpop.xlane.xlu0 %3428  ;;  %v6192_v45 = vsel %vm6169_vm4, %v17252_v18, -1e+30  ;;  %10789 = vmatpush3.msk.msra.mxu1 %vm369_vm0, %v3789_v0  ;;  %v6193_v0 = vsel %vm6169_vm4, %v13895_v12, -1e+30  ;;  %v14535_v12 = vld [vmem:[%s16822_s1 + $0x20] sm:$0xff]  ;;  %10814 = vmatprep.subr.msk.mxu0 %vm369_vm0, %v3790_v35 }
 0x359   : > { %17250 = vst [vmem:[#allocation242_spill] sm:$0xff] %v14461_v22  ;;  %17251 = vst [vmem:[#allocation243_spill] sm:$0xff] %v14463_v28  ;;  %10777 = vmatmul.mubr.msk.f32.gmra.mrb[232].mxu0 %vm320_vm1, %v13549_v38  ;;  %v14494_v38 = vld [vmem:[%s16822_s1 + $0x8] sm:$0xff]  ;;  %10840 = vmatprep.subr.msk.mxu1 %vm369_vm0, %v3791_v63 }
 0x35a   : > { %10779 = vmatprep.mubr.msk.f32.mxu0 %vm320_vm1, %v13568_v17  ;;  %10791 = vmatmul.mubr.msk.f32.vlgmr.msra.gmra.mrb[224].mxu1 %vm320_vm1, %v14494_v38 }
 0x35b   : > { %6461 = vmax.xlane.f32.xlu1 %v6190_v49  ;;  %6459 = vmax.xlane.f32.xlu0 %v6189_v13  ;;  %v14498_v49 = vpop.f32.mrb[161].mxu1  ;;  %v6194_v13 = vsel %vm6169_vm4, %v13891_v39, -1e+30 }
 0x35c   : > { %v14484_v25 = vpop.xlane.xlu1 %3402  ;;  %v14486_v22 = vpop.xlane.xlu0 %3400  ;;  %10793 = vmatprep.mubr.msk.f32.mxu1 %vm320_vm1, %v14503_v24  ;;  %10815 = vmatpush3.msk.msra.mxu0 %vm369_vm0, %v3790_v35 }
 0x35d   : > { %17253 = vst [vmem:[#allocation179_spill] sm:$0xff] %v14484_v25  ;;  %17254 = vst [vmem:[#allocation244_spill] sm:$0xff] %v14486_v22  ;;  %10780 = vmatmul.mubr.msk.f32.gmra.mrb[234].mxu0 %vm320_vm1, %v13577_v53  ;;  %v14509_v17 = vpop.f32.mrb[162].mxu1  ;;  %v14526_v53 = vld [vmem:[%s16822_s1 + $0x18] sm:$0xff]  ;;  %10841 = vmatpush3.msk.msra.mxu1 %vm369_vm0, %v3791_v63  ;;  %v6210_v63 = vsel %vm6169_vm4, %v14040_v61, -1e+30 }
 0x35e   : > { %10782 = vmatprep.mubr.msk.f32.mxu0 %vm320_vm1, %v13596_v52  ;;  %10794 = vmatmul.mubr.msk.f32.gmra.mrb[226].mxu1 %vm320_vm1, %v14526_v53  ;;  %v14530_v39 = vpop.f32.mrb[163].mxu1  ;;  %vm16841_vm0 = vcmask 786112  }
 0x35f   : > { %6465 = vmax.xlane.f32.xlu1 %v6192_v45  ;;  %6463 = vmax.xlane.f32.xlu0 %v6191_v50  ;;  %v14541_v52 = vpop.f32.mrb[164].mxu1  ;;  %v17257_v45 = vld [vmem:[#allocation184_spill] sm:$0xff] }
 0x360   : > { %v14517_v18 = vpop.xlane.xlu1 %3434  ;;  %v14519_v28 = vpop.xlane.xlu0 %3432  ;;  %10796 = vmatprep.mubr.msk.f32.mxu1 %vm320_vm1, %v14535_v12  ;;  %v6196_v50 = vsel %vm6169_vm4, %v17257_v45, -1e+30  ;;  %v6197_v45 = vsel %vm6169_vm4, %v13931_v57, -1e+30  ;;  %v14601_v57 = vld [vmem:[%s16822_s1 + $0x40] sm:$0xff] }
 0x361   : > { %17255 = vst [vmem:[#allocation245_spill] sm:$0xff] %v14517_v18  ;;  %17256 = vst [vmem:[#allocation246_spill] sm:$0xff] %v14519_v28  ;;  %10783 = vmatmul.mubr.msk.f32.gmra.mrb[236].mxu0 %vm320_vm1, %v13605_v58  ;;  %v6195_v18 = vsel %vm6169_vm4, %v13913_v55, -1e+30  ;;  %v14558_v58 = vld [vmem:[%s16822_s1 + $0x28] sm:$0xff]  ;;  %v14567_v55 = vld [vmem:[%s16822_s1 + $0x30] sm:$0xff] }
 0x362   : > { %10785 = vmatprep.mubr.msk.f32.mxu0 %vm320_vm1, %v13624_v59  ;;  %10797 = vmatmul.mubr.msk.f32.gmra.mrb[228].mxu1 %vm320_vm1, %v14558_v58 }
 0x363   : > { %6469 = vmax.xlane.f32.xlu1 %v6194_v13  ;;  %6467 = vmax.xlane.f32.xlu0 %v6193_v0  ;;  %v14562_v13 = vpop.f32.mrb[165].mxu1  ;;  %v6198_v0 = vsel %vm6169_vm4, %v13927_v34, -1e+30 }
 0x364   : > { %v14549_v28 = vpop.xlane.xlu1 %3406  ;;  %v14551_v8 = vpop.xlane.xlu0 %3404  ;;  %10799 = vmatprep.mubr.msk.f32.mxu1 %vm320_vm1, %v14567_v55 }
 0x365   : > { %17258 = vst [vmem:[#allocation184_spill] sm:$0xff] %v14549_v28  ;;  %17259 = vst [vmem:[#allocation247_spill] sm:$0xff] %v14551_v8  ;;  %10786 = vmatmul.mubr.msk.f32.gmra.mrb[238].mxu0 %vm320_vm1, %v13633_v11  ;;  %v14573_v59 = vpop.f32.mrb[166].mxu1  ;;  %v11005_v11 = vld [vmem:[%s16822_s1] sm:$0xff] }
 0x366   : > { %10816 = vmatprep.mubr.msk.f32.mxu0 %vm320_vm1, %v11005_v11  ;;  %v14596_v34 = vpop.f32.mrb[167].mxu1 }
 0x367   : > { %6473 = vmax.xlane.f32.xlu1 %v6196_v50  ;;  %6471 = vmax.xlane.f32.xlu0 %v6195_v18  ;;  %v14592_v18 = vld [vmem:[%s16822_s1 + $0x38] sm:$0xff]  ;;  %v14605_v50 = vpop.f32.mrb[168].mxu1 }
 0x368   : > { %v14581_v37 = vpop.xlane.xlu1 %3438  ;;  %v14583_v8 = vpop.xlane.xlu0 %3436  ;;  %10800 = vmatmul.mubr.msk.f32.gmra.mrb[230].mxu1 %vm320_vm1, %v14592_v18 }
 0x369   : > { %17260 = vst [vmem:[#allocation248_spill] sm:$0xff] %v14581_v37  ;;  %17261 = vst [vmem:[#allocation249_spill] sm:$0xff] %v14583_v8  ;;  %10802 = vmatprep.mubr.msk.f32.mxu1 %vm320_vm1, %v14601_v57  ;;  %v6200_v37 = vsel %vm6170_vm5, %v13948_v16, -1e+30  ;;  %v6199_v8 = vsel %vm6170_vm5, %v13952_v60, -1e+30  ;;  %10817 = vmatmul.mubr.msk.f32.vlgmr.msra.gmra.mrb[240].mxu0 %vm320_vm1, %v14494_v38 }
 0x36a   : > { %v14629_v16 = vld [vmem:[%s16822_s1 + $0x50] sm:$0xff]  ;;  %10819 = vmatprep.mubr.msk.f32.mxu0 %vm320_vm1, %v14503_v24 }
 0x36b   : > { %6477 = vmax.xlane.f32.xlu1 %v6198_v0  ;;  %6475 = vmax.xlane.f32.xlu0 %v6197_v45  ;;  %v14620_v0 = vld [vmem:[%s16822_s1 + $0x48] sm:$0xff]  ;;  %v14624_v45 = vpop.f32.mrb[169].mxu1 }
 0x36c   : > { %v14613_v28 = vpop.xlane.xlu1 %3410  ;;  %v14615_v22 = vpop.xlane.xlu0 %3408  ;;  %10803 = vmatmul.mubr.msk.f32.gmra.mrb[232].mxu1 %vm320_vm1, %v14620_v0 }
 0x36d   : > { %17262 = vst [vmem:[#allocation250_spill] sm:$0xff] %v14613_v28  ;;  %17263 = vst [vmem:[#allocation251_spill] sm:$0xff] %v14615_v22  ;;  %10805 = vmatprep.mubr.msk.f32.mxu1 %vm320_vm1, %v14629_v16  ;;  %v14633_v60 = vpop.f32.mrb[170].mxu1  ;;  %v6202_v22 = vsel %vm6170_vm5, %v13966_v41, -1e+30  ;;  %10820 = vmatmul.mubr.msk.f32.gmra.mrb[242].mxu0 %vm320_vm1, %v14526_v53 }
 0x36e   : > { %v6201_v28 = vsel %vm6170_vm5, %v13970_v19, -1e+30  ;;  %v14654_v41 = vpop.f32.mrb[171].mxu1  ;;  %v14659_v19 = vld [vmem:[%s16822_s1 + $0x60] sm:$0xff]  ;;  %10822 = vmatprep.mubr.msk.f32.mxu0 %vm320_vm1, %v14535_v12 }
 0x36f   : > { %6481 = vmax.xlane.f32.xlu1 %v6200_v37  ;;  %6479 = vmax.xlane.f32.xlu0 %v6199_v8  ;;  %v14649_v37 = vld [vmem:[%s16822_s1 + $0x58] sm:$0xff]  ;;  %v14663_v8 = vpop.f32.mrb[172].mxu1 }
 0x370   : > { %v14641_v25 = vpop.xlane.xlu1 %3442  ;;  %v14643_v43 = vpop.xlane.xlu0 %3440  ;;  %10806 = vmatmul.mubr.msk.f32.gmra.mrb[234].mxu1 %vm320_vm1, %v14649_v37 }
 0x371   : > { %17264 = vst [vmem:[#allocation252_spill] sm:$0xff] %v14641_v25  ;;  %17265 = vst [vmem:[#allocation253_spill] sm:$0xff] %v14643_v43  ;;  %10808 = vmatprep.mubr.msk.f32.mxu1 %vm320_vm1, %v14659_v19  ;;  %v6204_v25 = vsel %vm6170_vm5, %v13984_v47, -1e+30  ;;  %v6203_v43 = vsel %vm6170_vm5, %v13988_v7, -1e+30  ;;  %10823 = vmatmul.mubr.msk.f32.gmra.mrb[244].mxu0 %vm320_vm1, %v14558_v58 }
 0x372   : > { %v14685_v47 = vpop.f32.mrb[173].mxu1  ;;  %v14690_v7 = vld [vmem:[%s16822_s1 + $0x70] sm:$0xff]  ;;  %10825 = vmatprep.mubr.msk.f32.mxu0 %vm320_vm1, %v14567_v55 }
 0x373   : > { %6485 = vmax.xlane.f32.xlu1 %v6202_v22  ;;  %6483 = vmax.xlane.f32.xlu0 %v6201_v28  ;;  %v14679_v22 = vld [vmem:[%s16822_s1 + $0x68] sm:$0xff]  ;;  %v14696_v35 = vpop.f32.mrb[174].mxu1  ;;  %v6206_v28 = vsel %vm6170_vm5, %v14002_v20, -1e+30 }
 0x374   : > { %v14671_v46 = vpop.xlane.xlu1 %3414  ;;  %v14673_v27 = vpop.xlane.xlu0 %3412  ;;  %10809 = vmatmul.mubr.msk.f32.gmra.mrb[236].mxu1 %vm320_vm1, %v14679_v22  ;;  %17268 = vst [vmem:[#allocation256_spill] sm:$0xff] %v14696_v35  ;;  %v6207_v35 = vsel %vm6169_vm4, %v14036_v32, -1e+30 }
 0x375   : > { %17266 = vst [vmem:[#allocation254_spill] sm:$0xff] %v14671_v46  ;;  %17267 = vst [vmem:[#allocation255_spill] sm:$0xff] %v14673_v27  ;;  %10811 = vmatprep.mubr.msk.f32.mxu1 %vm320_vm1, %v14690_v7  ;;  %v6205_v27 = vsel %vm6170_vm5, %v14006_v6, -1e+30  ;;  %v14719_v20 = vpop.f32.mrb[175].mxu1  ;;  %v14722_v6 = vpop.f32.mrb[176].mxu0  ;;  %10826 = vmatmul.mubr.msk.f32.gmra.mrb[246].mxu0 %vm320_vm1, %v14592_v18 }
 0x376   : > { %10828 = vmatprep.mubr.msk.f32.mxu0 %vm320_vm1, %v14601_v57 }
 0x377   : > { %6489 = vmax.xlane.f32.xlu1 %v6204_v25  ;;  %6487 = vmax.xlane.f32.xlu0 %v6203_v43  ;;  %v14712_v25 = vld [vmem:[%s16822_s1 + $0x78] sm:$0xff]  ;;  %v6208_v43 = vsel %vm6169_vm4, %v14022_v31, -1e+30  ;;  %v14741_v31 = vpop.f32.mrb[177].mxu0 }
 0x378   : > { %v14704_v46 = vpop.xlane.xlu1 %3446  ;;  %v14706_v3 = vpop.xlane.xlu0 %3444  ;;  %10812 = vmatmul.mubr.msk.f32.gmra.mrb[238].mxu1 %vm320_vm1, %v14712_v25 }
 0x379   : > { %17269 = vst [vmem:[#allocation257_spill] sm:$0xff] %v14704_v46  ;;  %17270 = vst [vmem:[#allocation258_spill] sm:$0xff] %v14706_v3  ;;  %10842 = vmatprep.mubr.msk.f32.mxu1 %vm320_vm1, %v11005_v11  ;;  %v14747_v32 = vpop.f32.mrb[178].mxu0  ;;  %v6209_v11 = vsel %vm6169_vm4, %v14054_v36, -1e+30  ;;  %10829 = vmatmul.mubr.msk.f32.gmra.mrb[248].mxu0 %vm320_vm1, %v14620_v0 }
 0x37a   : > { %v6212_v36 = vsel %vm6169_vm4, %v14058_v40, -1e+30  ;;  %10831 = vmatprep.mubr.msk.f32.mxu0 %vm320_vm1, %v14629_v16 }
 0x37b   : > { %6493 = vmax.xlane.f32.xlu1 %v6206_v28  ;;  %6491 = vmax.xlane.f32.xlu0 %v6205_v27  ;;  %v6211_v28 = vsel %vm6169_vm4, %v14072_v42, -1e+30  ;;  %v6214_v42 = vsel %vm6169_vm4, %v14076_v54, -1e+30 }
 0x37c   : > { %v14727_v46 = vpop.xlane.xlu1 %3418  ;;  %v14729_v3 = vpop.xlane.xlu0 %3416  ;;  %10843 = vmatmul.mubr.msk.f32.vlgmr.msra.gmra.mrb[240].mxu1 %vm320_vm1, %v14494_v38 }
 0x37d   : > { %17271 = vst [vmem:[#allocation259_spill] sm:$0xff] %v14727_v46  ;;  %17272 = vst [vmem:[#allocation260_spill] sm:$0xff] %v14729_v3  ;;  %10845 = vmatprep.mubr.msk.f32.mxu1 %vm320_vm1, %v14503_v24  ;;  %v14763_v24 = vpop.f32.mrb[179].mxu0  ;;  %10832 = vmatmul.mubr.msk.f32.gmra.mrb[250].mxu0 %vm320_vm1, %v14649_v37  ;;  %v17320_v46 = vld [vmem:[#allocation222_spill] sm:$0xff] }
 0x37e   : > { %v14769_v61 = vpop.f32.mrb[180].mxu0  ;;  %10834 = vmatprep.mubr.msk.f32.mxu0 %vm320_vm1, %v14659_v19 }
 0x37f   : > { %6497 = vmax.xlane.f32.xlu1 %v6208_v43  ;;  %6495 = vmax.xlane.f32.xlu0 %v6207_v35 }
 0x380   : > { %v14752_v27 = vpop.xlane.xlu1 %3422  ;;  %v14754_v38 = vpop.xlane.xlu0 %3420  ;;  %10846 = vmatmul.mubr.msk.f32.gmra.mrb[242].mxu1 %vm320_vm1, %v14526_v53 }
 0x381   : > { %17273 = vst [vmem:[#allocation261_spill] sm:$0xff] %v14752_v27  ;;  %17274 = vst [vmem:[#allocation262_spill] sm:$0xff] %v14754_v38  ;;  %10848 = vmatprep.mubr.msk.f32.mxu1 %vm320_vm1, %v14535_v12  ;;  %v14785_v12 = vpop.f32.mrb[181].mxu0  ;;  %10835 = vmatmul.mubr.msk.f32.gmra.mrb[252].mxu0 %vm320_vm1, %v14679_v22  ;;  %v17314_v27 = vld [vmem:[#allocation220_spill] sm:$0xff] }
 0x382   : > { %v14791_v40 = vpop.f32.mrb[182].mxu0  ;;  %10837 = vmatprep.mubr.msk.f32.mxu0 %vm320_vm1, %v14690_v7 }
 0x383   : > { %6501 = vmax.xlane.f32.xlu1 %v6210_v63  ;;  %6499 = vmax.xlane.f32.xlu0 %v6209_v11  ;;  %v6213_v63 = vsel %vm6169_vm4, %v14092_v29, -1e+30  ;;  %v17279_v11 = vld [vmem:[#allocation204_spill] sm:$0xff] }
 0x384   : > { %v14774_v53 = vpop.xlane.xlu1 %3450  ;;  %v14776_v35 = vpop.xlane.xlu0 %3448  ;;  %10849 = vmatmul.mubr.msk.f32.gmra.mrb[244].mxu1 %vm320_vm1, %v14558_v58  ;;  %v6216_v29 = vsel %vm6170_vm5, %v17279_v11, -1e+30 }
 0x385   : > { %17275 = vst [vmem:[#allocation263_spill] sm:$0xff] %v14774_v53  ;;  %17276 = vst [vmem:[#allocation264_spill] sm:$0xff] %v14776_v35  ;;  %10851 = vmatprep.mubr.msk.f32.mxu1 %vm320_vm1, %v14567_v55  ;;  %v14807_v55 = vpop.f32.mrb[183].mxu0  ;;  %10838 = vmatmul.mubr.msk.f32.gmra.mrb[254].mxu0 %vm320_vm1, %v14712_v25 }
 0x386   : > { %v14813_v54 = vpop.f32.mrb[184].mxu0 }
 0x387   : > { %6505 = vmax.xlane.f32.xlu1 %v6212_v36  ;;  %6503 = vmax.xlane.f32.xlu0 %v6211_v28  ;;  %v17282_v28 = vld [vmem:[#allocation207_spill] sm:$0xff] }
 0x388   : > { %v14796_v58 = vpop.xlane.xlu1 %3454  ;;  %v14798_v43 = vpop.xlane.xlu0 %3452  ;;  %10852 = vmatmul.mubr.msk.f32.gmra.mrb[246].mxu1 %vm320_vm1, %v14592_v18 }
 0x389   : > { %17277 = vst [vmem:[#allocation265_spill] sm:$0xff] %v14796_v58  ;;  %17278 = vst [vmem:[#allocation266_spill] sm:$0xff] %v14798_v43  ;;  %10854 = vmatprep.mubr.msk.f32.mxu1 %vm320_vm1, %v14601_v57  ;;  %v6215_v58 = vsel %vm6170_vm5, %v17282_v28, -1e+30  ;;  %v14829_v57 = vpop.f32.mrb[185].mxu0  ;;  %v17286_v43 = vld [vmem:[#allocation143_spill] sm:$0xff] }
 0x38a   : > { %v6217_v53 = vsel %vm6170_vm5, %v17286_v43, -1e+30 }
 0x38b   : > { %6509 = vmax.xlane.f32.xlu1 %v6214_v42  ;;  %6507 = vmax.xlane.f32.xlu0 %v6213_v63  ;;  %v14835_v42 = vpop.f32.mrb[186].mxu0  ;;  %v17283_v63 = vld [vmem:[#allocation208_spill] sm:$0xff] }
 0x38c   : > { %v14818_v18 = vpop.xlane.xlu1 %3458  ;;  %v14820_v36 = vpop.xlane.xlu0 %3456  ;;  %10855 = vmatmul.mubr.msk.f32.gmra.mrb[248].mxu1 %vm320_vm1, %v14620_v0  ;;  %v6218_v11 = vsel %vm6170_vm5, %v17283_v63, -1e+30 }
 0x38d   : > { %17280 = vst [vmem:[#allocation204_spill] sm:$0xff] %v14818_v18  ;;  %17281 = vst [vmem:[#allocation267_spill] sm:$0xff] %v14820_v36  ;;  %10857 = vmatprep.mubr.msk.f32.mxu1 %vm320_vm1, %v14629_v16  ;;  %v14851_v16 = vpop.f32.mrb[187].mxu0  ;;  %v17308_v36 = vld [vmem:[#allocation218_spill] sm:$0xff] }
 0x38e   : > { %17287 = vst [vmem:[#allocation143_spill] sm:$0xff] %v14851_v16 }
 0x38f   : > { %6513 = vmax.xlane.f32.xlu1 %v6216_v29  ;;  %6511 = vmax.xlane.f32.xlu0 %v6215_v58  ;;  %v14855_v58 = vpop.f32.mrb[188].mxu0  ;;  %v17289_v29 = vld [vmem:[#allocation211_spill] sm:$0xff] }
 0x390   : > { %v14840_v0 = vpop.xlane.xlu1 %3462  ;;  %v14842_v28 = vpop.xlane.xlu0 %3460  ;;  %10858 = vmatmul.mubr.msk.f32.gmra.mrb[250].mxu1 %vm320_vm1, %v14649_v37  ;;  %17288 = vst [vmem:[#allocation268_spill] sm:$0xff] %v14855_v58  ;;  %v6220_v63 = vsel %vm6170_vm5, %v17289_v29, -1e+30  ;;  %v17292_v37 = vld [vmem:[#allocation18_spill] sm:$0xff] }
 0x391   : > { %17284 = vst [vmem:[#allocation207_spill] sm:$0xff] %v14840_v0  ;;  %17285 = vst [vmem:[#allocation208_spill] sm:$0xff] %v14842_v28  ;;  %10860 = vmatprep.mubr.msk.f32.mxu1 %vm320_vm1, %v14659_v19  ;;  %v6219_v0 = vsel %vm6170_vm5, %v17292_v37, -1e+30  ;;  %v14869_v19 = vpop.f32.mrb[189].mxu0  ;;  %v17298_v37 = vld [vmem:[#allocation147_spill] sm:$0xff] }
 0x392   : > { %17293 = vst [vmem:[#allocation18_spill] sm:$0xff] %v14869_v19 }
 0x393   : > { %6517 = vmax.xlane.f32.xlu1 %v6218_v11  ;;  %6515 = vmax.xlane.f32.xlu0 %v6217_v53  ;;  %v14873_v53 = vpop.f32.mrb[190].mxu0  ;;  %v17295_v11 = vld [vmem:[#allocation213_spill] sm:$0xff] }
 0x394   : > { %v14860_v43 = vpop.xlane.xlu1 %3466  ;;  %v14862_v35 = vpop.xlane.xlu0 %3464  ;;  %10861 = vmatmul.mubr.msk.f32.gmra.mrb[252].mxu1 %vm320_vm1, %v14679_v22  ;;  %17294 = vst [vmem:[#allocation270_spill] sm:$0xff] %v14873_v53  ;;  %v6222_v29 = vsel %vm6170_vm5, %v17295_v11, -1e+30  ;;  %v6221_v22 = vsel %vm6170_vm5, %v17298_v37, -1e+30 }
 0x395   : > { %17290 = vst [vmem:[#allocation211_spill] sm:$0xff] %v14860_v43  ;;  %17291 = vst [vmem:[#allocation269_spill] sm:$0xff] %v14862_v35  ;;  %10863 = vmatprep.mubr.msk.f32.mxu1 %vm320_vm1, %v14690_v7  ;;  %v14887_v7 = vpop.f32.mrb[191].mxu0 }
 0x396   : > { %17299 = vst [vmem:[#allocation147_spill] sm:$0xff] %v14887_v7 }
 0x397   : > { %6521 = vmax.xlane.f32.xlu1 %v6220_v63  ;;  %6519 = vmax.xlane.f32.xlu0 %v6219_v0  ;;  %v14889_v0 = vpop.f32.mrb[176].mxu1  ;;  %v17301_v63 = vld [vmem:[#allocation215_spill] sm:$0xff] }
 0x398   : > { %v14878_v43 = vpop.xlane.xlu1 %3470  ;;  %v14880_v35 = vpop.xlane.xlu0 %3468  ;;  %10864 = vmatmul.mubr.msk.f32.gmra.mrb[254].mxu1 %vm320_vm1, %v14712_v25  ;;  %17300 = vst [vmem:[#allocation272_spill] sm:$0xff] %v14889_v0  ;;  %v6224_v11 = vsel %vm6169_vm4, %v17301_v63, -1e+30  ;;  %v6225_v63 = vsel %vm6169_vm4, %v17308_v36, -1e+30  ;;  %vm7545_vm1 = vcmask 851712  }
 0x399   : > { %17296 = vst [vmem:[#allocation213_spill] sm:$0xff] %v14878_v43  ;;  %17297 = vst [vmem:[#allocation271_spill] sm:$0xff] %v14880_v35  ;;  %v17302_v43 = vld [vmem:[#allocation216_spill] sm:$0xff]  ;;  %v14901_v18 = vpop.f32.mrb[177].mxu1 }
 0x39a   : > { %v6223_v35 = vsel %vm6169_vm4, %v17302_v43, -1e+30  ;;  %17305 = vst [vmem:[#allocation273_spill] sm:$0xff] %v14901_v18  ;;  %v14903_v25 = vpop.f32.mrb[178].mxu1 }
 0x39b   : > { %6525 = vmax.xlane.f32.xlu1 %v6222_v29  ;;  %6523 = vmax.xlane.f32.xlu0 %v6221_v22  ;;  %17306 = vst [vmem:[#allocation274_spill] sm:$0xff] %v14903_v25  ;;  %v17307_v29 = vld [vmem:[#allocation217_spill] sm:$0xff] }
 0x39c   : > { %v14897_v28 = vpop.xlane.xlu1 %3474  ;;  %v14899_v37 = vpop.xlane.xlu0 %3472  ;;  %v6226_v22 = vsel %vm6169_vm4, %v17307_v29, -1e+30  ;;  %v6227_v29 = vsel %vm6169_vm4, %v17314_v27, -1e+30 }
 0x39d   : > { %17303 = vst [vmem:[#allocation215_spill] sm:$0xff] %v14897_v28  ;;  %17304 = vst [vmem:[#allocation216_spill] sm:$0xff] %v14899_v37  ;;  %v14915_v28 = vpop.f32.mrb[179].mxu1 }
 0x39e   : > { %17311 = vst [vmem:[#allocation275_spill] sm:$0xff] %v14915_v28  ;;  %v17374_v28 = vld [vmem:[#allocation55_spill] sm:$0xff] }
 0x39f   : > { %6529 = vmax.xlane.f32.xlu1 %v6224_v11  ;;  %6527 = vmax.xlane.f32.xlu0 %v6223_v35  ;;  %v14917_v11 = vpop.f32.mrb[180].mxu1  ;;  %v17313_v35 = vld [vmem:[#allocation219_spill] sm:$0xff] }
 0x3a0   : > { %v14911_v38 = vpop.xlane.xlu1 %3478  ;;  %v14913_v43 = vpop.xlane.xlu0 %3476  ;;  %17312 = vst [vmem:[#allocation276_spill] sm:$0xff] %v14917_v11  ;;  %v6228_v37 = vsel %vm6169_vm4, %v17313_v35, -1e+30  ;;  %v6229_v35 = vsel %vm6169_vm4, %v17320_v46, -1e+30 }
 0x3a1   : > { %17309 = vst [vmem:[#allocation217_spill] sm:$0xff] %v14911_v38  ;;  %17310 = vst [vmem:[#allocation218_spill] sm:$0xff] %v14913_v43  ;;  %v14929_v38 = vpop.f32.mrb[181].mxu1 }
 0x3a2   : > { %17317 = vst [vmem:[#allocation277_spill] sm:$0xff] %v14929_v38 }
 0x3a3   : > { %6533 = vmax.xlane.f32.xlu1 %v6226_v22  ;;  %6531 = vmax.xlane.f32.xlu0 %v6225_v63  ;;  %v14931_v22 = vpop.f32.mrb[182].mxu1  ;;  %v17319_v63 = vld [vmem:[#allocation221_spill] sm:$0xff] }
 0x3a4   : > { %v14925_v3 = vpop.xlane.xlu1 %3482  ;;  %v14927_v36 = vpop.xlane.xlu0 %3480  ;;  %17318 = vst [vmem:[#allocation278_spill] sm:$0xff] %v14931_v22  ;;  %v6230_v43 = vsel %vm6169_vm4, %v17319_v63, -1e+30  ;;  %v17326_v22 = vld [vmem:[#allocation224_spill] sm:$0xff] }
 0x3a5   : > { %17315 = vst [vmem:[#allocation219_spill] sm:$0xff] %v14925_v3  ;;  %17316 = vst [vmem:[#allocation220_spill] sm:$0xff] %v14927_v36  ;;  %v14943_v3 = vpop.f32.mrb[183].mxu1  ;;  %v6231_v63 = vsel %vm6170_vm5, %v17326_v22, -1e+30 }
 0x3a6   : > { %17323 = vst [vmem:[#allocation279_spill] sm:$0xff] %v14943_v3 }
 0x3a7   : > { %6537 = vmax.xlane.f32.xlu1 %v6228_v37  ;;  %6535 = vmax.xlane.f32.xlu0 %v6227_v29  ;;  %v14945_v37 = vpop.f32.mrb[184].mxu1  ;;  %v17325_v29 = vld [vmem:[#allocation223_spill] sm:$0xff] }
 0x3a8   : > { %v14939_v11 = vpop.xlane.xlu1 %3486  ;;  %v14941_v27 = vpop.xlane.xlu0 %3484  ;;  %17324 = vst [vmem:[#allocation280_spill] sm:$0xff] %v14945_v37  ;;  %v6232_v36 = vsel %vm6170_vm5, %v17325_v29, -1e+30  ;;  %v17332_v37 = vld [vmem:[#allocation226_spill] sm:$0xff] }
 0x3a9   : > { %17321 = vst [vmem:[#allocation221_spill] sm:$0xff] %v14939_v11  ;;  %17322 = vst [vmem:[#allocation222_spill] sm:$0xff] %v14941_v27  ;;  %v14957_v11 = vpop.f32.mrb[185].mxu1  ;;  %v6233_v29 = vsel %vm6170_vm5, %v17332_v37, -1e+30 }
 0x3aa   : > { %17329 = vst [vmem:[#allocation281_spill] sm:$0xff] %v14957_v11 }
 0x3ab   : > { %6541 = vmax.xlane.f32.xlu1 %v6230_v43  ;;  %6539 = vmax.xlane.f32.xlu0 %v6229_v35  ;;  %v14959_v43 = vpop.f32.mrb[186].mxu1  ;;  %v17331_v35 = vld [vmem:[#allocation225_spill] sm:$0xff] }
 0x3ac   : > { %v14953_v38 = vpop.xlane.xlu1 %3490  ;;  %v14955_v46 = vpop.xlane.xlu0 %3488  ;;  %17330 = vst [vmem:[#allocation282_spill] sm:$0xff] %v14959_v43  ;;  %v6234_v27 = vsel %vm6170_vm5, %v17331_v35, -1e+30  ;;  %v17338_v43 = vld [vmem:[#allocation228_spill] sm:$0xff] }
 0x3ad   : > { %17327 = vst [vmem:[#allocation223_spill] sm:$0xff] %v14953_v38  ;;  %17328 = vst [vmem:[#allocation224_spill] sm:$0xff] %v14955_v46  ;;  %v14971_v38 = vpop.f32.mrb[187].mxu1  ;;  %v6235_v35 = vsel %vm6170_vm5, %v17338_v43, -1e+30 }
 0x3ae   : > { %17335 = vst [vmem:[#allocation283_spill] sm:$0xff] %v14971_v38 }
 0x3af   : > { %6545 = vmax.xlane.f32.xlu1 %v6232_v36  ;;  %6543 = vmax.xlane.f32.xlu0 %v6231_v63  ;;  %v14973_v36 = vpop.f32.mrb[188].mxu1  ;;  %v17337_v63 = vld [vmem:[#allocation227_spill] sm:$0xff] }
 0x3b0   : > { %v14967_v3 = vpop.xlane.xlu1 %3494  ;;  %v14969_v22 = vpop.xlane.xlu0 %3492  ;;  %17336 = vst [vmem:[#allocation284_spill] sm:$0xff] %v14973_v36  ;;  %v6236_v46 = vsel %vm6170_vm5, %v17337_v63, -1e+30 }
 0x3b1   : > { %17333 = vst [vmem:[#allocation225_spill] sm:$0xff] %v14967_v3  ;;  %17334 = vst [vmem:[#allocation226_spill] sm:$0xff] %v14969_v22  ;;  %v14985_v3 = vpop.f32.mrb[189].mxu1  ;;  %v17343_v22 = vld [vmem:[#allocation16_spill] sm:$0xff] }
 0x3b2   : > { %17341 = vst [vmem:[#allocation285_spill] sm:$0xff] %v14985_v3  ;;  %v6237_v63 = vsel %vm6170_vm5, %v17343_v22, -1e+30 }
 0x3b3   : > { %6549 = vmax.xlane.f32.xlu1 %v6234_v27  ;;  %6547 = vmax.xlane.f32.xlu0 %v6233_v29  ;;  %v14987_v27 = vpop.f32.mrb[190].mxu1  ;;  %v6238_v29 = vsel %vm6170_vm5, %v14301_v23, -1e+30  ;;  %v17350_v23 = vld [vmem:[#allocation38_spill] sm:$0xff] }
 0x3b4   : > { %v14981_v11 = vpop.xlane.xlu1 %3498  ;;  %v14983_v37 = vpop.xlane.xlu0 %3496  ;;  %17342 = vst [vmem:[#allocation286_spill] sm:$0xff] %v14987_v27  ;;  %v6239_v22 = vsel %vm6169_vm4, %v17350_v23, -1e+30 }
 0x3b5   : > { %17339 = vst [vmem:[#allocation227_spill] sm:$0xff] %v14981_v11  ;;  %17340 = vst [vmem:[#allocation228_spill] sm:$0xff] %v14983_v37  ;;  %v14999_v11 = vpop.f32.mrb[191].mxu1 }
 0x3b6   : > { %17346 = vst [vmem:[#allocation288_spill] sm:$0xff] %v14999_v11  ;;  %v17370_v11 = vld [vmem:[#allocation50_spill] sm:$0xff] }
 0x3b7   : > { %6553 = vmax.xlane.f32.xlu1 %v6236_v46  ;;  %6551 = vmax.xlane.f32.xlu0 %v6235_v35  ;;  %v15001_v46 = vpop.f32.mrb[192].mxu0  ;;  %v17348_v35 = vld [vmem:[#allocation229_spill] sm:$0xff] }
 0x3b8   : > { %v14995_v36 = vpop.xlane.xlu1 %3502  ;;  %v14997_v43 = vpop.xlane.xlu0 %3500  ;;  %17347 = vst [vmem:[#allocation289_spill] sm:$0xff] %v15001_v46  ;;  %v6240_v37 = vsel %vm6169_vm4, %v17348_v35, -1e+30  ;;  %v6241_v35 = vsel %vm6169_vm4, %v14354_v2, -1e+30 }
 0x3b9   : > { %17344 = vst [vmem:[#allocation16_spill] sm:$0xff] %v14995_v36  ;;  %17345 = vst [vmem:[#allocation287_spill] sm:$0xff] %v14997_v43  ;;  %v15013_v36 = vpop.f32.mrb[193].mxu0  ;;  %v6243_v2 = vsel %vm6169_vm4, %v14376_v51, -1e+30 }
 0x3ba   : > { %17352 = vst [vmem:[#allocation290_spill] sm:$0xff] %v15013_v36  ;;  %v6245_v51 = vsel %vm6169_vm4, %v14397_v26, -1e+30 }
 0x3bb   : > { %6557 = vmax.xlane.f32.xlu1 %v6238_v29  ;;  %6555 = vmax.xlane.f32.xlu0 %v6237_v63  ;;  %v15015_v29 = vpop.f32.mrb[194].mxu0  ;;  %v6242_v63 = vsel %vm6169_vm4, %v14340_v48, -1e+30 }
 0x3bc   : > { %v15006_v27 = vpop.xlane.xlu1 %3506  ;;  %v15011_v3 = vpop.xlane.xlu0 %3504  ;;  %17353 = vst [vmem:[#allocation291_spill] sm:$0xff] %v15015_v29  ;;  %v17359_v29 = vld [vmem:[#allocation168_spill] sm:$0xff] }
 0x3bd   : > { %17349 = vst [vmem:[#allocation229_spill] sm:$0xff] %v15006_v27  ;;  %17351 = vst [vmem:[#allocation38_spill] sm:$0xff] %v15011_v3  ;;  %v15027_v23 = vpop.f32.mrb[195].mxu0  ;;  %v6244_v48 = vsel %vm6169_vm4, %v17359_v29, -1e+30 }
 0x3be   : > { %17356 = vst [vmem:[#allocation294_spill] sm:$0xff] %v15027_v23  ;;  %v15032_v3 = vpop.f32.mrb[196].mxu0  ;;  %v6246_v29 = vsel %vm6169_vm4, %v14380_v56, -1e+30  ;;  %v3522_v56 = vmax.f32 %v17370_v11, -1e+30 }
 0x3bf   : > { %6561 = vmax.xlane.f32.xlu1 %v6240_v37  ;;  %6559 = vmax.xlane.f32.xlu0 %v6239_v22  ;;  %v17357_v37 = vlaneseq  ;;  %17358 = vst [vmem:[#allocation295_spill] sm:$0xff] %v15032_v3  ;;  %v15044_v23 = vpop.f32.mrb[197].mxu0  ;;  %v17368_v3 = vld [vmem:[#allocation46_spill] sm:$0xff] }
 0x3c0   : > { %v15020_v43 = vpop.xlane.xlu1 %3510  ;;  %v15025_v27 = vpop.xlane.xlu0 %3508  ;;  %17362 = vst [vmem:[#allocation297_spill] sm:$0xff] %v15044_v23  ;;  %v3523_v36 = vmax.f32 %v17368_v3, -1e+30  ;;  %v17372_v3 = vld [vmem:[#allocation51_spill] sm:$0xff] }
 0x3c1   : > { %17354 = vst [vmem:[#allocation292_spill] sm:$0xff] %v15020_v43  ;;  %17355 = vst [vmem:[#allocation293_spill] sm:$0xff] %v15025_v27  ;;  %v15030_v22 = vand.u32 127, %v17357_v37 }
 0x3c3   : > { %6565 = vmax.xlane.f32.xlu1 %v6242_v63  ;;  %6563 = vmax.xlane.f32.xlu0 %v6241_v35  ;;  %v7463_v63 = vadd.s32 4294967288, %v15030_v22  ;;  %v15047_v35 = vpop.f32.mrb[198].mxu0  ;;  %v15071_v26 = vsub.s32 %v15030_v22, %v17221_v4 }
 0x3c4   : > { %v15037_v43 = vpop.xlane.xlu1 %3514  ;;  %v15042_v27 = vpop.xlane.xlu0 %3512  ;;  %17363 = vst [vmem:[#allocation298_spill] sm:$0xff] %v15047_v35  ;;  %v7477_v35 = vadd.s32 4294967272, %v15030_v22 }
 0x3c5   : > { %17360 = vst [vmem:[#allocation168_spill] sm:$0xff] %v15037_v43  ;;  %17361 = vst [vmem:[#allocation296_spill] sm:$0xff] %v15042_v27  ;;  %v17366_v27 = vld [vmem:[#allocation44_spill] sm:$0xff]  ;;  %v15063_v46 = vpop.f32.mrb[199].mxu0 }
 0x3c6   : > { %v3521_v23 = vmax.f32 %v17366_v27, -1e+30  ;;  %17369 = vst [vmem:[#allocation44_spill] sm:$0xff] %v15063_v46  ;;  %v7470_v27 = vadd.s32 4294967280, %v15030_v22  ;;  %v6248_v46 = vsel %vm6170_vm5, %v14402_v10, -1e+30  ;;  %v15089_v53 = vsub.s32 %v7477_v35, %v17221_v4 }
 0x3c7   : > { %6569 = vmax.xlane.f32.xlu1 %v6244_v48  ;;  %6567 = vmax.xlane.f32.xlu0 %v6243_v2  ;;  %v17367_v48 = vld [vmem:[#allocation45_spill] sm:$0xff]  ;;  %v7491_v10 = vadd.s32 4294967256, %v15030_v22  ;;  %v6250_v35 = vsel %vm6170_vm5, %v14420_v9, -1e+30  ;;  %v7505_v9 = vadd.s32 4294967240, %v15030_v22 }
 0x3c8   : > { %v15052_v37 = vpop.xlane.xlu1 %3518  ;;  %v15057_v43 = vpop.xlane.xlu0 %3516  ;;  %v3520_v2 = vmax.f32 %v17367_v48, -1e+30 }
 0x3c9   : > { %17364 = vst [vmem:[#allocation299_spill] sm:$0xff] %v15052_v37  ;;  %17365 = vst [vmem:[#allocation300_spill] sm:$0xff] %v15057_v43  ;;  %v15067_v37 = vsub.s32 %v7463_v63, %v17221_v4  ;;  %v15074_v48 = vpop.f32.mrb[200].mxu0  ;;  %v3525_v43 = vmax.f32 %v17372_v3, -1e+30 }
 0x3ca   : > { %17371 = vst [vmem:[#allocation45_spill] sm:$0xff] %v15074_v48  ;;  %v6247_v63 = vsel %vm6170_vm5, %v14416_v1, -1e+30  ;;  %v15085_v7 = vpop.f32.mrb[201].mxu0  ;;  %v17376_v48 = vld [vmem:[#allocation56_spill] sm:$0xff] }
 0x3cb   : > { %6573 = vmax.xlane.f32.xlu1 %v6246_v29  ;;  %6571 = vmax.xlane.f32.xlu0 %v6245_v51  ;;  %v17373_v51 = vld [vmem:[#allocation52_spill] sm:$0xff]  ;;  %17375 = vst [vmem:[#allocation46_spill] sm:$0xff] %v15085_v7  ;;  %v3526_v3 = vmax.f32 %v17376_v48, -1e+30 }
 0x3cc   : > { %v6434_v11 = vpop.xlane.xlu1 %6433  ;;  %v6432_v29 = vpop.xlane.xlu0 %6431  ;;  %v3524_v38 = vmax.f32 %v17373_v51, -1e+30  ;;  %v15095_v51 = vsub.s32 %v7470_v27, %v17221_v4  ;;  %v17378_v48 = vld [vmem:[#allocation60_spill] sm:$0xff] }
 0x3cd   : > { %v6944_v18 = vmax.f32 %v3521_v23, %v6434_v11  ;;  %v6943_v0 = vmax.f32 %v3520_v2, %v6432_v29  ;;  %v7484_v23 = vadd.s32 4294967264, %v15030_v22  ;;  %v15098_v2 = vpop.f32.mrb[202].mxu0  ;;  %v15112_v11 = vsub.s32 %v7491_v10, %v17221_v4 }
 0x3ce   : > { %17377 = vst [vmem:[#allocation50_spill] sm:$0xff] %v15098_v2  ;;  %v15109_v58 = vpop.f32.mrb[203].mxu0  ;;  %v7498_v2 = vadd.s32 4294967248, %v15030_v22  ;;  %v6252_v10 = vsel %vm6170_vm5, %v14438_v30, -1e+30 }
 0x3cf   : > { %v7467_v19 = vrot.slane %v6944_v18, %v15067_v37  ;;  %v7462_v1 = vrot.slane %v6943_v0, %v15071_v26  ;;  %6577 = vmax.xlane.f32.xlu1 %v6248_v46  ;;  %6575 = vmax.xlane.f32.xlu0 %v6247_v63  ;;  %v6249_v18 = vsel %vm6170_vm5, %v14434_v62, -1e+30  ;;  %v17379_v46 = vld [vmem:[#allocation61_spill] sm:$0xff]  ;;  %17380 = vst [vmem:[#allocation51_spill] sm:$0xff] %v15109_v58 }
 0x3d0   : > { %v6438_v29 = vpop.xlane.xlu1 %6437  ;;  %v6436_v0 = vpop.xlane.xlu0 %6435  ;;  %v15138_v30 = vsub.s32 %v7498_v2, %v17221_v4  ;;  %v6254_v2 = vsel %vm6170_vm5, %v14456_v33, -1e+30  ;;  %v7533_v33 = vadd.s32 4294967208, %v15030_v22 }
 0x3d1   : > { %v7469_v27 = vsel %vm7468_vm6, %v7467_v19, %v7462_v1  ;;  %v6946_v25 = vmax.f32 %v3523_v36, %v6438_v29  ;;  %v6945_v7 = vmax.f32 %v3522_v56, %v6436_v0  ;;  %v15119_v19 = vsub.s32 %v7484_v23, %v17221_v4  ;;  %v15121_v36 = vpop.f32.mrb[204].mxu0  ;;  %v17382_v56 = vld [vmem:[#allocation64_spill] sm:$0xff] }
 0x3d2   : > { %17381 = vst [vmem:[#allocation52_spill] sm:$0xff] %v15121_v36  ;;  %v15131_v0 = vpop.f32.mrb[205].mxu0  ;;  %v15135_v1 = vsub.s32 %v7505_v9, %v17221_v4  ;;  %v7519_v36 = vadd.s32 4294967224, %v15030_v22 }
 0x3d3   : > { %v7481_v16 = vrot.slane %v6946_v25, %v15089_v53  ;;  %v7474_v62 = vrot.slane %v6945_v7, %v15095_v51  ;;  %6581 = vmax.xlane.f32.xlu1 %v6250_v35  ;;  %6579 = vmax.xlane.f32.xlu0 %v6249_v18  ;;  %v6251_v25 = vsel %vm6170_vm5, %v14452_v14, -1e+30 }
 0x3d4   : > { %v6442_v29 = vpop.xlane.xlu1 %6441  ;;  %v6440_v7 = vpop.xlane.xlu0 %6439 }
 0x3d5   : > { %v7476_v35 = vsel %vm7475_vm7, %v7474_v62, %v7469_v27  ;;  %v6948_v18 = vmax.f32 %v3525_v43, %v6442_v29  ;;  %v6947_v23 = vmax.f32 %v3524_v38, %v6440_v7  ;;  %v7512_v38 = vadd.s32 4294967232, %v15030_v22  ;;  %v15144_v43 = vpop.f32.mrb[206].mxu0 }
 0x3d6   : > { %v7483_v63 = vsel %vm7482_vm8, %v7481_v16, %v7476_v35  ;;  %17383 = vst [vmem:[#allocation55_spill] sm:$0xff] %v15144_v43  ;;  %v17384_v16 = vld [vmem:[#allocation65_spill] sm:$0xff]  ;;  %v6253_v62 = vsel %vm6170_vm5, %v14472_v44, -1e+30 }
 0x3d7   : > { %v7495_v14 = vrot.slane %v6948_v18, %v15112_v11  ;;  %v7488_v58 = vrot.slane %v6947_v23, %v15119_v19  ;;  %6585 = vmax.xlane.f32.xlu1 %v6252_v10  ;;  %6583 = vmax.xlane.f32.xlu0 %v6251_v25  ;;  %v3530_v27 = vmax.f32 %v17384_v16, -1e+30  ;;  %v17385_v25 = vmax.f32 %v17374_v28, -1e+30  ;;  %v15156_v18 = vpop.f32.mrb[207].mxu0 }
 0x3d8   : > { %v6446_v9 = vpop.xlane.xlu1 %6445  ;;  %v6444_v29 = vpop.xlane.xlu0 %6443  ;;  %v15160_v16 = vsub.s32 %v7519_v36, %v17221_v4  ;;  %v15166_v28 = vsub.s32 %v7512_v38, %v17221_v4  ;;  %v6256_v36 = vsel %vm6169_vm4, %v14476_v15, -1e+30  ;;  %v17388_v38 = vmax.f32 %v17378_v48, -1e+30 }
 0x3d9   : > { %v7490_v10 = vsel %vm7489_vm9, %v7488_v58, %v7483_v63  ;;  %v6950_v7 = vmax.f32 %v17385_v25, %v6446_v9  ;;  %v6949_v35 = vmax.f32 %v3526_v3, %v6444_v29  ;;  %v7526_v58 = vadd.s32 4294967216, %v15030_v22  ;;  %v15169_v3 = vpop.f32.mrb[192].mxu1  ;;  %v17387_v63 = vld [vmem:[#allocation68_spill] sm:$0xff] }
 0x3da   : > { %v7497_v23 = vsel %vm7496_vm10, %v7495_v14, %v7490_v10  ;;  %17386 = vst [vmem:[#allocation56_spill] sm:$0xff] %v15169_v3  ;;  %v3533_v14 = vmax.f32 %v17387_v63, -1e+30  ;;  %v6255_v9 = vsel %vm6169_vm4, %v14498_v49, -1e+30  ;;  %v15187_v15 = vsub.s32 %v7533_v33, %v17221_v4 }
 0x3db   : > { %v7509_v44 = vrot.slane %v6950_v7, %v15135_v1  ;;  %v7502_v43 = vrot.slane %v6949_v35, %v15138_v30  ;;  %6589 = vmax.xlane.f32.xlu1 %v6254_v2  ;;  %6587 = vmax.xlane.f32.xlu0 %v6253_v62  ;;  %v17389_v25 = vmax.f32 %v17379_v46, -1e+30  ;;  %v15183_v35 = vpop.f32.mrb[193].mxu1  ;;  %v7547_v49 = vadd.s32 4294967192, %v15030_v22 }
 0x3dc   : > { %v6450_v29 = vpop.xlane.xlu1 %6449  ;;  %v6448_v2 = vpop.xlane.xlu0 %6447  ;;  %v15193_v48 = vsub.s32 %v7526_v58, %v17221_v4  ;;  %v7540_v46 = vadd.s32 4294967200, %v15030_v22  ;;  %v6258_v33 = vsel %vm6169_vm4, %v14509_v17, -1e+30  ;;  %v17392_v58 = vmax.f32 %v17382_v56, -1e+30 }
 0x3dd   : > { %v7504_v62 = vsel %vm7503_vm11, %v7502_v43, %v7497_v23  ;;  %v6952_v10 = vmax.f32 %v17388_v38, %v6450_v29  ;;  %v6951_v7 = vmax.f32 %v17389_v25, %v6448_v2  ;;  %v15196_v23 = vpop.f32.mrb[194].mxu1  ;;  %v6257_v2 = vsel %vm6169_vm4, %v14530_v39, -1e+30 }
 0x3de   : > { %v7511_v63 = vsel %vm7510_vm12, %v7509_v44, %v7504_v62  ;;  %17390 = vst [vmem:[#allocation60_spill] sm:$0xff] %v15196_v23  ;;  %v17391_v44 = vld [vmem:[#allocation69_spill] sm:$0xff]  ;;  %v15208_v25 = vpop.f32.mrb[195].mxu1  ;;  %v7561_v17 = vadd.s32 4294967176, %v15030_v22  ;;  %v15218_v56 = vsub.s32 %v7540_v46, %v17221_v4 }
 0x3df   : > { %v7523_v3 = vrot.slane %v6952_v10, %v15160_v16  ;;  %v7516_v43 = vrot.slane %v6951_v7, %v15166_v28  ;;  %6593 = vmax.xlane.f32.xlu1 %v6256_v36  ;;  %6591 = vmax.xlane.f32.xlu0 %v6255_v9  ;;  %v3532_v29 = vmax.f32 %v17391_v44, -1e+30  ;;  %v15212_v44 = vsub.s32 %v7547_v49, %v17221_v4 }
 0x3e0   : > { %v6454_v62 = vpop.xlane.xlu1 %6453  ;;  %v6452_v36 = vpop.xlane.xlu0 %6451  ;;  %v6259_v49 = vsel %vm6169_vm4, %v14562_v13, -1e+30 }
 0x3e1   : > { %v7518_v9 = vsel %vm7517_vm13, %v7516_v43, %v7511_v63  ;;  %v6954_v38 = vmax.f32 %v17392_v58, %v6454_v62  ;;  %v6953_v10 = vmax.f32 %v3530_v27, %v6452_v36  ;;  %v7554_v27 = vadd.s32 4294967184, %v15030_v22  ;;  %v15221_v63 = vpop.f32.mrb[196].mxu1  ;;  %v17394_v36 = vld [vmem:[#allocation72_spill] sm:$0xff]  ;;  %v17395_v22 = vld [vmem:[#allocation73_spill] sm:$0xff] }
 0x3e2   : > { %v7525_v7 = vsel %vm16842_vm14, %v7523_v3, %v7518_v9  ;;  %17393 = vst [vmem:[#allocation61_spill] sm:$0xff] %v15221_v63  ;;  %v6260_v3 = vsel %vm6169_vm4, %v14541_v52, -1e+30  ;;  %v15231_v58 = vpop.f32.mrb[197].mxu1  ;;  %v15236_v52 = vsub.s32 %v7561_v17, %v17221_v4 }
 0x3e3   : > { %v7537_v39 = vrot.slane %v6954_v38, %v15187_v15  ;;  %v7530_v23 = vrot.slane %v6953_v10, %v15193_v48  ;;  %6597 = vmax.xlane.f32.xlu1 %v6258_v33  ;;  %6595 = vmax.xlane.f32.xlu0 %v6257_v2  ;;  %v3535_v33 = vmax.f32 %v17394_v36, -1e+30  ;;  %v3534_v38 = vmax.f32 %v17395_v22, -1e+30 }
 0x3e4   : > { %v6458_v43 = vpop.xlane.xlu1 %6457  ;;  %v6456_v62 = vpop.xlane.xlu0 %6455 }
 0x3e5   : > { %v7532_v2 = vsel %vm7531_vm15, %v7530_v23, %v7525_v7  ;;  %v6956_v46 = vmax.f32 %v3533_v14, %v6458_v43  ;;  %v6955_v9 = vmax.f32 %v3532_v29, %v6456_v62  ;;  %v15241_v14 = vsub.s32 %v7554_v27, %v17221_v4  ;;  %v15243_v23 = vpop.f32.mrb[198].mxu1  ;;  %v17396_v4 = vld [vmem:[#allocation43_spill] sm:$0xff] }
 0x3e6   : > { %v7539_v10 = vsel %vm16841_vm0, %v7537_v39, %v7532_v2  ;;  %v6262_v29 = vsel %vm6169_vm4, %v14573_v59, -1e+30  ;;  %v6261_v7 = vsel %vm6169_vm4, %v14596_v34, -1e+30  ;;  %v15252_v62 = vpop.f32.mrb[199].mxu1  ;;  %v17397_v2 = vld [vmem:[#allocation47_spill] sm:$0xff] }
 0x3e7   : > { %v7551_v13 = vrot.slane %v6956_v46, %v15212_v44  ;;  %v7544_v63 = vrot.slane %v6955_v9, %v15218_v56  ;;  %6601 = vmax.xlane.f32.xlu1 %v6260_v3  ;;  %6599 = vmax.xlane.f32.xlu0 %v6259_v49  ;;  %v3537_v27 = vmax.f32 %v17396_v4, -1e+30  ;;  %v3536_v46 = vmax.f32 %v17397_v2, -1e+30  ;;  %v15259_v9 = vpop.f32.mrb[200].mxu1 }
 0x3e8   : > { %v6462_v17 = vpop.xlane.xlu1 %6461  ;;  %v6460_v39 = vpop.xlane.xlu0 %6459  ;;  %vm7566_vm0 = vcmask 1048512  }
 0x3e9   : > { %v7546_v43 = vsel %vm7545_vm1, %v7544_v63, %v7539_v10  ;;  %v6958_v3 = vmax.f32 %v3535_v33, %v6462_v17  ;;  %v6957_v49 = vmax.f32 %v3534_v38, %v6460_v39  ;;  %v6264_v63 = vsel %vm6170_vm5, %v14605_v50, -1e+30  ;;  %v15268_v39 = vpop.f32.mrb[201].mxu1 }
 0x3ea   : > { %v7553_v36 = vsel %vm7552_vm2, %v7551_v13, %v7546_v43  ;;  %v6263_v33 = vsel %vm6170_vm5, %v14624_v45, -1e+30  ;;  %v15277_v45 = vpop.f32.mrb[202].mxu1 }
 0x3eb   : > { %v7565_v59 = vrot.slane %v6958_v3, %v15236_v52  ;;  %v7558_v34 = vrot.slane %v6957_v49, %v15241_v14  ;;  %6605 = vmax.xlane.f32.xlu1 %v6262_v29  ;;  %6603 = vmax.xlane.f32.xlu0 %v6261_v7  ;;  %v17398_v7 = vld [vmem:[#allocation48_spill] sm:$0xff]  ;;  %v17399_v3 = vld [vmem:[#allocation49_spill] sm:$0xff] }
 0x3ec   : > { %v6466_v22 = vpop.xlane.xlu1 %6465  ;;  %v6464_v38 = vpop.xlane.xlu0 %6463  ;;  %v3539_v43 = vmax.f32 %v17398_v7, -1e+30  ;;  %v3538_v49 = vmax.f32 %v17399_v3, -1e+30 }
 0x3ed   : > { %v7560_v10 = vsel %vm7559_vm3, %v7558_v34, %v7553_v36  ;;  %v6960_v13 = vmax.f32 %v3537_v27, %v6466_v22  ;;  %v6959_v17 = vmax.f32 %v3536_v46, %v6464_v38  ;;  %v6266_v27 = vsel %vm6170_vm5, %v14633_v60, -1e+30  ;;  %v15286_v38 = vpop.f32.mrb[203].mxu1 }
 0x3ee   : > { %v15271_v29 = vsel %vm7566_vm0, %v7565_v59, %v7560_v10  ;;  %v6265_v36 = vsel %vm6170_vm5, %v14654_v41, -1e+30  ;;  %v17401_v10 = vld [vmem:[#allocation54_spill] sm:$0xff]  ;;  %v15292_v7 = vpop.f32.mrb[204].mxu1  ;;  %v6268_v41 = vsel %vm6170_vm5, %v14663_v8, -1e+30 }
 0x3ef   : > { %v7575_v50 = vrot.slane %v6960_v13, %v15067_v37  ;;  %v7571_v4 = vrot.slane %v6959_v17, %v15071_v26  ;;  %6609 = vmax.xlane.f32.xlu1 %v6264_v63  ;;  %6607 = vmax.xlane.f32.xlu0 %v6263_v33  ;;  %v17400_v63 = vld [vmem:[#allocation53_spill] sm:$0xff]  ;;  %v3540_v13 = vmax.f32 %v17401_v10, -1e+30  ;;  %17402 = vst [vmem:[#allocation64_spill] sm:$0xff] %v15292_v7  ;;  %v17405_v7 = vld [vmem:[#allocation256_spill] sm:$0xff] }
 0x3f0   : > { %v6470_v2 = vpop.xlane.xlu1 %6469  ;;  %v6468_v46 = vpop.xlane.xlu0 %6467  ;;  %v3541_v33 = vmax.f32 %v17400_v63, -1e+30 }
 0x3f1   : > { %v7576_v59 = vsel %vm7468_vm6, %v7575_v50, %v7571_v4  ;;  %v6962_v34 = vmax.f32 %v3539_v43, %v6470_v2  ;;  %v6961_v22 = vmax.f32 %v3538_v49, %v6468_v46  ;;  %v6267_v43 = vsel %vm6170_vm5, %v14685_v47, -1e+30  ;;  %v15301_v46 = vpop.f32.mrb[205].mxu1 }
 0x3f2   : > { %v15308_v47 = vpop.f32.mrb[206].mxu1 }
 0x3f3   : > { %v7585_v17 = vrot.slane %v6962_v34, %v15089_v53  ;;  %v7580_v60 = vrot.slane %v6961_v22, %v15095_v51  ;;  %6613 = vmax.xlane.f32.xlu1 %v6266_v27  ;;  %6611 = vmax.xlane.f32.xlu0 %v6265_v36  ;;  %v17403_v36 = vld [vmem:[#allocation58_spill] sm:$0xff]  ;;  %v17404_v22 = vld [vmem:[#allocation59_spill] sm:$0xff] }
 0x3f4   : > { %v6474_v3 = vpop.xlane.xlu1 %6473  ;;  %v6472_v49 = vpop.xlane.xlu0 %6471  ;;  %v3543_v34 = vmax.f32 %v17403_v36, -1e+30  ;;  %v3542_v63 = vmax.f32 %v17404_v22, -1e+30 }
 0x3f5   : > { %v7581_v50 = vsel %vm7475_vm7, %v7580_v60, %v7576_v59  ;;  %v6964_v4 = vmax.f32 %v3541_v33, %v6474_v3  ;;  %v6963_v2 = vmax.f32 %v3540_v13, %v6472_v49  ;;  %v6270_v59 = vsel %vm6170_vm5, %v17405_v7, -1e+30 }
 0x3f6   : > { %v7586_v27 = vsel %vm7482_vm8, %v7585_v17, %v7581_v50  ;;  %v6269_v33 = vsel %vm6170_vm5, %v14719_v20, -1e+30  ;;  %v15317_v50 = vpop.f32.mrb[207].mxu1  ;;  %v15324_v20 = vpop.f32.mrb[208].mxu0 }
 0x3f7   : > { %v7595_v8 = vrot.slane %v6964_v4, %v15112_v11  ;;  %v7590_v10 = vrot.slane %v6963_v2, %v15119_v19  ;;  %6617 = vmax.xlane.f32.xlu1 %v6268_v41  ;;  %6615 = vmax.xlane.f32.xlu0 %v6267_v43  ;;  %v17406_v43 = vld [vmem:[#allocation62_spill] sm:$0xff]  ;;  %v17407_v2 = vld [vmem:[#allocation63_spill] sm:$0xff] }
 0x3f8   : > { %v6478_v13 = vpop.xlane.xlu1 %6477  ;;  %v6476_v17 = vpop.xlane.xlu0 %6475  ;;  %v3545_v4 = vmax.f32 %v17406_v43, -1e+30  ;;  %v3544_v36 = vmax.f32 %v17407_v2, -1e+30 }
 0x3f9   : > { %v7591_v60 = vsel %vm7489_vm9, %v7590_v10, %v7586_v27  ;;  %v6966_v3 = vmax.f32 %v3543_v34, %v6478_v13  ;;  %v6965_v49 = vmax.f32 %v3542_v63, %v6476_v17  ;;  %v6272_v27 = vsel %vm6169_vm4, %v14722_v6, -1e+30 }
 0x3fa   : > { %v7596_v41 = vsel %vm7496_vm10, %v7595_v8, %v7591_v60  ;;  %v6271_v63 = vsel %vm6169_vm4, %v14741_v31, -1e+30  ;;  %v15333_v60 = vpop.f32.mrb[209].mxu0 }
 0x3fb   : > { %v7605_v7 = vrot.slane %v6966_v3, %v15135_v1  ;;  %v7600_v22 = vrot.slane %v6965_v49, %v15138_v30  ;;  %6621 = vmax.xlane.f32.xlu1 %v6270_v59  ;;  %6619 = vmax.xlane.f32.xlu0 %v6269_v33  ;;  %v17408_v33 = vld [vmem:[#allocation66_spill] sm:$0xff]  ;;  %v17409_v49 = vld [vmem:[#allocation67_spill] sm:$0xff]  ;;  %v15340_v31 = vpop.f32.mrb[210].mxu0 }
 0x3fc   : > { %v6482_v34 = vpop.xlane.xlu1 %6481  ;;  %v6480_v8 = vpop.xlane.xlu0 %6479  ;;  %v3547_v3 = vmax.f32 %v17408_v33, -1e+30  ;;  %v3546_v43 = vmax.f32 %v17409_v49, -1e+30 }
 0x3fd   : > { %v7601_v10 = vsel %vm7503_vm11, %v7600_v22, %v7596_v41  ;;  %v6968_v13 = vmax.f32 %v3545_v4, %v6482_v34  ;;  %v6967_v17 = vmax.f32 %v3544_v36, %v6480_v8  ;;  %v6274_v41 = vsel %vm6169_vm4, %v14747_v32, -1e+30 }
 0x3fe   : > { %v7606_v59 = vsel %vm7510_vm12, %v7605_v7, %v7601_v10  ;;  %v6273_v36 = vsel %vm6169_vm4, %v14763_v24, -1e+30  ;;  %v15349_v10 = vpop.f32.mrb[211].mxu0 }
 0x3ff   : > { %v7615_v6 = vrot.slane %v6968_v13, %v15160_v16  ;;  %v7610_v2 = vrot.slane %v6967_v17, %v15166_v28  ;;  %6625 = vmax.xlane.f32.xlu1 %v6272_v27  ;;  %6623 = vmax.xlane.f32.xlu0 %v6271_v63  ;;  %v17410_v63 = vld [vmem:[#allocation70_spill] sm:$0xff]  ;;  %v17411_v17 = vld [vmem:[#allocation71_spill] sm:$0xff]  ;;  %v15356_v24 = vpop.f32.mrb[212].mxu0 }
 0x400   : > { %v6486_v4 = vpop.xlane.xlu1 %6485  ;;  %v6484_v7 = vpop.xlane.xlu0 %6483  ;;  %v3549_v13 = vmax.f32 %v17410_v63, -1e+30  ;;  %v3548_v33 = vmax.f32 %v17411_v17, -1e+30 }
 0x401   : > { %v7611_v22 = vsel %vm7517_vm13, %v7610_v2, %v7606_v59  ;;  %v6970_v34 = vmax.f32 %v3547_v3, %v6486_v4  ;;  %v6969_v8 = vmax.f32 %v3546_v43, %v6484_v7  ;;  %v6276_v59 = vsel %vm6169_vm4, %v14769_v61, -1e+30 }
 0x402   : > { %v7616_v27 = vsel %vm16842_vm14, %v7615_v6, %v7611_v22  ;;  %v6275_v43 = vsel %vm6169_vm4, %v14785_v12, -1e+30  ;;  %v15365_v22 = vpop.f32.mrb[213].mxu0  ;;  %vm17412_vm14 = vcmask 786112  }
 0x403   : > { %v7625_v32 = vrot.slane %v6970_v34, %v15187_v15  ;;  %v7620_v49 = vrot.slane %v6969_v8, %v15193_v48  ;;  %6629 = vmax.xlane.f32.xlu1 %v6274_v41  ;;  %6627 = vmax.xlane.f32.xlu0 %v6273_v36  ;;  %v17413_v36 = vld [vmem:[#allocation74_spill] sm:$0xff]  ;;  %v17414_v8 = vld [vmem:[#allocation75_spill] sm:$0xff]  ;;  %v15372_v12 = vpop.f32.mrb[214].mxu0 }
 0x404   : > { %v6490_v3 = vpop.xlane.xlu1 %6489  ;;  %v6488_v6 = vpop.xlane.xlu0 %6487  ;;  %v3551_v34 = vmax.f32 %v17413_v36, -1e+30  ;;  %v3550_v63 = vmax.f32 %v17414_v8, -1e+30 }
 0x405   : > { %v7621_v2 = vsel %vm7531_vm15, %v7620_v49, %v7616_v27  ;;  %v6972_v4 = vmax.f32 %v3549_v13, %v6490_v3  ;;  %v6971_v7 = vmax.f32 %v3548_v33, %v6488_v6  ;;  %v6278_v27 = vsel %vm6169_vm4, %v14791_v40, -1e+30 }
 0x406   : > { %v7626_v41 = vsel %vm17412_vm14, %v7625_v32, %v7621_v2  ;;  %v6277_v33 = vsel %vm6169_vm4, %v14807_v55, -1e+30  ;;  %v15381_v2 = vpop.f32.mrb[215].mxu0  ;;  %vm16843_vm14 = vcmask 1041409  }
 0x407   : > { %v7635_v61 = vrot.slane %v6972_v4, %v15212_v44  ;;  %v7630_v17 = vrot.slane %v6971_v7, %v15218_v56  ;;  %6633 = vmax.xlane.f32.xlu1 %v6276_v59  ;;  %6631 = vmax.xlane.f32.xlu0 %v6275_v43  ;;  %v17415_v43 = vld [vmem:[#allocation76_spill] sm:$0xff]  ;;  %v17416_v7 = vld [vmem:[#allocation77_spill] sm:$0xff]  ;;  %v15388_v55 = vpop.f32.mrb[216].mxu0 }
 0x408   : > { %v6494_v13 = vpop.xlane.xlu1 %6493  ;;  %v6492_v32 = vpop.xlane.xlu0 %6491  ;;  %v3553_v4 = vmax.f32 %v17415_v43, -1e+30  ;;  %v3552_v36 = vmax.f32 %v17416_v7, -1e+30 }
 0x409   : > { %v7631_v49 = vsel %vm7545_vm1, %v7630_v17, %v7626_v41  ;;  %v6974_v3 = vmax.f32 %v3551_v34, %v6494_v13  ;;  %v6973_v6 = vmax.f32 %v3550_v63, %v6492_v32  ;;  %v6280_v41 = vsel %vm6170_vm5, %v14813_v54, -1e+30 }
 0x40a   : > { %v7636_v59 = vsel %vm7552_vm2, %v7635_v61, %v7631_v49  ;;  %v6279_v63 = vsel %vm6170_vm5, %v14829_v57, -1e+30  ;;  %v15397_v49 = vpop.f32.mrb[217].mxu0 }
 0x40b   : > { %v7645_v40 = vrot.slane %v6974_v3, %v15236_v52  ;;  %v7640_v8 = vrot.slane %v6973_v6, %v15241_v14  ;;  %6637 = vmax.xlane.f32.xlu1 %v6278_v27  ;;  %6635 = vmax.xlane.f32.xlu0 %v6277_v33  ;;  %17417 = vst [vmem:[#allocation65_spill] sm:$0xff] %v15397_v49  ;;  %v17418_v27 = vld [vmem:[#allocation82_spill] sm:$0xff]  ;;  %v17419_v6 = vld [vmem:[#allocation83_spill] sm:$0xff] }
 0x40c   : > { %v6498_v34 = vpop.xlane.xlu1 %6497  ;;  %v6496_v61 = vpop.xlane.xlu0 %6495  ;;  %v3555_v33 = vmax.f32 %v17418_v27, -1e+30  ;;  %v3554_v43 = vmax.f32 %v17419_v6, -1e+30  ;;  %v17432_v49 = vld [vmem:[#allocation270_spill] sm:$0xff] }
 0x40d   : > { %v7641_v17 = vsel %vm7559_vm3, %v7640_v8, %v7636_v59  ;;  %v6976_v13 = vmax.f32 %v3553_v4, %v6498_v34  ;;  %v6975_v32 = vmax.f32 %v3552_v36, %v6496_v61  ;;  %v15408_v59 = vpop.f32.mrb[218].mxu0  ;;  %v6282_v4 = vsel %vm6170_vm5, %v14835_v42, -1e+30 }
 0x40e   : > { %v7646_v3 = vsel %vm7566_vm0, %v7645_v40, %v7641_v17  ;;  %17420 = vst [vmem:[#allocation68_spill] sm:$0xff] %v15408_v59  ;;  %v17421_v40 = vld [vmem:[#allocation143_spill] sm:$0xff] }
 0x40f   : > { %v15404_v54 = vsel %vm16843_vm14, %v7646_v3, %v15271_v29  ;;  %v7654_v7 = vrot.slane %v6976_v13, %v15067_v37  ;;  %v7650_v57 = vrot.slane %v6975_v32, %v15071_v26  ;;  %6641 = vmax.xlane.f32.xlu1 %v6280_v41  ;;  %6639 = vmax.xlane.f32.xlu0 %v6279_v63  ;;  %v6281_v8 = vsel %vm6170_vm5, %v17421_v40, -1e+30  ;;  %v15417_v13 = vpop.f32.mrb[219].mxu0  ;;  %v17423_v41 = vld [vmem:[#allocation20_spill] sm:$0xff]  ;;  %v17424_v32 = vld [vmem:[#allocation87_spill] sm:$0xff] }
 0x410   : > { %v6502_v36 = vpop.xlane.xlu1 %6501  ;;  %v6500_v34 = vpop.xlane.xlu0 %6499  ;;  %17422 = vst [vmem:[#allocation69_spill] sm:$0xff] %v15417_v13  ;;  %v3557_v63 = vmax.f32 %v17423_v41, -1e+30  ;;  %v3556_v27 = vmax.f32 %v17424_v32, -1e+30  ;;  %v17426_v40 = vld [vmem:[#allocation268_spill] sm:$0xff] }
 0x411   : > { %v7655_v29 = vsel %vm7468_vm6, %v7654_v7, %v7650_v57  ;;  %v6978_v61 = vmax.f32 %v3555_v33, %v6502_v36  ;;  %v6977_v17 = vmax.f32 %v3554_v43, %v6500_v34  ;;  %v15423_v6 = vpop.f32.mrb[220].mxu0  ;;  %v6284_v7 = vsel %vm6170_vm5, %v17426_v40, -1e+30  ;;  %v17427_v43 = vld [vmem:[#allocation18_spill] sm:$0xff] }
 0x412   : > { %17425 = vst [vmem:[#allocation72_spill] sm:$0xff] %v15423_v6  ;;  %v6283_v57 = vsel %vm6170_vm5, %v17427_v43, -1e+30  ;;  %v15432_v32 = vpop.f32.mrb[221].mxu0  ;;  %v17430_v6 = vld [vmem:[#allocation91_spill] sm:$0xff]  ;;  %vm17447_vm14 = vcmask 654912  }
 0x413   : > { %v7664_v3 = vrot.slane %v6978_v61, %v15089_v53  ;;  %v7659_v42 = vrot.slane %v6977_v17, %v15095_v51  ;;  %6645 = vmax.xlane.f32.xlu1 %v6282_v4  ;;  %6643 = vmax.xlane.f32.xlu0 %v6281_v8  ;;  %17428 = vst [vmem:[#allocation73_spill] sm:$0xff] %v15432_v32  ;;  %v17429_v8 = vld [vmem:[#allocation24_spill] sm:$0xff]  ;;  %v3558_v13 = vmax.f32 %v17430_v6, -1e+30  ;;  %v15439_v43 = vpop.f32.mrb[222].mxu0 }
 0x414   : > { %v6506_v33 = vpop.xlane.xlu1 %6505  ;;  %v6504_v36 = vpop.xlane.xlu0 %6503  ;;  %v3559_v17 = vmax.f32 %v17429_v8, -1e+30  ;;  %17431 = vst [vmem:[#allocation43_spill] sm:$0xff] %v15439_v43  ;;  %v17438_v32 = vld [vmem:[#allocation272_spill] sm:$0xff] }
 0x415   : > { %v7660_v34 = vsel %vm7475_vm7, %v7659_v42, %v7655_v29  ;;  %v6980_v41 = vmax.f32 %v3557_v63, %v6506_v33  ;;  %v6979_v61 = vmax.f32 %v3556_v27, %v6504_v36  ;;  %v6286_v29 = vsel %vm6170_vm5, %v17432_v49, -1e+30  ;;  %v17433_v27 = vld [vmem:[#allocation147_spill] sm:$0xff] }
 0x416   : > { %v7665_v4 = vsel %vm7482_vm8, %v7664_v3, %v7660_v34  ;;  %v6285_v3 = vsel %vm6170_vm5, %v17433_v27, -1e+30  ;;  %v15448_v34 = vpop.f32.mrb[223].mxu0  ;;  %v15455_v27 = vpop.f32.mrb[208].mxu1 }
 0x417   : > { %v7674_v40 = vrot.slane %v6980_v41, %v15112_v11  ;;  %v7669_v59 = vrot.slane %v6979_v61, %v15119_v19  ;;  %6649 = vmax.xlane.f32.xlu1 %v6284_v7  ;;  %6647 = vmax.xlane.f32.xlu0 %v6283_v57  ;;  %17434 = vst [vmem:[#allocation47_spill] sm:$0xff] %v15448_v34  ;;  %v17435_v57 = vld [vmem:[#allocation28_spill] sm:$0xff]  ;;  %v17436_v61 = vld [vmem:[#allocation94_spill] sm:$0xff]  ;;  %17437 = vst [vmem:[#allocation48_spill] sm:$0xff] %v15455_v27 }
 0x418   : > { %v6510_v63 = vpop.xlane.xlu1 %6509  ;;  %v6508_v42 = vpop.xlane.xlu0 %6507  ;;  %v3561_v41 = vmax.f32 %v17435_v57, -1e+30  ;;  %v3560_v8 = vmax.f32 %v17436_v61, -1e+30  ;;  %v17442_v57 = vld [vmem:[#allocation98_spill] sm:$0xff] }
 0x419   : > { %v7670_v6 = vsel %vm7489_vm9, %v7669_v59, %v7665_v4  ;;  %v6982_v33 = vmax.f32 %v3559_v17, %v6510_v63  ;;  %v6981_v36 = vmax.f32 %v3558_v13, %v6508_v42  ;;  %v6288_v59 = vsel %vm6169_vm4, %v17438_v32, -1e+30  ;;  %v17439_v13 = vld [vmem:[#allocation273_spill] sm:$0xff]  ;;  %v17444_v34 = vld [vmem:[#allocation274_spill] sm:$0xff] }
 0x41a   : > { %v7675_v7 = vsel %vm7496_vm10, %v7674_v40, %v7670_v6  ;;  %v6287_v4 = vsel %vm6169_vm4, %v17439_v13, -1e+30  ;;  %v3562_v61 = vmax.f32 %v17442_v57, -1e+30 }
 0x41b   : > { %v7684_v49 = vrot.slane %v6982_v33, %v15135_v1  ;;  %v7679_v43 = vrot.slane %v6981_v36, %v15138_v30  ;;  %6653 = vmax.xlane.f32.xlu1 %v6286_v29  ;;  %6651 = vmax.xlane.f32.xlu0 %v6285_v3  ;;  %v15464_v33 = vpop.f32.mrb[209].mxu1  ;;  %v17441_v3 = vld [vmem:[#allocation32_spill] sm:$0xff] }
 0x41c   : > { %v6514_v17 = vpop.xlane.xlu1 %6513  ;;  %v6512_v40 = vpop.xlane.xlu0 %6511  ;;  %17440 = vst [vmem:[#allocation49_spill] sm:$0xff] %v15464_v33  ;;  %v3563_v36 = vmax.f32 %v17441_v3, -1e+30  ;;  %v17449_v3 = vld [vmem:[#allocation102_spill] sm:$0xff]  ;;  %v17451_v33 = vld [vmem:[#allocation276_spill] sm:$0xff] }
 0x41d   : > { %v7680_v63 = vsel %vm7503_vm11, %v7679_v43, %v7675_v7  ;;  %v6984_v42 = vmax.f32 %v3561_v41, %v6514_v17  ;;  %v6983_v6 = vmax.f32 %v3560_v8, %v6512_v40  ;;  %v15471_v13 = vpop.f32.mrb[210].mxu1  ;;  %v6290_v43 = vsel %vm6169_vm4, %v17444_v34, -1e+30  ;;  %v17445_v7 = vld [vmem:[#allocation275_spill] sm:$0xff] }
 0x41e   : > { %v7685_v29 = vsel %vm7510_vm12, %v7684_v49, %v7680_v63  ;;  %17443 = vst [vmem:[#allocation53_spill] sm:$0xff] %v15471_v13  ;;  %v6289_v41 = vsel %vm6169_vm4, %v17445_v7, -1e+30  ;;  %v3564_v57 = vmax.f32 %v17449_v3, -1e+30 }
 0x41f   : > { %v7694_v32 = vrot.slane %v6984_v42, %v15160_v16  ;;  %v7689_v27 = vrot.slane %v6983_v6, %v15166_v28  ;;  %6657 = vmax.xlane.f32.xlu1 %v6288_v59  ;;  %6655 = vmax.xlane.f32.xlu0 %v6287_v4  ;;  %v15480_v42 = vpop.f32.mrb[211].mxu1  ;;  %v17448_v4 = vld [vmem:[#allocation36_spill] sm:$0xff] }
 0x420   : > { %v6518_v8 = vpop.xlane.xlu1 %6517  ;;  %v6516_v49 = vpop.xlane.xlu0 %6515  ;;  %17446 = vst [vmem:[#allocation54_spill] sm:$0xff] %v15480_v42  ;;  %v3565_v6 = vmax.f32 %v17448_v4, -1e+30  ;;  %v17456_v4 = vld [vmem:[#allocation107_spill] sm:$0xff]  ;;  %v17458_v42 = vld [vmem:[#allocation278_spill] sm:$0xff] }
 0x421   : > { %v7690_v17 = vsel %vm7517_vm13, %v7689_v27, %v7685_v29  ;;  %v6986_v40 = vmax.f32 %v3563_v36, %v6518_v8  ;;  %v6985_v63 = vmax.f32 %v3562_v61, %v6516_v49  ;;  %v15487_v7 = vpop.f32.mrb[212].mxu1  ;;  %v6292_v27 = vsel %vm6169_vm4, %v17451_v33, -1e+30  ;;  %v17452_v29 = vld [vmem:[#allocation277_spill] sm:$0xff] }
 0x422   : > { %v7695_v59 = vsel %vm17447_vm14, %v7694_v32, %v7690_v17  ;;  %17450 = vst [vmem:[#allocation58_spill] sm:$0xff] %v15487_v7  ;;  %v6291_v36 = vsel %vm6169_vm4, %v17452_v29, -1e+30  ;;  %vm17454_vm14 = vcmask 786112   ;;  %v3566_v3 = vmax.f32 %v17456_v4, -1e+30 }
 0x423   : > { %v7704_v34 = vrot.slane %v6986_v40, %v15187_v15  ;;  %v7699_v13 = vrot.slane %v6985_v63, %v15193_v48  ;;  %6661 = vmax.xlane.f32.xlu1 %v6290_v43  ;;  %6659 = vmax.xlane.f32.xlu0 %v6289_v41  ;;  %v15496_v40 = vpop.f32.mrb[213].mxu1  ;;  %v17455_v41 = vld [vmem:[#allocation106_spill] sm:$0xff] }
 0x424   : > { %v6522_v61 = vpop.xlane.xlu1 %6521  ;;  %v6520_v32 = vpop.xlane.xlu0 %6519  ;;  %17453 = vst [vmem:[#allocation59_spill] sm:$0xff] %v15496_v40  ;;  %v3567_v63 = vmax.f32 %v17455_v41, -1e+30  ;;  %v17462_v41 = vld [vmem:[#allocation80_spill] sm:$0xff]  ;;  %v17482_v40 = vld [vmem:[#allocation286_spill] sm:$0xff] }
 0x425   : > { %v7700_v8 = vsel %vm7531_vm15, %v7699_v13, %v7695_v59  ;;  %v6988_v49 = vmax.f32 %v3565_v6, %v6522_v61  ;;  %v6987_v17 = vmax.f32 %v3564_v57, %v6520_v32  ;;  %v15503_v29 = vpop.f32.mrb[214].mxu1  ;;  %v6294_v13 = vsel %vm6169_vm4, %v17458_v42, -1e+30  ;;  %v17459_v59 = vld [vmem:[#allocation279_spill] sm:$0xff] }
 0x426   : > { %v7705_v43 = vsel %vm17454_vm14, %v7704_v34, %v7700_v8  ;;  %17457 = vst [vmem:[#allocation256_spill] sm:$0xff] %v15503_v29  ;;  %v6293_v6 = vsel %vm6169_vm4, %v17459_v59, -1e+30  ;;  %v3568_v4 = vmax.f32 %v17462_v41, -1e+30  ;;  %vm16844_vm14 = vcmask 1042434  }
 0x427   : > { %v7714_v33 = vrot.slane %v6988_v49, %v15212_v44  ;;  %v7709_v7 = vrot.slane %v6987_v17, %v15218_v56  ;;  %6665 = vmax.xlane.f32.xlu1 %v6292_v27  ;;  %6663 = vmax.xlane.f32.xlu0 %v6291_v36  ;;  %v15512_v49 = vpop.f32.mrb[215].mxu1  ;;  %v17461_v36 = vld [vmem:[#allocation79_spill] sm:$0xff] }
 0x428   : > { %v6526_v57 = vpop.xlane.xlu1 %6525  ;;  %v6524_v34 = vpop.xlane.xlu0 %6523  ;;  %17460 = vst [vmem:[#allocation62_spill] sm:$0xff] %v15512_v49  ;;  %v3569_v17 = vmax.f32 %v17461_v36, -1e+30  ;;  %v17468_v41 = vld [vmem:[#allocation19_spill] sm:$0xff] }
 0x429   : > { %v7710_v61 = vsel %vm7545_vm1, %v7709_v7, %v7705_v43  ;;  %v6990_v32 = vmax.f32 %v3567_v63, %v6526_v57  ;;  %v6989_v8 = vmax.f32 %v3566_v3, %v6524_v34  ;;  %v15519_v59 = vpop.f32.mrb[216].mxu1  ;;  %v17464_v7 = vld [vmem:[#allocation280_spill] sm:$0xff]  ;;  %v17465_v63 = vld [vmem:[#allocation281_spill] sm:$0xff] }
 0x42a   : > { %v7715_v27 = vsel %vm7552_vm2, %v7714_v33, %v7710_v61  ;;  %17463 = vst [vmem:[#allocation63_spill] sm:$0xff] %v15519_v59  ;;  %v6296_v43 = vsel %vm6170_vm5, %v17464_v7, -1e+30  ;;  %v6295_v3 = vsel %vm6170_vm5, %v17465_v63, -1e+30 }
 0x42b   : > { %v7724_v42 = vrot.slane %v6990_v32, %v15236_v52  ;;  %v7719_v29 = vrot.slane %v6989_v8, %v15241_v14  ;;  %6669 = vmax.xlane.f32.xlu1 %v6294_v13  ;;  %6667 = vmax.xlane.f32.xlu0 %v6293_v6  ;;  %v15528_v8 = vpop.f32.mrb[217].mxu1  ;;  %v17467_v13 = vld [vmem:[#allocation17_spill] sm:$0xff]  ;;  %v3570_v59 = vmax.f32 %v17468_v41, -1e+30 }
 0x42c   : > { %v6530_v33 = vpop.xlane.xlu1 %6529  ;;  %v6528_v57 = vpop.xlane.xlu0 %6527  ;;  %17466 = vst [vmem:[#allocation66_spill] sm:$0xff] %v15528_v8  ;;  %v3571_v6 = vmax.f32 %v17467_v13, -1e+30 }
 0x42d   : > { %v7720_v34 = vsel %vm7559_vm3, %v7719_v29, %v7715_v27  ;;  %v6992_v61 = vmax.f32 %v3569_v17, %v6530_v33  ;;  %v6991_v32 = vmax.f32 %v3568_v4, %v6528_v57  ;;  %v15539_v29 = vpop.f32.mrb[218].mxu1  ;;  %v17470_v27 = vld [vmem:[#allocation282_spill] sm:$0xff]  ;;  %v17471_v4 = vld [vmem:[#allocation283_spill] sm:$0xff] }
 0x42e   : > { %v7725_v36 = vsel %vm7566_vm0, %v7724_v42, %v7720_v34  ;;  %17469 = vst [vmem:[#allocation67_spill] sm:$0xff] %v15539_v29  ;;  %v6298_v17 = vsel %vm6170_vm5, %v17470_v27, -1e+30  ;;  %v6297_v42 = vsel %vm6170_vm5, %v17471_v4, -1e+30  ;;  %v15548_v13 = vpop.f32.mrb[219].mxu1 }
 0x42f   : > { %v15535_v7 = vsel %vm16844_vm14, %v7725_v36, %v15404_v54  ;;  %v7733_v63 = vrot.slane %v6992_v61, %v15067_v37  ;;  %v7729_v49 = vrot.slane %v6991_v32, %v15071_v26  ;;  %6673 = vmax.xlane.f32.xlu1 %v6296_v43  ;;  %6671 = vmax.xlane.f32.xlu0 %v6295_v3  ;;  %v17473_v43 = vld [vmem:[#allocation21_spill] sm:$0xff]  ;;  %v17474_v32 = vld [vmem:[#allocation23_spill] sm:$0xff]  ;;  %v15554_v29 = vpop.f32.mrb[220].mxu1  ;;  %v17476_v4 = vld [vmem:[#allocation284_spill] sm:$0xff]  ;;  %vm17497_vm14 = vcmask 654912  }
 0x430   : > { %v6534_v33 = vpop.xlane.xlu1 %6533  ;;  %v6532_v57 = vpop.xlane.xlu0 %6531  ;;  %17472 = vst [vmem:[#allocation70_spill] sm:$0xff] %v15548_v13  ;;  %v3573_v3 = vmax.f32 %v17473_v43, -1e+30  ;;  %v3572_v36 = vmax.f32 %v17474_v32, -1e+30  ;;  %17475 = vst [vmem:[#allocation71_spill] sm:$0xff] %v15554_v29 }
 0x431   : > { %v7734_v54 = vsel %vm7468_vm6, %v7733_v63, %v7729_v49  ;;  %v6994_v34 = vmax.f32 %v3571_v6, %v6534_v33  ;;  %v6993_v61 = vmax.f32 %v3570_v59, %v6532_v57  ;;  %v6300_v49 = vsel %vm6170_vm5, %v17476_v4, -1e+30  ;;  %v17477_v6 = vld [vmem:[#allocation285_spill] sm:$0xff]  ;;  %v15563_v32 = vpop.f32.mrb[221].mxu1  ;;  %v17480_v29 = vld [vmem:[#allocation27_spill] sm:$0xff] }
 0x432   : > { %v6299_v59 = vsel %vm6170_vm5, %v17477_v6, -1e+30  ;;  %17478 = vst [vmem:[#allocation74_spill] sm:$0xff] %v15563_v32  ;;  %v3574_v13 = vmax.f32 %v17480_v29, -1e+30  ;;  %v15570_v6 = vpop.f32.mrb[222].mxu1 }
 0x433   : > { %v7743_v41 = vrot.slane %v6994_v34, %v15089_v53  ;;  %v7738_v27 = vrot.slane %v6993_v61, %v15095_v51  ;;  %6677 = vmax.xlane.f32.xlu1 %v6298_v17  ;;  %6675 = vmax.xlane.f32.xlu0 %v6297_v42  ;;  %v17479_v42 = vld [vmem:[#allocation25_spill] sm:$0xff]  ;;  %17481 = vst [vmem:[#allocation75_spill] sm:$0xff] %v15570_v6 }
 0x434   : > { %v6538_v63 = vpop.xlane.xlu1 %6537  ;;  %v6536_v33 = vpop.xlane.xlu0 %6535  ;;  %v3575_v61 = vmax.f32 %v17479_v42, -1e+30  ;;  %v17488_v32 = vld [vmem:[#allocation289_spill] sm:$0xff] }
 0x435   : > { %v7739_v57 = vsel %vm7475_vm7, %v7738_v27, %v7734_v54  ;;  %v6996_v43 = vmax.f32 %v3573_v3, %v6538_v63  ;;  %v6995_v34 = vmax.f32 %v3572_v36, %v6536_v33  ;;  %v6302_v54 = vsel %vm6170_vm5, %v17482_v40, -1e+30  ;;  %v17483_v3 = vld [vmem:[#allocation288_spill] sm:$0xff] }
 0x436   : > { %v7744_v17 = vsel %vm7482_vm8, %v7743_v41, %v7739_v57  ;;  %v6301_v36 = vsel %vm6170_vm5, %v17483_v3, -1e+30  ;;  %v15579_v57 = vpop.f32.mrb[223].mxu1  ;;  %v15586_v3 = vpop.f32.mrb[224].mxu0 }
 0x437   : > { %v7753_v4 = vrot.slane %v6996_v43, %v15112_v11  ;;  %v7748_v8 = vrot.slane %v6995_v34, %v15119_v19  ;;  %6681 = vmax.xlane.f32.xlu1 %v6300_v49  ;;  %6679 = vmax.xlane.f32.xlu0 %v6299_v59  ;;  %17484 = vst [vmem:[#allocation76_spill] sm:$0xff] %v15579_v57  ;;  %v17485_v59 = vld [vmem:[#allocation29_spill] sm:$0xff]  ;;  %v17486_v34 = vld [vmem:[#allocation31_spill] sm:$0xff]  ;;  %17487 = vst [vmem:[#allocation77_spill] sm:$0xff] %v15586_v3 }
 0x438   : > { %v6542_v41 = vpop.xlane.xlu1 %6541  ;;  %v6540_v27 = vpop.xlane.xlu0 %6539  ;;  %v3577_v43 = vmax.f32 %v17485_v59, -1e+30  ;;  %v3576_v42 = vmax.f32 %v17486_v34, -1e+30  ;;  %v17492_v59 = vld [vmem:[#allocation35_spill] sm:$0xff] }
 0x439   : > { %v7749_v29 = vsel %vm7489_vm9, %v7748_v8, %v7744_v17  ;;  %v6998_v63 = vmax.f32 %v3575_v61, %v6542_v41  ;;  %v6997_v33 = vmax.f32 %v3574_v13, %v6540_v27  ;;  %v6304_v8 = vsel %vm6169_vm4, %v17488_v32, -1e+30  ;;  %v17489_v17 = vld [vmem:[#allocation290_spill] sm:$0xff]  ;;  %v17494_v57 = vld [vmem:[#allocation291_spill] sm:$0xff] }
 0x43a   : > { %v7754_v49 = vsel %vm7496_vm10, %v7753_v4, %v7749_v29  ;;  %v6303_v61 = vsel %vm6169_vm4, %v17489_v17, -1e+30  ;;  %v3578_v34 = vmax.f32 %v17492_v59, -1e+30 }
 0x43b   : > { %v7763_v40 = vrot.slane %v6998_v63, %v15135_v1  ;;  %v7758_v6 = vrot.slane %v6997_v33, %v15138_v30  ;;  %6685 = vmax.xlane.f32.xlu1 %v6302_v54  ;;  %6683 = vmax.xlane.f32.xlu0 %v6301_v36  ;;  %v15595_v63 = vpop.f32.mrb[225].mxu0  ;;  %v17491_v36 = vld [vmem:[#allocation33_spill] sm:$0xff] }
 0x43c   : > { %v6546_v13 = vpop.xlane.xlu1 %6545  ;;  %v6544_v4 = vpop.xlane.xlu0 %6543  ;;  %17490 = vst [vmem:[#allocation82_spill] sm:$0xff] %v15595_v63  ;;  %v3579_v33 = vmax.f32 %v17491_v36, -1e+30  ;;  %v17499_v36 = vld [vmem:[#allocation39_spill] sm:$0xff] }
 0x43d   : > { %v7759_v41 = vsel %vm7503_vm11, %v7758_v6, %v7754_v49  ;;  %v7000_v27 = vmax.f32 %v3577_v43, %v6546_v13  ;;  %v6999_v29 = vmax.f32 %v3576_v42, %v6544_v4  ;;  %v15602_v17 = vpop.f32.mrb[226].mxu0  ;;  %v6306_v6 = vsel %vm6169_vm4, %v17494_v57, -1e+30  ;;  %v17495_v43 = vld [vmem:[#allocation294_spill] sm:$0xff]  ;;  %v17501_v63 = vld [vmem:[#allocation295_spill] sm:$0xff] }
 0x43e   : > { %v7764_v54 = vsel %vm7510_vm12, %v7763_v40, %v7759_v41  ;;  %17493 = vst [vmem:[#allocation83_spill] sm:$0xff] %v15602_v17  ;;  %v6305_v42 = vsel %vm6169_vm4, %v17495_v43, -1e+30  ;;  %v3580_v59 = vmax.f32 %v17499_v36, -1e+30 }
 0x43f   : > { %v7773_v32 = vrot.slane %v7000_v27, %v15160_v16  ;;  %v7768_v3 = vrot.slane %v6999_v29, %v15166_v28  ;;  %6689 = vmax.xlane.f32.xlu1 %v6304_v8  ;;  %6687 = vmax.xlane.f32.xlu0 %v6303_v61  ;;  %v15611_v27 = vpop.f32.mrb[227].mxu0  ;;  %v17498_v61 = vld [vmem:[#allocation37_spill] sm:$0xff] }
 0x440   : > { %v6550_v49 = vpop.xlane.xlu1 %6549  ;;  %v6548_v40 = vpop.xlane.xlu0 %6547  ;;  %17496 = vst [vmem:[#allocation143_spill] sm:$0xff] %v15611_v27  ;;  %v3581_v29 = vmax.f32 %v17498_v61, -1e+30  ;;  %v17506_v61 = vld [vmem:[#allocation42_spill] sm:$0xff] }
 0x441   : > { %v7769_v13 = vsel %vm7517_vm13, %v7768_v3, %v7764_v54  ;;  %v7002_v4 = vmax.f32 %v3579_v33, %v6550_v49  ;;  %v7001_v41 = vmax.f32 %v3578_v34, %v6548_v40  ;;  %v15618_v43 = vpop.f32.mrb[228].mxu0  ;;  %v6308_v3 = vsel %vm6169_vm4, %v17501_v63, -1e+30  ;;  %v17502_v33 = vld [vmem:[#allocation297_spill] sm:$0xff]  ;;  %v17508_v27 = vld [vmem:[#allocation298_spill] sm:$0xff] }
 0x442   : > { %v7774_v8 = vsel %vm17497_vm14, %v7773_v32, %v7769_v13  ;;  %17500 = vst [vmem:[#allocation20_spill] sm:$0xff] %v15618_v43  ;;  %v6307_v34 = vsel %vm6169_vm4, %v17502_v33, -1e+30  ;;  %vm17504_vm14 = vcmask 786112   ;;  %v3582_v36 = vmax.f32 %v17506_v61, -1e+30 }
 0x443   : > { %v7783_v57 = vrot.slane %v7002_v4, %v15187_v15  ;;  %v7778_v17 = vrot.slane %v7001_v41, %v15193_v48  ;;  %6693 = vmax.xlane.f32.xlu1 %v6306_v6  ;;  %6691 = vmax.xlane.f32.xlu0 %v6305_v42  ;;  %v15627_v4 = vpop.f32.mrb[229].mxu0  ;;  %v17505_v42 = vld [vmem:[#allocation41_spill] sm:$0xff] }
 0x444   : > { %v6554_v54 = vpop.xlane.xlu1 %6553  ;;  %v6552_v32 = vpop.xlane.xlu0 %6551  ;;  %17503 = vst [vmem:[#allocation87_spill] sm:$0xff] %v15627_v4  ;;  %v3583_v41 = vmax.f32 %v17505_v42, -1e+30  ;;  %v17512_v42 = vld [vmem:[#allocation108_spill] sm:$0xff]  ;;  %v17513_v61 = vld [vmem:[#allocation109_spill] sm:$0xff] }
 0x445   : > { %v7779_v49 = vsel %vm7531_vm15, %v7778_v17, %v7774_v8  ;;  %v7004_v40 = vmax.f32 %v3581_v29, %v6554_v54  ;;  %v7003_v13 = vmax.f32 %v3580_v59, %v6552_v32  ;;  %v15634_v33 = vpop.f32.mrb[230].mxu0  ;;  %v6310_v17 = vsel %vm6169_vm4, %v17508_v27, -1e+30  ;;  %v17509_v29 = vld [vmem:[#allocation44_spill] sm:$0xff] }
 0x446   : > { %v7784_v6 = vsel %vm17504_vm14, %v7783_v57, %v7779_v49  ;;  %17507 = vst [vmem:[#allocation268_spill] sm:$0xff] %v15634_v33  ;;  %v6309_v59 = vsel %vm6169_vm4, %v17509_v29, -1e+30  ;;  %v3585_v27 = vmax.f32 %v17512_v42, -1e+30  ;;  %vm16845_vm14 = vcmask 1043459  }
 0x447   : > { %v7793_v63 = vrot.slane %v7004_v40, %v15212_v44  ;;  %v7788_v43 = vrot.slane %v7003_v13, %v15218_v56  ;;  %6697 = vmax.xlane.f32.xlu1 %v6308_v3  ;;  %6695 = vmax.xlane.f32.xlu0 %v6307_v34  ;;  %v15643_v40 = vpop.f32.mrb[224].mxu1  ;;  %v15645_v3 = vpop.f32.mrb[231].mxu0  ;;  %v3584_v33 = vmax.f32 %v17513_v61, -1e+30 }
 0x448   : > { %v6558_v8 = vpop.xlane.xlu1 %6557  ;;  %v6556_v57 = vpop.xlane.xlu0 %6555  ;;  %17510 = vst [vmem:[#allocation18_spill] sm:$0xff] %v15643_v40 }
 0x449   : > { %v7789_v54 = vsel %vm7545_vm1, %v7788_v43, %v7784_v6  ;;  %v7006_v32 = vmax.f32 %v3583_v41, %v6558_v8  ;;  %v7005_v49 = vmax.f32 %v3582_v36, %v6556_v57  ;;  %v15648_v13 = vpop.f32.mrb[225].mxu1  ;;  %v15654_v43 = vpop.f32.mrb[232].mxu0  ;;  %v17515_v6 = vld [vmem:[#allocation45_spill] sm:$0xff] }
 0x44a   : > { %v7794_v34 = vsel %vm7552_vm2, %v7793_v63, %v7789_v54  ;;  %17511 = vst [vmem:[#allocation24_spill] sm:$0xff] %v15648_v13  ;;  %17514 = vst [vmem:[#allocation91_spill] sm:$0xff] %v15654_v43  ;;  %v6312_v41 = vsel %vm6170_vm5, %v17515_v6, -1e+30  ;;  %v17516_v63 = vld [vmem:[#allocation46_spill] sm:$0xff]  ;;  %v17521_v6 = vld [vmem:[#allocation113_spill] sm:$0xff] }
 0x44b   : > { %v7803_v4 = vrot.slane %v7006_v32, %v15236_v52  ;;  %v7798_v29 = vrot.slane %v7005_v49, %v15241_v14  ;;  %6701 = vmax.xlane.f32.xlu1 %v6310_v17  ;;  %6699 = vmax.xlane.f32.xlu0 %v6309_v59  ;;  %v6311_v8 = vsel %vm6170_vm5, %v17516_v63, -1e+30  ;;  %v15663_v49 = vpop.f32.mrb[226].mxu1  ;;  %v15665_v17 = vpop.f32.mrb[233].mxu0  ;;  %v17519_v59 = vld [vmem:[#allocation112_spill] sm:$0xff] }
 0x44c   : > { %v6562_v36 = vpop.xlane.xlu1 %6561  ;;  %v6560_v57 = vpop.xlane.xlu0 %6559  ;;  %17517 = vst [vmem:[#allocation270_spill] sm:$0xff] %v15663_v49  ;;  %17518 = vst [vmem:[#allocation147_spill] sm:$0xff] %v15665_v17  ;;  %v3587_v61 = vmax.f32 %v17519_v59, -1e+30  ;;  %v3586_v43 = vmax.f32 %v17521_v6, -1e+30 }
 0x44d   : > { %v7799_v54 = vsel %vm7559_vm3, %v7798_v29, %v7794_v34  ;;  %v7008_v32 = vmax.f32 %v3585_v27, %v6562_v36  ;;  %v7007_v42 = vmax.f32 %v3584_v33, %v6560_v57  ;;  %v15669_v40 = vpop.f32.mrb[227].mxu1  ;;  %v15678_v27 = vpop.f32.mrb[234].mxu0  ;;  %v17523_v29 = vld [vmem:[#allocation50_spill] sm:$0xff]  ;;  %v17524_v57 = vld [vmem:[#allocation51_spill] sm:$0xff] }
 0x44e   : > { %v7804_v13 = vsel %vm7566_vm0, %v7803_v4, %v7799_v54  ;;  %17520 = vst [vmem:[#allocation28_spill] sm:$0xff] %v15669_v40  ;;  %17522 = vst [vmem:[#allocation94_spill] sm:$0xff] %v15678_v27  ;;  %v6314_v4 = vsel %vm6170_vm5, %v17523_v29, -1e+30  ;;  %v6313_v54 = vsel %vm6170_vm5, %v17524_v57, -1e+30 }
 0x44f   : > { %v15674_v63 = vsel %vm16845_vm14, %v7804_v13, %v15535_v7  ;;  %v7812_v34 = vrot.slane %v7008_v32, %v15067_v37  ;;  %v7808_v33 = vrot.slane %v7007_v42, %v15071_v26  ;;  %6705 = vmax.xlane.f32.xlu1 %v6312_v41  ;;  %6703 = vmax.xlane.f32.xlu0 %v6311_v8  ;;  %v15687_v6 = vpop.f32.mrb[228].mxu1  ;;  %v15689_v41 = vpop.f32.mrb[235].mxu0  ;;  %v17528_v42 = vld [vmem:[#allocation116_spill] sm:$0xff]  ;;  %v17529_v40 = vld [vmem:[#allocation117_spill] sm:$0xff]  ;;  %vm17549_vm14 = vcmask 654912  }
 0x450   : > { %v6566_v36 = vpop.xlane.xlu1 %6565  ;;  %v6564_v59 = vpop.xlane.xlu0 %6563  ;;  %17525 = vst [vmem:[#allocation272_spill] sm:$0xff] %v15687_v6  ;;  %17526 = vst [vmem:[#allocation273_spill] sm:$0xff] %v15689_v41  ;;  %v3589_v49 = vmax.f32 %v17528_v42, -1e+30  ;;  %v3588_v29 = vmax.f32 %v17529_v40, -1e+30 }
 0x451   : > { %v7813_v7 = vsel %vm7468_vm6, %v7812_v34, %v7808_v33  ;;  %v7010_v13 = vmax.f32 %v3587_v61, %v6566_v36  ;;  %v7009_v32 = vmax.f32 %v3586_v43, %v6564_v59  ;;  %v15691_v8 = vpop.f32.mrb[229].mxu1  ;;  %v15697_v57 = vpop.f32.mrb[236].mxu0  ;;  %v17531_v61 = vld [vmem:[#allocation52_spill] sm:$0xff]  ;;  %v6315_v33 = vsel %vm6170_vm5, %v15131_v0, -1e+30 }
 0x452   : > { %17527 = vst [vmem:[#allocation32_spill] sm:$0xff] %v15691_v8  ;;  %17530 = vst [vmem:[#allocation98_spill] sm:$0xff] %v15697_v57  ;;  %v6316_v43 = vsel %vm6170_vm5, %v17531_v61, -1e+30  ;;  %v15706_v42 = vpop.f32.mrb[230].mxu1  ;;  %v17534_v6 = vld [vmem:[#allocation120_spill] sm:$0xff] }
 0x453   : > { %v7822_v27 = vrot.slane %v7010_v13, %v15089_v53  ;;  %v7817_v17 = vrot.slane %v7009_v32, %v15095_v51  ;;  %6709 = vmax.xlane.f32.xlu1 %v6314_v4  ;;  %6707 = vmax.xlane.f32.xlu0 %v6313_v54  ;;  %17532 = vst [vmem:[#allocation274_spill] sm:$0xff] %v15706_v42  ;;  %v15708_v4 = vpop.f32.mrb[237].mxu0  ;;  %v15711_v32 = vpop.f32.mrb[231].mxu1  ;;  %v3591_v61 = vmax.f32 %v17534_v6, -1e+30  ;;  %v17535_v8 = vld [vmem:[#allocation121_spill] sm:$0xff] }
 0x454   : > { %v6570_v34 = vpop.xlane.xlu1 %6569  ;;  %v6568_v36 = vpop.xlane.xlu0 %6567  ;;  %17533 = vst [vmem:[#allocation275_spill] sm:$0xff] %v15711_v32  ;;  %v3590_v57 = vmax.f32 %v17535_v8, -1e+30  ;;  %v17541_v42 = vld [vmem:[#allocation125_spill] sm:$0xff] }
 0x455   : > { %v7818_v40 = vsel %vm7475_vm7, %v7817_v17, %v7813_v7  ;;  %v7012_v59 = vmax.f32 %v3589_v49, %v6570_v34  ;;  %v7011_v13 = vmax.f32 %v3588_v29, %v6568_v36  ;;  %v15717_v49 = vpop.f32.mrb[238].mxu0  ;;  %v17537_v17 = vld [vmem:[#allocation55_spill] sm:$0xff]  ;;  %v3592_v32 = vmax.f32 %v17541_v42, -1e+30 }
 0x456   : > { %v7823_v54 = vsel %vm7482_vm8, %v7822_v27, %v7818_v40  ;;  %17536 = vst [vmem:[#allocation36_spill] sm:$0xff] %v15717_v49  ;;  %v6318_v7 = vsel %vm6170_vm5, %v17537_v17, -1e+30  ;;  %v6317_v27 = vsel %vm6170_vm5, %v15156_v18, -1e+30  ;;  %v15726_v40 = vpop.f32.mrb[232].mxu1 }
 0x457   : > { %v7832_v41 = vrot.slane %v7012_v59, %v15112_v11  ;;  %v7827_v0 = vrot.slane %v7011_v13, %v15119_v19  ;;  %6713 = vmax.xlane.f32.xlu1 %v6316_v43  ;;  %6711 = vmax.xlane.f32.xlu0 %v6315_v33  ;;  %17538 = vst [vmem:[#allocation102_spill] sm:$0xff] %v15726_v40  ;;  %v15728_v43 = vpop.f32.mrb[239].mxu0  ;;  %v15731_v59 = vpop.f32.mrb[233].mxu1  ;;  %v17540_v13 = vld [vmem:[#allocation124_spill] sm:$0xff] }
 0x458   : > { %v6574_v29 = vpop.xlane.xlu1 %6573  ;;  %v6572_v6 = vpop.xlane.xlu0 %6571  ;;  %17539 = vst [vmem:[#allocation276_spill] sm:$0xff] %v15731_v59  ;;  %v3593_v17 = vmax.f32 %v17540_v13, -1e+30  ;;  %v17546_v13 = vld [vmem:[#allocation129_spill] sm:$0xff]  ;;  %v17547_v59 = vld [vmem:[#allocation60_spill] sm:$0xff] }
 0x459   : > { %v7828_v8 = vsel %vm7489_vm9, %v7827_v0, %v7823_v54  ;;  %v7014_v34 = vmax.f32 %v3591_v61, %v6574_v29  ;;  %v7013_v36 = vmax.f32 %v3590_v57, %v6572_v6  ;;  %v17542_v54 = vld [vmem:[#allocation56_spill] sm:$0xff] }
 0x45a   : > { %v7833_v33 = vsel %vm7496_vm10, %v7832_v41, %v7828_v8  ;;  %v6320_v57 = vsel %vm6169_vm4, %v17542_v54, -1e+30  ;;  %v6319_v41 = vsel %vm6169_vm4, %v15183_v35, -1e+30  ;;  %v15744_v8 = vpop.f32.mrb[234].mxu1 }
 0x45b   : > { %v7842_v49 = vrot.slane %v7014_v34, %v15135_v1  ;;  %v7837_v18 = vrot.slane %v7013_v36, %v15138_v30  ;;  %6717 = vmax.xlane.f32.xlu1 %v6318_v7  ;;  %6715 = vmax.xlane.f32.xlu0 %v6317_v27  ;;  %17543 = vst [vmem:[#allocation277_spill] sm:$0xff] %v15744_v8  ;;  %v15747_v7 = vpop.f32.mrb[235].mxu1  ;;  %v17545_v27 = vld [vmem:[#allocation128_spill] sm:$0xff]  ;;  %v3594_v54 = vmax.f32 %v17546_v13, -1e+30  ;;  %v17552_v13 = vld [vmem:[#allocation133_spill] sm:$0xff] }
 0x45c   : > { %v6578_v61 = vpop.xlane.xlu1 %6577  ;;  %v6576_v0 = vpop.xlane.xlu0 %6575  ;;  %17544 = vst [vmem:[#allocation106_spill] sm:$0xff] %v15747_v7  ;;  %v3595_v36 = vmax.f32 %v17545_v27, -1e+30 }
 0x45d   : > { %v7838_v29 = vsel %vm7503_vm11, %v7837_v18, %v7833_v33  ;;  %v7016_v6 = vmax.f32 %v3593_v17, %v6578_v61  ;;  %v7015_v42 = vmax.f32 %v3592_v32, %v6576_v0  ;;  %v6322_v32 = vsel %vm6169_vm4, %v17547_v59, -1e+30  ;;  %v17551_v59 = vld [vmem:[#allocation132_spill] sm:$0xff] }
 0x45e   : > { %v7843_v34 = vsel %vm7510_vm12, %v7842_v49, %v7838_v29  ;;  %v6321_v49 = vsel %vm6169_vm4, %v15208_v25, -1e+30  ;;  %v15760_v29 = vpop.f32.mrb[236].mxu1  ;;  %v3597_v27 = vmax.f32 %v17551_v59, -1e+30 }
 0x45f   : > { %v7852_v40 = vrot.slane %v7016_v6, %v15160_v16  ;;  %v7847_v35 = vrot.slane %v7015_v42, %v15166_v28  ;;  %6721 = vmax.xlane.f32.xlu1 %v6320_v57  ;;  %6719 = vmax.xlane.f32.xlu0 %v6319_v41  ;;  %17548 = vst [vmem:[#allocation107_spill] sm:$0xff] %v15760_v29  ;;  %v15762_v6 = vpop.f32.mrb[240].mxu0  ;;  %v15765_v41 = vpop.f32.mrb[237].mxu1  ;;  %v3596_v25 = vmax.f32 %v17552_v13, -1e+30  ;;  %v17558_v29 = vld [vmem:[#allocation137_spill] sm:$0xff] }
 0x460   : > { %v6582_v33 = vpop.xlane.xlu1 %6581  ;;  %v6580_v17 = vpop.xlane.xlu0 %6579  ;;  %17550 = vst [vmem:[#allocation278_spill] sm:$0xff] %v15765_v41 }
 0x461   : > { %v7848_v18 = vsel %vm7517_vm13, %v7847_v35, %v7843_v34  ;;  %v7018_v61 = vmax.f32 %v3595_v36, %v6582_v33  ;;  %v7017_v0 = vmax.f32 %v3594_v54, %v6580_v17  ;;  %v15767_v42 = vpop.f32.mrb[241].mxu0  ;;  %v17553_v36 = vld [vmem:[#allocation61_spill] sm:$0xff]  ;;  %v15780_v13 = vpop.f32.mrb[238].mxu1 }
 0x462   : > { %v7853_v57 = vsel %vm17549_vm14, %v7852_v40, %v7848_v18  ;;  %v6324_v54 = vsel %vm6169_vm4, %v17553_v36, -1e+30  ;;  %v6323_v40 = vsel %vm6169_vm4, %v15231_v58, -1e+30  ;;  %17554 = vst [vmem:[#allocation279_spill] sm:$0xff] %v15780_v13  ;;  %vm17555_vm14 = vcmask 786112  }
 0x463   : > { %v7862_v8 = vrot.slane %v7018_v61, %v15187_v15  ;;  %v7857_v34 = vrot.slane %v7017_v0, %v15193_v48  ;;  %6725 = vmax.xlane.f32.xlu1 %v6322_v32  ;;  %6723 = vmax.xlane.f32.xlu0 %v6321_v49  ;;  %v15783_v32 = vpop.f32.mrb[239].mxu1  ;;  %v17557_v49 = vld [vmem:[#allocation136_spill] sm:$0xff]  ;;  %v3598_v36 = vmax.f32 %v17558_v29, -1e+30  ;;  %v15789_v7 = vpop.f32.mrb[242].mxu0 }
 0x464   : > { %v6586_v35 = vpop.xlane.xlu1 %6585  ;;  %v6584_v33 = vpop.xlane.xlu0 %6583  ;;  %17556 = vst [vmem:[#allocation79_spill] sm:$0xff] %v15783_v32  ;;  %v3599_v0 = vmax.f32 %v17557_v49, -1e+30 }
 0x465   : > { %v7858_v17 = vsel %vm7531_vm15, %v7857_v34, %v7853_v57  ;;  %v7020_v18 = vmax.f32 %v3597_v27, %v6586_v35  ;;  %v7019_v59 = vmax.f32 %v3596_v25, %v6584_v33  ;;  %v6326_v57 = vsel %vm6169_vm4, %v15243_v23, -1e+30  ;;  %v15798_v33 = vpop.f32.mrb[240].mxu1 }
 0x466   : > { %v7863_v61 = vsel %vm17555_vm14, %v7862_v8, %v7858_v17  ;;  %v6325_v8 = vsel %vm6169_vm4, %v15252_v62, -1e+30  ;;  %v15803_v17 = vpop.f32.mrb[241].mxu1  ;;  %vm16846_vm14 = vcmask 1044484  }
 0x467   : > { %v7872_v41 = vrot.slane %v7020_v18, %v15212_v44  ;;  %v7867_v58 = vrot.slane %v7019_v59, %v15218_v56  ;;  %6729 = vmax.xlane.f32.xlu1 %v6324_v54  ;;  %6727 = vmax.xlane.f32.xlu0 %v6323_v40  ;;  %v15800_v54 = vpop.f32.mrb[243].mxu0  ;;  %v17559_v18 = vld [vmem:[#allocation110_spill] sm:$0xff]  ;;  %v17560_v59 = vld [vmem:[#allocation111_spill] sm:$0xff] }
 0x468   : > { %v6590_v27 = vpop.xlane.xlu1 %6589  ;;  %v6588_v25 = vpop.xlane.xlu0 %6587  ;;  %v3601_v23 = vmax.f32 %v17559_v18, -1e+30  ;;  %v3600_v49 = vmax.f32 %v17560_v59, -1e+30 }
 0x469   : > { %v7868_v29 = vsel %vm7545_vm1, %v7867_v58, %v7863_v61  ;;  %v7022_v34 = vmax.f32 %v3599_v0, %v6590_v27  ;;  %v7021_v35 = vmax.f32 %v3598_v36, %v6588_v25  ;;  %v6328_v61 = vsel %vm6170_vm5, %v15259_v9, -1e+30 }
 0x46a   : > { %v7873_v40 = vsel %vm7552_vm2, %v7872_v41, %v7868_v29  ;;  %v6327_v41 = vsel %vm6170_vm5, %v15268_v39, -1e+30  ;;  %v17561_v29 = vld [vmem:[#allocation114_spill] sm:$0xff] }
 0x46b   : > { %v7882_v62 = vrot.slane %v7022_v34, %v15236_v52  ;;  %v7877_v13 = vrot.slane %v7021_v35, %v15241_v14  ;;  %6733 = vmax.xlane.f32.xlu1 %v6326_v57  ;;  %6731 = vmax.xlane.f32.xlu0 %v6325_v8  ;;  %v3603_v34 = vmax.f32 %v17561_v29, -1e+30  ;;  %v17562_v8 = vld [vmem:[#allocation115_spill] sm:$0xff] }
 0x46c   : > { %v6594_v0 = vpop.xlane.xlu1 %6593  ;;  %v6592_v36 = vpop.xlane.xlu0 %6591  ;;  %v3602_v35 = vmax.f32 %v17562_v8, -1e+30 }
 0x46d   : > { %v7878_v58 = vsel %vm7559_vm3, %v7877_v13, %v7873_v40  ;;  %v7024_v27 = vmax.f32 %v3601_v23, %v6594_v0  ;;  %v7023_v25 = vmax.f32 %v3600_v49, %v6592_v36  ;;  %v6330_v13 = vsel %vm6170_vm5, %v15277_v45, -1e+30  ;;  %v15832_v0 = vpop.f32.mrb[242].mxu1 }
 0x46e   : > { %v7883_v57 = vsel %vm7566_vm0, %v7882_v62, %v7878_v58  ;;  %v6329_v40 = vsel %vm6170_vm5, %v15286_v38, -1e+30  ;;  %v15834_v36 = vpop.f32.mrb[243].mxu1  ;;  %v17564_v58 = vld [vmem:[#allocation119_spill] sm:$0xff]  ;;  %v17565_v38 = vld [vmem:[#allocation64_spill] sm:$0xff] }
 0x46f   : > { %v15821_v18 = vsel %vm16846_vm14, %v7883_v57, %v15674_v63  ;;  %v7891_v9 = vrot.slane %v7024_v27, %v15067_v37  ;;  %v7887_v39 = vrot.slane %v7023_v25, %v15071_v26  ;;  %6737 = vmax.xlane.f32.xlu1 %v6328_v61  ;;  %6735 = vmax.xlane.f32.xlu0 %v6327_v41  ;;  %v17563_v61 = vld [vmem:[#allocation118_spill] sm:$0xff]  ;;  %v3604_v27 = vmax.f32 %v17564_v58, -1e+30 }
 0x470   : > { %v6598_v23 = vpop.xlane.xlu1 %6597  ;;  %v6596_v59 = vpop.xlane.xlu0 %6595  ;;  %v3605_v41 = vmax.f32 %v17563_v61, -1e+30  ;;  %v6332_v29 = vsel %vm6170_vm5, %v17565_v38, -1e+30  ;;  %vm17572_vm14 = vcmask 654912  }
 0x471   : > { %v7892_v49 = vsel %vm7468_vm6, %v7891_v9, %v7887_v39  ;;  %v7026_v63 = vmax.f32 %v3603_v34, %v6598_v23  ;;  %v7025_v62 = vmax.f32 %v3602_v35, %v6596_v59  ;;  %v6331_v34 = vsel %vm6170_vm5, %v15301_v46, -1e+30  ;;  %v15847_v23 = vpop.f32.mrb[244].mxu0 }
 0x473   : > { %v7901_v45 = vrot.slane %v7026_v63, %v15089_v53  ;;  %v7896_v25 = vrot.slane %v7025_v62, %v15095_v51  ;;  %6741 = vmax.xlane.f32.xlu1 %v6330_v13  ;;  %6739 = vmax.xlane.f32.xlu0 %v6329_v40  ;;  %v15850_v13 = vpop.f32.mrb[245].mxu0  ;;  %v17566_v40 = vld [vmem:[#allocation57_spill] sm:$0xff]  ;;  %v17567_v62 = vld [vmem:[#allocation123_spill] sm:$0xff] }
 0x474   : > { %v6602_v57 = vpop.xlane.xlu1 %6601  ;;  %v6600_v8 = vpop.xlane.xlu0 %6599  ;;  %v3607_v63 = vmax.f32 %v17566_v40, -1e+30  ;;  %v3606_v61 = vmax.f32 %v17567_v62, -1e+30 }
 0x475   : > { %v7897_v35 = vsel %vm7475_vm7, %v7896_v25, %v7892_v49  ;;  %v7028_v9 = vmax.f32 %v3605_v41, %v6602_v57  ;;  %v7027_v39 = vmax.f32 %v3604_v27, %v6600_v8  ;;  %v6334_v49 = vsel %vm6170_vm5, %v15308_v47, -1e+30 }
 0x476   : > { %v7902_v59 = vsel %vm7482_vm8, %v7901_v45, %v7897_v35  ;;  %v6333_v41 = vsel %vm6170_vm5, %v15317_v50, -1e+30  ;;  %v17568_v35 = vld [vmem:[#allocation126_spill] sm:$0xff]  ;;  %v6336_v50 = vsel %vm6169_vm4, %v15324_v20, -1e+30 }
 0x477   : > { %v7911_v58 = vrot.slane %v7028_v9, %v15112_v11  ;;  %v7906_v46 = vrot.slane %v7027_v39, %v15119_v19  ;;  %6745 = vmax.xlane.f32.xlu1 %v6332_v29  ;;  %6743 = vmax.xlane.f32.xlu0 %v6331_v34  ;;  %v3609_v9 = vmax.f32 %v17568_v35, -1e+30  ;;  %v17569_v29 = vld [vmem:[#allocation127_spill] sm:$0xff]  ;;  %v6337_v35 = vsel %vm6169_vm4, %v15349_v10, -1e+30 }
 0x478   : > { %v6606_v27 = vpop.xlane.xlu1 %6605  ;;  %v6604_v45 = vpop.xlane.xlu0 %6603  ;;  %v3608_v34 = vmax.f32 %v17569_v29, -1e+30  ;;  %v6340_v10 = vsel %vm6169_vm4, %v15356_v24, -1e+30 }
 0x479   : > { %v7907_v25 = vsel %vm7489_vm9, %v7906_v46, %v7902_v59  ;;  %v7030_v38 = vmax.f32 %v3607_v63, %v6606_v27  ;;  %v7029_v57 = vmax.f32 %v3606_v61, %v6604_v45  ;;  %v6335_v59 = vsel %vm6169_vm4, %v15333_v60, -1e+30  ;;  %v15875_v46 = vpop.f32.mrb[244].mxu1 }
 0x47a   : > { %v7912_v8 = vsel %vm7496_vm10, %v7911_v58, %v7907_v25  ;;  %v17571_v25 = vld [vmem:[#allocation131_spill] sm:$0xff]  ;;  %v6338_v60 = vsel %vm6169_vm4, %v15340_v31, -1e+30 }
 0x47b   : > { %v7921_v39 = vrot.slane %v7030_v38, %v15135_v1  ;;  %v7916_v47 = vrot.slane %v7029_v57, %v15138_v30  ;;  %6749 = vmax.xlane.f32.xlu1 %v6334_v49  ;;  %6747 = vmax.xlane.f32.xlu0 %v6333_v41  ;;  %v15878_v49 = vpop.f32.mrb[245].mxu1  ;;  %v17570_v41 = vld [vmem:[#allocation130_spill] sm:$0xff]  ;;  %v3610_v20 = vmax.f32 %v17571_v25, -1e+30 }
 0x47c   : > { %v6610_v40 = vpop.xlane.xlu1 %6609  ;;  %v6608_v63 = vpop.xlane.xlu0 %6607  ;;  %v3611_v45 = vmax.f32 %v17570_v41, -1e+30  ;;  %v6339_v41 = vsel %vm6169_vm4, %v15365_v22, -1e+30  ;;  %v6342_v22 = vsel %vm6169_vm4, %v15372_v12, -1e+30 }
 0x47d   : > { %v7917_v62 = vsel %vm7503_vm11, %v7916_v47, %v7912_v8  ;;  %v7032_v61 = vmax.f32 %v3609_v9, %v6610_v40  ;;  %v7031_v58 = vmax.f32 %v3608_v34, %v6608_v63  ;;  %v15891_v47 = vpop.f32.mrb[246].mxu0 }
 0x47e   : > { %v7922_v27 = vsel %vm7510_vm12, %v7921_v39, %v7917_v62  ;;  %v17574_v62 = vld [vmem:[#allocation135_spill] sm:$0xff] }
 0x47f   : > { %v7931_v38 = vrot.slane %v7032_v61, %v15160_v16  ;;  %v7926_v57 = vrot.slane %v7031_v58, %v15166_v28  ;;  %6753 = vmax.xlane.f32.xlu1 %v6336_v50  ;;  %6751 = vmax.xlane.f32.xlu0 %v6335_v59  ;;  %v15894_v50 = vpop.f32.mrb[247].mxu0  ;;  %v17573_v59 = vld [vmem:[#allocation134_spill] sm:$0xff]  ;;  %v3612_v31 = vmax.f32 %v17574_v62, -1e+30 }
 0x480   : > { %v6614_v8 = vpop.xlane.xlu1 %6613  ;;  %v6612_v9 = vpop.xlane.xlu0 %6611  ;;  %v3613_v63 = vmax.f32 %v17573_v59, -1e+30 }
 0x481   : > { %v7927_v29 = vsel %vm7517_vm13, %v7926_v57, %v7922_v27  ;;  %v7034_v34 = vmax.f32 %v3611_v45, %v6614_v8  ;;  %v7033_v39 = vmax.f32 %v3610_v20, %v6612_v9  ;;  %v17576_v8 = vld [vmem:[#allocation138_spill] sm:$0xff] }
 0x482   : > { %v7932_v40 = vsel %vm17572_vm14, %v7931_v38, %v7927_v29  ;;  %vm17575_vm14 = vcmask 786112   ;;  %v3615_v9 = vmax.f32 %v17576_v8, -1e+30 }
 0x483   : > { %v7941_v61 = vrot.slane %v7034_v34, %v15187_v15  ;;  %v7936_v58 = vrot.slane %v7033_v39, %v15193_v48  ;;  %6757 = vmax.xlane.f32.xlu1 %v6338_v60  ;;  %6755 = vmax.xlane.f32.xlu0 %v6337_v35  ;;  %v17577_v60 = vld [vmem:[#allocation139_spill] sm:$0xff]  ;;  %v6341_v39 = vsel %vm6169_vm4, %v15381_v2, -1e+30  ;;  %v6344_v2 = vsel %vm6170_vm5, %v15388_v55, -1e+30  ;;  %v17582_v55 = vld [vmem:[#allocation145_spill] sm:$0xff] }
 0x484   : > { %v6618_v27 = vpop.xlane.xlu1 %6617  ;;  %v6616_v45 = vpop.xlane.xlu0 %6615  ;;  %v3614_v35 = vmax.f32 %v17577_v60, -1e+30 }
 0x485   : > { %v7937_v25 = vsel %vm7531_vm15, %v7936_v58, %v7932_v40  ;;  %v7036_v20 = vmax.f32 %v3613_v63, %v6618_v27  ;;  %v7035_v38 = vmax.f32 %v3612_v31, %v6616_v45  ;;  %v15919_v31 = vpop.f32.mrb[246].mxu1 }
 0x486   : > { %v7942_v57 = vsel %vm17575_vm14, %v7941_v61, %v7937_v25  ;;  %v15922_v58 = vpop.f32.mrb[247].mxu1  ;;  %vm16847_vm14 = vcmask 1045509  }
 0x487   : > { %v7951_v29 = vrot.slane %v7036_v20, %v15212_v44  ;;  %v7946_v24 = vrot.slane %v7035_v38, %v15218_v56  ;;  %6761 = vmax.xlane.f32.xlu1 %v6340_v10  ;;  %6759 = vmax.xlane.f32.xlu0 %v6339_v41  ;;  %v17578_v10 = vld [vmem:[#allocation140_spill] sm:$0xff]  ;;  %v17579_v41 = vld [vmem:[#allocation141_spill] sm:$0xff] }
 0x488   : > { %v6622_v34 = vpop.xlane.xlu1 %6621  ;;  %v6620_v40 = vpop.xlane.xlu0 %6619  ;;  %v3617_v27 = vmax.f32 %v17578_v10, -1e+30  ;;  %v3616_v12 = vmax.f32 %v17579_v41, -1e+30  ;;  %v17580_v38 = vld [vmem:[#allocation65_spill] sm:$0xff] }
 0x489   : > { %v7947_v59 = vsel %vm7545_vm1, %v7946_v24, %v7942_v57  ;;  %v7038_v63 = vmax.f32 %v3615_v9, %v6622_v34  ;;  %v7037_v62 = vmax.f32 %v3614_v35, %v6620_v40  ;;  %v6343_v57 = vsel %vm6170_vm5, %v17580_v38, -1e+30  ;;  %v17581_v24 = vld [vmem:[#allocation81_spill] sm:$0xff] }
 0x48a   : > { %v7952_v61 = vsel %vm7552_vm2, %v7951_v29, %v7947_v59  ;;  %v15935_v29 = vpop.f32.mrb[248].mxu0  ;;  %v3618_v40 = vmax.f32 %v17582_v55, -1e+30  ;;  %v17584_v41 = vld [vmem:[#allocation69_spill] sm:$0xff] }
 0x48b   : > { %v7961_v45 = vrot.slane %v7038_v63, %v15236_v52  ;;  %v7956_v25 = vrot.slane %v7037_v62, %v15241_v14  ;;  %6765 = vmax.xlane.f32.xlu1 %v6342_v22  ;;  %6763 = vmax.xlane.f32.xlu0 %v6341_v39  ;;  %v3619_v22 = vmax.f32 %v17581_v24, -1e+30  ;;  %v15939_v39 = vpop.f32.mrb[249].mxu0  ;;  %v17588_v55 = vld [vmem:[#allocation73_spill] sm:$0xff] }
 0x48c   : > { %v6626_v20 = vpop.xlane.xlu1 %6625  ;;  %v6624_v8 = vpop.xlane.xlu0 %6623 }
 0x48d   : > { %v7957_v9 = vsel %vm7559_vm3, %v7956_v25, %v7952_v61  ;;  %v7040_v60 = vmax.f32 %v3617_v27, %v6626_v20  ;;  %v7039_v35 = vmax.f32 %v3616_v12, %v6624_v8  ;;  %v17583_v61 = vld [vmem:[#allocation68_spill] sm:$0xff]  ;;  %v6345_v12 = vsel %vm6170_vm5, %v17584_v41, -1e+30  ;;  %v17586_v8 = vld [vmem:[#allocation150_spill] sm:$0xff] }
 0x48e   : > { %v7962_v34 = vsel %vm7566_vm0, %v7961_v45, %v7957_v9  ;;  %v6346_v10 = vsel %vm6170_vm5, %v17583_v61, -1e+30  ;;  %v3620_v9 = vmax.f32 %v17586_v8, -1e+30 }
 0x48f   : > { %v7970_v59 = vrot.slane %v7040_v60, %v15067_v37  ;;  %v7966_v63 = vrot.slane %v7039_v35, %v15071_v26  ;;  %6769 = vmax.xlane.f32.xlu1 %v6344_v2  ;;  %6767 = vmax.xlane.f32.xlu0 %v6343_v57  ;;  %v15946_v62 = vsel %vm16847_vm14, %v7962_v34, %v15821_v18  ;;  %v17585_v2 = vld [vmem:[#allocation86_spill] sm:$0xff]  ;;  %v17587_v35 = vld [vmem:[#allocation72_spill] sm:$0xff]  ;;  %vm17604_vm14 = vcmask 654912  }
 0x490   : > { %v6630_v27 = vpop.xlane.xlu1 %6629  ;;  %v6628_v45 = vpop.xlane.xlu0 %6627  ;;  %v3621_v57 = vmax.f32 %v17585_v2, -1e+30  ;;  %v6348_v24 = vsel %vm6170_vm5, %v17587_v35, -1e+30  ;;  %v17592_v35 = vld [vmem:[#allocation43_spill] sm:$0xff] }
 0x491   : > { %v7971_v25 = vsel %vm7468_vm6, %v7970_v59, %v7966_v63  ;;  %v7042_v20 = vmax.f32 %v3619_v22, %v6630_v27  ;;  %v7041_v38 = vmax.f32 %v3618_v40, %v6628_v45  ;;  %v6347_v22 = vsel %vm6170_vm5, %v17588_v55, -1e+30  ;;  %v15966_v27 = vpop.f32.mrb[248].mxu1 }
 0x492   : > { %17589 = vst [vmem:[#allocation80_spill] sm:$0xff] %v15966_v27  ;;  %v17602_v27 = vld [vmem:[#allocation54_spill] sm:$0xff] }
 0x493   : > { %v7980_v18 = vrot.slane %v7042_v20, %v15089_v53  ;;  %v7975_v60 = vrot.slane %v7041_v38, %v15095_v51  ;;  %6773 = vmax.xlane.f32.xlu1 %v6346_v10  ;;  %6771 = vmax.xlane.f32.xlu0 %v6345_v12  ;;  %v15969_v10 = vpop.f32.mrb[249].mxu1  ;;  %v17590_v12 = vld [vmem:[#allocation90_spill] sm:$0xff] }
 0x494   : > { %v6634_v34 = vpop.xlane.xlu1 %6633  ;;  %v6632_v40 = vpop.xlane.xlu0 %6631  ;;  %v3623_v45 = vmax.f32 %v17590_v12, -1e+30  ;;  %v17591_v20 = vld [vmem:[#allocation154_spill] sm:$0xff]  ;;  %v17596_v12 = vld [vmem:[#allocation159_spill] sm:$0xff] }
 0x495   : > { %v7976_v59 = vsel %vm7475_vm7, %v7975_v60, %v7971_v25  ;;  %v7044_v63 = vmax.f32 %v3621_v57, %v6634_v34  ;;  %v7043_v61 = vmax.f32 %v3620_v9, %v6632_v40  ;;  %v3622_v38 = vmax.f32 %v17591_v20, -1e+30  ;;  %v17593_v9 = vld [vmem:[#allocation47_spill] sm:$0xff] }
 0x496   : > { %v7981_v41 = vsel %vm7482_vm8, %v7980_v18, %v7976_v59  ;;  %v6350_v25 = vsel %vm6170_vm5, %v17592_v35, -1e+30  ;;  %v6349_v18 = vsel %vm6170_vm5, %v17593_v9, -1e+30  ;;  %v15982_v59 = vpop.f32.mrb[250].mxu0  ;;  %v17597_v9 = vld [vmem:[#allocation48_spill] sm:$0xff] }
 0x497   : > { %v7990_v2 = vrot.slane %v7044_v63, %v15112_v11  ;;  %v7985_v8 = vrot.slane %v7043_v61, %v15119_v19  ;;  %6777 = vmax.xlane.f32.xlu1 %v6348_v24  ;;  %6775 = vmax.xlane.f32.xlu0 %v6347_v22  ;;  %17594 = vst [vmem:[#allocation280_spill] sm:$0xff] %v15982_v59  ;;  %v15985_v24 = vpop.f32.mrb[251].mxu0  ;;  %v17595_v22 = vld [vmem:[#allocation93_spill] sm:$0xff]  ;;  %v3624_v20 = vmax.f32 %v17596_v12, -1e+30 }
 0x498   : > { %v6638_v57 = vpop.xlane.xlu1 %6637  ;;  %v6636_v60 = vpop.xlane.xlu0 %6635  ;;  %v3625_v61 = vmax.f32 %v17595_v22, -1e+30  ;;  %v17599_v22 = vld [vmem:[#allocation97_spill] sm:$0xff] }
 0x499   : > { %v7986_v34 = vsel %vm7489_vm9, %v7985_v8, %v7981_v41  ;;  %v7046_v55 = vmax.f32 %v3623_v45, %v6638_v57  ;;  %v7045_v40 = vmax.f32 %v3622_v38, %v6636_v60  ;;  %v6352_v41 = vsel %vm6169_vm4, %v17597_v9, -1e+30  ;;  %v17598_v45 = vld [vmem:[#allocation49_spill] sm:$0xff] }
 0x49a   : > { %v7991_v63 = vsel %vm7496_vm10, %v7990_v2, %v7986_v34  ;;  %v6351_v38 = vsel %vm6169_vm4, %v17598_v45, -1e+30  ;;  %v17601_v59 = vld [vmem:[#allocation53_spill] sm:$0xff] }
 0x49b   : > { %v8000_v35 = vrot.slane %v7046_v55, %v15135_v1  ;;  %v7995_v32 = vrot.slane %v7045_v40, %v15138_v30  ;;  %6781 = vmax.xlane.f32.xlu1 %v6350_v25  ;;  %6779 = vmax.xlane.f32.xlu0 %v6349_v18  ;;  %v3627_v40 = vmax.f32 %v17599_v22, -1e+30  ;;  %v17600_v25 = vld [vmem:[#allocation163_spill] sm:$0xff]  ;;  %v6354_v45 = vsel %vm6169_vm4, %v17601_v59, -1e+30 }
 0x49c   : > { %v6642_v2 = vpop.xlane.xlu1 %6641  ;;  %v6640_v8 = vpop.xlane.xlu0 %6639  ;;  %v3626_v18 = vmax.f32 %v17600_v25, -1e+30  ;;  %v17608_v25 = vld [vmem:[#allocation58_spill] sm:$0xff] }
 0x49d   : > { %v7996_v57 = vsel %vm7503_vm11, %v7995_v32, %v7991_v63  ;;  %v7048_v60 = vmax.f32 %v3625_v61, %v6642_v2  ;;  %v7047_v34 = vmax.f32 %v3624_v20, %v6640_v8  ;;  %v6353_v32 = vsel %vm6169_vm4, %v17602_v27, -1e+30  ;;  %v16010_v8 = vpop.f32.mrb[250].mxu1 }
 0x49e   : > { %v8001_v55 = vsel %vm7510_vm12, %v8000_v35, %v7996_v57  ;;  %17603 = vst [vmem:[#allocation281_spill] sm:$0xff] %v16010_v8 }
 0x49f   : > { %v8010_v12 = vrot.slane %v7048_v60, %v15160_v16  ;;  %v8005_v9 = vrot.slane %v7047_v34, %v15166_v28  ;;  %6785 = vmax.xlane.f32.xlu1 %v6352_v41  ;;  %6783 = vmax.xlane.f32.xlu0 %v6351_v38  ;;  %v16013_v41 = vpop.f32.mrb[251].mxu1  ;;  %v17606_v38 = vld [vmem:[#allocation101_spill] sm:$0xff]  ;;  %v17607_v34 = vld [vmem:[#allocation166_spill] sm:$0xff] }
 0x4a0   : > { %v6646_v63 = vpop.xlane.xlu1 %6645  ;;  %v6644_v61 = vpop.xlane.xlu0 %6643  ;;  %17605 = vst [vmem:[#allocation17_spill] sm:$0xff] %v16013_v41  ;;  %v3629_v60 = vmax.f32 %v17606_v38, -1e+30  ;;  %v3628_v59 = vmax.f32 %v17607_v34, -1e+30  ;;  %v17614_v34 = vld [vmem:[#allocation169_spill] sm:$0xff] }
 0x4a1   : > { %v8006_v20 = vsel %vm7517_vm13, %v8005_v9, %v8001_v55  ;;  %v7050_v35 = vmax.f32 %v3627_v40, %v6646_v63  ;;  %v7049_v2 = vmax.f32 %v3626_v18, %v6644_v61  ;;  %v6356_v55 = vsel %vm6169_vm4, %v17608_v25, -1e+30  ;;  %v17609_v40 = vld [vmem:[#allocation59_spill] sm:$0xff]  ;;  %v16026_v38 = vpop.f32.mrb[252].mxu0  ;;  %v17615_v41 = vld [vmem:[#allocation256_spill] sm:$0xff] }
 0x4a2   : > { %v8011_v57 = vsel %vm17604_vm14, %v8010_v12, %v8006_v20  ;;  %v6355_v18 = vsel %vm6169_vm4, %v17609_v40, -1e+30  ;;  %17610 = vst [vmem:[#allocation19_spill] sm:$0xff] %v16026_v38  ;;  %vm17611_vm14 = vcmask 786112   ;;  %v3630_v25 = vmax.f32 %v17614_v34, -1e+30 }
 0x4a3   : > { %v8020_v22 = vrot.slane %v7050_v35, %v15187_v15  ;;  %v8015_v27 = vrot.slane %v7049_v2, %v15193_v48  ;;  %6789 = vmax.xlane.f32.xlu1 %v6354_v45  ;;  %6787 = vmax.xlane.f32.xlu0 %v6353_v32  ;;  %v16029_v45 = vpop.f32.mrb[253].mxu0  ;;  %v17613_v32 = vld [vmem:[#allocation105_spill] sm:$0xff]  ;;  %v17619_v38 = vld [vmem:[#allocation63_spill] sm:$0xff] }
 0x4a4   : > { %v6650_v12 = vpop.xlane.xlu1 %6649  ;;  %v6648_v9 = vpop.xlane.xlu0 %6647  ;;  %17612 = vst [vmem:[#allocation282_spill] sm:$0xff] %v16029_v45  ;;  %v3631_v2 = vmax.f32 %v17613_v32, -1e+30  ;;  %v17617_v32 = vld [vmem:[#allocation78_spill] sm:$0xff] }
 0x4a5   : > { %v8016_v63 = vsel %vm7531_vm15, %v8015_v27, %v8011_v57  ;;  %v7052_v61 = vmax.f32 %v3629_v60, %v6650_v12  ;;  %v7051_v20 = vmax.f32 %v3628_v59, %v6648_v9  ;;  %v6358_v57 = vsel %vm6169_vm4, %v17615_v41, -1e+30  ;;  %v17616_v60 = vld [vmem:[#allocation62_spill] sm:$0xff] }
 0x4a6   : > { %v8021_v35 = vsel %vm17611_vm14, %v8020_v22, %v8016_v63  ;;  %v6357_v59 = vsel %vm6169_vm4, %v17616_v60, -1e+30  ;;  %v6360_v60 = vsel %vm6170_vm5, %v17619_v38, -1e+30  ;;  %v17620_v45 = vld [vmem:[#allocation66_spill] sm:$0xff]  ;;  %vm16848_vm14 = vcmask 1046534  }
 0x4a7   : > { %v8030_v8 = vrot.slane %v7052_v61, %v15212_v44  ;;  %v8025_v40 = vrot.slane %v7051_v20, %v15218_v56  ;;  %6793 = vmax.xlane.f32.xlu1 %v6356_v55  ;;  %6791 = vmax.xlane.f32.xlu0 %v6355_v18  ;;  %v3633_v20 = vmax.f32 %v17617_v32, -1e+30  ;;  %v17618_v55 = vld [vmem:[#allocation142_spill] sm:$0xff]  ;;  %v17624_v38 = vld [vmem:[#allocation85_spill] sm:$0xff] }
 0x4a8   : > { %v6654_v22 = vpop.xlane.xlu1 %6653  ;;  %v6652_v27 = vpop.xlane.xlu0 %6651  ;;  %v3632_v18 = vmax.f32 %v17618_v55, -1e+30 }
 0x4a9   : > { %v8026_v12 = vsel %vm7545_vm1, %v8025_v40, %v8021_v35  ;;  %v7054_v9 = vmax.f32 %v3631_v2, %v6654_v22  ;;  %v7053_v63 = vmax.f32 %v3630_v25, %v6652_v27  ;;  %v6359_v35 = vsel %vm6170_vm5, %v17620_v45, -1e+30  ;;  %v16054_v27 = vpop.f32.mrb[252].mxu1 }
 0x4aa   : > { %v8031_v61 = vsel %vm7552_vm2, %v8030_v8, %v8026_v12  ;;  %17621 = vst [vmem:[#allocation283_spill] sm:$0xff] %v16054_v27  ;;  %v17622_v12 = vld [vmem:[#allocation84_spill] sm:$0xff] }
 0x4ab   : > { %v8040_v34 = vrot.slane %v7054_v9, %v15236_v52  ;;  %v8035_v41 = vrot.slane %v7053_v63, %v15241_v14  ;;  %6797 = vmax.xlane.f32.xlu1 %v6358_v57  ;;  %6795 = vmax.xlane.f32.xlu0 %v6357_v59  ;;  %v3635_v57 = vmax.f32 %v17622_v12, -1e+30  ;;  %v16058_v9 = vpop.f32.mrb[253].mxu1  ;;  %v3634_v63 = vmax.f32 %v17624_v38, -1e+30  ;;  %v17630_v12 = vld [vmem:[#allocation89_spill] sm:$0xff] }
 0x4ac   : > { %v6658_v2 = vpop.xlane.xlu1 %6657  ;;  %v6656_v8 = vpop.xlane.xlu0 %6655  ;;  %17623 = vst [vmem:[#allocation21_spill] sm:$0xff] %v16058_v9 }
 0x4ad   : > { %v8036_v25 = vsel %vm7559_vm3, %v8035_v41, %v8031_v61  ;;  %v7056_v40 = vmax.f32 %v3633_v20, %v6658_v2  ;;  %v7055_v22 = vmax.f32 %v3632_v18, %v6656_v8  ;;  %v17625_v20 = vld [vmem:[#allocation67_spill] sm:$0xff]  ;;  %v17626_v18 = vld [vmem:[#allocation70_spill] sm:$0xff] }
 0x4ae   : > { %v8041_v59 = vsel %vm7566_vm0, %v8040_v34, %v8036_v25  ;;  %v6362_v55 = vsel %vm6170_vm5, %v17625_v20, -1e+30  ;;  %v6361_v34 = vsel %vm6170_vm5, %v17626_v18, -1e+30  ;;  %v17631_v18 = vld [vmem:[#allocation71_spill] sm:$0xff] }
 0x4af   : > { %v8049_v32 = vrot.slane %v7056_v40, %v15067_v37  ;;  %v8045_v45 = vrot.slane %v7055_v22, %v15071_v26  ;;  %6801 = vmax.xlane.f32.xlu1 %v6360_v60  ;;  %6799 = vmax.xlane.f32.xlu0 %v6359_v35  ;;  %v16065_v61 = vsel %vm16848_vm14, %v8041_v59, %v15946_v62  ;;  %v16074_v60 = vpop.f32.mrb[254].mxu0  ;;  %v17629_v62 = vld [vmem:[#allocation88_spill] sm:$0xff]  ;;  %v3636_v59 = vmax.f32 %v17630_v12, -1e+30 }
 0x4b0   : > { %v6662_v41 = vpop.xlane.xlu1 %6661  ;;  %v6660_v2 = vpop.xlane.xlu0 %6659  ;;  %17627 = vst [vmem:[#allocation23_spill] sm:$0xff] %v16074_v60  ;;  %v3637_v22 = vmax.f32 %v17629_v62, -1e+30  ;;  %v17633_v60 = vld [vmem:[#allocation92_spill] sm:$0xff]  ;;  %vm17647_vm14 = vcmask 654912  }
 0x4b1   : > { %v8050_v8 = vsel %vm7468_vm6, %v8049_v32, %v8045_v45  ;;  %v7058_v25 = vmax.f32 %v3635_v57, %v6662_v41  ;;  %v7057_v40 = vmax.f32 %v3634_v63, %v6660_v2  ;;  %v16076_v35 = vpop.f32.mrb[255].mxu0  ;;  %v6364_v32 = vsel %vm6170_vm5, %v17631_v18, -1e+30  ;;  %v17632_v57 = vld [vmem:[#allocation74_spill] sm:$0xff] }
 0x4b2   : > { %17628 = vst [vmem:[#allocation284_spill] sm:$0xff] %v16076_v35  ;;  %v6363_v63 = vsel %vm6170_vm5, %v17632_v57, -1e+30  ;;  %v16094_v35 = vpop.f32.mrb[254].mxu1  ;;  %v17636_v57 = vld [vmem:[#allocation75_spill] sm:$0xff] }
 0x4b3   : > { %v8059_v38 = vrot.slane %v7058_v25, %v15089_v53  ;;  %v8054_v20 = vrot.slane %v7057_v40, %v15095_v51  ;;  %6805 = vmax.xlane.f32.xlu1 %v6362_v55  ;;  %6803 = vmax.xlane.f32.xlu0 %v6361_v34  ;;  %v3639_v40 = vmax.f32 %v17633_v60, -1e+30  ;;  %v17634_v55 = vld [vmem:[#allocation156_spill] sm:$0xff]  ;;  %17635 = vst [vmem:[#allocation285_spill] sm:$0xff] %v16094_v35 }
 0x4b4   : > { %v6666_v45 = vpop.xlane.xlu1 %6665  ;;  %v6664_v41 = vpop.xlane.xlu0 %6663  ;;  %v3638_v34 = vmax.f32 %v17634_v55, -1e+30 }
 0x4b5   : > { %v8055_v2 = vsel %vm7475_vm7, %v8054_v20, %v8050_v8  ;;  %v7060_v62 = vmax.f32 %v3637_v22, %v6666_v45  ;;  %v7059_v12 = vmax.f32 %v3636_v59, %v6664_v41  ;;  %v6366_v8 = vsel %vm6170_vm5, %v17636_v57, -1e+30  ;;  %v17637_v22 = vld [vmem:[#allocation76_spill] sm:$0xff] }
 0x4b6   : > { %v8060_v25 = vsel %vm7482_vm8, %v8059_v38, %v8055_v2  ;;  %v6365_v59 = vsel %vm6170_vm5, %v17637_v22, -1e+30  ;;  %v16103_v2 = vpop.f32.mrb[255].mxu1  ;;  %v17641_v22 = vld [vmem:[#allocation77_spill] sm:$0xff] }
 0x4b7   : > { %v8069_v27 = vrot.slane %v7060_v62, %v15112_v11  ;;  %v8064_v18 = vrot.slane %v7059_v12, %v15119_v19  ;;  %6809 = vmax.xlane.f32.xlu1 %v6364_v32  ;;  %6807 = vmax.xlane.f32.xlu0 %v6363_v63  ;;  %17638 = vst [vmem:[#allocation25_spill] sm:$0xff] %v16103_v2  ;;  %v17639_v63 = vld [vmem:[#allocation95_spill] sm:$0xff]  ;;  %v17640_v12 = vld [vmem:[#allocation96_spill] sm:$0xff] }
 0x4b8   : > { %v6670_v38 = vpop.xlane.xlu1 %6669  ;;  %v6668_v60 = vpop.xlane.xlu0 %6667  ;;  %v3641_v62 = vmax.f32 %v17639_v63, -1e+30  ;;  %v3640_v55 = vmax.f32 %v17640_v12, -1e+30  ;;  %v17643_v63 = vld [vmem:[#allocation99_spill] sm:$0xff] }
 0x4b9   : > { %v8065_v20 = vsel %vm7489_vm9, %v8064_v18, %v8060_v25  ;;  %v7062_v45 = vmax.f32 %v3639_v40, %v6670_v38  ;;  %v7061_v41 = vmax.f32 %v3638_v34, %v6668_v60  ;;  %v6368_v25 = vsel %vm6169_vm4, %v17641_v22, -1e+30  ;;  %v17642_v34 = vld [vmem:[#allocation82_spill] sm:$0xff]  ;;  %v17645_v2 = vld [vmem:[#allocation83_spill] sm:$0xff] }
 0x4ba   : > { %v8070_v32 = vsel %vm7496_vm10, %v8069_v27, %v8065_v20  ;;  %v6367_v18 = vsel %vm6169_vm4, %v17642_v34, -1e+30  ;;  %v6370_v34 = vsel %vm6169_vm4, %v17645_v2, -1e+30 }
 0x4bb   : > { %v8079_v57 = vrot.slane %v7062_v45, %v15135_v1  ;;  %v8074_v35 = vrot.slane %v7061_v41, %v15138_v30  ;;  %6813 = vmax.xlane.f32.xlu1 %v6366_v8  ;;  %6811 = vmax.xlane.f32.xlu0 %v6365_v59  ;;  %v3643_v41 = vmax.f32 %v17643_v63, -1e+30  ;;  %v17644_v8 = vld [vmem:[#allocation100_spill] sm:$0xff] }
 0x4bc   : > { %v6674_v40 = vpop.xlane.xlu1 %6673  ;;  %v6672_v27 = vpop.xlane.xlu0 %6671  ;;  %v3642_v59 = vmax.f32 %v17644_v8, -1e+30  ;;  %v17650_v63 = vld [vmem:[#allocation20_spill] sm:$0xff] }
 0x4bd   : > { %v8075_v38 = vsel %vm7503_vm11, %v8074_v35, %v8070_v32  ;;  %v7064_v60 = vmax.f32 %v3641_v62, %v6674_v40  ;;  %v7063_v20 = vmax.f32 %v3640_v55, %v6672_v27  ;;  %v17646_v35 = vld [vmem:[#allocation143_spill] sm:$0xff]  ;;  %v6372_v8 = vsel %vm6169_vm4, %v17650_v63, -1e+30 }
 0x4be   : > { %v8080_v45 = vsel %vm7510_vm12, %v8079_v57, %v8075_v38  ;;  %v6369_v32 = vsel %vm6169_vm4, %v17646_v35, -1e+30  ;;  %v17648_v38 = vld [vmem:[#allocation103_spill] sm:$0xff] }
 0x4bf   : > { %v8089_v12 = vrot.slane %v7064_v60, %v15160_v16  ;;  %v8084_v22 = vrot.slane %v7063_v20, %v15166_v28  ;;  %6817 = vmax.xlane.f32.xlu1 %v6368_v25  ;;  %6815 = vmax.xlane.f32.xlu0 %v6367_v18  ;;  %v3645_v60 = vmax.f32 %v17648_v38, -1e+30  ;;  %v17649_v25 = vld [vmem:[#allocation104_spill] sm:$0xff] }
 0x4c0   : > { %v6678_v9 = vpop.xlane.xlu1 %6677  ;;  %v6676_v62 = vpop.xlane.xlu0 %6675  ;;  %v3644_v18 = vmax.f32 %v17649_v25, -1e+30  ;;  %v17655_v25 = vld [vmem:[#allocation268_spill] sm:$0xff] }
 0x4c1   : > { %v8085_v55 = vsel %vm7517_vm13, %v8084_v22, %v8080_v45  ;;  %v7066_v57 = vmax.f32 %v3643_v41, %v6678_v9  ;;  %v7065_v40 = vmax.f32 %v3642_v59, %v6676_v62  ;;  %v17651_v45 = vld [vmem:[#allocation87_spill] sm:$0xff]  ;;  %v6374_v63 = vsel %vm6169_vm4, %v17655_v25, -1e+30 }
 0x4c2   : > { %v8090_v27 = vsel %vm17647_vm14, %v8089_v12, %v8085_v55  ;;  %v6371_v9 = vsel %vm6169_vm4, %v17651_v45, -1e+30  ;;  %vm17652_vm14 = vcmask 786112   ;;  %v17653_v55 = vld [vmem:[#allocation40_spill] sm:$0xff] }
 0x4c3   : > { %v8099_v20 = vrot.slane %v7066_v57, %v15187_v15  ;;  %v8094_v2 = vrot.slane %v7065_v40, %v15193_v48  ;;  %6821 = vmax.xlane.f32.xlu1 %v6370_v34  ;;  %6819 = vmax.xlane.f32.xlu0 %v6369_v32  ;;  %v3647_v57 = vmax.f32 %v17653_v55, -1e+30  ;;  %v17654_v34 = vld [vmem:[#allocation170_spill] sm:$0xff]  ;;  %v17658_v55 = vld [vmem:[#allocation91_spill] sm:$0xff] }
 0x4c4   : > { %v6682_v35 = vpop.xlane.xlu1 %6681  ;;  %v6680_v41 = vpop.xlane.xlu0 %6679  ;;  %v3646_v32 = vmax.f32 %v17654_v34, -1e+30 }
 0x4c5   : > { %v8095_v59 = vsel %vm7531_vm15, %v8094_v2, %v8090_v27  ;;  %v7068_v12 = vmax.f32 %v3645_v60, %v6682_v35  ;;  %v7067_v22 = vmax.f32 %v3644_v18, %v6680_v41  ;;  %v6373_v27 = vsel %vm6169_vm4, %v15645_v3, -1e+30  ;;  %v17656_v41 = vld [vmem:[#allocation171_spill] sm:$0xff] }
 0x4c6   : > { %v8100_v62 = vsel %vm17652_vm14, %v8099_v20, %v8095_v59  ;;  %v6376_v3 = vsel %vm6170_vm5, %v17658_v55, -1e+30  ;;  %vm16849_vm14 = vcmask 1047559  }
 0x4c7   : > { %v8109_v40 = vrot.slane %v7068_v12, %v15212_v44  ;;  %v8104_v38 = vrot.slane %v7067_v22, %v15218_v56  ;;  %6825 = vmax.xlane.f32.xlu1 %v6372_v8  ;;  %6823 = vmax.xlane.f32.xlu0 %v6371_v9  ;;  %v3649_v8 = vmax.f32 %v17656_v41, -1e+30  ;;  %v17657_v9 = vld [vmem:[#allocation172_spill] sm:$0xff] }
 0x4c8   : > { %v6686_v45 = vpop.xlane.xlu1 %6685  ;;  %v6684_v60 = vpop.xlane.xlu0 %6683  ;;  %v3648_v59 = vmax.f32 %v17657_v9, -1e+30 }
 0x4c9   : > { %v8105_v18 = vsel %vm7545_vm1, %v8104_v38, %v8100_v62  ;;  %v7070_v20 = vmax.f32 %v3647_v57, %v6686_v45  ;;  %v7069_v2 = vmax.f32 %v3646_v32, %v6684_v60  ;;  %v17659_v57 = vld [vmem:[#allocation147_spill] sm:$0xff]  ;;  %v7199_v45 = vld [vmem:[%s11371_s12] sm:$0xff] }
 0x4ca   : > { %v8110_v35 = vsel %vm7552_vm2, %v8109_v40, %v8105_v18  ;;  %v6375_v34 = vsel %vm6170_vm5, %v17659_v57, -1e+30  ;;  %v17660_v60 = vld [vmem:[#allocation175_spill] sm:$0xff] }
 0x4cb   : > { %v8119_v12 = vrot.slane %v7070_v20, %v15236_v52  ;;  %v8114_v22 = vrot.slane %v7069_v2, %v15241_v14  ;;  %6829 = vmax.xlane.f32.xlu1 %v6374_v63  ;;  %6827 = vmax.xlane.f32.xlu0 %v6373_v27  ;;  %v3651_v18 = vmax.f32 %v17660_v60, -1e+30  ;;  %v17661_v27 = vld [vmem:[#allocation176_spill] sm:$0xff] }
 0x4cc   : > { %v6690_v62 = vpop.xlane.xlu1 %6689  ;;  %v6688_v32 = vpop.xlane.xlu0 %6687  ;;  %v3650_v20 = vmax.f32 %v17661_v27, -1e+30 }
 0x4cd   : > { %v8115_v40 = vsel %vm7559_vm3, %v8114_v22, %v8110_v35  ;;  %v7072_v38 = vmax.f32 %v3649_v8, %v6690_v62  ;;  %v7071_v25 = vmax.f32 %v3648_v59, %v6688_v32  ;;  %v17662_v35 = vld [vmem:[#allocation94_spill] sm:$0xff]  ;;  %v17663_v22 = vld [vmem:[#allocation273_spill] sm:$0xff] }
 0x4ce   : > { %v8120_v63 = vsel %vm7566_vm0, %v8119_v12, %v8115_v40  ;;  %v6378_v8 = vsel %vm6170_vm5, %v17662_v35, -1e+30  ;;  %v6377_v12 = vsel %vm6170_vm5, %v17663_v22, -1e+30 }
 0x4cf   : > { %v8128_v2 = vrot.slane %v7072_v38, %v15067_v37  ;;  %v8124_v41 = vrot.slane %v7071_v25, %v15071_v26  ;;  %6833 = vmax.xlane.f32.xlu1 %v6376_v3  ;;  %6831 = vmax.xlane.f32.xlu0 %v6375_v34  ;;  %v8766_v9 = vsel %vm16849_vm14, %v8120_v63, %v16065_v61  ;;  %v17664_v3 = vld [vmem:[#allocation180_spill] sm:$0xff]  ;;  %v17665_v38 = vld [vmem:[#allocation181_spill] sm:$0xff]  ;;  %v17666_v63 = vld [vmem:[#allocation98_spill] sm:$0xff]  ;;  %vm17677_vm14 = vcmask 654912  }
 0x4d0   : > { %v6694_v59 = vpop.xlane.xlu1 %6693  ;;  %v6692_v55 = vpop.xlane.xlu0 %6691  ;;  %v8776_v62 = vmax.f32 %v7199_v45, %v8766_v9  ;;  %v3653_v34 = vmax.f32 %v17664_v3, -1e+30  ;;  %v3652_v61 = vmax.f32 %v17665_v38, -1e+30  ;;  %v6380_v27 = vsel %vm6170_vm5, %v17666_v63, -1e+30 }
 0x4d1   : > { %v8129_v57 = vsel %vm7468_vm6, %v8128_v2, %v8124_v41  ;;  %v7074_v32 = vmax.f32 %v3651_v18, %v6694_v59  ;;  %v7073_v40 = vmax.f32 %v3650_v20, %v6692_v55  ;;  %v6379_v18 = vsel %vm6170_vm5, %v15708_v4, -1e+30  ;;  %v17667_v59 = vld [vmem:[#allocation185_spill] sm:$0xff] }
 0x4d2   : > { %8778 = vst [vmem:[%s11371_s12] sm:$0xff] %v8776_v62  ;;  %v3655_v22 = vmax.f32 %v17667_v59, -1e+30  ;;  %v17672_v59 = vld [vmem:[#allocation18_spill] sm:$0xff] }
 0x4d3   : > { %v8138_v25 = vrot.slane %v7074_v32, %v15089_v53  ;;  %v8133_v60 = vrot.slane %v7073_v40, %v15095_v51  ;;  %6837 = vmax.xlane.f32.xlu1 %v6378_v8  ;;  %6835 = vmax.xlane.f32.xlu0 %v6377_v12  ;;  %v17668_v8 = vld [vmem:[#allocation186_spill] sm:$0xff]  ;;  %v17669_v32 = vld [vmem:[#allocation36_spill] sm:$0xff] }
 0x4d4   : > { %v6698_v45 = vpop.xlane.xlu1 %6697  ;;  %v6696_v20 = vpop.xlane.xlu0 %6695  ;;  %v3654_v12 = vmax.f32 %v17668_v8, -1e+30  ;;  %v6382_v4 = vsel %vm6170_vm5, %v17669_v32, -1e+30  ;;  %v17673_v8 = vld [vmem:[#allocation24_spill] sm:$0xff] }
 0x4d5   : > { %v8134_v2 = vsel %vm7475_vm7, %v8133_v60, %v8129_v57  ;;  %v7076_v41 = vmax.f32 %v3653_v34, %v6698_v45  ;;  %v7075_v9 = vmax.f32 %v3652_v61, %v6696_v20  ;;  %v6381_v57 = vsel %vm6170_vm5, %v15728_v43, -1e+30  ;;  %v17670_v60 = vld [vmem:[#allocation188_spill] sm:$0xff] }
 0x4d6   : > { %v8139_v35 = vsel %vm7482_vm8, %v8138_v25, %v8134_v2  ;;  %v3657_v63 = vmax.f32 %v17670_v60, -1e+30 }
 0x4d7   : > { %v8148_v55 = vrot.slane %v7076_v41, %v15112_v11  ;;  %v8143_v62 = vrot.slane %v7075_v9, %v15119_v19  ;;  %6841 = vmax.xlane.f32.xlu1 %v6380_v27  ;;  %6839 = vmax.xlane.f32.xlu0 %v6379_v18  ;;  %v17671_v27 = vld [vmem:[#allocation189_spill] sm:$0xff] }
 0x4d8   : > { %v6702_v40 = vpop.xlane.xlu1 %6701  ;;  %v6700_v3 = vpop.xlane.xlu0 %6699  ;;  %v3656_v45 = vmax.f32 %v17671_v27, -1e+30  ;;  %v17676_v27 = vld [vmem:[#allocation28_spill] sm:$0xff] }
 0x4d9   : > { %v8144_v34 = vsel %vm7489_vm9, %v8143_v62, %v8139_v35  ;;  %v7078_v38 = vmax.f32 %v3655_v22, %v6702_v40  ;;  %v7077_v61 = vmax.f32 %v3654_v12, %v6700_v3  ;;  %v6384_v22 = vsel %vm6169_vm4, %v17672_v59, -1e+30  ;;  %v17674_v62 = vld [vmem:[#allocation192_spill] sm:$0xff] }
 0x4da   : > { %v8149_v25 = vsel %vm7496_vm10, %v8148_v55, %v8144_v34  ;;  %v6383_v12 = vsel %vm6169_vm4, %v17673_v8, -1e+30  ;;  %v3659_v32 = vmax.f32 %v17674_v62, -1e+30 }
 0x4db   : > { %v8158_v18 = vrot.slane %v7078_v38, %v15135_v1  ;;  %v8153_v20 = vrot.slane %v7077_v61, %v15138_v30  ;;  %6845 = vmax.xlane.f32.xlu1 %v6382_v4  ;;  %6843 = vmax.xlane.f32.xlu0 %v6381_v57  ;;  %v17675_v4 = vld [vmem:[#allocation193_spill] sm:$0xff]  ;;  %v6399_v61 = vsel %vm6169_vm4, %v15767_v42, -1e+30 }
 0x4dc   : > { %v6706_v2 = vpop.xlane.xlu1 %6705  ;;  %v6704_v41 = vpop.xlane.xlu0 %6703  ;;  %v3658_v40 = vmax.f32 %v17675_v4, -1e+30 }
 0x4dd   : > { %v8154_v43 = vsel %vm7503_vm11, %v8153_v20, %v8149_v25  ;;  %v7080_v9 = vmax.f32 %v3657_v63, %v6706_v2  ;;  %v7079_v35 = vmax.f32 %v3656_v45, %v6704_v41  ;;  %v6385_v45 = vsel %vm6169_vm4, %v17676_v27, -1e+30  ;;  %v17678_v20 = vld [vmem:[#allocation196_spill] sm:$0xff]  ;;  %v17679_v41 = vld [vmem:[#allocation197_spill] sm:$0xff] }
 0x4de   : > { %v8159_v55 = vsel %vm7510_vm12, %v8158_v18, %v8154_v43  ;;  %v3661_v2 = vmax.f32 %v17678_v20, -1e+30  ;;  %v3660_v43 = vmax.f32 %v17679_v41, -1e+30 }
 0x4df   : > { %v8168_v57 = vrot.slane %v7080_v9, %v15160_v16  ;;  %v8163_v3 = vrot.slane %v7079_v35, %v15166_v28  ;;  %6849 = vmax.xlane.f32.xlu1 %v6384_v22  ;;  %6847 = vmax.xlane.f32.xlu0 %v6383_v12 }
 0x4e0   : > { %v6710_v34 = vpop.xlane.xlu1 %6709  ;;  %v6708_v38 = vpop.xlane.xlu0 %6707 }
 0x4e1   : > { %v8164_v25 = vsel %vm7517_vm13, %v8163_v3, %v8159_v55  ;;  %v7082_v60 = vmax.f32 %v3659_v32, %v6710_v34  ;;  %v7081_v63 = vmax.f32 %v3658_v40, %v6708_v38  ;;  %v17680_v55 = vld [vmem:[#allocation270_spill] sm:$0xff]  ;;  %v6400_v32 = vsel %vm6169_vm4, %v15762_v6, -1e+30  ;;  %v17682_v40 = vld [vmem:[#allocation200_spill] sm:$0xff]  ;;  %v17683_v3 = vld [vmem:[#allocation201_spill] sm:$0xff] }
 0x4e2   : > { %v8169_v18 = vsel %vm17677_vm14, %v8168_v57, %v8164_v25  ;;  %v6386_v62 = vsel %vm6169_vm4, %v17680_v55, -1e+30  ;;  %vm17681_vm14 = vcmask 786112   ;;  %v3663_v57 = vmax.f32 %v17682_v40, -1e+30 }
 0x4e3   : > { %v8178_v9 = vrot.slane %v7082_v60, %v15187_v15  ;;  %v8173_v35 = vrot.slane %v7081_v63, %v15193_v48  ;;  %6879 = vmax.xlane.f32.xlu1 %v6399_v61  ;;  %6851 = vmax.xlane.f32.xlu0 %v6385_v45  ;;  %v3662_v34 = vmax.f32 %v17683_v3, -1e+30  ;;  %v6401_v60 = vsel %vm6169_vm4, %v15800_v54, -1e+30 }
 0x4e4   : > { %v6714_v42 = vpop.xlane.xlu1 %6713  ;;  %v6712_v59 = vpop.xlane.xlu0 %6711  ;;  %v6415_v6 = vsel %vm6169_vm4, %v15803_v17, -1e+30 }
 0x4e5   : > { %v8174_v22 = vsel %vm7531_vm15, %v8173_v35, %v8169_v18  ;;  %v7084_v8 = vmax.f32 %v3661_v2, %v6714_v42  ;;  %v7083_v12 = vmax.f32 %v3660_v43, %v6712_v59  ;;  %v17684_v2 = vld [vmem:[#allocation173_spill] sm:$0xff]  ;;  %v17685_v43 = vld [vmem:[#allocation174_spill] sm:$0xff] }
 0x4e6   : > { %v8179_v4 = vsel %vm17681_vm14, %v8178_v9, %v8174_v22  ;;  %v3665_v41 = vmax.f32 %v17684_v2, -1e+30  ;;  %v3664_v9 = vmax.f32 %v17685_v43, -1e+30  ;;  %vm17700_vm14 = vcmask 654912  }
 0x4e7   : > { %v8188_v38 = vrot.slane %v7084_v8, %v15212_v44  ;;  %v8183_v61 = vrot.slane %v7083_v12, %v15218_v56  ;;  %6853 = vmax.xlane.f32.xlu1 %v6386_v62  ;;  %6881 = vmax.xlane.f32.xlu0 %v6400_v32  ;;  %v17686_v12 = vld [vmem:[#allocation32_spill] sm:$0xff]  ;;  %v6416_v62 = vsel %vm6169_vm4, %v15798_v33, -1e+30 }
 0x4e8   : > { %v6718_v25 = vpop.xlane.xlu1 %6717  ;;  %v6716_v63 = vpop.xlane.xlu0 %6715  ;;  %v6387_v55 = vsel %vm6169_vm4, %v17686_v12, -1e+30 }
 0x4e9   : > { %v8184_v27 = vsel %vm7545_vm1, %v8183_v61, %v8179_v4  ;;  %v7086_v45 = vmax.f32 %v3663_v57, %v6718_v25  ;;  %v7085_v18 = vmax.f32 %v3662_v34, %v6716_v63  ;;  %v17687_v4 = vld [vmem:[#allocation177_spill] sm:$0xff]  ;;  %v17688_v57 = vld [vmem:[#allocation178_spill] sm:$0xff] }
 0x4ea   : > { %v8189_v20 = vsel %vm7552_vm2, %v8188_v38, %v8184_v27  ;;  %v3667_v40 = vmax.f32 %v17687_v4, -1e+30  ;;  %v3666_v3 = vmax.f32 %v17688_v57, -1e+30  ;;  %v6402_v27 = vsel %vm6169_vm4, %v15789_v7, -1e+30 }
 0x4eb   : > { %v8198_v35 = vrot.slane %v7086_v45, %v15236_v52  ;;  %v8193_v42 = vrot.slane %v7085_v18, %v15241_v14  ;;  %6911 = vmax.xlane.f32.xlu1 %v6415_v6  ;;  %6883 = vmax.xlane.f32.xlu0 %v6401_v60  ;;  %v6417_v60 = vsel %vm6169_vm4, %v15834_v36, -1e+30  ;;  %v17689_v45 = vld [vmem:[#allocation182_spill] sm:$0xff] }
 0x4ec   : > { %v6722_v54 = vpop.xlane.xlu1 %6721  ;;  %v6720_v59 = vpop.xlane.xlu0 %6719  ;;  %v3669_v18 = vmax.f32 %v17689_v45, -1e+30 }
 0x4ed   : > { %v8194_v17 = vsel %vm7559_vm3, %v8193_v42, %v8189_v20  ;;  %v7088_v22 = vmax.f32 %v3665_v41, %v6722_v54  ;;  %v7087_v8 = vmax.f32 %v3664_v9, %v6720_v59  ;;  %v17690_v20 = vld [vmem:[#allocation183_spill] sm:$0xff]  ;;  %v17691_v59 = vld [vmem:[#allocation272_spill] sm:$0xff] }
 0x4ee   : > { %v16265_v32 = vsel %vm7566_vm0, %v8198_v35, %v8194_v17  ;;  %v3668_v2 = vmax.f32 %v17690_v20, -1e+30  ;;  %v6403_v35 = vsel %vm6169_vm4, %v15850_v13, -1e+30  ;;  %v6388_v17 = vsel %vm6169_vm4, %v17691_v59, -1e+30 }
 0x4ef   : > { %v8207_v34 = vrot.slane %v7088_v22, %v15067_v37  ;;  %v8203_v38 = vrot.slane %v7087_v8, %v15071_v26  ;;  %6855 = vmax.xlane.f32.xlu1 %v6387_v55  ;;  %6913 = vmax.xlane.f32.xlu0 %v6416_v62  ;;  %v17692_v8 = vld [vmem:[#allocation122_spill] sm:$0xff]  ;;  %v17693_v55 = vld [vmem:[#allocation187_spill] sm:$0xff] }
 0x4f0   : > { %v6726_v61 = vpop.xlane.xlu1 %6725  ;;  %v6724_v25 = vpop.xlane.xlu0 %6723  ;;  %v3671_v12 = vmax.f32 %v17692_v8, -1e+30  ;;  %v3670_v62 = vmax.f32 %v17693_v55, -1e+30  ;;  %v17698_v59 = vld [vmem:[#allocation195_spill] sm:$0xff] }
 0x4f1   : > { %v8208_v33 = vsel %vm7468_vm6, %v8207_v34, %v8203_v38  ;;  %v7090_v63 = vmax.f32 %v3667_v40, %v6726_v61  ;;  %v7089_v6 = vmax.f32 %v3666_v3, %v6724_v25  ;;  %v17694_v61 = vld [vmem:[#allocation275_spill] sm:$0xff]  ;;  %v6405_v55 = vsel %vm6169_vm4, %v15894_v50, -1e+30 }
 0x4f2   : > { %v6389_v25 = vsel %vm6169_vm4, %v17694_v61, -1e+30 }
 0x4f3   : > { %v8217_v41 = vrot.slane %v7090_v63, %v15089_v53  ;;  %v8212_v43 = vrot.slane %v7089_v6, %v15095_v51  ;;  %6915 = vmax.xlane.f32.xlu1 %v6417_v60  ;;  %6885 = vmax.xlane.f32.xlu0 %v6402_v27  ;;  %v6418_v60 = vsel %vm6169_vm4, %v15832_v0, -1e+30  ;;  %v17695_v63 = vld [vmem:[#allocation190_spill] sm:$0xff]  ;;  %v17696_v27 = vld [vmem:[#allocation191_spill] sm:$0xff] }
 0x4f4   : > { %v6730_v9 = vpop.xlane.xlu1 %6729  ;;  %v6728_v36 = vpop.xlane.xlu0 %6727  ;;  %v3673_v6 = vmax.f32 %v17695_v63, -1e+30  ;;  %v3672_v45 = vmax.f32 %v17696_v27, -1e+30 }
 0x4f5   : > { %v8213_v42 = vsel %vm7475_vm7, %v8212_v43, %v8208_v33  ;;  %v7092_v54 = vmax.f32 %v3669_v18, %v6730_v9  ;;  %v7091_v7 = vmax.f32 %v3668_v2, %v6728_v36  ;;  %v6419_v43 = vsel %vm6169_vm4, %v15878_v49, -1e+30 }
 0x4f6   : > { %v8218_v22 = vsel %vm7482_vm8, %v8217_v41, %v8213_v42 }
 0x4f7   : > { %v8227_v4 = vrot.slane %v7092_v54, %v15112_v11  ;;  %v8222_v40 = vrot.slane %v7091_v7, %v15119_v19  ;;  %6887 = vmax.xlane.f32.xlu1 %v6403_v35  ;;  %6857 = vmax.xlane.f32.xlu0 %v6388_v17  ;;  %v6404_v35 = vsel %vm6169_vm4, %v15847_v23, -1e+30  ;;  %v17697_v54 = vld [vmem:[#allocation194_spill] sm:$0xff]  ;;  %v3674_v17 = vmax.f32 %v17698_v59, -1e+30 }
 0x4f8   : > { %v6734_v13 = vpop.xlane.xlu1 %6733  ;;  %v6732_v57 = vpop.xlane.xlu0 %6731  ;;  %v3675_v7 = vmax.f32 %v17697_v54, -1e+30 }
 0x4f9   : > { %v8223_v3 = vsel %vm7489_vm9, %v8222_v40, %v8218_v22  ;;  %v7094_v34 = vmax.f32 %v3671_v12, %v6734_v13  ;;  %v7093_v38 = vmax.f32 %v3670_v62, %v6732_v57  ;;  %v17699_v40 = vld [vmem:[#allocation274_spill] sm:$0xff] }
 0x4fa   : > { %v8228_v33 = vsel %vm7496_vm10, %v8227_v4, %v8223_v3  ;;  %v6390_v13 = vsel %vm6169_vm4, %v17699_v40, -1e+30  ;;  %v17701_v3 = vld [vmem:[#allocation198_spill] sm:$0xff] }
 0x4fb   : > { %v8237_v18 = vrot.slane %v7094_v34, %v15135_v1  ;;  %v8232_v20 = vrot.slane %v7093_v38, %v15138_v30  ;;  %6859 = vmax.xlane.f32.xlu1 %v6389_v25  ;;  %6917 = vmax.xlane.f32.xlu0 %v6418_v60  ;;  %v3677_v34 = vmax.f32 %v17701_v3, -1e+30  ;;  %v17702_v38 = vld [vmem:[#allocation199_spill] sm:$0xff] }
 0x4fc   : > { %v6738_v2 = vpop.xlane.xlu1 %6737  ;;  %v6736_v41 = vpop.xlane.xlu0 %6735  ;;  %v3676_v61 = vmax.f32 %v17702_v38, -1e+30 }
 0x4fd   : > { %v8233_v0 = vsel %vm7503_vm11, %v8232_v20, %v8228_v33  ;;  %v7096_v9 = vmax.f32 %v3673_v6, %v6738_v2  ;;  %v7095_v36 = vmax.f32 %v3672_v45, %v6736_v41  ;;  %v17703_v45 = vld [vmem:[#allocation276_spill] sm:$0xff]  ;;  %v6420_v20 = vsel %vm6169_vm4, %v15875_v46, -1e+30  ;;  %v17705_v41 = vld [vmem:[#allocation202_spill] sm:$0xff] }
 0x4fe   : > { %v8238_v42 = vsel %vm7510_vm12, %v8237_v18, %v8233_v0  ;;  %v6391_v18 = vsel %vm6170_vm5, %v17703_v45, -1e+30  ;;  %v17706_v0 = vld [vmem:[#allocation203_spill] sm:$0xff] }
 0x4ff   : > { %v8247_v22 = vrot.slane %v7096_v9, %v15160_v16  ;;  %v8242_v8 = vrot.slane %v7095_v36, %v15166_v28  ;;  %6919 = vmax.xlane.f32.xlu1 %v6419_v43  ;;  %6889 = vmax.xlane.f32.xlu0 %v6404_v35  ;;  %v3679_v43 = vmax.f32 %v17705_v41, -1e+30  ;;  %v3678_v9 = vmax.f32 %v17706_v0, -1e+30  ;;  %v17713_v41 = vld [vmem:[#allocation106_spill] sm:$0xff]  ;;  %v17714_v0 = vld [vmem:[#allocation148_spill] sm:$0xff] }
 0x500   : > { %v6742_v49 = vpop.xlane.xlu1 %6741  ;;  %v6740_v12 = vpop.xlane.xlu0 %6739 }
 0x501   : > { %v8243_v23 = vsel %vm7517_vm13, %v8242_v8, %v8238_v42  ;;  %v7098_v62 = vmax.f32 %v3675_v7, %v6742_v49  ;;  %v7097_v4 = vmax.f32 %v3674_v17, %v6740_v12  ;;  %v6421_v7 = vsel %vm6169_vm4, %v15922_v58, -1e+30  ;;  %v17707_v49 = vld [vmem:[#allocation205_spill] sm:$0xff] }
 0x502   : > { %v8248_v57 = vsel %vm17700_vm14, %v8247_v22, %v8243_v23  ;;  %vm17704_vm14 = vcmask 786112   ;;  %v6406_v22 = vsel %vm6169_vm4, %v15891_v47, -1e+30  ;;  %v3681_v12 = vmax.f32 %v17707_v49, -1e+30  ;;  %v17716_v49 = vld [vmem:[#allocation152_spill] sm:$0xff] }
 0x503   : > { %v8257_v25 = vrot.slane %v7098_v62, %v15187_v15  ;;  %v8252_v60 = vrot.slane %v7097_v4, %v15193_v48  ;;  %6891 = vmax.xlane.f32.xlu1 %v6405_v55  ;;  %6861 = vmax.xlane.f32.xlu0 %v6390_v13  ;;  %v17708_v55 = vld [vmem:[#allocation206_spill] sm:$0xff]  ;;  %v6407_v13 = vsel %vm6170_vm5, %v15939_v39, -1e+30 }
 0x504   : > { %v6746_v50 = vpop.xlane.xlu1 %6745  ;;  %v6744_v33 = vpop.xlane.xlu0 %6743  ;;  %v3680_v23 = vmax.f32 %v17708_v55, -1e+30  ;;  %v17717_v55 = vld [vmem:[#allocation153_spill] sm:$0xff] }
 0x505   : > { %v8253_v63 = vsel %vm7531_vm15, %v8252_v60, %v8248_v57  ;;  %v7100_v6 = vmax.f32 %v3677_v34, %v6746_v50  ;;  %v7099_v27 = vmax.f32 %v3676_v61, %v6744_v33  ;;  %v17709_v34 = vld [vmem:[#allocation144_spill] sm:$0xff]  ;;  %v17710_v61 = vld [vmem:[#allocation102_spill] sm:$0xff] }
 0x506   : > { %v8258_v2 = vsel %vm17704_vm14, %v8257_v25, %v8253_v63  ;;  %v3683_v38 = vmax.f32 %v17709_v34, -1e+30  ;;  %v6392_v25 = vsel %vm6170_vm5, %v17710_v61, -1e+30  ;;  %v17711_v50 = vld [vmem:[#allocation212_spill] sm:$0xff]  ;;  %vm17712_vm14 = vcmask 1041409  }
 0x507   : > { %v8267_v36 = vrot.slane %v7100_v6, %v15212_v44  ;;  %v8262_v35 = vrot.slane %v7099_v27, %v15218_v56  ;;  %6863 = vmax.xlane.f32.xlu1 %v6391_v18  ;;  %6921 = vmax.xlane.f32.xlu0 %v6420_v20  ;;  %v3682_v33 = vmax.f32 %v17711_v50, -1e+30 }
 0x508   : > { %v6750_v42 = vpop.xlane.xlu1 %6749  ;;  %v6748_v54 = vpop.xlane.xlu0 %6747 }
 0x509   : > { %v8263_v46 = vsel %vm7545_vm1, %v8262_v35, %v8258_v2  ;;  %v7102_v59 = vmax.f32 %v3679_v43, %v6750_v42  ;;  %v7101_v17 = vmax.f32 %v3678_v9, %v6748_v54  ;;  %v6393_v43 = vsel %vm6170_vm5, %v17713_v41, -1e+30 }
 0x50a   : > { %v8268_v8 = vsel %vm7552_vm2, %v8267_v36, %v8263_v46  ;;  %v3685_v9 = vmax.f32 %v17714_v0, -1e+30  ;;  %v17715_v36 = vld [vmem:[#allocation149_spill] sm:$0xff] }
 0x50b   : > { %v8277_v62 = vrot.slane %v7102_v59, %v15236_v52  ;;  %v8272_v4 = vrot.slane %v7101_v17, %v15241_v14  ;;  %6923 = vmax.xlane.f32.xlu1 %v6421_v7  ;;  %6893 = vmax.xlane.f32.xlu0 %v6406_v22  ;;  %v3684_v35 = vmax.f32 %v17715_v36, -1e+30  ;;  %v6423_v59 = vsel %vm6170_vm5, %v15969_v10, -1e+30 }
 0x50c   : > { %v6754_v58 = vpop.xlane.xlu1 %6753  ;;  %v6752_v40 = vpop.xlane.xlu0 %6751  ;;  %v6408_v22 = vsel %vm6170_vm5, %v15935_v29, -1e+30 }
 0x50d   : > { %v8273_v47 = vsel %vm7559_vm3, %v8272_v4, %v8268_v8  ;;  %v7104_v57 = vmax.f32 %v3681_v12, %v6754_v58  ;;  %v7103_v3 = vmax.f32 %v3680_v23, %v6752_v40  ;;  %v3687_v12 = vmax.f32 %v17716_v49, -1e+30 }
 0x50e   : > { %v8278_v60 = vsel %vm7566_vm0, %v8277_v62, %v8273_v47  ;;  %v3686_v23 = vmax.f32 %v17717_v55, -1e+30  ;;  %v6409_v40 = vsel %vm6170_vm5, %v15985_v24, -1e+30 }
 0x50f   : > { %v16366_v63 = vsel %vm17712_vm14, %v8278_v60, %v16265_v32  ;;  %v8286_v39 = vrot.slane %v7104_v57, %v15067_v37  ;;  %v8282_v6 = vrot.slane %v7103_v3, %v15071_v26  ;;  %6895 = vmax.xlane.f32.xlu1 %v6407_v13  ;;  %6865 = vmax.xlane.f32.xlu0 %v6392_v25  ;;  %v6422_v32 = vsel %vm6169_vm4, %v15919_v31, -1e+30  ;;  %v17718_v57 = vld [vmem:[#allocation277_spill] sm:$0xff]  ;;  %v17720_v25 = vld [vmem:[#allocation158_spill] sm:$0xff] }
 0x510   : > { %v6758_v27 = vpop.xlane.xlu1 %6757  ;;  %v6756_v45 = vpop.xlane.xlu0 %6755  ;;  %v6394_v3 = vsel %vm6170_vm5, %v17718_v57, -1e+30  ;;  %v3688_v60 = vmax.f32 %v17720_v25, -1e+30  ;;  %vm17727_vm4 = vcmask 654912   ;;  %vm17732_vm14 = vcmask 786112  }
 0x511   : > { %v8287_v18 = vsel %vm7468_vm6, %v8286_v39, %v8282_v6  ;;  %v7106_v20 = vmax.f32 %v3683_v38, %v6758_v27  ;;  %v7105_v2 = vmax.f32 %v3682_v33, %v6756_v45  ;;  %v17719_v38 = vld [vmem:[#allocation157_spill] sm:$0xff]  ;;  %v17733_v25 = vld [vmem:[#allocation232_spill] sm:$0xff] }
 0x512   : > { %v3689_v61 = vmax.f32 %v17719_v38, -1e+30 }
 0x513   : > { %v8296_v42 = vrot.slane %v7106_v20, %v15089_v53  ;;  %v8291_v54 = vrot.slane %v7105_v2, %v15095_v51  ;;  %6867 = vmax.xlane.f32.xlu1 %v6393_v43  ;;  %6925 = vmax.xlane.f32.xlu0 %v6422_v32  ;;  %v17722_v2 = vld [vmem:[#allocation80_spill] sm:$0xff]  ;;  %v17723_v32 = vld [vmem:[#allocation161_spill] sm:$0xff] }
 0x514   : > { %v6762_v7 = vpop.xlane.xlu1 %6761  ;;  %v6760_v46 = vpop.xlane.xlu0 %6759  ;;  %v6424_v41 = vsel %vm6170_vm5, %v17722_v2, -1e+30  ;;  %v3691_v0 = vmax.f32 %v17723_v32, -1e+30  ;;  %v17735_v2 = vld [vmem:[#allocation79_spill] sm:$0xff] }
 0x515   : > { %v8292_v17 = vsel %vm7475_vm7, %v8291_v54, %v8287_v18  ;;  %v7108_v21 = vmax.f32 %v3685_v9, %v6762_v7  ;;  %v7107_v31 = vmax.f32 %v3684_v35, %v6760_v46  ;;  %v17721_v18 = vld [vmem:[#allocation278_spill] sm:$0xff]  ;;  %v17725_v46 = vld [vmem:[#allocation17_spill] sm:$0xff] }
 0x516   : > { %v8297_v8 = vsel %vm7482_vm8, %v8296_v42, %v8292_v17  ;;  %v6395_v20 = vsel %vm6170_vm5, %v17721_v18, -1e+30  ;;  %v17724_v9 = vld [vmem:[#allocation162_spill] sm:$0xff] }
 0x517   : > { %v8306_v62 = vrot.slane %v7108_v21, %v15112_v11  ;;  %v8301_v4 = vrot.slane %v7107_v31, %v15119_v19  ;;  %6927 = vmax.xlane.f32.xlu1 %v6423_v59  ;;  %6897 = vmax.xlane.f32.xlu0 %v6408_v22  ;;  %v3690_v36 = vmax.f32 %v17724_v9, -1e+30  ;;  %v6425_v59 = vsel %vm6170_vm5, %v17725_v46, -1e+30  ;;  %v17726_v22 = vld [vmem:[#allocation280_spill] sm:$0xff]  ;;  %v17737_v9 = vld [vmem:[#allocation209_spill] sm:$0xff] }
 0x518   : > { %v6766_v10 = vpop.xlane.xlu1 %6765  ;;  %v6764_v58 = vpop.xlane.xlu0 %6763 }
 0x519   : > { %v8302_v29 = vsel %vm7489_vm9, %v8301_v4, %v8297_v8  ;;  %v7110_v13 = vmax.f32 %v3687_v12, %v6766_v10  ;;  %v7109_v47 = vmax.f32 %v3686_v23, %v6764_v58  ;;  %v6410_v8 = vsel %vm6170_vm5, %v17726_v22, -1e+30  ;;  %v17728_v12 = vld [vmem:[#allocation165_spill] sm:$0xff]  ;;  %v17729_v23 = vld [vmem:[#allocation230_spill] sm:$0xff] }
 0x51a   : > { %v8307_v34 = vsel %vm7496_vm10, %v8306_v62, %v8302_v29  ;;  %v3693_v55 = vmax.f32 %v17728_v12, -1e+30  ;;  %v3692_v62 = vmax.f32 %v17729_v23, -1e+30  ;;  %v17730_v29 = vld [vmem:[#allocation282_spill] sm:$0xff] }
 0x51b   : > { %v8316_v50 = vrot.slane %v7110_v13, %v15135_v1  ;;  %v8311_v33 = vrot.slane %v7109_v47, %v15138_v30  ;;  %6899 = vmax.xlane.f32.xlu1 %v6409_v40  ;;  %6869 = vmax.xlane.f32.xlu0 %v6394_v3  ;;  %v6411_v13 = vsel %vm6170_vm5, %v17730_v29, -1e+30 }
 0x51c   : > { %v6770_v24 = vpop.xlane.xlu1 %6769  ;;  %v6768_v39 = vpop.xlane.xlu0 %6767 }
 0x51d   : > { %v8312_v6 = vsel %vm7503_vm11, %v8311_v33, %v8307_v34  ;;  %v7112_v27 = vmax.f32 %v3689_v61, %v6770_v24  ;;  %v7111_v45 = vmax.f32 %v3688_v60, %v6768_v39  ;;  %v17731_v34 = vld [vmem:[#allocation107_spill] sm:$0xff]  ;;  %v3695_v60 = vmax.f32 %v17733_v25, -1e+30 }
 0x51e   : > { %v8317_v43 = vsel %vm7510_vm12, %v8316_v50, %v8312_v6  ;;  %v6396_v38 = vsel %vm6170_vm5, %v17731_v34, -1e+30  ;;  %v17734_v50 = vld [vmem:[#allocation233_spill] sm:$0xff]  ;;  %v17745_v25 = vld [vmem:[#allocation279_spill] sm:$0xff] }
 0x51f   : > { %v8326_v35 = vrot.slane %v7112_v27, %v15160_v16  ;;  %v8321_v42 = vrot.slane %v7111_v45, %v15166_v28  ;;  %6871 = vmax.xlane.f32.xlu1 %v6395_v20  ;;  %6929 = vmax.xlane.f32.xlu0 %v6424_v41  ;;  %v3694_v33 = vmax.f32 %v17734_v50, -1e+30  ;;  %v6397_v41 = vsel %vm6170_vm5, %v17735_v2, -1e+30 }
 0x520   : > { %v6774_v54 = vpop.xlane.xlu1 %6773  ;;  %v6772_v7 = vpop.xlane.xlu0 %6771 }
 0x521   : > { %v8322_v17 = vsel %vm7517_vm13, %v8321_v42, %v8317_v43  ;;  %v7114_v21 = vmax.f32 %v3691_v0, %v6774_v54  ;;  %v7113_v31 = vmax.f32 %v3690_v36, %v6772_v7  ;;  %v17736_v43 = vld [vmem:[#allocation281_spill] sm:$0xff]  ;;  %v3697_v36 = vmax.f32 %v17737_v9, -1e+30 }
 0x522   : > { %v8327_v49 = vsel %vm17727_vm4, %v8326_v35, %v8322_v17  ;;  %v6426_v32 = vsel %vm6170_vm5, %v17736_v43, -1e+30  ;;  %v17738_v35 = vld [vmem:[#allocation210_spill] sm:$0xff]  ;;  %v17739_v17 = vld [vmem:[#allocation21_spill] sm:$0xff]  ;;  %vm17743_vm4 = vcmask 1042434  }
 0x523   : > { %v8336_v4 = vrot.slane %v7114_v21, %v15187_v15  ;;  %v8331_v10 = vrot.slane %v7113_v31, %v15193_v48  ;;  %6931 = vmax.xlane.f32.xlu1 %v6425_v59  ;;  %6901 = vmax.xlane.f32.xlu0 %v6410_v8  ;;  %v3696_v42 = vmax.f32 %v17738_v35, -1e+30  ;;  %v6427_v21 = vsel %vm6170_vm5, %v17739_v17, -1e+30 }
 0x524   : > { %v6778_v58 = vpop.xlane.xlu1 %6777  ;;  %v6776_v40 = vpop.xlane.xlu0 %6775 }
 0x525   : > { %v8332_v47 = vsel %vm7531_vm15, %v8331_v10, %v8327_v49  ;;  %v7116_v57 = vmax.f32 %v3693_v55, %v6778_v58  ;;  %v7115_v3 = vmax.f32 %v3692_v62, %v6776_v40  ;;  %v17740_v49 = vld [vmem:[#allocation146_spill] sm:$0xff]  ;;  %v17741_v55 = vld [vmem:[#allocation19_spill] sm:$0xff] }
 0x526   : > { %v8337_v61 = vsel %vm17732_vm14, %v8336_v4, %v8332_v47  ;;  %v3699_v12 = vmax.f32 %v17740_v49, -1e+30  ;;  %v6412_v23 = vsel %vm6170_vm5, %v17741_v55, -1e+30  ;;  %v17742_v4 = vld [vmem:[#allocation214_spill] sm:$0xff] }
 0x527   : > { %v8346_v24 = vrot.slane %v7116_v57, %v15212_v44  ;;  %v8341_v39 = vrot.slane %v7115_v3, %v15218_v56  ;;  %6903 = vmax.xlane.f32.xlu1 %v6411_v13  ;;  %6873 = vmax.xlane.f32.xlu0 %v6396_v38  ;;  %v3698_v10 = vmax.f32 %v17742_v4, -1e+30  ;;  %v17744_v57 = vld [vmem:[#allocation284_spill] sm:$0xff] }
 0x528   : > { %v6782_v6 = vpop.xlane.xlu1 %6781  ;;  %v6780_v27 = vpop.xlane.xlu0 %6779  ;;  %v6413_v3 = vsel %vm6170_vm5, %v17744_v57, -1e+30 }
 0x529   : > { %v8342_v45 = vsel %vm7545_vm1, %v8341_v39, %v8337_v61  ;;  %v7118_v18 = vmax.f32 %v3695_v60, %v6782_v6  ;;  %v7117_v20 = vmax.f32 %v3694_v33, %v6780_v27  ;;  %v17746_v60 = vld [vmem:[#allocation22_spill] sm:$0xff]  ;;  %v17747_v33 = vld [vmem:[#allocation151_spill] sm:$0xff] }
 0x52a   : > { %v8347_v0 = vsel %vm7552_vm2, %v8346_v24, %v8342_v45  ;;  %v3701_v50 = vmax.f32 %v17746_v60, -1e+30  ;;  %v3700_v24 = vmax.f32 %v17747_v33, -1e+30 }
 0x52b   : > { %v8356_v54 = vrot.slane %v7118_v18, %v15236_v52  ;;  %v8351_v7 = vrot.slane %v7117_v20, %v15241_v14  ;;  %6875 = vmax.xlane.f32.xlu1 %v6397_v41  ;;  %6933 = vmax.xlane.f32.xlu0 %v6426_v32  ;;  %v17748_v41 = vld [vmem:[#allocation283_spill] sm:$0xff] }
 0x52c   : > { %v6786_v46 = vpop.xlane.xlu1 %6785  ;;  %v6784_v59 = vpop.xlane.xlu0 %6783  ;;  %v6428_v43 = vsel %vm6170_vm5, %v17748_v41, -1e+30  ;;  %v17749_v32 = vld [vmem:[#allocation23_spill] sm:$0xff] }
 0x52d   : > { %v8352_v31 = vsel %vm7559_vm3, %v8351_v7, %v8347_v0  ;;  %v7120_v22 = vmax.f32 %v3697_v36, %v6786_v46  ;;  %v7119_v8 = vmax.f32 %v3696_v42, %v6784_v59  ;;  %v6414_v0 = vsel %vm6170_vm5, %v17749_v32, -1e+30  ;;  %v17750_v36 = vld [vmem:[#allocation26_spill] sm:$0xff]  ;;  %v17751_v42 = vld [vmem:[#allocation155_spill] sm:$0xff]  ;;  %v17752_v59 = vld [vmem:[#allocation285_spill] sm:$0xff] }
 0x52e   : > { %v8357_v62 = vsel %vm7566_vm0, %v8356_v54, %v8352_v31  ;;  %v3703_v35 = vmax.f32 %v17750_v36, -1e+30  ;;  %v3702_v54 = vmax.f32 %v17751_v42, -1e+30  ;;  %v6430_v17 = vsel %vm6170_vm5, %v17752_v59, -1e+30 }
 0x52f   : > { %v16465_v58 = vsel %vm17743_vm4, %v8357_v62, %v16366_v63  ;;  %v8365_v40 = vrot.slane %v7120_v22, %v15067_v37  ;;  %v8361_v29 = vrot.slane %v7119_v8, %v15071_v26  ;;  %6935 = vmax.xlane.f32.xlu1 %v6427_v21  ;;  %6905 = vmax.xlane.f32.xlu0 %v6412_v23  ;;  %v6398_v63 = vsel %vm6170_vm5, %v17745_v25, -1e+30  ;;  %v17753_v21 = vld [vmem:[#allocation25_spill] sm:$0xff]  ;;  %v17754_v62 = vld [vmem:[#allocation30_spill] sm:$0xff]  ;;  %v17760_v41 = vld [vmem:[#allocation231_spill] sm:$0xff] }
 0x530   : > { %v6790_v13 = vpop.xlane.xlu1 %6789  ;;  %v6788_v47 = vpop.xlane.xlu0 %6787  ;;  %v6429_v31 = vsel %vm6170_vm5, %v17753_v21, -1e+30  ;;  %v3705_v4 = vmax.f32 %v17754_v62, -1e+30  ;;  %vm17758_vm5 = vcmask 654912   ;;  %vm17767_vm4 = vcmask 1043459  }
 0x531   : > { %v8366_v34 = vsel %vm7468_vm6, %v8365_v40, %v8361_v29  ;;  %v7122_v38 = vmax.f32 %v3699_v12, %v6790_v13  ;;  %v7121_v61 = vmax.f32 %v3698_v10, %v6788_v47  ;;  %v17755_v10 = vld [vmem:[#allocation160_spill] sm:$0xff] }
 0x532   : > { %v3704_v40 = vmax.f32 %v17755_v10, -1e+30 }
 0x533   : > { %v8375_v39 = vrot.slane %v7122_v38, %v15089_v53  ;;  %v8370_v6 = vrot.slane %v7121_v61, %v15095_v51  ;;  %6907 = vmax.xlane.f32.xlu1 %v6413_v3  ;;  %6877 = vmax.xlane.f32.xlu0 %v6398_v63  ;;  %v17756_v61 = vld [vmem:[#allocation34_spill] sm:$0xff]  ;;  %v17757_v63 = vld [vmem:[#allocation164_spill] sm:$0xff] }
 0x534   : > { %v6794_v27 = vpop.xlane.xlu1 %6793  ;;  %v6792_v45 = vpop.xlane.xlu0 %6791  ;;  %v3707_v25 = vmax.f32 %v17756_v61, -1e+30  ;;  %v3706_v60 = vmax.f32 %v17757_v63, -1e+30  ;;  %v17765_v61 = vld [vmem:[#allocation240_spill] sm:$0xff] }
 0x535   : > { %v8371_v18 = vsel %vm7475_vm7, %v8370_v6, %v8366_v34  ;;  %v7124_v20 = vmax.f32 %v3701_v50, %v6794_v27  ;;  %v7123_v2 = vmax.f32 %v3700_v24, %v6792_v45 }
 0x536   : > { %v8376_v9 = vsel %vm7482_vm8, %v8375_v39, %v8371_v18 }
 0x537   : > { %v8385_v7 = vrot.slane %v7124_v20, %v15112_v11  ;;  %v8380_v46 = vrot.slane %v7123_v2, %v15119_v19  ;;  %6909 = vmax.xlane.f32.xlu1 %v6414_v0  ;;  %6937 = vmax.xlane.f32.xlu0 %v6428_v43  ;;  %v17759_v20 = vld [vmem:[#allocation167_spill] sm:$0xff]  ;;  %v3708_v43 = vmax.f32 %v17760_v41, -1e+30 }
 0x538   : > { %v6798_v22 = vpop.xlane.xlu1 %6797  ;;  %v6796_v8 = vpop.xlane.xlu0 %6795  ;;  %v3709_v2 = vmax.f32 %v17759_v20, -1e+30 }
 0x539   : > { %v8381_v49 = vsel %vm7489_vm9, %v8380_v46, %v8376_v9  ;;  %v7126_v12 = vmax.f32 %v3703_v35, %v6798_v22  ;;  %v7125_v55 = vmax.f32 %v3702_v54, %v6796_v8  ;;  %v17761_v46 = vld [vmem:[#allocation234_spill] sm:$0xff] }
 0x53a   : > { %v8386_v23 = vsel %vm7496_vm10, %v8385_v7, %v8381_v49  ;;  %v3711_v59 = vmax.f32 %v17761_v46, -1e+30  ;;  %v17770_v46 = vld [vmem:[#allocation184_spill] sm:$0xff] }
 0x53b   : > { %v8395_v29 = vrot.slane %v7126_v12, %v15135_v1  ;;  %v8390_v13 = vrot.slane %v7125_v55, %v15138_v30  ;;  %6941 = vmax.xlane.f32.xlu1 %v6430_v17  ;;  %6939 = vmax.xlane.f32.xlu0 %v6429_v31  ;;  %v17762_v17 = vld [vmem:[#allocation235_spill] sm:$0xff] }
 0x53c   : > { %v6802_v5 = vpop.xlane.xlu1 %6801  ;;  %v6800_v47 = vpop.xlane.xlu0 %6799  ;;  %v3710_v21 = vmax.f32 %v17762_v17, -1e+30  ;;  %v17771_v17 = vld [vmem:[#allocation247_spill] sm:$0xff] }
 0x53d   : > { %v8391_v57 = vsel %vm7503_vm11, %v8390_v13, %v8386_v23  ;;  %v7128_v3 = vmax.f32 %v3705_v4, %v6802_v5  ;;  %v7127_v34 = vmax.f32 %v3704_v40, %v6800_v47  ;;  %v17763_v4 = vld [vmem:[#allocation236_spill] sm:$0xff]  ;;  %v17764_v40 = vld [vmem:[#allocation237_spill] sm:$0xff] }
 0x53e   : > { %v8396_v38 = vsel %vm7510_vm12, %v8395_v29, %v8391_v57  ;;  %v3713_v10 = vmax.f32 %v17763_v4, -1e+30  ;;  %v3712_v29 = vmax.f32 %v17764_v40, -1e+30  ;;  %v17772_v4 = vld [vmem:[#allocation250_spill] sm:$0xff]  ;;  %v17773_v40 = vld [vmem:[#allocation251_spill] sm:$0xff] }
 0x53f   : > { %v8405_v50 = vrot.slane %v7128_v3, %v15160_v16  ;;  %v8400_v33 = vrot.slane %v7127_v34, %v15166_v28 }
 0x540   : > { %v6806_v24 = vpop.xlane.xlu1 %6805  ;;  %v6804_v39 = vpop.xlane.xlu0 %6803 }
 0x541   : > { %v8401_v6 = vsel %vm7517_vm13, %v8400_v33, %v8396_v38  ;;  %v7130_v27 = vmax.f32 %v3707_v25, %v6806_v24  ;;  %v7129_v45 = vmax.f32 %v3706_v60, %v6804_v39  ;;  %v3715_v25 = vmax.f32 %v17765_v61, -1e+30  ;;  %v17766_v60 = vld [vmem:[#allocation241_spill] sm:$0xff] }
 0x542   : > { %v8406_v18 = vsel %vm17758_vm5, %v8405_v50, %v8401_v6  ;;  %v3714_v50 = vmax.f32 %v17766_v60, -1e+30  ;;  %v17775_v60 = vld [vmem:[#allocation255_spill] sm:$0xff] }
 0x543   : > { %v8415_v32 = vrot.slane %v7130_v27, %v15187_v15  ;;  %v8410_v0 = vrot.slane %v7129_v45, %v15193_v48 }
 0x544   : > { %v6810_v9 = vpop.xlane.xlu1 %6809  ;;  %v6808_v36 = vpop.xlane.xlu0 %6807 }
 0x545   : > { %v8411_v35 = vsel %vm7531_vm15, %v8410_v0, %v8406_v18  ;;  %v7132_v42 = vmax.f32 %v3709_v2, %v6810_v9  ;;  %v7131_v54 = vmax.f32 %v3708_v43, %v6808_v36  ;;  %v17768_v2 = vld [vmem:[#allocation179_spill] sm:$0xff]  ;;  %v17769_v43 = vld [vmem:[#allocation244_spill] sm:$0xff] }
 0x546   : > { %v8416_v7 = vsel %vm17732_vm14, %v8415_v32, %v8411_v35  ;;  %v3717_v41 = vmax.f32 %v17768_v2, -1e+30  ;;  %v3716_v32 = vmax.f32 %v17769_v43, -1e+30 }
 0x547   : > { %v8425_v31 = vrot.slane %v7132_v42, %v15212_v44  ;;  %v8420_v22 = vrot.slane %v7131_v54, %v15218_v56 }
 0x548   : > { %v6814_v8 = vpop.xlane.xlu1 %6813  ;;  %v6812_v49 = vpop.xlane.xlu0 %6811 }
 0x549   : > { %v8421_v12 = vsel %vm7545_vm1, %v8420_v22, %v8416_v7  ;;  %v7134_v55 = vmax.f32 %v3711_v59, %v6814_v8  ;;  %v7133_v23 = vmax.f32 %v3710_v21, %v6812_v49  ;;  %v3719_v59 = vmax.f32 %v17770_v46, -1e+30 }
 0x54a   : > { %v8426_v62 = vsel %vm7552_vm2, %v8425_v31, %v8421_v12  ;;  %v3718_v21 = vmax.f32 %v17771_v17, -1e+30 }
 0x54b   : > { %v8435_v13 = vrot.slane %v7134_v55, %v15236_v52  ;;  %v8430_v5 = vrot.slane %v7133_v23, %v15241_v14 }
 0x54c   : > { %v6818_v47 = vpop.xlane.xlu1 %6817  ;;  %v6816_v57 = vpop.xlane.xlu0 %6815 }
 0x54d   : > { %v8431_v3 = vsel %vm7559_vm3, %v8430_v5, %v8426_v62  ;;  %v7136_v34 = vmax.f32 %v3713_v10, %v6818_v47  ;;  %v7135_v38 = vmax.f32 %v3712_v29, %v6816_v57  ;;  %v3721_v10 = vmax.f32 %v17772_v4, -1e+30 }
 0x54e   : > { %v8436_v63 = vsel %vm7566_vm0, %v8435_v13, %v8431_v3  ;;  %v3720_v29 = vmax.f32 %v17773_v40, -1e+30 }
 0x54f   : > { %v16534_v33 = vsel %vm17767_vm4, %v8436_v63, %v16465_v58  ;;  %v8444_v24 = vrot.slane %v7136_v34, %v15067_v37  ;;  %v8440_v39 = vrot.slane %v7135_v38, %v15071_v26  ;;  %vm17784_vm4 = vcmask 1044484  }
 0x550   : > { %v6822_v6 = vpop.xlane.xlu1 %6821  ;;  %v6820_v27 = vpop.xlane.xlu0 %6819 }
 0x551   : > { %v8445_v45 = vsel %vm7468_vm6, %v8444_v24, %v8440_v39  ;;  %v7138_v18 = vmax.f32 %v3715_v25, %v6822_v6  ;;  %v7137_v20 = vmax.f32 %v3714_v50, %v6820_v27  ;;  %v17774_v25 = vld [vmem:[#allocation254_spill] sm:$0xff]  ;;  %v3722_v50 = vmax.f32 %v17775_v60, -1e+30 }
 0x552   : > { %v3723_v63 = vmax.f32 %v17774_v25, -1e+30  ;;  %v17782_v25 = vld [vmem:[#allocation243_spill] sm:$0xff] }
 0x553   : > { %v8454_v0 = vrot.slane %v7138_v18, %v15089_v53  ;;  %v8449_v9 = vrot.slane %v7137_v20, %v15095_v51 }
 0x554   : > { %v6826_v58 = vpop.xlane.xlu1 %6825  ;;  %v6824_v36 = vpop.xlane.xlu0 %6823 }
 0x555   : > { %v8450_v35 = vsel %vm7475_vm7, %v8449_v9, %v8445_v45  ;;  %v7140_v42 = vmax.f32 %v3717_v41, %v6826_v58  ;;  %v7139_v54 = vmax.f32 %v3716_v32, %v6824_v36  ;;  %v17776_v41 = vld [vmem:[#allocation259_spill] sm:$0xff]  ;;  %v17777_v32 = vld [vmem:[#allocation260_spill] sm:$0xff] }
 0x556   : > { %v8455_v7 = vsel %vm7482_vm8, %v8454_v0, %v8450_v35  ;;  %v3725_v43 = vmax.f32 %v17776_v41, -1e+30  ;;  %v3724_v0 = vmax.f32 %v17777_v32, -1e+30 }
 0x557   : > { %v8464_v31 = vrot.slane %v7140_v42, %v15112_v11  ;;  %v8459_v22 = vrot.slane %v7139_v54, %v15119_v19 }
 0x558   : > { %v6830_v8 = vpop.xlane.xlu1 %6829  ;;  %v6828_v49 = vpop.xlane.xlu0 %6827 }
 0x559   : > { %v8460_v12 = vsel %vm7489_vm9, %v8459_v22, %v8455_v7  ;;  %v7142_v55 = vmax.f32 %v3719_v59, %v6830_v8  ;;  %v7141_v23 = vmax.f32 %v3718_v21, %v6828_v49  ;;  %v17778_v59 = vld [vmem:[#allocation261_spill] sm:$0xff]  ;;  %v17779_v21 = vld [vmem:[#allocation262_spill] sm:$0xff] }
 0x55a   : > { %v8465_v62 = vsel %vm7496_vm10, %v8464_v31, %v8460_v12  ;;  %v3727_v17 = vmax.f32 %v17778_v59, -1e+30  ;;  %v3726_v31 = vmax.f32 %v17779_v21, -1e+30  ;;  %v17788_v59 = vld [vmem:[#allocation224_spill] sm:$0xff] }
 0x55b   : > { %v8474_v13 = vrot.slane %v7142_v55, %v15135_v1  ;;  %v8469_v5 = vrot.slane %v7141_v23, %v15138_v30 }
 0x55c   : > { %v6834_v47 = vpop.xlane.xlu1 %6833  ;;  %v6832_v57 = vpop.xlane.xlu0 %6831 }
 0x55d   : > { %v8470_v3 = vsel %vm7503_vm11, %v8469_v5, %v8465_v62  ;;  %v7144_v34 = vmax.f32 %v3721_v10, %v6834_v47  ;;  %v7143_v38 = vmax.f32 %v3720_v29, %v6832_v57  ;;  %v17780_v10 = vld [vmem:[#allocation238_spill] sm:$0xff]  ;;  %v17781_v29 = vld [vmem:[#allocation239_spill] sm:$0xff] }
 0x55e   : > { %v8475_v61 = vsel %vm7510_vm12, %v8474_v13, %v8470_v3  ;;  %v3729_v40 = vmax.f32 %v17780_v10, -1e+30  ;;  %v3728_v13 = vmax.f32 %v17781_v29, -1e+30 }
 0x55f   : > { %v8484_v24 = vrot.slane %v7144_v34, %v15160_v16  ;;  %v8479_v39 = vrot.slane %v7143_v38, %v15166_v28 }
 0x560   : > { %v6838_v6 = vpop.xlane.xlu1 %6837  ;;  %v6836_v27 = vpop.xlane.xlu0 %6835 }
 0x561   : > { %v8480_v45 = vsel %vm7517_vm13, %v8479_v39, %v8475_v61  ;;  %v7146_v18 = vmax.f32 %v3723_v63, %v6838_v6  ;;  %v7145_v20 = vmax.f32 %v3722_v50, %v6836_v27  ;;  %v3730_v63 = vmax.f32 %v17782_v25, -1e+30  ;;  %v17783_v50 = vld [vmem:[#allocation267_spill] sm:$0xff]  ;;  %v17792_v25 = vld [vmem:[#allocation226_spill] sm:$0xff] }
 0x562   : > { %v8485_v2 = vsel %vm17758_vm5, %v8484_v24, %v8480_v45  ;;  %v3744_v24 = vmax.f32 %v17783_v50, -1e+30 }
 0x563   : > { %v8494_v9 = vrot.slane %v7146_v18, %v15187_v15  ;;  %v8489_v58 = vrot.slane %v7145_v20, %v15193_v48 }
 0x564   : > { %v6842_v36 = vpop.xlane.xlu1 %6841  ;;  %v6840_v35 = vpop.xlane.xlu0 %6839 }
 0x565   : > { %v8490_v42 = vsel %vm7531_vm15, %v8489_v58, %v8485_v2  ;;  %v7148_v54 = vmax.f32 %v3725_v43, %v6842_v36  ;;  %v7147_v7 = vmax.f32 %v3724_v0, %v6840_v35  ;;  %v17785_v43 = vld [vmem:[#allocation242_spill] sm:$0xff]  ;;  %v17786_v0 = vld [vmem:[#allocation204_spill] sm:$0xff] }
 0x566   : > { %v8495_v46 = vsel %vm17732_vm14, %v8494_v9, %v8490_v42  ;;  %v3731_v32 = vmax.f32 %v17785_v43, -1e+30  ;;  %v3745_v9 = vmax.f32 %v17786_v0, -1e+30 }
 0x567   : > { %v8504_v22 = vrot.slane %v7148_v54, %v15212_v44  ;;  %v8499_v8 = vrot.slane %v7147_v7, %v15218_v56 }
 0x568   : > { %v6846_v49 = vpop.xlane.xlu1 %6845  ;;  %v6844_v12 = vpop.xlane.xlu0 %6843 }
 0x569   : > { %v8500_v55 = vsel %vm7545_vm1, %v8499_v8, %v8495_v46  ;;  %v7150_v23 = vmax.f32 %v3727_v17, %v6846_v49  ;;  %v7149_v62 = vmax.f32 %v3726_v31, %v6844_v12  ;;  %v3760_v17 = vmax.f32 %v17788_v59, -1e+30 }
 0x56a   : > { %v8505_v4 = vsel %vm7552_vm2, %v8504_v22, %v8500_v55 }
 0x56b   : > { %v8514_v5 = vrot.slane %v7150_v23, %v15236_v52  ;;  %v8509_v47 = vrot.slane %v7149_v62, %v15241_v14 }
 0x56c   : > { %v6850_v57 = vpop.xlane.xlu1 %6849  ;;  %v6848_v3 = vpop.xlane.xlu0 %6847 }
 0x56d   : > { %v8510_v34 = vsel %vm7559_vm3, %v8509_v47, %v8505_v4  ;;  %v7152_v38 = vmax.f32 %v3729_v40, %v6850_v57  ;;  %v7151_v61 = vmax.f32 %v3728_v13, %v6848_v3  ;;  %v17789_v4 = vld [vmem:[#allocation246_spill] sm:$0xff]  ;;  %v17790_v40 = vld [vmem:[#allocation223_spill] sm:$0xff] }
 0x56e   : > { %v8515_v60 = vsel %vm7566_vm0, %v8514_v5, %v8510_v34  ;;  %v3732_v10 = vmax.f32 %v17789_v4, -1e+30  ;;  %v3761_v29 = vmax.f32 %v17790_v40, -1e+30 }
 0x56f   : > { %v8523_v39 = vrot.slane %v7152_v38, %v15067_v37  ;;  %v8519_v6 = vrot.slane %v7151_v61, %v15071_v26  ;;  %v16587_v27 = vsel %vm17784_vm4, %v8515_v60, %v16534_v33  ;;  %v17787_v33 = vld [vmem:[#allocation208_spill] sm:$0xff]  ;;  %v17791_v38 = vld [vmem:[#allocation207_spill] sm:$0xff] }
 0x570   : > { %v6880_v45 = vpop.xlane.xlu1 %6879  ;;  %v6852_v18 = vpop.xlane.xlu0 %6851  ;;  %v3746_v46 = vmax.f32 %v17787_v33, -1e+30  ;;  %v3747_v61 = vmax.f32 %v17791_v38, -1e+30 }
 0x571   : > { %v8524_v20 = vsel %vm7468_vm6, %v8523_v39, %v8519_v6  ;;  %v7167_v2 = vmax.f32 %v3744_v24, %v6880_v45  ;;  %v7153_v41 = vmax.f32 %v3730_v63, %v6852_v18  ;;  %v3762_v63 = vmax.f32 %v17792_v25, -1e+30 }
 0x573   : > { %v8528_v58 = vrot.slane %v7153_v41, %v15095_v51  ;;  %v8598_v21 = vrot.slane %v7167_v2, %v15071_v26  ;;  %v17793_v41 = vld [vmem:[#allocation245_spill] sm:$0xff] }
 0x574   : > { %v6854_v36 = vpop.xlane.xlu1 %6853  ;;  %v6882_v35 = vpop.xlane.xlu0 %6881  ;;  %v3733_v43 = vmax.f32 %v17793_v41, -1e+30 }
 0x575   : > { %v8529_v42 = vsel %vm7475_vm7, %v8528_v58, %v8524_v20  ;;  %v7154_v54 = vmax.f32 %v3731_v32, %v6854_v36  ;;  %v7168_v7 = vmax.f32 %v3745_v9, %v6882_v35  ;;  %v17794_v32 = vld [vmem:[#allocation269_spill] sm:$0xff] }
 0x576   : > { %v3748_v0 = vmax.f32 %v17794_v32, -1e+30 }
 0x577   : > { %v8533_v31 = vrot.slane %v7154_v54, %v15089_v53  ;;  %v8602_v22 = vrot.slane %v7168_v7, %v15067_v37  ;;  %v17795_v7 = vld [vmem:[#allocation249_spill] sm:$0xff] }
 0x578   : > { %v6912_v8 = vpop.xlane.xlu1 %6911  ;;  %v6884_v49 = vpop.xlane.xlu0 %6883  ;;  %v3734_v33 = vmax.f32 %v17795_v7, -1e+30 }
 0x579   : > { %v8534_v12 = vsel %vm7482_vm8, %v8533_v31, %v8529_v42  ;;  %v8603_v55 = vsel %vm7468_vm6, %v8602_v22, %v8598_v21  ;;  %v7183_v23 = vmax.f32 %v3760_v17, %v6912_v8  ;;  %v7169_v62 = vmax.f32 %v3746_v46, %v6884_v49  ;;  %v17796_v46 = vld [vmem:[#allocation225_spill] sm:$0xff] }
 0x57a   : > { %v3763_v59 = vmax.f32 %v17796_v46, -1e+30 }
 0x57b   : > { %v8607_v13 = vrot.slane %v7169_v62, %v15095_v51  ;;  %v8677_v60 = vrot.slane %v7183_v23, %v15071_v26  ;;  %v17798_v62 = vld [vmem:[#allocation228_spill] sm:$0xff] }
 0x57c   : > { %v6856_v5 = vpop.xlane.xlu1 %6855  ;;  %v6914_v47 = vpop.xlane.xlu0 %6913  ;;  %v3764_v4 = vmax.f32 %v17798_v62, -1e+30 }
 0x57d   : > { %v8608_v57 = vsel %vm7475_vm7, %v8607_v13, %v8603_v55  ;;  %v7155_v3 = vmax.f32 %v3732_v10, %v6856_v5  ;;  %v7184_v34 = vmax.f32 %v3761_v29, %v6914_v47  ;;  %v17797_v55 = vld [vmem:[#allocation211_spill] sm:$0xff] }
 0x57e   : > { %v3749_v23 = vmax.f32 %v17797_v55, -1e+30 }
 0x57f   : > { %v8538_v50 = vrot.slane %v7155_v3, %v15119_v19  ;;  %v8681_v24 = vrot.slane %v7184_v34, %v15067_v37  ;;  %v17799_v34 = vld [vmem:[#allocation248_spill] sm:$0xff] }
 0x580   : > { %v6916_v39 = vpop.xlane.xlu1 %6915  ;;  %v6886_v6 = vpop.xlane.xlu0 %6885  ;;  %v3735_v38 = vmax.f32 %v17799_v34, -1e+30 }
 0x581   : > { %v8539_v45 = vsel %vm7489_vm9, %v8538_v50, %v8534_v12  ;;  %v8682_v18 = vsel %vm7468_vm6, %v8681_v24, %v8677_v60  ;;  %v7185_v20 = vmax.f32 %v3762_v63, %v6916_v39  ;;  %v7170_v2 = vmax.f32 %v3747_v61, %v6886_v6  ;;  %v17800_v61 = vld [vmem:[#allocation271_spill] sm:$0xff]  ;;  %vm17809_vm6 = vmmov %vm17758_vm5 }
 0x582   : > { %v3750_v25 = vmax.f32 %v17800_v61, -1e+30 }
 0x583   : > { %v8686_v9 = vrot.slane %v7185_v20, %v15095_v51  ;;  %v8612_v26 = vrot.slane %v7170_v2, %v15089_v53  ;;  %v17802_v2 = vld [vmem:[#allocation227_spill] sm:$0xff] }
 0x584   : > { %v6888_v58 = vpop.xlane.xlu1 %6887  ;;  %v6858_v36 = vpop.xlane.xlu0 %6857  ;;  %v3765_v41 = vmax.f32 %v17802_v2, -1e+30 }
 0x585   : > { %v8687_v37 = vsel %vm7475_vm7, %v8686_v9, %v8682_v18  ;;  %v8613_v35 = vsel %vm7482_vm8, %v8612_v26, %v8608_v57  ;;  %v7171_v42 = vmax.f32 %v3748_v0, %v6888_v58  ;;  %v7156_v54 = vmax.f32 %v3733_v43, %v6858_v36  ;;  %v17801_v18 = vld [vmem:[#allocation253_spill] sm:$0xff]  ;;  %vm17814_vm7 = vmmov %vm17758_vm5 }
 0x586   : > { %v3736_v20 = vmax.f32 %v17801_v18, -1e+30 }
 0x587   : > { %v8617_v17 = vrot.slane %v7171_v42, %v15119_v19  ;;  %v8543_v21 = vrot.slane %v7156_v54, %v15112_v11  ;;  %v17804_v42 = vld [vmem:[#allocation287_spill] sm:$0xff] }
 0x588   : > { %v6860_v31 = vpop.xlane.xlu1 %6859  ;;  %v6918_v51 = vpop.xlane.xlu0 %6917  ;;  %v3766_v54 = vmax.f32 %v17804_v42, -1e+30 }
 0x589   : > { %v8618_v22 = vsel %vm7489_vm9, %v8617_v17, %v8613_v35  ;;  %v8544_v8 = vsel %vm7496_vm10, %v8543_v21, %v8539_v45  ;;  %v7157_v49 = vmax.f32 %v3734_v33, %v6860_v31  ;;  %v7186_v12 = vmax.f32 %v3763_v59, %v6918_v51 }
 0x58b   : > { %v8548_v10 = vrot.slane %v7157_v49, %v15138_v30  ;;  %v8691_v40 = vrot.slane %v7186_v12, %v15089_v53  ;;  %v17806_v49 = vld [vmem:[#allocation216_spill] sm:$0xff] }
 0x58c   : > { %v6920_v29 = vpop.xlane.xlu1 %6919  ;;  %v6890_v13 = vpop.xlane.xlu0 %6889  ;;  %v3752_v12 = vmax.f32 %v17806_v49, -1e+30 }
 0x58d   : > { %v8549_v5 = vsel %vm7503_vm11, %v8548_v10, %v8544_v8  ;;  %v8692_v47 = vsel %vm7482_vm8, %v8691_v40, %v8687_v37  ;;  %v7187_v57 = vmax.f32 %v3764_v4, %v6920_v29  ;;  %v7172_v3 = vmax.f32 %v3749_v23, %v6890_v13  ;;  %v17803_v37 = vld [vmem:[#allocation213_spill] sm:$0xff]  ;;  %v17807_v13 = vld [vmem:[#allocation258_spill] sm:$0xff]  ;;  %vm17817_vm8 = vmmov %vm17732_vm14 }
 0x58e   : > { %v3751_v35 = vmax.f32 %v17803_v37, -1e+30 }
 0x58f   : > { %v8696_v63 = vrot.slane %v7187_v57, %v15119_v19  ;;  %v8622_v60 = vrot.slane %v7172_v3, %v15112_v11 }
 0x590   : > { %v6892_v50 = vpop.xlane.xlu1 %6891  ;;  %v6862_v24 = vpop.xlane.xlu0 %6861 }
 0x591   : > { %v8697_v53 = vsel %vm7489_vm9, %v8696_v63, %v8692_v47  ;;  %v8623_v39 = vsel %vm7496_vm10, %v8622_v60, %v8618_v22  ;;  %v7173_v6 = vmax.f32 %v3750_v25, %v6892_v50  ;;  %v7158_v45 = vmax.f32 %v3735_v38, %v6862_v24  ;;  %v17805_v22 = vld [vmem:[#allocation252_spill] sm:$0xff]  ;;  %v17810_v50 = vld [vmem:[#allocation215_spill] sm:$0xff]  ;;  %vm17820_vm9 = vmmov %vm17758_vm5 }
 0x592   : > { %v3737_v8 = vmax.f32 %v17805_v22, -1e+30  ;;  %v17808_v47 = vld [vmem:[#allocation16_spill] sm:$0xff]  ;;  %v3753_v24 = vmax.f32 %v17810_v50, -1e+30 }
 0x593   : > { %v8627_v43 = vrot.slane %v7173_v6, %v15138_v30  ;;  %v8553_v32 = vrot.slane %v7158_v45, %v15135_v1  ;;  %v3767_v57 = vmax.f32 %v17808_v47, -1e+30 }
 0x594   : > { %v6864_v0 = vpop.xlane.xlu1 %6863  ;;  %v6922_v19 = vpop.xlane.xlu0 %6921 }
 0x595   : > { %v8628_v9 = vsel %vm7503_vm11, %v8627_v43, %v8623_v39  ;;  %v8554_v26 = vsel %vm7510_vm12, %v8553_v32, %v8549_v5  ;;  %v7159_v58 = vmax.f32 %v3736_v20, %v6864_v0  ;;  %v7188_v36 = vmax.f32 %v3765_v41, %v6922_v19  ;;  %v17812_v0 = vld [vmem:[#allocation257_spill] sm:$0xff] }
 0x596   : > { %v3738_v5 = vmax.f32 %v17807_v13, -1e+30  ;;  %v3739_v19 = vmax.f32 %v17812_v0, -1e+30 }
 0x597   : > { %v8558_v7 = vrot.slane %v7159_v58, %v15166_v28  ;;  %v8701_v33 = vrot.slane %v7188_v36, %v15112_v11 }
 0x598   : > { %v6924_v46 = vpop.xlane.xlu1 %6923  ;;  %v6894_v59 = vpop.xlane.xlu0 %6893 }
 0x599   : > { %v8559_v17 = vsel %vm7517_vm13, %v8558_v7, %v8554_v26  ;;  %v8702_v21 = vsel %vm7496_vm10, %v8701_v33, %v8697_v53  ;;  %v7189_v31 = vmax.f32 %v3766_v54, %v6924_v46  ;;  %v7174_v51 = vmax.f32 %v3751_v35, %v6894_v59  ;;  %v17811_v53 = vld [vmem:[#allocation38_spill] sm:$0xff]  ;;  %v17815_v33 = vld [vmem:[#allocation264_spill] sm:$0xff]  ;;  %v17816_v59 = vld [vmem:[#allocation229_spill] sm:$0xff] }
 0x59a   : > { %v3768_v39 = vmax.f32 %v17811_v53, -1e+30  ;;  %v3740_v46 = vmax.f32 %v17815_v33, -1e+30  ;;  %vm17823_vm10 = vmmov %vm17817_vm8 }
 0x59b   : > { %v8706_v55 = vrot.slane %v7189_v31, %v15138_v30  ;;  %v8632_v23 = vrot.slane %v7174_v51, %v15135_v1 }
 0x59c   : > { %v6896_v62 = vpop.xlane.xlu1 %6895  ;;  %v6866_v4 = vpop.xlane.xlu0 %6865 }
 0x59d   : > { %v8707_v11 = vsel %vm7503_vm11, %v8706_v55, %v8702_v21  ;;  %v8633_v10 = vsel %vm7510_vm12, %v8632_v23, %v8628_v9  ;;  %v7175_v40 = vmax.f32 %v3752_v12, %v6896_v62  ;;  %v7160_v29 = vmax.f32 %v3737_v8, %v6866_v4  ;;  %v17813_v9 = vld [vmem:[#allocation218_spill] sm:$0xff]  ;;  %v17818_v55 = vld [vmem:[#allocation217_spill] sm:$0xff]  ;;  %vm17828_vm11 = vmmov %vm17817_vm8 }
 0x59e   : > { %v3754_v26 = vmax.f32 %v17813_v9, -1e+30  ;;  %v3755_v23 = vmax.f32 %v17818_v55, -1e+30  ;;  %v17819_v62 = vld [vmem:[#allocation293_spill] sm:$0xff]  ;;  %v17826_v9 = vld [vmem:[#allocation219_spill] sm:$0xff] }
 0x59f   : > { %v8637_v3 = vrot.slane %v7175_v40, %v15166_v28  ;;  %v8563_v34 = vrot.slane %v7160_v29, %v15160_v16  ;;  %v3770_v4 = vmax.f32 %v17819_v62, -1e+30 }
 0x5a0   : > { %v6868_v38 = vpop.xlane.xlu1 %6867  ;;  %v6926_v30 = vpop.xlane.xlu0 %6925 }
 0x5a1   : > { %v8638_v61 = vsel %vm7517_vm13, %v8637_v3, %v8633_v10  ;;  %v8564_v25 = vsel %vm17809_vm6, %v8563_v34, %v8559_v17  ;;  %v7161_v63 = vmax.f32 %v3738_v5, %v6868_v38  ;;  %v7190_v60 = vmax.f32 %v3767_v57, %v6926_v30  ;;  %v17821_v3 = vld [vmem:[#allocation263_spill] sm:$0xff]  ;;  %v17822_v38 = vld [vmem:[#allocation220_spill] sm:$0xff] }
 0x5a2   : > { %v3769_v17 = vmax.f32 %v17816_v59, -1e+30  ;;  %v3741_v34 = vmax.f32 %v17821_v3, -1e+30  ;;  %v3756_v30 = vmax.f32 %v17822_v38, -1e+30 }
 0x5a3   : > { %v8568_v6 = vrot.slane %v7161_v63, %v15193_v48  ;;  %v8711_v45 = vrot.slane %v7190_v60, %v15135_v1  ;;  %v17829_v59 = vld [vmem:[#allocation265_spill] sm:$0xff] }
 0x5a4   : > { %v6928_v18 = vpop.xlane.xlu1 %6927  ;;  %v6898_v20 = vpop.xlane.xlu0 %6897 }
 0x5a5   : > { %v8569_v2 = vsel %vm7531_vm15, %v8568_v6, %v8564_v25  ;;  %v8712_v41 = vsel %vm7510_vm12, %v8711_v45, %v8707_v11  ;;  %v7191_v43 = vmax.f32 %v3768_v39, %v6928_v18  ;;  %v7176_v32 = vmax.f32 %v3753_v24, %v6898_v20  ;;  %v17824_v39 = vld [vmem:[#allocation266_spill] sm:$0xff]  ;;  %v17825_v45 = vld [vmem:[#allocation292_spill] sm:$0xff] }
 0x5a6   : > { %v3742_v6 = vmax.f32 %v17824_v39, -1e+30  ;;  %v3771_v18 = vmax.f32 %v17825_v45, -1e+30  ;;  %vm17833_vm12 = vcmask 1045509  }
 0x5a7   : > { %v8716_v58 = vrot.slane %v7191_v43, %v15166_v28  ;;  %v8642_v36 = vrot.slane %v7176_v32, %v15160_v16 }
 0x5a8   : > { %v6900_v37 = vpop.xlane.xlu1 %6899  ;;  %v6870_v35 = vpop.xlane.xlu0 %6869 }
 0x5a9   : > { %v8717_v1 = vsel %vm7517_vm13, %v8716_v58, %v8712_v41  ;;  %v8643_v42 = vsel %vm17814_vm7, %v8642_v36, %v8638_v61  ;;  %v7177_v54 = vmax.f32 %v3754_v26, %v6900_v37  ;;  %v7162_v7 = vmax.f32 %v3739_v19, %v6870_v35  ;;  %v17827_v58 = vld [vmem:[#allocation296_spill] sm:$0xff] }
 0x5aa   : > { %v3757_v26 = vmax.f32 %v17826_v9, -1e+30  ;;  %v3772_v36 = vmax.f32 %v17827_v58, -1e+30  ;;  %vm17836_vm13 = vcmask 1046534  }
 0x5ab   : > { %v8647_v21 = vrot.slane %v7177_v54, %v15193_v48  ;;  %v8573_v31 = vrot.slane %v7162_v7, %v15187_v15 }
 0x5ac   : > { %v6872_v51 = vpop.xlane.xlu1 %6871  ;;  %v6930_v28 = vpop.xlane.xlu0 %6929 }
 0x5ad   : > { %v8648_v22 = vsel %vm7531_vm15, %v8647_v21, %v8643_v42  ;;  %v8574_v8 = vsel %vm17817_vm8, %v8573_v31, %v8569_v2  ;;  %v7163_v49 = vmax.f32 %v3740_v46, %v6872_v51  ;;  %v7192_v12 = vmax.f32 %v3769_v17, %v6930_v28  ;;  %v17830_v21 = vld [vmem:[#allocation222_spill] sm:$0xff] }
 0x5ae   : > { %v3743_v17 = vmax.f32 %v17829_v59, -1e+30  ;;  %v3758_v31 = vmax.f32 %v17830_v21, -1e+30 }
 0x5af   : > { %v8578_v11 = vrot.slane %v7163_v49, %v15218_v56  ;;  %v8721_v10 = vrot.slane %v7192_v12, %v15160_v16 }
 0x5b0   : > { %v6932_v40 = vpop.xlane.xlu1 %6931  ;;  %v6902_v29 = vpop.xlane.xlu0 %6901 }
 0x5b1   : > { %v8579_v13 = vsel %vm7545_vm1, %v8578_v11, %v8574_v8  ;;  %v8722_v5 = vsel %vm17820_vm9, %v8721_v10, %v8717_v1  ;;  %v7193_v47 = vmax.f32 %v3770_v4, %v6932_v40  ;;  %v7178_v57 = vmax.f32 %v3755_v23, %v6902_v29  ;;  %v17831_v23 = vld [vmem:[#allocation221_spill] sm:$0xff]  ;;  %v17832_v4 = vld [vmem:[#allocation168_spill] sm:$0xff] }
 0x5b2   : > { %v3759_v62 = vmax.f32 %v17831_v23, -1e+30  ;;  %v3773_v11 = vmax.f32 %v17832_v4, -1e+30 }
 0x5b3   : > { %v8726_v61 = vrot.slane %v7193_v47, %v15193_v48  ;;  %v8652_v25 = vrot.slane %v7178_v57, %v15187_v15 }
 0x5b4   : > { %v6904_v63 = vpop.xlane.xlu1 %6903  ;;  %v6874_v60 = vpop.xlane.xlu0 %6873 }
 0x5b5   : > { %v8727_v16 = vsel %vm7531_vm15, %v8726_v61, %v8722_v5  ;;  %v8653_v50 = vsel %vm17823_vm10, %v8652_v25, %v8648_v22  ;;  %v7179_v24 = vmax.f32 %v3756_v30, %v6904_v63  ;;  %v7164_v53 = vmax.f32 %v3741_v34, %v6874_v60  ;;  %v17834_v34 = vld [vmem:[#allocation299_spill] sm:$0xff]  ;;  %v17835_v30 = vld [vmem:[#allocation300_spill] sm:$0xff] }
 0x5b6   : > { %v3775_v38 = vmax.f32 %v17834_v34, -1e+30  ;;  %v3774_v61 = vmax.f32 %v17835_v30, -1e+30  ;;  %vm17837_vm15 = vcmask 1047559  }
 0x5b7   : > { %v8657_v20 = vrot.slane %v7179_v24, %v15218_v56  ;;  %v8583_v2 = vrot.slane %v7164_v53, %v15212_v44 }
 0x5b8   : > { %v6876_v41 = vpop.xlane.xlu1 %6875  ;;  %v6934_v48 = vpop.xlane.xlu0 %6933 }
 0x5b9   : > { %v8658_v43 = vsel %vm7545_vm1, %v8657_v20, %v8653_v50  ;;  %v8584_v32 = vsel %vm7552_vm2, %v8583_v2, %v8579_v13  ;;  %v7165_v0 = vmax.f32 %v3742_v6, %v6876_v41  ;;  %v7194_v19 = vmax.f32 %v3771_v18, %v6934_v48  ;;  %v7200_v18 = vld [vmem:[%s11371_s12 + $0x8] sm:$0xff]  ;;  %v8784_v48 = vld [vmem:[%s11371_s12] sm:$0xff] (!%p9478_p7) }
 0x5bb   : > { %v8588_v37 = vrot.slane %v7165_v0, %v15241_v14  ;;  %v8731_v35 = vrot.slane %v7194_v19, %v15187_v15 }
 0x5bc   : > { %v6936_v1 = vpop.xlane.xlu1 %6935  ;;  %v6906_v42 = vpop.xlane.xlu0 %6905 }
 0x5bd   : > { %v8589_v54 = vsel %vm7559_vm3, %v8588_v37, %v8584_v32  ;;  %v8732_v7 = vsel %vm17828_vm11, %v8731_v35, %v8727_v16  ;;  %v7195_v33 = vmax.f32 %v3772_v36, %v6936_v1  ;;  %v7180_v46 = vmax.f32 %v3757_v26, %v6906_v42 }
 0x5bf   : > { %v8736_v51 = vrot.slane %v7195_v33, %v15218_v56  ;;  %v8662_v28 = vrot.slane %v7180_v46, %v15212_v44 }
 0x5c0   : > { %v6908_v22 = vpop.xlane.xlu1 %6907  ;;  %v6878_v8 = vpop.xlane.xlu0 %6877 }
 0x5c1   : > { %v8737_v15 = vsel %vm7545_vm1, %v8736_v51, %v8732_v7  ;;  %v8663_v49 = vsel %vm7552_vm2, %v8662_v28, %v8658_v43  ;;  %v7181_v12 = vmax.f32 %v3758_v31, %v6908_v22  ;;  %v7166_v55 = vmax.f32 %v3743_v17, %v6878_v8 }
 0x5c3   : > { %v8667_v10 = vrot.slane %v7181_v12, %v15241_v14  ;;  %v8593_v40 = vrot.slane %v7166_v55, %v15236_v52 }
 0x5c4   : > { %v6910_v29 = vpop.xlane.xlu1 %6909  ;;  %v6938_v56 = vpop.xlane.xlu0 %6937 }
 0x5c5   : > { %v8668_v13 = vsel %vm7559_vm3, %v8667_v10, %v8663_v49  ;;  %v8594_v5 = vsel %vm7566_vm0, %v8593_v40, %v8589_v54  ;;  %v7182_v47 = vmax.f32 %v3759_v62, %v6910_v29  ;;  %v7196_v57 = vmax.f32 %v3773_v11, %v6938_v56 }
 0x5c6   : > { %v8771_v3 = vsel %vm17833_vm12, %v8594_v5, %v16587_v27 }
 0x5c7   : > { %v8672_v25 = vrot.slane %v7182_v47, %v15236_v52  ;;  %v8741_v63 = vrot.slane %v7196_v57, %v15212_v44 }
 0x5c8   : > { %v6942_v60 = vpop.xlane.xlu1 %6941  ;;  %v6940_v16 = vpop.xlane.xlu0 %6939 }
 0x5c9   : > { %v8673_v50 = vsel %vm7566_vm0, %v8672_v25, %v8668_v13  ;;  %v8742_v24 = vsel %vm7552_vm2, %v8741_v63, %v8737_v15  ;;  %v7198_v53 = vmax.f32 %v3775_v38, %v6942_v60  ;;  %v7197_v39 = vmax.f32 %v3774_v61, %v6940_v16 }
 0x5ca   : > { %v8772_v6 = vsel %vm17836_vm13, %v8673_v50, %v8771_v3 }
 0x5cb   : > { %v8751_v27 = vrot.slane %v7198_v53, %v15236_v52  ;;  %v8746_v45 = vrot.slane %v7197_v39, %v15241_v14  ;;  %v9479_v52 = vld [vmem:[%s16824_s3] ss:$0 sm:$0xff] (!%p9478_p7) }
 0x5cc   : > { %8783 = sbr.rel (%p9478_p7) target bundleno = 1501 (0x5dd), region = 48  ;;  %v8793_v43 = vadd.f32 (!%p9478_p7), %v9479_v52, %v8784_v48 }
 0x5cd   : > { %v8747_v20 = vsel %vm7559_vm3, %v8746_v45, %v8742_v24 }
 0x5ce   : > { %v8752_v2 = vsel %vm7566_vm0, %v8751_v27, %v8747_v20  ;;  %8795 = vst [vmem:[%s11371_s12] sm:$0xff] (!%p9478_p7), %v8793_v43 }
 0x5cf   : > { %v8773_v44 = vsel %vm17837_vm15, %v8752_v2, %v8772_v6 }
 0x5d0   : > { %v8777_v41 = vmax.f32 %v7200_v18, %v8773_v44 }
 0x5d2   : > { %8779 = vst [vmem:[%s11371_s12 + $0x8] sm:$0xff] %v8777_v41 }
 0x5d9   : > { %v8785_v14 = vld [vmem:[%s11371_s12 + $0x8] sm:$0xff] }
 0x5da   : > { %v8794_v32 = vadd.f32 %v9479_v52, %v8785_v14 }
 0x5dc   : > { %8796 = vst [vmem:[%s11371_s12 + $0x8] sm:$0xff] %v8794_v32 }
 0x5dd PF: > { %s16740_s8 = scalar_lea.sflag [#allocation4], %s257_s23  ;;  %8804 = sbr.rel (!%p11281_p12) target bundleno = 1536 (0x600), region = 52 }
 0x5de   : > { %s9481_s21 = sshll.u32 (%p11281_p12), %s11153_s22, 1 }
 0x5df   : > { %s8806_s26 = ssub.s32 (%p11281_p12), 3, %s9481_s21 }
 0x5e0   : > { %p8807_p4 = scmp.lt.s32.totalorder (%p11281_p12), %s8806_s26, 2 }
 0x5e4   : > { %s17865_s26 = smov (!%p8807_p4, %s8806_s26), 2 }
 0x5e5   : > { %s16745_s27 = sshll.u32 %s17865_s26, 7 }
 0x5e6   : > { %s8811_s18 = ssub.s32 256, %s16745_s27 }
 0x5e7   : > { %8812 = vsyncadd %s16740_s8, %s8811_s18  ;;  %p9483_p5 = scmp.ne.s32.totalorder %s16745_s27, 0  ;;  %s9489_s23 = sshll.u32 %s11153_s22, 8 }
 0x5e8   : > { %s16754_s20 = scalar_lea.hbm %s16825_s4, %s9489_s23  ;;  %s8817_s28 = sshll.u32 %s11371_s12, 4  ;;  %s16757_s28 = int_to_ptr.vmem [resolvable:$true] %s8817_s28 }
 0x5e9   : > { %s11043_s30 = scalar_lea.vmem %s16757_s28, %s16745_s27  ;;  %s11171_s7 = smov [#allocation5]  }
 0x5ea   : > { %p11044_p12 = scmp.ne.s32.totalorder %s16757_s28, %s11043_s30  ;;  %s11047_s29 = sshll.u32 %s11171_s7, 4  ;;  %s11048_s29 = int_to_ptr.vmem [resolvable:$false] %s11047_s29 }
 0x5eb   : > { %s11049_s22 = scalar_lea.vmem %s11048_s29, 512  ;;  %p11050_p10 = scmp.lt.s32.totalorder %s16757_s28, %s11048_s29 }
 0x5ec   : > { %p11045_p6 = pnand %p11044_p12, %p9483_p5  ;;  %p11051_p11 = scmp.lt.s32.totalorder %s11049_s22, %s11043_s30 }
 0x5ee   : > { %p11046_p8 = pneg %p11045_p6  ;;  %p11052_p13 = por %p11051_p11, %p11050_p10 }
 0x5f0   : > { %p11053_p9 = pnand %p11052_p13, %p11046_p8 }
 0x5f2   : > { %11056 = shalt.err (!%p11053_p9)
}
 0x5f3   : > { %s11057_s12 = scalar_lea.hbm %s16754_s20, %s16745_s27  ;;  %s11061_s6 = scalar_lea.hbm %s16825_s4, 384 }
 0x5f4   : > { %p11058_p0 = scmp.ne.s32.totalorder %s16754_s20, %s11057_s12  ;;  %p11062_p2 = scmp.lt.u32.totalorder %s16754_s20, %s16825_s4 }
 0x5f5   : > { %p11063_p7 = scmp.lt.u32.totalorder %s11061_s6, %s11057_s12  ;;  %p11065_p12 = scmp.lt.u32.totalorder %s11057_s12, %s16754_s20 }
 0x5f6   : > { %p11059_p1 = pnand %p11058_p0, %p9483_p5 }
 0x5f7   : > { %p11064_p4 = por %p11063_p7, %p11062_p2 }
 0x5f8   : > { %p11060_p3 = pneg %p11059_p1 }
 0x5f9   : > { %p11066_p6 = por %p11065_p12, %p11064_p4 }
 0x5fb   : > { %p11067_p8 = pnand %p11066_p6, %p11060_p3 }
 0x5fd   : > { %11070 = shalt.err (!%p11067_p8)
}
 0x5fe   : > { %s11172_s5 = smov 128   ;;  %s11173_s21 = smov 8  }
 0x5ff   : > { %8823 = dma.vmem_to_hbm [thread:$0]  (%p9483_p5), %s16757_s28, %s16745_s27, %s16754_s20, %s16740_s8, %s11172_s5, %s11172_s5, %s11173_s21  }
 0x600 PF: > { %p10873_p10 = scmp.ge.s32.totalorder %s11165_s25, 2  ;;  %s8832_s26 = sand.u32 1, %s11125_s15  }
 0x601   : > { %p17838_p11 = scmp.ne.s32.totalorder %s16861_s14, 0  ;;  %s8833_s18 = scalar_lea.sflag [#allocation4], %s8832_s26 }
 0x603   : > { %p10870_p13 = pnand %p10873_p10, %p17838_p11 }
 0x605   : > { %11120 = dma.done.wait (!%p10870_p13), %s8833_s18, 256  }
 0x606   : > { %11122 = vsyncadd (!%p10870_p13), %s8833_s18, 4294967040  ;;  %s20_s25 = sadd.s32 1, %s11165_s25   ;;  %s17839_s23 = sld [smem:[#allocation8_spill]] }
 0x607   : > { %p17_p9 = scmp.ge.s32.totalorder %s20_s25, 6   ;;  %s17840_s17 = sld [smem:[#allocation14_spill]] }
 0x608   : > { %s17841_s8 = sld [smem:[#allocation9_spill]]  ;;  %s17842_s20 = sld [smem:[#allocation15_spill]] }
 0x609   : > { %s17843_s21 = sld [smem:[#allocation10_spill]]  ;;  %s17844_s22 = sld [smem:[#allocation11_spill]] }
 0x60a   : > { %s17845_s27 = sld [smem:[#allocation12_spill]]  ;;  %s17846_s24 = sld [smem:[#allocation13_spill]] }
 0x60b   : > { %s17847_s15 = smov %s11129_s16  ;;  %s17849_s18 = smov %s11141_s19 }
 0x60c   : > { %s17848_s16 = smov %s17839_s23  ;;  %19 = sbr.rel (!%p17_p9) target bundleno = 9 (0x9), region = 92 }
 0x60e   : > { %s17850_s19 = smov %s17841_s8 }
 0x610   : > { %s17851_s23 = smov %s17845_s27 }
 0x613   :  { %8838 = vsyncpa [#allocation3], 1 }
 0x614   :  { %8840 = vsyncpa [#allocation3 + $0x1], 1 }
 0x615   :  { %8841 = vsyncpa [#allocation4], 1 }
 0x616   :  { %8843 = vsyncpa [#allocation4 + $0x1], 1 }

</bundles_post_ra>
